<compile_context>
chip_gen: v5e
topology: v5e:2x2
jax: 0.10.0
libtpu: 0.0.40
codegen_flags: <defaults>
</compile_context>

<pallas_src>
import jax
import jax.numpy as jnp
from jax import lax
from jax.experimental import pallas as pl
from jax.experimental.pallas import tpu as pltpu

NEG_SLOPE = 0.01                      # PyTorch LeakyReLU default negative_slope
C_IN, H_IN, W_IN = 3, 31, 31          # x.view(-1, 3, 31, 31)
KSZ = 3                               # Conv2d(3, 50, 3)
C_OUT = 50
CO_PAD = 128                          # conv channels zero-padded to 1 lane-vreg
POOL = 6                              # MaxPool2d(6, 6), floor mode
P = (H_IN - KSZ + 1) // POOL          # 4 pooled rows/cols
NTILE = P * P                         # 16 pooling windows per image
TILE_HW = POOL + KSZ - 1              # 8 input rows/cols feeding one window
TILE_K = TILE_HW * TILE_HW * C_IN     # 192 = contraction depth of the conv matmul
WIN = POOL * POOL                     # 36 conv outputs per pooling window
H1, H2 = 50, 50
TB = 8                                # images per grid step


def _resident(shape):
    """Full-array block with a constant index_map -> stays VMEM-resident."""
    nd = len(shape)
    return pl.BlockSpec(shape, lambda b, _nd=nd: (0,) * _nd)


def fused_forward_kernel(x_ref, wc_ref, bc_ref, w1_ref, b1_ref, w2_ref,
                         b2_ref, w3_ref, b3_ref, o_ref):
    """One grid step = TB images: conv -> pool -> MLP entirely in VMEM/vregs.

    x_ref  : (NTILE*TB, TILE_K)   row p*TB+n = 8x8x3 patch feeding pooling
                                  window p of (local) image n, lanes (ri,rj,ci)
    wc_ref : (TILE_K, WIN*CO_PAD) Toeplitz-expanded conv weight; column
                                  (a*6+e)*128+co = filter for offset (a,e)
                                  inside the window, output channel co
    w1_ref : (NTILE, CO_PAD, H1)  first Linear, rows reordered to (window, chan)
    """
    # ---- Conv2d(3,50,3) at every pooled position of every image: ONE matmul.
    acc = jnp.dot(x_ref[...], wc_ref[...],
                  preferred_element_type=jnp.float32)          # (TB*16, 36*128)

    # ---- MaxPool2d(6,6): balanced max tree over 36 vreg-aligned lane slices.
    parts = [acc[:, g * CO_PAD:(g + 1) * CO_PAD] for g in range(WIN)]
    while len(parts) > 1:
        nxt = [jnp.maximum(parts[i], parts[i + 1])
               for i in range(0, len(parts) - 1, 2)]
        if len(parts) % 2:
            nxt.append(parts[-1])
        parts = nxt
    # bias + ReLU once per pooled position (see math note above)
    pooled = jnp.maximum(parts[0] + bc_ref[...], 0.0)          # (TB*16, 128)

    # ---- first Linear folded over the 16 windows: 16 aligned (TB,128)@(128,50)
    h1 = jnp.zeros((TB, H1), jnp.float32)
    for p in range(NTILE):
        h1 = h1 + jnp.dot(pooled[p * TB:(p + 1) * TB, :], w1_ref[p],
                          preferred_element_type=jnp.float32)

    # ---- remaining MLP: ReLU -> Linear -> LeakyReLU -> Linear
    h = jnp.maximum(h1 + b1_ref[...], 0.0)
    h = jnp.dot(h, w2_ref[...], preferred_element_type=jnp.float32) + b2_ref[...]
    h = jnp.where(h > 0, h, NEG_SLOPE * h)
    o_ref[...] = jnp.dot(h, w3_ref[...],
                         preferred_element_type=jnp.float32) + b3_ref[...]


def _prep_inputs(x, n_pad):
    """(N, 2883) -> lane-dense 8x8x3 pooling tiles, rows (block, tile, image)."""
    n = x.shape[0]
    x = jnp.pad(x, ((0, n_pad - n), (0, 0)))
    x_img = x.reshape(n_pad, C_IN, H_IN, W_IN)
    idx = POOL * jnp.arange(P)[:, None] + jnp.arange(TILE_HW)[None, :]  # (4, 8)
    t = x_img[:, :, idx, :]                       # (N, ci, pi, ri, 31)
    t = t[:, :, :, :, idx]                        # (N, ci, pi, ri, pj, rj)
    t = t.transpose(0, 2, 4, 3, 5, 1)             # (N, pi, pj, ri, rj, ci)
    t = t.reshape(n_pad, NTILE, TILE_K)           # lane k = (ri*8 + rj)*3 + ci
    nb = n_pad // TB
    t = t.reshape(nb, TB, NTILE, TILE_K).transpose(0, 2, 1, 3)  # tile-major rows
    return t.reshape(nb * NTILE * TB, TILE_K)


def _prep_weights(params):
    """Toeplitz-expand the conv weight; pad bias/w1 channels to CO_PAD lanes."""
    w4 = params["wconv"].reshape(KSZ, KSZ, C_IN, C_OUT)          # (di,dj,ci,co)
    w4 = jnp.pad(w4, ((0, 0), (0, 0), (0, 0), (0, CO_PAD - C_OUT)))
    a = jnp.arange(POOL)
    r = jnp.arange(TILE_HW)
    d = jnp.arange(KSZ)
    # sel[a, ri, di] = 1 iff ri - a == di   (same selector reused for columns)
    sel = (r[None, :, None] - a[:, None, None] == d[None, None, :]
           ).astype(jnp.float32)                                  # (6, 8, 3)
    # Wbig[ri,rj,ci, a,e,co] = sum_{di,dj} sel[a,ri,di] sel[e,rj,dj] w4[di,dj,ci,co]
    wbig = jnp.einsum('apd,eqf,dfco->pqcaeo', sel, sel, w4)
    wbig = wbig.reshape(TILE_K, WIN * CO_PAD)                     # (192, 4608)

    bc = jnp.pad(params["bconv"], ((0, 0), (0, CO_PAD - C_OUT)))  # (1, 128)

    # PyTorch flatten of (N,50,4,4) is index co*16 + p -> reorder to (p, co, h)
    w1r = params["w1"].reshape(C_OUT, NTILE, H1).transpose(1, 0, 2)
    w1r = jnp.pad(w1r, ((0, 0), (0, CO_PAD - C_OUT), (0, 0)))     # (16, 128, 50)
    return wbig, bc, w1r


def neuralnet_forward(x, params):
    n = x.shape[0]
    out_size = params["w3"].shape[1]
    nb = (n + TB - 1) // TB
    n_pad = nb * TB

    x_r = _prep_inputs(x, n_pad)
    wbig, bc, w1r = _prep_weights(params)

    out = pl.pallas_call(
        fused_forward_kernel,
        out_shape=jax.ShapeDtypeStruct((n_pad, out_size), jnp.float32),
        grid=(nb,),
        in_specs=[
            pl.BlockSpec((NTILE * TB, TILE_K), lambda b: (b, 0)),  # input tiles
            _resident((TILE_K, WIN * CO_PAD)),                     # conv (Toeplitz)
            _resident((1, CO_PAD)),                                # conv bias
            _resident((NTILE, CO_PAD, H1)),                        # w1 (reordered)
            _resident((1, H1)),                                    # b1
            _resident((H1, H2)),                                   # w2
            _resident((1, H2)),                                    # b2
            _resident((H2, out_size)),                             # w3
            _resident((1, out_size)),                              # b3
        ],
        out_specs=pl.BlockSpec((TB, out_size), lambda b: (b, 0)),
        compiler_params=pltpu.CompilerParams(
            dimension_semantics=("parallel",)),
    )(x_r, wbig, bc, w1r, params["b1"], params["w2"], params["b2"],
      params["w3"], params["b3"])
    return out[:n]


# ---------------- Pure-JAX reference (literal op order) for sanity checking ---
def reference_forward(x, params):
    n = x.shape[0]
    x_img = x.reshape(n, C_IN, H_IN, W_IN).transpose(0, 2, 3, 1)
    w_hwio = params["wconv"].reshape(KSZ, KSZ, C_IN, C_OUT)       # (di,dj,ci,co)
    y = lax.conv_general_dilated(x_img, w_hwio, (1, 1), "VALID",
                                 dimension_numbers=("NHWC", "HWIO", "NHWC"))
    y = y + params["bconv"][0]
    y = jnp.where(y > 0, y, NEG_SLOPE * y)                        # LeakyReLU
    y = y[:, :P * POOL, :P * POOL, :].reshape(n, P, POOL, P, POOL, C_OUT)
    y = y.max(axis=(2, 4))                                        # MaxPool(6,6)
    y = jnp.maximum(y, 0.0)                                       # ReLU
    feat = y.transpose(0, 3, 1, 2).reshape(n, C_OUT * P * P)      # C,H,W flatten
    h = jnp.maximum(feat @ params["w1"] + params["b1"], 0.0)
    h = h @ params["w2"] + params["b2"]
    h = jnp.where(h > 0, h, NEG_SLOPE * h)
    return h @ params["w3"] + params["b3"]


if __name__ == "__main__":
    # TODO(synk): step()/SGD optimizer and loss_fn are training-only and not
    # part of forward(); they are intentionally not implemented as kernels.
    key = jax.random.PRNGKey(0)
    k_in, *k_w = jax.random.split(key, 9)
    out_size = 5
    params = {
        "wconv": 0.05 * jax.random.normal(k_w[0], (27, 50), jnp.float32),
        "bconv": 0.05 * jax.random.normal(k_w[1], (1, 50), jnp.float32),
        "w1":    0.05 * jax.random.normal(k_w[2], (800, 50), jnp.float32),
        "b1":    0.05 * jax.random.normal(k_w[3], (1, 50), jnp.float32),
        "w2":    0.05 * jax.random.normal(k_w[4], (50, 50), jnp.float32),
        "b2":    0.05 * jax.random.normal(k_w[5], (1, 50), jnp.float32),
        "w3":    0.05 * jax.random.normal(k_w[6], (50, out_size), jnp.float32),
        "b3":    0.05 * jax.random.normal(k_w[7], (1, out_size), jnp.float32),
    }
    N = 10                                           # exercises 2 grid steps + tail padding
    x = jax.random.normal(k_in, (N, C_IN * H_IN * W_IN), jnp.float32)  # (N, 2883)

    fwd = jax.jit(neuralnet_forward)
    out = jax.block_until_ready(fwd(x, params))
    ref = reference_forward(x, params)
    assert out.shape == (N, out_size), out.shape
    assert jnp.allclose(out, ref, atol=1e-4, rtol=1e-4), \
        float(jnp.max(jnp.abs(out - ref)))
    print("KERNEL_OK")
</pallas_src>

<mosaic_0001>
module attributes {stable_mosaic.version = 11 : i64} {
  func.func @fused_forward_kernel(%arg0: i32, %arg1: memref<128x192xf32, #tpu.memory_space<vmem>>, %arg2: memref<192x4608xf32, #tpu.memory_space<vmem>>, %arg3: memref<1x128xf32, #tpu.memory_space<vmem>>, %arg4: memref<16x128x50xf32, #tpu.memory_space<vmem>>, %arg5: memref<1x50xf32, #tpu.memory_space<vmem>>, %arg6: memref<50x50xf32, #tpu.memory_space<vmem>>, %arg7: memref<1x50xf32, #tpu.memory_space<vmem>>, %arg8: memref<50x5xf32, #tpu.memory_space<vmem>>, %arg9: memref<1x5xf32, #tpu.memory_space<vmem>>, %arg10: memref<8x5xf32, #tpu.memory_space<vmem>>) attributes {dimension_semantics = [#tpu.dimension_semantics<parallel>], iteration_bounds = array<i64: 2>, scalar_prefetch = 0 : i64, scratch_operands = 0 : i64, tpu.core_type = #tpu.core_type<tc>, window_params = [{transform_indices = @transform_0, window_bounds = array<i64: 128, 192>}, {pipeline_mode = #tpu.pipeline_mode<synchronous>, transform_indices = @transform_1, window_bounds = array<i64: 192, 4608>}, {pipeline_mode = #tpu.pipeline_mode<synchronous>, transform_indices = @transform_2, window_bounds = array<i64: 1, 128>}, {pipeline_mode = #tpu.pipeline_mode<synchronous>, transform_indices = @transform_3, window_bounds = array<i64: 16, 128, 50>}, {pipeline_mode = #tpu.pipeline_mode<synchronous>, transform_indices = @transform_4, window_bounds = array<i64: 1, 50>}, {pipeline_mode = #tpu.pipeline_mode<synchronous>, transform_indices = @transform_5, window_bounds = array<i64: 50, 50>}, {pipeline_mode = #tpu.pipeline_mode<synchronous>, transform_indices = @transform_6, window_bounds = array<i64: 1, 50>}, {pipeline_mode = #tpu.pipeline_mode<synchronous>, transform_indices = @transform_7, window_bounds = array<i64: 50, 5>}, {pipeline_mode = #tpu.pipeline_mode<synchronous>, transform_indices = @transform_8, window_bounds = array<i64: 1, 5>}, {transform_indices = @transform_9, window_bounds = array<i64: 8, 5>}]} {
    %c0 = arith.constant 0 : index
    %c0_0 = arith.constant 0 : index
    %0 = vector.load %arg1[%c0, %c0_0] : memref<128x192xf32, #tpu.memory_space<vmem>>, vector<128x192xf32>
    %c0_1 = arith.constant 0 : index
    %c0_2 = arith.constant 0 : index
    %1 = vector.load %arg2[%c0_1, %c0_2] : memref<192x4608xf32, #tpu.memory_space<vmem>>, vector<192x4608xf32>
    %cst = arith.constant dense<0.000000e+00> : vector<128x4608xf32>
    %2 = tpu.matmul %0, %1, %cst {dimension_numbers = #tpu.dot_dimension_numbers<[1], [0], [0], [1], [0, 0, 1, 1], [], []>} : vector<128x192xf32>, vector<192x4608xf32>, vector<128x4608xf32> -> vector<128x4608xf32>
    %3 = vector.extract_strided_slice %2 {offsets = [0, 0], sizes = [128, 128], strides = [1, 1]} : vector<128x4608xf32> to vector<128x128xf32>
    %4 = vector.extract_strided_slice %2 {offsets = [0, 128], sizes = [128, 128], strides = [1, 1]} : vector<128x4608xf32> to vector<128x128xf32>
    %5 = vector.extract_strided_slice %2 {offsets = [0, 256], sizes = [128, 128], strides = [1, 1]} : vector<128x4608xf32> to vector<128x128xf32>
    %6 = vector.extract_strided_slice %2 {offsets = [0, 384], sizes = [128, 128], strides = [1, 1]} : vector<128x4608xf32> to vector<128x128xf32>
    %7 = vector.extract_strided_slice %2 {offsets = [0, 512], sizes = [128, 128], strides = [1, 1]} : vector<128x4608xf32> to vector<128x128xf32>
    %8 = vector.extract_strided_slice %2 {offsets = [0, 640], sizes = [128, 128], strides = [1, 1]} : vector<128x4608xf32> to vector<128x128xf32>
    %9 = vector.extract_strided_slice %2 {offsets = [0, 768], sizes = [128, 128], strides = [1, 1]} : vector<128x4608xf32> to vector<128x128xf32>
    %10 = vector.extract_strided_slice %2 {offsets = [0, 896], sizes = [128, 128], strides = [1, 1]} : vector<128x4608xf32> to vector<128x128xf32>
    %11 = vector.extract_strided_slice %2 {offsets = [0, 1024], sizes = [128, 128], strides = [1, 1]} : vector<128x4608xf32> to vector<128x128xf32>
    %12 = vector.extract_strided_slice %2 {offsets = [0, 1152], sizes = [128, 128], strides = [1, 1]} : vector<128x4608xf32> to vector<128x128xf32>
    %13 = vector.extract_strided_slice %2 {offsets = [0, 1280], sizes = [128, 128], strides = [1, 1]} : vector<128x4608xf32> to vector<128x128xf32>
    %14 = vector.extract_strided_slice %2 {offsets = [0, 1408], sizes = [128, 128], strides = [1, 1]} : vector<128x4608xf32> to vector<128x128xf32>
    %15 = vector.extract_strided_slice %2 {offsets = [0, 1536], sizes = [128, 128], strides = [1, 1]} : vector<128x4608xf32> to vector<128x128xf32>
    %16 = vector.extract_strided_slice %2 {offsets = [0, 1664], sizes = [128, 128], strides = [1, 1]} : vector<128x4608xf32> to vector<128x128xf32>
    %17 = vector.extract_strided_slice %2 {offsets = [0, 1792], sizes = [128, 128], strides = [1, 1]} : vector<128x4608xf32> to vector<128x128xf32>
    %18 = vector.extract_strided_slice %2 {offsets = [0, 1920], sizes = [128, 128], strides = [1, 1]} : vector<128x4608xf32> to vector<128x128xf32>
    %19 = vector.extract_strided_slice %2 {offsets = [0, 2048], sizes = [128, 128], strides = [1, 1]} : vector<128x4608xf32> to vector<128x128xf32>
    %20 = vector.extract_strided_slice %2 {offsets = [0, 2176], sizes = [128, 128], strides = [1, 1]} : vector<128x4608xf32> to vector<128x128xf32>
    %21 = vector.extract_strided_slice %2 {offsets = [0, 2304], sizes = [128, 128], strides = [1, 1]} : vector<128x4608xf32> to vector<128x128xf32>
    %22 = vector.extract_strided_slice %2 {offsets = [0, 2432], sizes = [128, 128], strides = [1, 1]} : vector<128x4608xf32> to vector<128x128xf32>
    %23 = vector.extract_strided_slice %2 {offsets = [0, 2560], sizes = [128, 128], strides = [1, 1]} : vector<128x4608xf32> to vector<128x128xf32>
    %24 = vector.extract_strided_slice %2 {offsets = [0, 2688], sizes = [128, 128], strides = [1, 1]} : vector<128x4608xf32> to vector<128x128xf32>
    %25 = vector.extract_strided_slice %2 {offsets = [0, 2816], sizes = [128, 128], strides = [1, 1]} : vector<128x4608xf32> to vector<128x128xf32>
    %26 = vector.extract_strided_slice %2 {offsets = [0, 2944], sizes = [128, 128], strides = [1, 1]} : vector<128x4608xf32> to vector<128x128xf32>
    %27 = vector.extract_strided_slice %2 {offsets = [0, 3072], sizes = [128, 128], strides = [1, 1]} : vector<128x4608xf32> to vector<128x128xf32>
    %28 = vector.extract_strided_slice %2 {offsets = [0, 3200], sizes = [128, 128], strides = [1, 1]} : vector<128x4608xf32> to vector<128x128xf32>
    %29 = vector.extract_strided_slice %2 {offsets = [0, 3328], sizes = [128, 128], strides = [1, 1]} : vector<128x4608xf32> to vector<128x128xf32>
    %30 = vector.extract_strided_slice %2 {offsets = [0, 3456], sizes = [128, 128], strides = [1, 1]} : vector<128x4608xf32> to vector<128x128xf32>
    %31 = vector.extract_strided_slice %2 {offsets = [0, 3584], sizes = [128, 128], strides = [1, 1]} : vector<128x4608xf32> to vector<128x128xf32>
    %32 = vector.extract_strided_slice %2 {offsets = [0, 3712], sizes = [128, 128], strides = [1, 1]} : vector<128x4608xf32> to vector<128x128xf32>
    %33 = vector.extract_strided_slice %2 {offsets = [0, 3840], sizes = [128, 128], strides = [1, 1]} : vector<128x4608xf32> to vector<128x128xf32>
    %34 = vector.extract_strided_slice %2 {offsets = [0, 3968], sizes = [128, 128], strides = [1, 1]} : vector<128x4608xf32> to vector<128x128xf32>
    %35 = vector.extract_strided_slice %2 {offsets = [0, 4096], sizes = [128, 128], strides = [1, 1]} : vector<128x4608xf32> to vector<128x128xf32>
    %36 = vector.extract_strided_slice %2 {offsets = [0, 4224], sizes = [128, 128], strides = [1, 1]} : vector<128x4608xf32> to vector<128x128xf32>
    %37 = vector.extract_strided_slice %2 {offsets = [0, 4352], sizes = [128, 128], strides = [1, 1]} : vector<128x4608xf32> to vector<128x128xf32>
    %38 = vector.extract_strided_slice %2 {offsets = [0, 4480], sizes = [128, 128], strides = [1, 1]} : vector<128x4608xf32> to vector<128x128xf32>
    %39 = arith.maximumf %3, %4 : vector<128x128xf32>
    %40 = arith.maximumf %5, %6 : vector<128x128xf32>
    %41 = arith.maximumf %7, %8 : vector<128x128xf32>
    %42 = arith.maximumf %9, %10 : vector<128x128xf32>
    %43 = arith.maximumf %11, %12 : vector<128x128xf32>
    %44 = arith.maximumf %13, %14 : vector<128x128xf32>
    %45 = arith.maximumf %15, %16 : vector<128x128xf32>
    %46 = arith.maximumf %17, %18 : vector<128x128xf32>
    %47 = arith.maximumf %19, %20 : vector<128x128xf32>
    %48 = arith.maximumf %21, %22 : vector<128x128xf32>
    %49 = arith.maximumf %23, %24 : vector<128x128xf32>
    %50 = arith.maximumf %25, %26 : vector<128x128xf32>
    %51 = arith.maximumf %27, %28 : vector<128x128xf32>
    %52 = arith.maximumf %29, %30 : vector<128x128xf32>
    %53 = arith.maximumf %31, %32 : vector<128x128xf32>
    %54 = arith.maximumf %33, %34 : vector<128x128xf32>
    %55 = arith.maximumf %35, %36 : vector<128x128xf32>
    %56 = arith.maximumf %37, %38 : vector<128x128xf32>
    %57 = arith.maximumf %39, %40 : vector<128x128xf32>
    %58 = arith.maximumf %41, %42 : vector<128x128xf32>
    %59 = arith.maximumf %43, %44 : vector<128x128xf32>
    %60 = arith.maximumf %45, %46 : vector<128x128xf32>
    %61 = arith.maximumf %47, %48 : vector<128x128xf32>
    %62 = arith.maximumf %49, %50 : vector<128x128xf32>
    %63 = arith.maximumf %51, %52 : vector<128x128xf32>
    %64 = arith.maximumf %53, %54 : vector<128x128xf32>
    %65 = arith.maximumf %55, %56 : vector<128x128xf32>
    %66 = arith.maximumf %57, %58 : vector<128x128xf32>
    %67 = arith.maximumf %59, %60 : vector<128x128xf32>
    %68 = arith.maximumf %61, %62 : vector<128x128xf32>
    %69 = arith.maximumf %63, %64 : vector<128x128xf32>
    %70 = arith.maximumf %66, %67 : vector<128x128xf32>
    %71 = arith.maximumf %68, %69 : vector<128x128xf32>
    %72 = arith.maximumf %70, %71 : vector<128x128xf32>
    %73 = arith.maximumf %72, %65 : vector<128x128xf32>
    %c0_3 = arith.constant 0 : index
    %c0_4 = arith.constant 0 : index
    %74 = vector.load %arg3[%c0_3, %c0_4] : memref<1x128xf32, #tpu.memory_space<vmem>>, vector<1x128xf32>
    %75 = vector.broadcast %74 : vector<1x128xf32> to vector<128x128xf32>
    %76 = arith.addf %73, %75 : vector<128x128xf32>
    %cst_5 = arith.constant 0.000000e+00 : f32
    %77 = vector.broadcast %cst_5 : f32 to vector<128x128xf32>
    %78 = arith.maximumf %76, %77 : vector<128x128xf32>
    %cst_6 = arith.constant 0.000000e+00 : f32
    %79 = vector.broadcast %cst_6 : f32 to vector<8x50xf32>
    %80 = vector.extract_strided_slice %78 {offsets = [0, 0], sizes = [8, 128], strides = [1, 1]} : vector<128x128xf32> to vector<8x128xf32>
    %c0_7 = arith.constant 0 : index
    %c0_8 = arith.constant 0 : index
    %c0_9 = arith.constant 0 : index
    %81 = vector.load %arg4[%c0_7, %c0_8, %c0_9] : memref<16x128x50xf32, #tpu.memory_space<vmem>>, vector<1x128x50xf32>
    %82 = vector.shape_cast %81 : vector<1x128x50xf32> to vector<128x50xf32>
    %cst_10 = arith.constant dense<0.000000e+00> : vector<8x50xf32>
    %83 = tpu.matmul %80, %82, %cst_10 {dimension_numbers = #tpu.dot_dimension_numbers<[1], [0], [0], [1], [0, 0, 1, 1], [], []>} : vector<8x128xf32>, vector<128x50xf32>, vector<8x50xf32> -> vector<8x50xf32>
    %84 = arith.addf %79, %83 : vector<8x50xf32>
    %85 = vector.extract_strided_slice %78 {offsets = [8, 0], sizes = [8, 128], strides = [1, 1]} : vector<128x128xf32> to vector<8x128xf32>
    %c1 = arith.constant 1 : index
    %c0_11 = arith.constant 0 : index
    %c0_12 = arith.constant 0 : index
    %86 = vector.load %arg4[%c1, %c0_11, %c0_12] : memref<16x128x50xf32, #tpu.memory_space<vmem>>, vector<1x128x50xf32>
    %87 = vector.shape_cast %86 : vector<1x128x50xf32> to vector<128x50xf32>
    %cst_13 = arith.constant dense<0.000000e+00> : vector<8x50xf32>
    %88 = tpu.matmul %85, %87, %cst_13 {dimension_numbers = #tpu.dot_dimension_numbers<[1], [0], [0], [1], [0, 0, 1, 1], [], []>} : vector<8x128xf32>, vector<128x50xf32>, vector<8x50xf32> -> vector<8x50xf32>
    %89 = arith.addf %84, %88 : vector<8x50xf32>
    %90 = vector.extract_strided_slice %78 {offsets = [16, 0], sizes = [8, 128], strides = [1, 1]} : vector<128x128xf32> to vector<8x128xf32>
    %c2 = arith.constant 2 : index
    %c0_14 = arith.constant 0 : index
    %c0_15 = arith.constant 0 : index
    %91 = vector.load %arg4[%c2, %c0_14, %c0_15] : memref<16x128x50xf32, #tpu.memory_space<vmem>>, vector<1x128x50xf32>
    %92 = vector.shape_cast %91 : vector<1x128x50xf32> to vector<128x50xf32>
    %cst_16 = arith.constant dense<0.000000e+00> : vector<8x50xf32>
    %93 = tpu.matmul %90, %92, %cst_16 {dimension_numbers = #tpu.dot_dimension_numbers<[1], [0], [0], [1], [0, 0, 1, 1], [], []>} : vector<8x128xf32>, vector<128x50xf32>, vector<8x50xf32> -> vector<8x50xf32>
    %94 = arith.addf %89, %93 : vector<8x50xf32>
    %95 = vector.extract_strided_slice %78 {offsets = [24, 0], sizes = [8, 128], strides = [1, 1]} : vector<128x128xf32> to vector<8x128xf32>
    %c3 = arith.constant 3 : index
    %c0_17 = arith.constant 0 : index
    %c0_18 = arith.constant 0 : index
    %96 = vector.load %arg4[%c3, %c0_17, %c0_18] : memref<16x128x50xf32, #tpu.memory_space<vmem>>, vector<1x128x50xf32>
    %97 = vector.shape_cast %96 : vector<1x128x50xf32> to vector<128x50xf32>
    %cst_19 = arith.constant dense<0.000000e+00> : vector<8x50xf32>
    %98 = tpu.matmul %95, %97, %cst_19 {dimension_numbers = #tpu.dot_dimension_numbers<[1], [0], [0], [1], [0, 0, 1, 1], [], []>} : vector<8x128xf32>, vector<128x50xf32>, vector<8x50xf32> -> vector<8x50xf32>
    %99 = arith.addf %94, %98 : vector<8x50xf32>
    %100 = vector.extract_strided_slice %78 {offsets = [32, 0], sizes = [8, 128], strides = [1, 1]} : vector<128x128xf32> to vector<8x128xf32>
    %c4 = arith.constant 4 : index
    %c0_20 = arith.constant 0 : index
    %c0_21 = arith.constant 0 : index
    %101 = vector.load %arg4[%c4, %c0_20, %c0_21] : memref<16x128x50xf32, #tpu.memory_space<vmem>>, vector<1x128x50xf32>
    %102 = vector.shape_cast %101 : vector<1x128x50xf32> to vector<128x50xf32>
    %cst_22 = arith.constant dense<0.000000e+00> : vector<8x50xf32>
    %103 = tpu.matmul %100, %102, %cst_22 {dimension_numbers = #tpu.dot_dimension_numbers<[1], [0], [0], [1], [0, 0, 1, 1], [], []>} : vector<8x128xf32>, vector<128x50xf32>, vector<8x50xf32> -> vector<8x50xf32>
    %104 = arith.addf %99, %103 : vector<8x50xf32>
    %105 = vector.extract_strided_slice %78 {offsets = [40, 0], sizes = [8, 128], strides = [1, 1]} : vector<128x128xf32> to vector<8x128xf32>
    %c5 = arith.constant 5 : index
    %c0_23 = arith.constant 0 : index
    %c0_24 = arith.constant 0 : index
    %106 = vector.load %arg4[%c5, %c0_23, %c0_24] : memref<16x128x50xf32, #tpu.memory_space<vmem>>, vector<1x128x50xf32>
    %107 = vector.shape_cast %106 : vector<1x128x50xf32> to vector<128x50xf32>
    %cst_25 = arith.constant dense<0.000000e+00> : vector<8x50xf32>
    %108 = tpu.matmul %105, %107, %cst_25 {dimension_numbers = #tpu.dot_dimension_numbers<[1], [0], [0], [1], [0, 0, 1, 1], [], []>} : vector<8x128xf32>, vector<128x50xf32>, vector<8x50xf32> -> vector<8x50xf32>
    %109 = arith.addf %104, %108 : vector<8x50xf32>
    %110 = vector.extract_strided_slice %78 {offsets = [48, 0], sizes = [8, 128], strides = [1, 1]} : vector<128x128xf32> to vector<8x128xf32>
    %c6 = arith.constant 6 : index
    %c0_26 = arith.constant 0 : index
    %c0_27 = arith.constant 0 : index
    %111 = vector.load %arg4[%c6, %c0_26, %c0_27] : memref<16x128x50xf32, #tpu.memory_space<vmem>>, vector<1x128x50xf32>
    %112 = vector.shape_cast %111 : vector<1x128x50xf32> to vector<128x50xf32>
    %cst_28 = arith.constant dense<0.000000e+00> : vector<8x50xf32>
    %113 = tpu.matmul %110, %112, %cst_28 {dimension_numbers = #tpu.dot_dimension_numbers<[1], [0], [0], [1], [0, 0, 1, 1], [], []>} : vector<8x128xf32>, vector<128x50xf32>, vector<8x50xf32> -> vector<8x50xf32>
    %114 = arith.addf %109, %113 : vector<8x50xf32>
    %115 = vector.extract_strided_slice %78 {offsets = [56, 0], sizes = [8, 128], strides = [1, 1]} : vector<128x128xf32> to vector<8x128xf32>
    %c7 = arith.constant 7 : index
    %c0_29 = arith.constant 0 : index
    %c0_30 = arith.constant 0 : index
    %116 = vector.load %arg4[%c7, %c0_29, %c0_30] : memref<16x128x50xf32, #tpu.memory_space<vmem>>, vector<1x128x50xf32>
    %117 = vector.shape_cast %116 : vector<1x128x50xf32> to vector<128x50xf32>
    %cst_31 = arith.constant dense<0.000000e+00> : vector<8x50xf32>
    %118 = tpu.matmul %115, %117, %cst_31 {dimension_numbers = #tpu.dot_dimension_numbers<[1], [0], [0], [1], [0, 0, 1, 1], [], []>} : vector<8x128xf32>, vector<128x50xf32>, vector<8x50xf32> -> vector<8x50xf32>
    %119 = arith.addf %114, %118 : vector<8x50xf32>
    %120 = vector.extract_strided_slice %78 {offsets = [64, 0], sizes = [8, 128], strides = [1, 1]} : vector<128x128xf32> to vector<8x128xf32>
    %c8 = arith.constant 8 : index
    %c0_32 = arith.constant 0 : index
    %c0_33 = arith.constant 0 : index
    %121 = vector.load %arg4[%c8, %c0_32, %c0_33] : memref<16x128x50xf32, #tpu.memory_space<vmem>>, vector<1x128x50xf32>
    %122 = vector.shape_cast %121 : vector<1x128x50xf32> to vector<128x50xf32>
    %cst_34 = arith.constant dense<0.000000e+00> : vector<8x50xf32>
    %123 = tpu.matmul %120, %122, %cst_34 {dimension_numbers = #tpu.dot_dimension_numbers<[1], [0], [0], [1], [0, 0, 1, 1], [], []>} : vector<8x128xf32>, vector<128x50xf32>, vector<8x50xf32> -> vector<8x50xf32>
    %124 = arith.addf %119, %123 : vector<8x50xf32>
    %125 = vector.extract_strided_slice %78 {offsets = [72, 0], sizes = [8, 128], strides = [1, 1]} : vector<128x128xf32> to vector<8x128xf32>
    %c9 = arith.constant 9 : index
    %c0_35 = arith.constant 0 : index
    %c0_36 = arith.constant 0 : index
    %126 = vector.load %arg4[%c9, %c0_35, %c0_36] : memref<16x128x50xf32, #tpu.memory_space<vmem>>, vector<1x128x50xf32>
    %127 = vector.shape_cast %126 : vector<1x128x50xf32> to vector<128x50xf32>
    %cst_37 = arith.constant dense<0.000000e+00> : vector<8x50xf32>
    %128 = tpu.matmul %125, %127, %cst_37 {dimension_numbers = #tpu.dot_dimension_numbers<[1], [0], [0], [1], [0, 0, 1, 1], [], []>} : vector<8x128xf32>, vector<128x50xf32>, vector<8x50xf32> -> vector<8x50xf32>
    %129 = arith.addf %124, %128 : vector<8x50xf32>
    %130 = vector.extract_strided_slice %78 {offsets = [80, 0], sizes = [8, 128], strides = [1, 1]} : vector<128x128xf32> to vector<8x128xf32>
    %c10 = arith.constant 10 : index
    %c0_38 = arith.constant 0 : index
    %c0_39 = arith.constant 0 : index
    %131 = vector.load %arg4[%c10, %c0_38, %c0_39] : memref<16x128x50xf32, #tpu.memory_space<vmem>>, vector<1x128x50xf32>
    %132 = vector.shape_cast %131 : vector<1x128x50xf32> to vector<128x50xf32>
    %cst_40 = arith.constant dense<0.000000e+00> : vector<8x50xf32>
    %133 = tpu.matmul %130, %132, %cst_40 {dimension_numbers = #tpu.dot_dimension_numbers<[1], [0], [0], [1], [0, 0, 1, 1], [], []>} : vector<8x128xf32>, vector<128x50xf32>, vector<8x50xf32> -> vector<8x50xf32>
    %134 = arith.addf %129, %133 : vector<8x50xf32>
    %135 = vector.extract_strided_slice %78 {offsets = [88, 0], sizes = [8, 128], strides = [1, 1]} : vector<128x128xf32> to vector<8x128xf32>
    %c11 = arith.constant 11 : index
    %c0_41 = arith.constant 0 : index
    %c0_42 = arith.constant 0 : index
    %136 = vector.load %arg4[%c11, %c0_41, %c0_42] : memref<16x128x50xf32, #tpu.memory_space<vmem>>, vector<1x128x50xf32>
    %137 = vector.shape_cast %136 : vector<1x128x50xf32> to vector<128x50xf32>
    %cst_43 = arith.constant dense<0.000000e+00> : vector<8x50xf32>
    %138 = tpu.matmul %135, %137, %cst_43 {dimension_numbers = #tpu.dot_dimension_numbers<[1], [0], [0], [1], [0, 0, 1, 1], [], []>} : vector<8x128xf32>, vector<128x50xf32>, vector<8x50xf32> -> vector<8x50xf32>
    %139 = arith.addf %134, %138 : vector<8x50xf32>
    %140 = vector.extract_strided_slice %78 {offsets = [96, 0], sizes = [8, 128], strides = [1, 1]} : vector<128x128xf32> to vector<8x128xf32>
    %c12 = arith.constant 12 : index
    %c0_44 = arith.constant 0 : index
    %c0_45 = arith.constant 0 : index
    %141 = vector.load %arg4[%c12, %c0_44, %c0_45] : memref<16x128x50xf32, #tpu.memory_space<vmem>>, vector<1x128x50xf32>
    %142 = vector.shape_cast %141 : vector<1x128x50xf32> to vector<128x50xf32>
    %cst_46 = arith.constant dense<0.000000e+00> : vector<8x50xf32>
    %143 = tpu.matmul %140, %142, %cst_46 {dimension_numbers = #tpu.dot_dimension_numbers<[1], [0], [0], [1], [0, 0, 1, 1], [], []>} : vector<8x128xf32>, vector<128x50xf32>, vector<8x50xf32> -> vector<8x50xf32>
    %144 = arith.addf %139, %143 : vector<8x50xf32>
    %145 = vector.extract_strided_slice %78 {offsets = [104, 0], sizes = [8, 128], strides = [1, 1]} : vector<128x128xf32> to vector<8x128xf32>
    %c13 = arith.constant 13 : index
    %c0_47 = arith.constant 0 : index
    %c0_48 = arith.constant 0 : index
    %146 = vector.load %arg4[%c13, %c0_47, %c0_48] : memref<16x128x50xf32, #tpu.memory_space<vmem>>, vector<1x128x50xf32>
    %147 = vector.shape_cast %146 : vector<1x128x50xf32> to vector<128x50xf32>
    %cst_49 = arith.constant dense<0.000000e+00> : vector<8x50xf32>
    %148 = tpu.matmul %145, %147, %cst_49 {dimension_numbers = #tpu.dot_dimension_numbers<[1], [0], [0], [1], [0, 0, 1, 1], [], []>} : vector<8x128xf32>, vector<128x50xf32>, vector<8x50xf32> -> vector<8x50xf32>
    %149 = arith.addf %144, %148 : vector<8x50xf32>
    %150 = vector.extract_strided_slice %78 {offsets = [112, 0], sizes = [8, 128], strides = [1, 1]} : vector<128x128xf32> to vector<8x128xf32>
    %c14 = arith.constant 14 : index
    %c0_50 = arith.constant 0 : index
    %c0_51 = arith.constant 0 : index
    %151 = vector.load %arg4[%c14, %c0_50, %c0_51] : memref<16x128x50xf32, #tpu.memory_space<vmem>>, vector<1x128x50xf32>
    %152 = vector.shape_cast %151 : vector<1x128x50xf32> to vector<128x50xf32>
    %cst_52 = arith.constant dense<0.000000e+00> : vector<8x50xf32>
    %153 = tpu.matmul %150, %152, %cst_52 {dimension_numbers = #tpu.dot_dimension_numbers<[1], [0], [0], [1], [0, 0, 1, 1], [], []>} : vector<8x128xf32>, vector<128x50xf32>, vector<8x50xf32> -> vector<8x50xf32>
    %154 = arith.addf %149, %153 : vector<8x50xf32>
    %155 = vector.extract_strided_slice %78 {offsets = [120, 0], sizes = [8, 128], strides = [1, 1]} : vector<128x128xf32> to vector<8x128xf32>
    %c15 = arith.constant 15 : index
    %c0_53 = arith.constant 0 : index
    %c0_54 = arith.constant 0 : index
    %156 = vector.load %arg4[%c15, %c0_53, %c0_54] : memref<16x128x50xf32, #tpu.memory_space<vmem>>, vector<1x128x50xf32>
    %157 = vector.shape_cast %156 : vector<1x128x50xf32> to vector<128x50xf32>
    %cst_55 = arith.constant dense<0.000000e+00> : vector<8x50xf32>
    %158 = tpu.matmul %155, %157, %cst_55 {dimension_numbers = #tpu.dot_dimension_numbers<[1], [0], [0], [1], [0, 0, 1, 1], [], []>} : vector<8x128xf32>, vector<128x50xf32>, vector<8x50xf32> -> vector<8x50xf32>
    %159 = arith.addf %154, %158 : vector<8x50xf32>
    %c0_56 = arith.constant 0 : index
    %c0_57 = arith.constant 0 : index
    %160 = vector.load %arg5[%c0_56, %c0_57] : memref<1x50xf32, #tpu.memory_space<vmem>>, vector<1x50xf32>
    %161 = vector.broadcast %160 : vector<1x50xf32> to vector<8x50xf32>
    %162 = arith.addf %159, %161 : vector<8x50xf32>
    %cst_58 = arith.constant 0.000000e+00 : f32
    %163 = vector.broadcast %cst_58 : f32 to vector<8x50xf32>
    %164 = arith.maximumf %162, %163 : vector<8x50xf32>
    %c0_59 = arith.constant 0 : index
    %c0_60 = arith.constant 0 : index
    %165 = vector.load %arg6[%c0_59, %c0_60] : memref<50x50xf32, #tpu.memory_space<vmem>>, vector<50x50xf32>
    %cst_61 = arith.constant dense<0.000000e+00> : vector<8x50xf32>
    %166 = tpu.matmul %164, %165, %cst_61 {dimension_numbers = #tpu.dot_dimension_numbers<[1], [0], [0], [1], [0, 0, 1, 1], [], []>} : vector<8x50xf32>, vector<50x50xf32>, vector<8x50xf32> -> vector<8x50xf32>
    %c0_62 = arith.constant 0 : index
    %c0_63 = arith.constant 0 : index
    %167 = vector.load %arg7[%c0_62, %c0_63] : memref<1x50xf32, #tpu.memory_space<vmem>>, vector<1x50xf32>
    %168 = vector.broadcast %167 : vector<1x50xf32> to vector<8x50xf32>
    %169 = arith.addf %166, %168 : vector<8x50xf32>
    %cst_64 = arith.constant 0.000000e+00 : f32
    %170 = vector.broadcast %cst_64 : f32 to vector<8x50xf32>
    %171 = arith.cmpf ogt, %169, %170 : vector<8x50xf32>
    %cst_65 = arith.constant 0.00999999977 : f32
    %172 = vector.broadcast %cst_65 : f32 to vector<8x50xf32>
    %173 = arith.mulf %172, %169 : vector<8x50xf32>
    %174 = arith.select %171, %169, %173 : vector<8x50xi1>, vector<8x50xf32>
    %c0_66 = arith.constant 0 : index
    %c0_67 = arith.constant 0 : index
    %175 = vector.load %arg8[%c0_66, %c0_67] : memref<50x5xf32, #tpu.memory_space<vmem>>, vector<50x5xf32>
    %cst_68 = arith.constant dense<0.000000e+00> : vector<8x5xf32>
    %176 = tpu.matmul %174, %175, %cst_68 {dimension_numbers = #tpu.dot_dimension_numbers<[1], [0], [0], [1], [0, 0, 1, 1], [], []>} : vector<8x50xf32>, vector<50x5xf32>, vector<8x5xf32> -> vector<8x5xf32>
    %c0_69 = arith.constant 0 : index
    %c0_70 = arith.constant 0 : index
    %177 = vector.load %arg9[%c0_69, %c0_70] : memref<1x5xf32, #tpu.memory_space<vmem>>, vector<1x5xf32>
    %178 = vector.broadcast %177 : vector<1x5xf32> to vector<8x5xf32>
    %179 = arith.addf %176, %178 : vector<8x5xf32>
    %c0_71 = arith.constant 0 : index
    %c0_72 = arith.constant 0 : index
    %180 = vector.load %arg10[%c0_71, %c0_72] : memref<8x5xf32, #tpu.memory_space<vmem>>, vector<8x5xf32>
    tpu.vector_store %arg10[%c0_71, %c0_72], %179 {strides = array<i32>} : memref<8x5xf32, #tpu.memory_space<vmem>>, vector<8x5xf32>,
    return
  }
  func.func @transform_0(%arg0: i32) -> (i32, i32) {
    %c0_i32 = arith.constant 0 : i32
    %c0_i32_0 = arith.constant 0 : i32
    return %arg0, %c0_i32 : i32, i32
  }
  func.func @transform_1(%arg0: i32) -> (i32, i32) {
    %c0_i32 = arith.constant 0 : i32
    %c0_i32_0 = arith.constant 0 : i32
    %c0_i32_1 = arith.constant 0 : i32
    return %c0_i32, %c0_i32_0 : i32, i32
  }
  func.func @transform_2(%arg0: i32) -> (i32, i32) {
    %c0_i32 = arith.constant 0 : i32
    %c0_i32_0 = arith.constant 0 : i32
    %c0_i32_1 = arith.constant 0 : i32
    return %c0_i32, %c0_i32_0 : i32, i32
  }
  func.func @transform_3(%arg0: i32) -> (i32, i32, i32) {
    %c0_i32 = arith.constant 0 : i32
    %c0_i32_0 = arith.constant 0 : i32
    %c0_i32_1 = arith.constant 0 : i32
    %c0_i32_2 = arith.constant 0 : i32
    return %c0_i32, %c0_i32_0, %c0_i32_1 : i32, i32, i32
  }
  func.func @transform_4(%arg0: i32) -> (i32, i32) {
    %c0_i32 = arith.constant 0 : i32
    %c0_i32_0 = arith.constant 0 : i32
    %c0_i32_1 = arith.constant 0 : i32
    return %c0_i32, %c0_i32_0 : i32, i32
  }
  func.func @transform_5(%arg0: i32) -> (i32, i32) {
    %c0_i32 = arith.constant 0 : i32
    %c0_i32_0 = arith.constant 0 : i32
    %c0_i32_1 = arith.constant 0 : i32
    return %c0_i32, %c0_i32_0 : i32, i32
  }
  func.func @transform_6(%arg0: i32) -> (i32, i32) {
    %c0_i32 = arith.constant 0 : i32
    %c0_i32_0 = arith.constant 0 : i32
    %c0_i32_1 = arith.constant 0 : i32
    return %c0_i32, %c0_i32_0 : i32, i32
  }
  func.func @transform_7(%arg0: i32) -> (i32, i32) {
    %c0_i32 = arith.constant 0 : i32
    %c0_i32_0 = arith.constant 0 : i32
    %c0_i32_1 = arith.constant 0 : i32
    return %c0_i32, %c0_i32_0 : i32, i32
  }
  func.func @transform_8(%arg0: i32) -> (i32, i32) {
    %c0_i32 = arith.constant 0 : i32
    %c0_i32_0 = arith.constant 0 : i32
    %c0_i32_1 = arith.constant 0 : i32
    return %c0_i32, %c0_i32_0 : i32, i32
  }
  func.func @transform_9(%arg0: i32) -> (i32, i32) {
    %c0_i32 = arith.constant 0 : i32
    %c0_i32_0 = arith.constant 0 : i32
    return %arg0, %c0_i32 : i32, i32
  }
}

</mosaic_0001>

<bundles_post_ra>
// kernel: neuralnet_forward.1
= control target key start
LH: loop header
LB: loop body
LE: loop exit
PB: predicated region body
PF: predicated region fallthrough
CT: control target
= control target key end

     0   :  { %s8461_s30 = smov 0   ;;  %s15423_s0 = inlined_call_operand.vmem [shape: f32[256,192], index: 0, kind: input, shape index: {}]   ;;  %s15424_s1 = inlined_call_operand.vmem [shape: f32[192,4608], index: 1, kind: input, shape index: {}]   ;;  %s15425_s2 = inlined_call_operand.vmem [shape: f32[1,128], index: 2, kind: input, shape index: {}]   ;;  %s15426_s3 = inlined_call_operand.vmem [shape: f32[16,128,50], index: 3, kind: input, shape index: {}]   ;;  %s15427_s4 = inlined_call_operand.vmem [shape: f32[1,50], index: 4, kind: input, shape index: {}]   ;;  %s15428_s5 = inlined_call_operand.vmem [shape: f32[50,50], index: 5, kind: input, shape index: {}]   ;;  %s15429_s6 = inlined_call_operand.vmem [shape: f32[1,50], index: 6, kind: input, shape index: {}]   ;;  %s15430_s7 = inlined_call_operand.vmem [shape: f32[50,5], index: 7, kind: input, shape index: {}]   ;;  %s15431_s8 = inlined_call_operand.vmem [shape: f32[1,5], index: 8, kind: input, shape index: {}]   ;;  %s15432_s9 = inlined_call_operand.vmem [shape: f32[16,5], index: 9, kind: output, shape index: {}]  }
   0x1 LB: > { %s8467_s10 = sadd.s32 4294967295, %s8409_s30   ;;  %p7306_p0 = scmp.ge.s32.totalorder %s8409_s30, 1  ;;  %s8409_s30 = sphi %s8461_s30, %s19_s30  }
   0x2   : > { %p289_p1 = scmp.lt.s32.totalorder %s8409_s30, 3 }
   0x4   : > { %p290_p2 = pnand %p7306_p0, %p289_p1 }
   0x6   : > { %293 = sbr.rel (%p290_p2) target bundleno = 2885 (0xb45), region = 56 }
   0xb   : > { %v909_v0 = vld [vmem:[%s15424_s1 + $0x10e8] sm:$0xff]  ;;  %v908_v2 = vld [vmem:[%s15424_s1 + $0x10e0] sm:$0xff]  ;;  %s7307_s19 = sshll.u32 %s8467_s10, 4  ;;  %vm1232_vm0 = vcmask 523264   ;;  %v1198_v38 = vld [vmem:[%s15424_s1 + $0x19f0] sm:$0xff]  ;;  %vm7183_vm1 = vcmask 1041408  }
   0xc   : > { %v873_v1 = vld [vmem:[%s15424_s1 + $0xfc8] sm:$0xff]  ;;  %1411 = vmatpush.msra.mxu2 %v909_v0  ;;  %v872_v3 = vld [vmem:[%s15424_s1 + $0xfc0] sm:$0xff]  ;;  %1281 = vmatpush.msra.mxu0 %v908_v2  ;;  %p8493_p3 = scmp.lt.s32.totalorder %s7307_s19, 31  ;;  %v1162_v43 = vld [vmem:[%s15424_s1 + $0x18d0] sm:$0xff]  ;;  %vm7179_vm2 = vcmask 408576   ;;  %p332_p4 = scmp.lt.s32.totalorder %s8467_s10, 1 }
   0xd   : > { %v837_v4 = vld [vmem:[%s15424_s1 + $0xea8] sm:$0xff]  ;;  %v836_v5 = vld [vmem:[%s15424_s1 + $0xea0] sm:$0xff]  ;;  %v910_v46 = vld [vmem:[%s15424_s1 + $0x10f0] sm:$0xff]  ;;  %vm7247_vm4 = vcmask 39936  }
   0xe   : > { %1412 = vmatpush.msra.mxu2 %v873_v1  ;;  %v801_v6 = vld [vmem:[%s15424_s1 + $0xd88] sm:$0xff]  ;;  %1282 = vmatpush.msra.mxu0 %v872_v3  ;;  %v800_v7 = vld [vmem:[%s15424_s1 + $0xd80] sm:$0xff]  ;;  %s15460_s19 = smov (!%p8493_p3, %s7307_s19), 31  ;;  %v874_v51 = vld [vmem:[%s15424_s1 + $0xfd0] sm:$0xff]  ;;  %s15462_s10 = smov (!%p332_p4, %s8467_s10), 1 }
   0xf   : > { %v1197_v8 = vld [vmem:[%s15424_s1 + $0x19e8] sm:$0xff]  ;;  %v764_v11 = vld [vmem:[%s15424_s1 + $0xc60] sm:$0xff]  ;;  %s8133_s25 = sshll.u32 %s15460_s19, 4  ;;  %v1199_v55 = vld [vmem:[%s15424_s1 + $0x19f8] sm:$0xff]  ;;  %s7310_s13 = sshll.u32 %s15462_s10, 3 }
  0x10   : > { %1413 = vmatpush.msra.mxu2 %v837_v4  ;;  %v765_v9 = vld [vmem:[%s15424_s1 + $0xc68] sm:$0xff]  ;;  %1283 = vmatpush.msra.mxu0 %v836_v5  ;;  %v1196_v13 = vld [vmem:[%s15424_s1 + $0x19e0] sm:$0xff]  ;;  %s8574_s21 = scalar_lea.vmem %s15423_s0, %s8133_s25  ;;  %v911_v56 = vld [vmem:[%s15424_s1 + $0x10f8] sm:$0xff]  ;;  %s335_s15 = scalar_lea.vmem %s15432_s9, %s7310_s13 }
  0x11   : > { %1484 = vmatpush.msra.mxu3 %v1197_v8  ;;  %v1161_v10 = vld [vmem:[%s15424_s1 + $0x18c8] sm:$0xff]  ;;  %v728_v15 = vld [vmem:[%s15424_s1 + $0xb40] sm:$0xff]  ;;  %1354 = vmatpush.msra.mxu1 %v1196_v13  ;;  %v8638_v49 = vld [vmem:[%s8574_s21 + $0x18] sm:$0xff] }
  0x12   : > { %1414 = vmatpush.msra.mxu2 %v801_v6  ;;  %v1125_v12 = vld [vmem:[%s15424_s1 + $0x17a8] sm:$0xff]  ;;  %1284 = vmatpush.msra.mxu0 %v800_v7  ;;  %v1160_v17 = vld [vmem:[%s15424_s1 + $0x18c0] sm:$0xff]  ;;  %v1163_v57 = vld [vmem:[%s15424_s1 + $0x18d8] sm:$0xff] }
  0x13   : > { %v729_v14 = vld [vmem:[%s15424_s1 + $0xb48] sm:$0xff]  ;;  %1485 = vmatpush.msra.mxu3 %v1161_v10  ;;  %v1124_v19 = vld [vmem:[%s15424_s1 + $0x17a0] sm:$0xff]  ;;  %1355 = vmatpush.msra.mxu1 %v1160_v17  ;;  %v838_v58 = vld [vmem:[%s15424_s1 + $0xeb0] sm:$0xff] }
  0x14   : > { %1415 = vmatpush.msra.mxu2 %v765_v9  ;;  %v1089_v16 = vld [vmem:[%s15424_s1 + $0x1688] sm:$0xff]  ;;  %1285 = vmatpush.msra.mxu0 %v764_v11  ;;  %v692_v20 = vld [vmem:[%s15424_s1 + $0xa20] sm:$0xff]  ;;  %v875_v59 = vld [vmem:[%s15424_s1 + $0xfd8] sm:$0xff] }
  0x15   : > { %v693_v18 = vld [vmem:[%s15424_s1 + $0xa28] sm:$0xff]  ;;  %1486 = vmatpush.msra.mxu3 %v1125_v12  ;;  %v1088_v23 = vld [vmem:[%s15424_s1 + $0x1680] sm:$0xff]  ;;  %1356 = vmatpush.msra.mxu1 %v1124_v19  ;;  %v1126_v60 = vld [vmem:[%s15424_s1 + $0x17b0] sm:$0xff] }
  0x16   : > { %1416 = vmatpush.msra.mxu2 %v729_v14  ;;  %v1053_v21 = vld [vmem:[%s15424_s1 + $0x1568] sm:$0xff]  ;;  %1286 = vmatpush.msra.mxu0 %v728_v15  ;;  %v656_v24 = vld [vmem:[%s15424_s1 + $0x900] sm:$0xff]  ;;  %v802_v62 = vld [vmem:[%s15424_s1 + $0xd90] sm:$0xff] }
  0x17   : > { %v657_v22 = vld [vmem:[%s15424_s1 + $0x908] sm:$0xff]  ;;  %1487 = vmatpush.msra.mxu3 %v1089_v16  ;;  %v1052_v27 = vld [vmem:[%s15424_s1 + $0x1560] sm:$0xff]  ;;  %1357 = vmatpush.msra.mxu1 %v1088_v23  ;;  %v839_v63 = vld [vmem:[%s15424_s1 + $0xeb8] sm:$0xff] }
  0x18   : > { %1417 = vmatpush.msra.mxu2 %v693_v18  ;;  %v1017_v25 = vld [vmem:[%s15424_s1 + $0x1448] sm:$0xff]  ;;  %1287 = vmatpush.msra.mxu0 %v692_v20  ;;  %v620_v28 = vld [vmem:[%s15424_s1 + $0x7e0] sm:$0xff]  ;;  %v1127_v0 = vld [vmem:[%s15424_s1 + $0x17b8] sm:$0xff] }
  0x19   : > { %v621_v26 = vld [vmem:[%s15424_s1 + $0x7e8] sm:$0xff]  ;;  %1488 = vmatpush.msra.mxu3 %v1053_v21  ;;  %v1016_v31 = vld [vmem:[%s15424_s1 + $0x1440] sm:$0xff]  ;;  %1358 = vmatpush.msra.mxu1 %v1052_v27  ;;  %v766_v1 = vld [vmem:[%s15424_s1 + $0xc70] sm:$0xff] }
  0x1a   : > { %1418 = vmatpush.msra.mxu2 %v657_v22  ;;  %v981_v29 = vld [vmem:[%s15424_s1 + $0x1328] sm:$0xff]  ;;  %1288 = vmatpush.msra.mxu0 %v656_v24  ;;  %v584_v32 = vld [vmem:[%s15424_s1 + $0x6c0] sm:$0xff]  ;;  %v8695_v2 = vld [vmem:[%s8574_s21 + $0x10] sm:$0xff] }
  0x1b   : > { %v585_v30 = vld [vmem:[%s15424_s1 + $0x6c8] sm:$0xff]  ;;  %1489 = vmatpush.msra.mxu3 %v1017_v25  ;;  %v548_v37 = vld [vmem:[%s15424_s1 + $0x5a0] sm:$0xff]  ;;  %1359 = vmatpush.msra.mxu1 %v1016_v31  ;;  %v803_v3 = vld [vmem:[%s15424_s1 + $0xd98] sm:$0xff] }
  0x1c   : > { %1419 = vmatpush.msra.mxu2 %v621_v26  ;;  %v945_v33 = vld [vmem:[%s15424_s1 + $0x1208] sm:$0xff]  ;;  %1289 = vmatpush.msra.mxu0 %v620_v28  ;;  %v512_v40 = vld [vmem:[%s15424_s1 + $0x480] sm:$0xff]  ;;  %v767_v4 = vld [vmem:[%s15424_s1 + $0xc78] sm:$0xff] }
  0x1d   : > { %v549_v34 = vld [vmem:[%s15424_s1 + $0x5a8] sm:$0xff]  ;;  %1490 = vmatpush.msra.mxu3 %v981_v29  ;;  %v980_v41 = vld [vmem:[%s15424_s1 + $0x1320] sm:$0xff]  ;;  %v730_v5 = vld [vmem:[%s15424_s1 + $0xb50] sm:$0xff] }
  0x1e   : > { %v8592_v35 = vld [vmem:[%s8574_s21 + $0x8] sm:$0xff]  ;;  %1420 = vmatpush.msra.mxu2 %v585_v30  ;;  %1290 = vmatpush.msra.mxu0 %v584_v32  ;;  %v944_v42 = vld [vmem:[%s15424_s1 + $0x1200] sm:$0xff]  ;;  %v731_v6 = vld [vmem:[%s15424_s1 + $0xb58] sm:$0xff] }
  0x1f   : > { %v513_v36 = vld [vmem:[%s15424_s1 + $0x488] sm:$0xff]  ;;  %1491 = vmatpush.msra.mxu3 %v945_v33  ;;  %v476_v44 = vld [vmem:[%s15424_s1 + $0x360] sm:$0xff]  ;;  %1360 = vmatpush.msra.mxu1 %v980_v41  ;;  %v8716_v7 = vld [vmem:[%s8574_s21 + $0x38] sm:$0xff] }
  0x20   : > { %v477_v39 = vld [vmem:[%s15424_s1 + $0x368] sm:$0xff]  ;;  %1421 = vmatpush.msra.mxu2 %v549_v34  ;;  %7327 = vmatmul.msk.f32.vlgmr.msra.gmra.mxu3 %vm1232_vm0, %v8592_v35  ;;  %v440_v47 = vld [vmem:[%s15424_s1 + $0x240] sm:$0xff]  ;;  %v1090_v9 = vld [vmem:[%s15424_s1 + $0x1690] sm:$0xff] }
  0x21   : > { %1291 = vmatpush.msra.mxu0 %v548_v37  ;;  %1614 = vmatpush.msrb.mxu3 %v1198_v38  ;;  %v441_v45 = vld [vmem:[%s15424_s1 + $0x248] sm:$0xff]  ;;  %v404_v50 = vld [vmem:[%s15424_s1 + $0x120] sm:$0xff]  ;;  %v1091_v10 = vld [vmem:[%s15424_s1 + $0x1698] sm:$0xff] }
  0x22   : > { %1422 = vmatpush.msra.mxu2 %v513_v36  ;;  %1361 = vmatpush.msra.mxu1 %v944_v42  ;;  %v405_v48 = vld [vmem:[%s15424_s1 + $0x128] sm:$0xff]  ;;  %v8650_v53 = vld [vmem:[%s8574_s21] sm:$0xff]  ;;  %v694_v11 = vld [vmem:[%s15424_s1 + $0xa30] sm:$0xff] }
  0x23   : > { %1292 = vmatpush.msra.mxu0 %v512_v40  ;;  %1615 = vmatpush.msrb.mxu3 %v1162_v43  ;;  %v369_v52 = vld [vmem:[%s15424_s1 + $0x8] sm:$0xff]  ;;  %v368_v54 = vld [vmem:[%s15424_s1] sm:$0xff]  ;;  %v695_v12 = vld [vmem:[%s15424_s1 + $0xa38] sm:$0xff] }
  0x24   : > { %1423 = vmatpush.msra.mxu2 %v477_v39  ;;  %7311 = vmatmul.msk.f32.vlgmr.msra.gmra.mxu1 %vm1232_vm0, %v8592_v35  ;;  %v8680_v61 = vld [vmem:[%s8574_s21 + $0x28] sm:$0xff]  ;;  %v8719_v8 = vld [vmem:[%s8574_s21 + $0x20] sm:$0xff]  ;;  %v8743_v14 = vld [vmem:[%s8574_s21 + $0x30] sm:$0xff] }
  0x25   : > { %1293 = vmatpush.msra.mxu0 %v476_v44  ;;  %1541 = vmatpush.msrb.mxu1 %v910_v46  ;;  %v8740_v13 = vld [vmem:[%s8574_s21 + $0x48] sm:$0xff]  ;;  %v658_v15 = vld [vmem:[%s15424_s1 + $0x910] sm:$0xff]  ;;  %v659_v16 = vld [vmem:[%s15424_s1 + $0x918] sm:$0xff] }
  0x26   : > { %1424 = vmatpush.msra.mxu2 %v441_v45  ;;  %1616 = vmatpush.msrb.mxu3 %v1126_v60  ;;  %v8758_v17 = vld [vmem:[%s8574_s21 + $0x58] sm:$0xff]  ;;  %v8761_v18 = vld [vmem:[%s8574_s21 + $0x40] sm:$0xff]  ;;  %v1054_v19 = vld [vmem:[%s15424_s1 + $0x1570] sm:$0xff] }
  0x27   : > { %1294 = vmatpush.msra.mxu0 %v440_v47  ;;  %1542 = vmatpush.msrb.mxu1 %v874_v51  ;;  %v1055_v20 = vld [vmem:[%s15424_s1 + $0x1578] sm:$0xff]  ;;  %v622_v21 = vld [vmem:[%s15424_s1 + $0x7f0] sm:$0xff]  ;;  %v8782_v23 = vld [vmem:[%s8574_s21 + $0x68] sm:$0xff] }
  0x28   : > { %1425 = vmatpush.msra.mxu2 %v405_v48  ;;  %7328 = vmatmul.msk.f32.gmra.mxu3 %vm1232_vm0, %v8638_v49  ;;  %v623_v22 = vld [vmem:[%s15424_s1 + $0x7f8] sm:$0xff]  ;;  %v8785_v24 = vld [vmem:[%s8574_s21 + $0x50] sm:$0xff]  ;;  %v8803_v28 = vld [vmem:[%s8574_s21 + $0x60] sm:$0xff] }
  0x29   : > { %1295 = vmatpush.msra.mxu0 %v404_v50  ;;  %1543 = vmatpush.msrb.mxu1 %v838_v58  ;;  %v586_v25 = vld [vmem:[%s15424_s1 + $0x6d0] sm:$0xff]  ;;  %v587_v26 = vld [vmem:[%s15424_s1 + $0x6d8] sm:$0xff]  ;;  %v8824_v33 = vld [vmem:[%s8574_s21 + $0x88] sm:$0xff] }
  0x2a   : > { %1426 = vmatpush.msra.mxu2 %v369_v52  ;;  %1617 = vmatpush.msrb.mxu3 %v1090_v9  ;;  %v8800_v27 = vld [vmem:[%s8574_s21 + $0x78] sm:$0xff]  ;;  %v1018_v29 = vld [vmem:[%s15424_s1 + $0x1450] sm:$0xff]  ;;  %v8845_v39 = vld [vmem:[%s8574_s21 + $0x80] sm:$0xff] }
  0x2b   : > { %1427 = vmatmul.f32.vlgmr.msra.gmra.mxu2 %v8650_v53  ;;  %1296 = vmatpush.msra.mxu0 %v368_v54  ;;  %v1019_v30 = vld [vmem:[%s15424_s1 + $0x1458] sm:$0xff]  ;;  %v550_v31 = vld [vmem:[%s15424_s1 + $0x5b0] sm:$0xff]  ;;  %v8866_v44 = vld [vmem:[%s8574_s21 + $0xa8] sm:$0xff] }
  0x2c   : > { %1744 = vmatpush.msrb.mxu2 %v1199_v55  ;;  %1297 = vmatmul.f32.vlgmr.msra.gmra.mxu0 %v8650_v53  ;;  %v551_v32 = vld [vmem:[%s15424_s1 + $0x5b8] sm:$0xff]  ;;  %v8827_v34 = vld [vmem:[%s8574_s21 + $0x70] sm:$0xff]  ;;  %v8887_v50 = vld [vmem:[%s8574_s21 + $0xa0] sm:$0xff] }
  0x2d   : > { %1671 = vmatpush.msrb.mxu0 %v911_v56  ;;  %7312 = vmatmul.msk.f32.gmra.mxu1 %vm1232_vm0, %v8638_v49  ;;  %v514_v36 = vld [vmem:[%s15424_s1 + $0x490] sm:$0xff]  ;;  %v515_v37 = vld [vmem:[%s15424_s1 + $0x498] sm:$0xff]  ;;  %v8908_v56 = vld [vmem:[%s8574_s21 + $0xc8] sm:$0xff] }
  0x2e   : > { %1745 = vmatpush.msrb.mxu2 %v1163_v57  ;;  %1544 = vmatpush.msrb.mxu1 %v802_v62  ;;  %v8842_v38 = vld [vmem:[%s8574_s21 + $0x98] sm:$0xff]  ;;  %v982_v40 = vld [vmem:[%s15424_s1 + $0x1330] sm:$0xff]  ;;  %v8929_v62 = vld [vmem:[%s8574_s21 + $0xc0] sm:$0xff] }
  0x2f   : > { %1672 = vmatpush.msrb.mxu0 %v875_v59  ;;  %1618 = vmatpush.msrb.mxu3 %v1054_v19  ;;  %v983_v41 = vld [vmem:[%s15424_s1 + $0x1338] sm:$0xff]  ;;  %v478_v42 = vld [vmem:[%s15424_s1 + $0x370] sm:$0xff]  ;;  %v8965_v9 = vld [vmem:[%s8574_s21 + $0xe0] sm:$0xff] }
  0x30   : > { %7329 = vmatmul.msk.f32.gmra.mxu3 %vm1232_vm0, %v8680_v61  ;;  %1746 = vmatpush.msrb.mxu2 %v1127_v0  ;;  %v479_v43 = vld [vmem:[%s15424_s1 + $0x378] sm:$0xff]  ;;  %v8869_v45 = vld [vmem:[%s8574_s21 + $0x90] sm:$0xff]  ;;  %v1201_v0 = vld [vmem:[%s15424_s1 + $0x1a08] sm:$0xff] }
  0x31   : > { %1673 = vmatpush.msrb.mxu0 %v839_v63  ;;  %1545 = vmatpush.msrb.mxu1 %v766_v1  ;;  %v442_v46 = vld [vmem:[%s15424_s1 + $0x250] sm:$0xff]  ;;  %v443_v47 = vld [vmem:[%s15424_s1 + $0x258] sm:$0xff]  ;;  %v1200_v63 = vld [vmem:[%s15424_s1 + $0x1a00] sm:$0xff] }
  0x32   : > { %1747 = vmatpush.msrb.mxu2 %v1091_v10  ;;  %1619 = vmatpush.msrb.mxu3 %v1018_v29  ;;  %v8884_v48 = vld [vmem:[%s8574_s21 + $0xb8] sm:$0xff]  ;;  %v946_v51 = vld [vmem:[%s15424_s1 + $0x1210] sm:$0xff]  ;;  %v8944_v1 = vld [vmem:[%s8574_s21 + $0xe8] sm:$0xff] }
  0x33   : > { %1430 = vmatmul.f32.gmra.mxu2 %v8695_v2  ;;  %1674 = vmatpush.msrb.mxu0 %v803_v3  ;;  %v947_v52 = vld [vmem:[%s15424_s1 + $0x1218] sm:$0xff]  ;;  %v406_v54 = vld [vmem:[%s15424_s1 + $0x130] sm:$0xff]  ;;  %v876_v10 = vld [vmem:[%s15424_s1 + $0xfe0] sm:$0xff] }
  0x34   : > { %1300 = vmatmul.f32.gmra.mxu0 %v8695_v2  ;;  %1546 = vmatpush.msrb.mxu1 %v730_v5  ;;  %v407_v55 = vld [vmem:[%s15424_s1 + $0x138] sm:$0xff]  ;;  %v8911_v57 = vld [vmem:[%s8574_s21 + $0xb0] sm:$0xff]  ;;  %v913_v5 = vld [vmem:[%s15424_s1 + $0x1108] sm:$0xff] }
  0x35   : > { %7313 = vmatmul.msk.f32.gmra.mxu1 %vm1232_vm0, %v8680_v61  ;;  %1675 = vmatpush.msrb.mxu0 %v767_v4  ;;  %v370_v58 = vld [vmem:[%s15424_s1 + $0x10] sm:$0xff]  ;;  %v371_v59 = vld [vmem:[%s15424_s1 + $0x18] sm:$0xff]  ;;  %v912_v4 = vld [vmem:[%s15424_s1 + $0x1100] sm:$0xff] }
  0x36   : > { %1547 = vmatpush.msrb.mxu1 %v694_v11  ;;  %1748 = vmatpush.msrb.mxu2 %v1055_v20  ;;  %v8926_v60 = vld [vmem:[%s8574_s21 + $0xd8] sm:$0xff]  ;;  %v8947_v3 = vld [vmem:[%s8574_s21 + $0xd0] sm:$0xff]  ;;  %v877_v11 = vld [vmem:[%s15424_s1 + $0xfe8] sm:$0xff] }
  0x37   : > { %1676 = vmatpush.msrb.mxu0 %v731_v6  ;;  %1620 = vmatpush.msrb.mxu3 %v982_v40  ;;  %v8962_v6 = vld [vmem:[%s8574_s21 + $0xf8] sm:$0xff]  ;;  %v840_v19 = vld [vmem:[%s15424_s1 + $0xec0] sm:$0xff]  ;;  %v841_v20 = vld [vmem:[%s15424_s1 + $0xec8] sm:$0xff] }
  0x38   : > { %7330 = vmatmul.msk.f32.gmra.mxu3 %vm1232_vm0, %v8716_v7  ;;  %1548 = vmatpush.msrb.mxu1 %v658_v15  ;;  %v1165_v15 = vld [vmem:[%s15424_s1 + $0x18e8] sm:$0xff] }
  0x39   : > { %1677 = vmatpush.msrb.mxu0 %v695_v12  ;;  %1749 = vmatpush.msrb.mxu2 %v1019_v30  ;;  %v1164_v12 = vld [vmem:[%s15424_s1 + $0x18e0] sm:$0xff]  ;;  %v805_v29 = vld [vmem:[%s15424_s1 + $0xda8] sm:$0xff] }
  0x3a   : > { %1549 = vmatpush.msrb.mxu1 %v622_v21  ;;  %1621 = vmatpush.msrb.mxu3 %v946_v51 }
  0x3b   : > { %1433 = vmatmul.f32.gmra.mxu2 %v8719_v8  ;;  %1678 = vmatpush.msrb.mxu0 %v659_v16  ;;  %v8986_v16 = vld [vmem:[%s8574_s21 + $0xf0] sm:$0xff] }
  0x3c   : > { %1303 = vmatmul.f32.gmra.mxu0 %v8719_v8  ;;  %1550 = vmatpush.msrb.mxu1 %v586_v25 }
  0x3d   : > { %7314 = vmatmul.msk.f32.gmra.mxu1 %vm1232_vm0, %v8716_v7  ;;  %1679 = vmatpush.msrb.mxu0 %v623_v22 }
  0x3e   : > { %1551 = vmatpush.msrb.mxu1 %v550_v31  ;;  %1750 = vmatpush.msrb.mxu2 %v983_v41 }
  0x3f   : > { %1680 = vmatpush.msrb.mxu0 %v587_v26  ;;  %1874 = vmatpush.msra.mxu3 %v1200_v63  ;;  %v804_v26 = vld [vmem:[%s15424_s1 + $0xda0] sm:$0xff] }
  0x40   : > { %7331 = vmatmul.msk.f32.gmra.mxu3 %vm1232_vm0, %v8740_v13  ;;  %1552 = vmatpush.msrb.mxu1 %v514_v36  ;;  %v1129_v36 = vld [vmem:[%s15424_s1 + $0x17c8] sm:$0xff] }
  0x41   : > { %1681 = vmatpush.msrb.mxu0 %v551_v32  ;;  %1751 = vmatpush.msrb.mxu2 %v947_v52  ;;  %v1128_v32 = vld [vmem:[%s15424_s1 + $0x17c0] sm:$0xff] }
  0x42   : > { %1553 = vmatpush.msrb.mxu1 %v478_v42  ;;  %1875 = vmatpush.msra.mxu3 %v1164_v12  ;;  %v1093_v12 = vld [vmem:[%s15424_s1 + $0x16a8] sm:$0xff] }
  0x43   : > { %1436 = vmatmul.f32.gmra.mxu2 %v8743_v14  ;;  %1682 = vmatpush.msrb.mxu0 %v515_v37 }
  0x44   : > { %1306 = vmatmul.f32.gmra.mxu0 %v8743_v14  ;;  %1554 = vmatpush.msrb.mxu1 %v442_v46  ;;  %v768_v46 = vld [vmem:[%s15424_s1 + $0xc80] sm:$0xff] }
  0x45   : > { %7315 = vmatmul.msk.f32.gmra.mxu1 %vm1232_vm0, %v8740_v13  ;;  %1683 = vmatpush.msrb.mxu0 %v479_v43 }
  0x46   : > { %1555 = vmatpush.msrb.mxu1 %v406_v54  ;;  %2004 = vmatpush.msra.mxu2 %v1201_v0  ;;  %v732_v0 = vld [vmem:[%s15424_s1 + $0xb60] sm:$0xff] }
  0x47   : > { %1684 = vmatpush.msrb.mxu0 %v443_v47  ;;  %1876 = vmatpush.msra.mxu3 %v1128_v32  ;;  %v769_v47 = vld [vmem:[%s15424_s1 + $0xc88] sm:$0xff] }
  0x48   : > { %7332 = vmatmul.msk.f32.gmra.mxu3 %vm1232_vm0, %v8758_v17  ;;  %1556 = vmatpush.msrb.mxu1 %v370_v58 }
  0x49   : > { %1685 = vmatpush.msrb.mxu0 %v407_v55  ;;  %2005 = vmatpush.msra.mxu2 %v1165_v15 }
  0x4a   : > { %1801 = vmatpush.msra.mxu1 %v912_v4  ;;  %v733_v4 = vld [vmem:[%s15424_s1 + $0xb68] sm:$0xff] }
  0x4b   : > { %1439 = vmatmul.f32.gmra.mxu2 %v8761_v18  ;;  %1686 = vmatpush.msrb.mxu0 %v371_v59 }
  0x4c   : > { %1309 = vmatmul.f32.gmra.mxu0 %v8761_v18  ;;  %1802 = vmatpush.msra.mxu1 %v876_v10 }
  0x4d   : > { %7316 = vmatmul.msk.f32.gmra.mxu1 %vm1232_vm0, %v8758_v17  ;;  %1931 = vmatpush.msra.mxu0 %v913_v5 }
  0x4e   : > { %1803 = vmatpush.msra.mxu1 %v840_v19  ;;  %2006 = vmatpush.msra.mxu2 %v1129_v36 }
  0x4f   : > { %1932 = vmatpush.msra.mxu0 %v877_v11  ;;  %v1092_v11 = vld [vmem:[%s15424_s1 + $0x16a0] sm:$0xff] }
  0x50   : > { %7333 = vmatmul.msk.f32.gmra.mxu3 %vm1232_vm0, %v8782_v23  ;;  %1804 = vmatpush.msra.mxu1 %v804_v26  ;;  %v697_v26 = vld [vmem:[%s15424_s1 + $0xa48] sm:$0xff] }
  0x51   : > { %1933 = vmatpush.msra.mxu0 %v841_v20  ;;  %1877 = vmatpush.msra.mxu3 %v1092_v11 }
  0x52   : > { %1805 = vmatpush.msra.mxu1 %v768_v46  ;;  %2007 = vmatpush.msra.mxu2 %v1093_v12  ;;  %v660_v46 = vld [vmem:[%s15424_s1 + $0x920] sm:$0xff] }
  0x53   : > { %1442 = vmatmul.f32.gmra.mxu2 %v8785_v24  ;;  %1934 = vmatpush.msra.mxu0 %v805_v29  ;;  %v624_v12 = vld [vmem:[%s15424_s1 + $0x800] sm:$0xff] }
  0x54   : > { %1312 = vmatmul.f32.gmra.mxu0 %v8785_v24  ;;  %1806 = vmatpush.msra.mxu1 %v732_v0 }
  0x55   : > { %7317 = vmatmul.msk.f32.gmra.mxu1 %vm1232_vm0, %v8782_v23  ;;  %1935 = vmatpush.msra.mxu0 %v769_v47  ;;  %v661_v47 = vld [vmem:[%s15424_s1 + $0x928] sm:$0xff] }
  0x57   : > { %1936 = vmatpush.msra.mxu0 %v733_v4 }
  0x58   : > { %7334 = vmatmul.msk.f32.gmra.mxu3 %vm1232_vm0, %v8800_v27 }
  0x59   : > { %1937 = vmatpush.msra.mxu0 %v697_v26 }
  0x5b   : > { %1445 = vmatmul.f32.gmra.mxu2 %v8803_v28  ;;  %1938 = vmatpush.msra.mxu0 %v661_v47  ;;  %v589_v47 = vld [vmem:[%s15424_s1 + $0x6e8] sm:$0xff] }
  0x5c   : > { %1315 = vmatmul.f32.gmra.mxu0 %v8803_v28 }
  0x5d   : > { %7318 = vmatmul.msk.f32.gmra.mxu1 %vm1232_vm0, %v8800_v27 }
  0x60   : > { %7335 = vmatmul.msk.f32.gmra.mxu3 %vm1232_vm0, %v8824_v33 }
  0x63   : > { %1448 = vmatmul.f32.gmra.mxu2 %v8827_v34 }
  0x64   : > { %1318 = vmatmul.f32.gmra.mxu0 %v8827_v34 }
  0x65   : > { %7319 = vmatmul.msk.f32.gmra.mxu1 %vm1232_vm0, %v8824_v33 }
  0x68   : > { %7336 = vmatmul.msk.f32.gmra.mxu3 %vm1232_vm0, %v8842_v38 }
  0x6b   : > { %1451 = vmatmul.f32.gmra.mxu2 %v8845_v39 }
  0x6c   : > { %1321 = vmatmul.f32.gmra.mxu0 %v8845_v39 }
  0x6d   : > { %7320 = vmatmul.msk.f32.gmra.mxu1 %vm1232_vm0, %v8842_v38 }
  0x70   : > { %7337 = vmatmul.msk.f32.gmra.mxu3 %vm1232_vm0, %v8866_v44 }
  0x73   : > { %1454 = vmatmul.f32.gmra.mxu2 %v8869_v45 }
  0x74   : > { %1324 = vmatmul.f32.gmra.mxu0 %v8869_v45 }
  0x75   : > { %7321 = vmatmul.msk.f32.gmra.mxu1 %vm1232_vm0, %v8866_v44 }
  0x78   : > { %7338 = vmatmul.msk.f32.gmra.mxu3 %vm1232_vm0, %v8884_v48 }
  0x7b   : > { %1457 = vmatmul.f32.gmra.mxu2 %v8887_v50 }
  0x7c   : > { %1327 = vmatmul.f32.gmra.mxu0 %v8887_v50 }
  0x7d   : > { %7322 = vmatmul.msk.f32.gmra.mxu1 %vm1232_vm0, %v8884_v48 }
  0x80   : > { %7339 = vmatmul.msk.f32.gmra.mxu3 %vm1232_vm0, %v8908_v56 }
  0x83   : > { %1460 = vmatmul.f32.gmra.mxu2 %v8911_v57 }
  0x84   : > { %1330 = vmatmul.f32.gmra.mxu0 %v8911_v57 }
  0x85   : > { %7323 = vmatmul.msk.f32.gmra.mxu1 %vm1232_vm0, %v8908_v56 }
  0x88   : > { %7340 = vmatmul.msk.f32.gmra.mxu3 %vm1232_vm0, %v8926_v60 }
  0x8b   : > { %1463 = vmatmul.f32.gmra.mxu2 %v8929_v62 }
  0x8c   : > { %1333 = vmatmul.f32.gmra.mxu0 %v8929_v62 }
  0x8d   : > { %7324 = vmatmul.msk.f32.gmra.mxu1 %vm1232_vm0, %v8926_v60 }
  0x90   : > { %7341 = vmatmul.msk.f32.gmra.mxu3 %vm1232_vm0, %v8944_v1 }
  0x93   : > { %1466 = vmatmul.f32.gmra.mxu2 %v8947_v3 }
  0x94   : > { %1336 = vmatmul.f32.gmra.mxu0 %v8947_v3 }
  0x95   : > { %7325 = vmatmul.msk.f32.gmra.mxu1 %vm1232_vm0, %v8944_v1 }
  0x98   : > { %7342 = vmatmul.msk.f32.gmra.mxu3 %vm1232_vm0, %v8962_v6 }
  0x9b   : > { %1469 = vmatmul.f32.gmra.mxu2 %v8965_v9 }
  0x9c   : > { %1339 = vmatmul.f32.gmra.mxu0 %v8965_v9 }
  0x9d   : > { %7326 = vmatmul.msk.f32.gmra.mxu1 %vm1232_vm0, %v8962_v6 }
  0xa0   : > { %7343 = vmatmul.msk.f32.vlgmr.msrb.gmra.mxu3 %vm1232_vm0, %v8592_v35 }
  0xa1   : > { %v1363_v21 = vpop.f32.mrf.mxu1 }
  0xa3   : > { %1472 = vmatmul.f32.gmra.mxu2 %v8986_v16  ;;  %v1493_v22 = vpop.f32.mrf.mxu3 }
  0xa4   : > { %1342 = vmatmul.f32.gmra.mxu0 %v8986_v16 }
  0xa5   : > { %1557 = vmatmul.f32.vlgmr.msrb.gmra.mxu1 %v8650_v53 }
  0xa8   : > { %7344 = vmatmul.msk.f32.gmra.mxu3 %vm1232_vm0, %v8638_v49 }
  0xa9   : > { %v1298_v25 = vpop.f32.mrf.mxu0 }
  0xaa   : > { %v1366_v30 = vpop.f32.mrf.mxu1  ;;  %v9016_v37 = vadd.f32 %v1363_v21, %v1298_v25  ;;  %v696_v25 = vld [vmem:[%s15424_s1 + $0xa40] sm:$0xff] }
  0xab   : > { %7359 = vmatmul.msk.f32.vlgmr.msrb.gmra.mxu2 %vm1232_vm0, %v8592_v35  ;;  %v1496_v31 = vpop.f32.mrf.mxu3  ;;  %1807 = vmatpush.msra.mxu1 %v696_v25 }
  0xac   : > { %1687 = vmatmul.f32.vlgmr.msrb.gmra.mxu0 %v8650_v53 }
  0xad   : > { %1560 = vmatmul.f32.gmra.mxu1 %v8695_v2 }
  0xae   : > { %v1428_v40 = vpop.f32.mrf.mxu2  ;;  %1808 = vmatpush.msra.mxu1 %v660_v46  ;;  %v588_v46 = vld [vmem:[%s15424_s1 + $0x6e0] sm:$0xff] }
  0xaf   : > { %v9019_v41 = vadd.f32 %v1493_v22, %v1428_v40  ;;  %v480_v40 = vld [vmem:[%s15424_s1 + $0x380] sm:$0xff] }
  0xb0   : > { %7345 = vmatmul.msk.f32.gmra.mxu3 %vm1232_vm0, %v8680_v61  ;;  %1809 = vmatpush.msra.mxu1 %v624_v12 }
  0xb1   : > { %v1301_v43 = vpop.f32.mrf.mxu0 }
  0xb2   : > { %v1369_v51 = vpop.f32.mrf.mxu1  ;;  %v9034_v54 = vadd.f32 %v1366_v30, %v1301_v43  ;;  %1810 = vmatpush.msra.mxu1 %v588_v46  ;;  %v552_v46 = vld [vmem:[%s15424_s1 + $0x5c0] sm:$0xff] }
  0xb3   : > { %7360 = vmatmul.msk.f32.gmra.mxu2 %vm1232_vm0, %v8638_v49  ;;  %v1499_v52 = vpop.f32.mrf.mxu3 }
  0xb4   : > { %1690 = vmatmul.f32.gmra.mxu0 %v8695_v2  ;;  %1811 = vmatpush.msra.mxu1 %v552_v46 }
  0xb5   : > { %1563 = vmatmul.f32.gmra.mxu1 %v8719_v8 }
  0xb6   : > { %v1431_v55 = vpop.f32.mrf.mxu2 }
  0xb7   : > { %v9037_v58 = vadd.f32 %v1496_v31, %v1431_v55  ;;  %v1056_v55 = vld [vmem:[%s15424_s1 + $0x1580] sm:$0xff] }
  0xb8   : > { %7346 = vmatmul.msk.f32.gmra.mxu3 %vm1232_vm0, %v8716_v7 }
  0xb9   : > { %v1304_v63 = vpop.f32.mrf.mxu0  ;;  %1878 = vmatpush.msra.mxu3 %v1056_v55  ;;  %v1020_v55 = vld [vmem:[%s15424_s1 + $0x1460] sm:$0xff] }
  0xba   : > { %v1372_v5 = vpop.f32.mrf.mxu1  ;;  %v9058_v15 = vadd.f32 %v1369_v51, %v1304_v63  ;;  %v1057_v63 = vld [vmem:[%s15424_s1 + $0x1588] sm:$0xff] }
  0xbb   : > { %7361 = vmatmul.msk.f32.gmra.mxu2 %vm1232_vm0, %v8680_v61  ;;  %v1502_v10 = vpop.f32.mrf.mxu3  ;;  %1879 = vmatpush.msra.mxu3 %v1020_v55 }
  0xbc   : > { %1693 = vmatmul.f32.gmra.mxu0 %v8719_v8  ;;  %2008 = vmatpush.msra.mxu2 %v1057_v63  ;;  %v1021_v63 = vld [vmem:[%s15424_s1 + $0x1468] sm:$0xff] }
  0xbd   : > { %1566 = vmatmul.f32.gmra.mxu1 %v8743_v14 }
  0xbe   : > { %v1434_v19 = vpop.f32.mrf.mxu2  ;;  %2009 = vmatpush.msra.mxu2 %v1021_v63 }
  0xbf   : > { %v9061_v20 = vadd.f32 %v1499_v52, %v1434_v19  ;;  %v625_v19 = vld [vmem:[%s15424_s1 + $0x808] sm:$0xff] }
  0xc0   : > { %7347 = vmatmul.msk.f32.gmra.mxu3 %vm1232_vm0, %v8740_v13  ;;  %1939 = vmatpush.msra.mxu0 %v625_v19 }
  0xc1   : > { %v1307_v22 = vpop.f32.mrf.mxu0 }
  0xc2   : > { %v1375_v29 = vpop.f32.mrf.mxu1  ;;  %v9076_v31 = vadd.f32 %v1372_v5, %v1307_v22  ;;  %1940 = vmatpush.msra.mxu0 %v589_v47 }
  0xc3   : > { %7362 = vmatmul.msk.f32.gmra.mxu2 %vm1232_vm0, %v8716_v7  ;;  %v1505_v30 = vpop.f32.mrf.mxu3 }
  0xc4   : > { %1696 = vmatmul.f32.gmra.mxu0 %v8743_v14 }
  0xc5   : > { %1569 = vmatmul.f32.gmra.mxu1 %v8761_v18 }
  0xc6   : > { %v1437_v32 = vpop.f32.mrf.mxu2 }
  0xc7   : > { %v9079_v36 = vadd.f32 %v1502_v10, %v1437_v32  ;;  %v444_v32 = vld [vmem:[%s15424_s1 + $0x260] sm:$0xff] }
  0xc8   : > { %7348 = vmatmul.msk.f32.gmra.mxu3 %vm1232_vm0, %v8758_v17 }
  0xc9   : > { %v1310_v43 = vpop.f32.mrf.mxu0 }
  0xca   : > { %v1378_v51 = vpop.f32.mrf.mxu1  ;;  %v9100_v0 = vadd.f32 %v1375_v29, %v1310_v43 }
  0xcb   : > { %7363 = vmatmul.msk.f32.gmra.mxu2 %vm1232_vm0, %v8740_v13  ;;  %v1508_v52 = vpop.f32.mrf.mxu3 }
  0xcc   : > { %1699 = vmatmul.f32.gmra.mxu0 %v8761_v18 }
  0xcd   : > { %1572 = vmatmul.f32.gmra.mxu1 %v8785_v24 }
  0xce   : > { %v1440_v4 = vpop.f32.mrf.mxu2 }
  0xcf   : > { %v9103_v5 = vadd.f32 %v1505_v30, %v1440_v4 }
  0xd0   : > { %7349 = vmatmul.msk.f32.gmra.mxu3 %vm1232_vm0, %v8782_v23 }
  0xd1   : > { %v1313_v11 = vpop.f32.mrf.mxu0 }
  0xd2   : > { %v1381_v22 = vpop.f32.mrf.mxu1  ;;  %v9118_v26 = vadd.f32 %v1378_v51, %v1313_v11 }
  0xd3   : > { %7364 = vmatmul.msk.f32.gmra.mxu2 %vm1232_vm0, %v8758_v17  ;;  %v1511_v25 = vpop.f32.mrf.mxu3 }
  0xd4   : > { %1702 = vmatmul.f32.gmra.mxu0 %v8785_v24 }
  0xd5   : > { %1575 = vmatmul.f32.gmra.mxu1 %v8803_v28 }
  0xd6   : > { %v1443_v29 = vpop.f32.mrf.mxu2 }
  0xd7   : > { %v9121_v30 = vadd.f32 %v1508_v52, %v1443_v29 }
  0xd8   : > { %7350 = vmatmul.msk.f32.gmra.mxu3 %vm1232_vm0, %v8800_v27 }
  0xd9   : > { %v1316_v43 = vpop.f32.mrf.mxu0 }
  0xda   : > { %v1384_v51 = vpop.f32.mrf.mxu1  ;;  %v9142_v4 = vadd.f32 %v1381_v22, %v1316_v43  ;;  %v553_v22 = vld [vmem:[%s15424_s1 + $0x5c8] sm:$0xff] }
  0xdb   : > { %7365 = vmatmul.msk.f32.gmra.mxu2 %vm1232_vm0, %v8782_v23  ;;  %v1514_v52 = vpop.f32.mrf.mxu3  ;;  %1941 = vmatpush.msra.mxu0 %v553_v22  ;;  %v516_v22 = vld [vmem:[%s15424_s1 + $0x4a0] sm:$0xff] }
  0xdc   : > { %1705 = vmatmul.f32.gmra.mxu0 %v8803_v28  ;;  %1812 = vmatpush.msra.mxu1 %v516_v22 }
  0xdd   : > { %1578 = vmatmul.f32.gmra.mxu1 %v8827_v34 }
  0xde   : > { %v1446_v11 = vpop.f32.mrf.mxu2  ;;  %1813 = vmatpush.msra.mxu1 %v480_v40  ;;  %v949_v40 = vld [vmem:[%s15424_s1 + $0x1228] sm:$0xff] }
  0xdf   : > { %v9145_v12 = vadd.f32 %v1511_v25, %v1446_v11  ;;  %v985_v11 = vld [vmem:[%s15424_s1 + $0x1348] sm:$0xff] }
  0xe0   : > { %7351 = vmatmul.msk.f32.gmra.mxu3 %vm1232_vm0, %v8824_v33  ;;  %2010 = vmatpush.msra.mxu2 %v985_v11 }
  0xe1   : > { %v1319_v29 = vpop.f32.mrf.mxu0  ;;  %1814 = vmatpush.msra.mxu1 %v444_v32 }
  0xe2   : > { %v1387_v43 = vpop.f32.mrf.mxu1  ;;  %v9160_v47 = vadd.f32 %v1384_v51, %v1319_v29  ;;  %v517_v51 = vld [vmem:[%s15424_s1 + $0x4a8] sm:$0xff]  ;;  %2011 = vmatpush.msra.mxu2 %v949_v40 }
  0xe3   : > { %7366 = vmatmul.msk.f32.gmra.mxu2 %vm1232_vm0, %v8800_v27  ;;  %v1517_v25 = vpop.f32.mrf.mxu3  ;;  %1942 = vmatpush.msra.mxu0 %v517_v51 }
  0xe4   : > { %1708 = vmatmul.f32.gmra.mxu0 %v8827_v34 }
  0xe5   : > { %1581 = vmatmul.f32.gmra.mxu1 %v8845_v39 }
  0xe6   : > { %v1449_v55 = vpop.f32.mrf.mxu2 }
  0xe7   : > { %v9163_v63 = vadd.f32 %v1514_v52, %v1449_v55  ;;  %v984_v55 = vld [vmem:[%s15424_s1 + $0x1340] sm:$0xff] }
  0xe8   : > { %7352 = vmatmul.msk.f32.gmra.mxu3 %vm1232_vm0, %v8842_v38 }
  0xe9   : > { %v1322_v46 = vpop.f32.mrf.mxu0  ;;  %1880 = vmatpush.msra.mxu3 %v984_v55 }
  0xea   : > { %v1390_v29 = vpop.f32.mrf.mxu1  ;;  %v9184_v19 = vadd.f32 %v1387_v43, %v1322_v46  ;;  %v481_v43 = vld [vmem:[%s15424_s1 + $0x388] sm:$0xff] }
  0xeb   : > { %7367 = vmatmul.msk.f32.gmra.mxu2 %vm1232_vm0, %v8824_v33  ;;  %v1520_v52 = vpop.f32.mrf.mxu3  ;;  %1943 = vmatpush.msra.mxu0 %v481_v43 }
  0xec   : > { %1711 = vmatmul.f32.gmra.mxu0 %v8845_v39 }
  0xed   : > { %1584 = vmatmul.f32.gmra.mxu1 %v8869_v45 }
  0xee   : > { %v1452_v22 = vpop.f32.mrf.mxu2 }
  0xef   : > { %v9187_v51 = vadd.f32 %v1517_v25, %v1452_v22 }
  0xf0   : > { %7353 = vmatmul.msk.f32.gmra.mxu3 %vm1232_vm0, %v8866_v44 }
  0xf1   : > { %v1325_v10 = vpop.f32.mrf.mxu0 }
  0xf2   : > { %v1393_v46 = vpop.f32.mrf.mxu1  ;;  %v9202_v11 = vadd.f32 %v1390_v29, %v1325_v10  ;;  %v445_v10 = vld [vmem:[%s15424_s1 + $0x268] sm:$0xff] }
  0xf3   : > { %7368 = vmatmul.msk.f32.gmra.mxu2 %vm1232_vm0, %v8842_v38  ;;  %v1523_v25 = vpop.f32.mrf.mxu3  ;;  %1944 = vmatpush.msra.mxu0 %v445_v10 }
  0xf4   : > { %1714 = vmatmul.f32.gmra.mxu0 %v8869_v45 }
  0xf5   : > { %1587 = vmatmul.f32.gmra.mxu1 %v8887_v50 }
  0xf6   : > { %v1455_v55 = vpop.f32.mrf.mxu2 }
  0xf7   : > { %v9205_v22 = vadd.f32 %v1520_v52, %v1455_v55  ;;  %v948_v55 = vld [vmem:[%s15424_s1 + $0x1220] sm:$0xff] }
  0xf8   : > { %7354 = vmatmul.msk.f32.gmra.mxu3 %vm1232_vm0, %v8884_v48 }
  0xf9   : > { %v1328_v43 = vpop.f32.mrf.mxu0  ;;  %1881 = vmatpush.msra.mxu3 %v948_v55 }
  0xfa   : > { %v1396_v29 = vpop.f32.mrf.mxu1  ;;  %v9226_v21 = vadd.f32 %v1393_v46, %v1328_v43  ;;  %v409_v46 = vld [vmem:[%s15424_s1 + $0x148] sm:$0xff] }
  0xfb   : > { %7369 = vmatmul.msk.f32.gmra.mxu2 %vm1232_vm0, %v8866_v44  ;;  %v1526_v52 = vpop.f32.mrf.mxu3  ;;  %1945 = vmatpush.msra.mxu0 %v409_v46 }
  0xfc   : > { %1717 = vmatmul.f32.gmra.mxu0 %v8887_v50  ;;  %v408_v50 = vld [vmem:[%s15424_s1 + $0x140] sm:$0xff] }
  0xfd   : > { %1590 = vmatmul.f32.gmra.mxu1 %v8911_v57 }
  0xfe   : > { %v1458_v32 = vpop.f32.mrf.mxu2  ;;  %1815 = vmatpush.msra.mxu1 %v408_v50 }
  0xff   : > { %v9229_v10 = vadd.f32 %v1523_v25, %v1458_v32 }
 0x100   : > { %7355 = vmatmul.msk.f32.gmra.mxu3 %vm1232_vm0, %v8908_v56 }
 0x101   : > { %v1331_v59 = vpop.f32.mrf.mxu0 }
 0x102   : > { %v1399_v43 = vpop.f32.mrf.mxu1  ;;  %v9244_v40 = vadd.f32 %v1396_v29, %v1331_v59 }
 0x103   : > { %7370 = vmatmul.msk.f32.gmra.mxu2 %vm1232_vm0, %v8884_v48  ;;  %v1529_v25 = vpop.f32.mrf.mxu3  ;;  %v372_v48 = vld [vmem:[%s15424_s1 + $0x20] sm:$0xff] }
 0x104   : > { %1720 = vmatmul.f32.gmra.mxu0 %v8911_v57  ;;  %v373_v57 = vld [vmem:[%s15424_s1 + $0x28] sm:$0xff]  ;;  %1816 = vmatpush.msra.mxu1 %v372_v48 }
 0x105   : > { %1593 = vmatmul.f32.gmra.mxu1 %v8929_v62  ;;  %1946 = vmatpush.msra.mxu0 %v373_v57 }
 0x106   : > { %v1461_v55 = vpop.f32.mrf.mxu2 }
 0x107   : > { %v9247_v32 = vadd.f32 %v1526_v52, %v1461_v55  ;;  %v1202_v52 = vld [vmem:[%s15424_s1 + $0x1a10] sm:$0xff]  ;;  %v1203_v55 = vld [vmem:[%s15424_s1 + $0x1a18] sm:$0xff] }
 0x108   : > { %7356 = vmatmul.msk.f32.gmra.mxu3 %vm1232_vm0, %v8926_v60  ;;  %2264 = vmatpush.msrb.mxu2 %v1203_v55 }
 0x109   : > { %v1334_v46 = vpop.f32.mrf.mxu0  ;;  %2134 = vmatpush.msrb.mxu3 %v1202_v52 }
 0x10a   : > { %v1402_v59 = vpop.f32.mrf.mxu1  ;;  %v9268_v50 = vadd.f32 %v1399_v43, %v1334_v46  ;;  %v914_v43 = vld [vmem:[%s15424_s1 + $0x1110] sm:$0xff] }
 0x10b   : > { %7371 = vmatmul.msk.f32.gmra.mxu2 %vm1232_vm0, %v8908_v56  ;;  %v1532_v29 = vpop.f32.mrf.mxu3  ;;  %2061 = vmatpush.msrb.mxu1 %v914_v43 }
 0x10c   : > { %1723 = vmatmul.f32.gmra.mxu0 %v8929_v62 }
 0x10d   : > { %1596 = vmatmul.f32.gmra.mxu1 %v8947_v3 }
 0x10e   : > { %v1464_v48 = vpop.f32.mrf.mxu2 }
 0x10f   : > { %v9271_v57 = vadd.f32 %v1529_v25, %v1464_v48  ;;  %v915_v25 = vld [vmem:[%s15424_s1 + $0x1118] sm:$0xff] }
 0x110   : > { %7357 = vmatmul.msk.f32.gmra.mxu3 %vm1232_vm0, %v8944_v1  ;;  %2191 = vmatpush.msrb.mxu0 %v915_v25 }
 0x111   : > { %v1337_v44 = vpop.f32.mrf.mxu0 }
 0x112   : > { %v1405_v42 = vpop.f32.mrf.mxu1  ;;  %v9286_v46 = vadd.f32 %v1402_v59, %v1337_v44  ;;  %v878_v44 = vld [vmem:[%s15424_s1 + $0xff0] sm:$0xff]  ;;  %v879_v59 = vld [vmem:[%s15424_s1 + $0xff8] sm:$0xff] }
 0x113   : > { %7372 = vmatmul.msk.f32.gmra.mxu2 %vm1232_vm0, %v8926_v60  ;;  %v1535_v62 = vpop.f32.mrf.mxu3  ;;  %2062 = vmatpush.msrb.mxu1 %v878_v44 }
 0x114   : > { %1726 = vmatmul.f32.gmra.mxu0 %v8947_v3 }
 0x115   : > { %1599 = vmatmul.f32.gmra.mxu1 %v8965_v9  ;;  %2192 = vmatpush.msrb.mxu0 %v879_v59 }
 0x116   : > { %v1467_v52 = vpop.f32.mrf.mxu2 }
 0x117   : > { %v9289_v55 = vadd.f32 %v1532_v29, %v1467_v52  ;;  %v1166_v29 = vld [vmem:[%s15424_s1 + $0x18f0] sm:$0xff] }
 0x118   : > { %7358 = vmatmul.msk.f32.gmra.mxu3 %vm1232_vm0, %v8962_v6 }
 0x119   : > { %v1340_v48 = vpop.f32.mrf.mxu0  ;;  %2135 = vmatpush.msrb.mxu3 %v1166_v29 }
 0x11a   : > { %v1408_v56 = vpop.f32.mrf.mxu1  ;;  %v9310_v43 = vadd.f32 %v1405_v42, %v1340_v48  ;;  %v842_v48 = vld [vmem:[%s15424_s1 + $0xed0] sm:$0xff] }
 0x11b   : > { %7373 = vmatmul.msk.f32.gmra.mxu2 %vm1232_vm0, %v8944_v1  ;;  %v1538_v3 = vpop.f32.mrf.mxu3  ;;  %v1167_v1 = vld [vmem:[%s15424_s1 + $0x18f8] sm:$0xff]  ;;  %2063 = vmatpush.msrb.mxu1 %v842_v48 }
 0x11c   : > { %1729 = vmatmul.f32.gmra.mxu0 %v8965_v9  ;;  %2265 = vmatpush.msrb.mxu2 %v1167_v1  ;;  %v9338_v9 = vld [vmem:[%s8574_s21 + $0x8] sm:$0xff] }
 0x11d   : > { %1602 = vmatmul.f32.gmra.mxu1 %v8986_v16 }
 0x11e   : > { %v1470_v25 = vpop.f32.mrf.mxu2 }
 0x11f   : > { %v9313_v52 = vadd.f32 %v1535_v62, %v1470_v25  ;;  %v843_v62 = vld [vmem:[%s15424_s1 + $0xed8] sm:$0xff] }
 0x120   : > { %7375 = vmatmul.msk.f32.vlgmr.msra.gmra.mxu3 %vm1232_vm0, %v8592_v35  ;;  %2193 = vmatpush.msrb.mxu0 %v843_v62 }
 0x121   : > { %15437 = vst [vmem:[#allocation2_spill] sm:$0xff] %v9313_v52  ;;  %v1343_v44 = vpop.f32.mrf.mxu0  ;;  %v9364_v52 = vld [vmem:[%s8574_s21 + $0x18] sm:$0xff] }
 0x122   : > { %v1558_v60 = vpop.f32.mrf.mxu1  ;;  %v9328_v35 = vadd.f32 %v1408_v56, %v1343_v44  ;;  %v806_v56 = vld [vmem:[%s15424_s1 + $0xdb0] sm:$0xff]  ;;  %v1131_v44 = vld [vmem:[%s15424_s1 + $0x17d8] sm:$0xff] }
 0x123   : > { %7374 = vmatmul.msk.f32.gmra.mxu2 %vm1232_vm0, %v8962_v6  ;;  %v1623_v42 = vpop.f32.mrf.mxu3  ;;  %2064 = vmatpush.msrb.mxu1 %v806_v56 }
 0x124   : > { %1732 = vmatmul.f32.gmra.mxu0 %v8986_v16  ;;  %15438 = vst [vmem:[#allocation3_spill] sm:$0xff] %v9328_v35  ;;  %v1624_v48 = vadd.f32 %v1623_v42, %v1558_v60  ;;  %2266 = vmatpush.msrb.mxu2 %v1131_v44  ;;  %v770_v42 = vld [vmem:[%s15424_s1 + $0xc90] sm:$0xff] }
 0x125   : > { %1817 = vmatmul.f32.vlgmr.msra.gmra.mxu1 %v8650_v53 }
 0x126   : > { %v1473_v59 = vpop.f32.mrf.mxu2  ;;  %2065 = vmatpush.msrb.mxu1 %v770_v42 }
 0x127   : > { %v9331_v29 = vadd.f32 %v1538_v3, %v1473_v59  ;;  %v807_v3 = vld [vmem:[%s15424_s1 + $0xdb8] sm:$0xff] }
 0x128   : > { %7376 = vmatmul.msk.f32.gmra.mxu3 %vm1232_vm0, %v8638_v49  ;;  %v1130_v49 = vld [vmem:[%s15424_s1 + $0x17d0] sm:$0xff]  ;;  %2194 = vmatpush.msrb.mxu0 %v807_v3 }
 0x129   : > { %15439 = vst [vmem:[#allocation4_spill] sm:$0xff] %v9331_v29  ;;  %v1688_v1 = vpop.f32.mrf.mxu0  ;;  %2136 = vmatpush.msrb.mxu3 %v1130_v49 }
 0x12a   : > { %v1561_v25 = vpop.f32.mrf.mxu1 }
 0x12b   : > { %7391 = vmatmul.msk.f32.vlgmr.msra.gmra.mxu2 %vm1232_vm0, %v9338_v9  ;;  %v1626_v16 = vpop.f32.mrf.mxu3 }
 0x12c   : > { %1947 = vmatmul.f32.vlgmr.msra.gmra.mxu0 %v8650_v53  ;;  %v15440_v53 = vmax.f32 %v9016_v37, %v9019_v41  ;;  %v1627_v37 = vadd.f32 %v1626_v16, %v1561_v25  ;;  %v734_v25 = vld [vmem:[%s15424_s1 + $0xb70] sm:$0xff] }
 0x12d   : > { %1820 = vmatmul.f32.gmra.mxu1 %v8695_v2  ;;  %v1094_v16 = vld [vmem:[%s15424_s1 + $0x16b0] sm:$0xff] }
 0x12e   : > { %v1753_v62 = vpop.f32.mrf.mxu2  ;;  %2066 = vmatpush.msrb.mxu1 %v734_v25  ;;  %2137 = vmatpush.msrb.mxu3 %v1094_v16 }
 0x12f   : > { %v1754_v59 = vadd.f32 %v1753_v62, %v1688_v1  ;;  %v771_v1 = vld [vmem:[%s15424_s1 + $0xc98] sm:$0xff] }
 0x130   : > { %7377 = vmatmul.msk.f32.gmra.mxu3 %vm1232_vm0, %v8680_v61  ;;  %2195 = vmatpush.msrb.mxu0 %v771_v1 }
 0x131   : > { %v5977_v6 = vmax.f32 %v1624_v48, %v1754_v59  ;;  %v1691_v29 = vpop.f32.mrf.mxu0  ;;  %v15441_v48 = vmax.f32 %v9034_v54, %v9037_v58 }
 0x132   : > { %v1564_v35 = vpop.f32.mrf.mxu1 }
 0x133   : > { %v9361_v56 = vmax.f32 %v15440_v53, %v5977_v6  ;;  %7392 = vmatmul.msk.f32.gmra.mxu2 %vm1232_vm0, %v9364_v52  ;;  %v1629_v60 = vpop.f32.mrf.mxu3 }
 0x134   : > { %1950 = vmatmul.f32.gmra.mxu0 %v8695_v2  ;;  %v1630_v54 = vadd.f32 %v1629_v60, %v1564_v35  ;;  %v698_v60 = vld [vmem:[%s15424_s1 + $0xa50] sm:$0xff] }
 0x135   : > { %1823 = vmatmul.f32.gmra.mxu1 %v8719_v8 }
 0x136   : > { %v1756_v41 = vpop.f32.mrf.mxu2  ;;  %2067 = vmatpush.msrb.mxu1 %v698_v60  ;;  %v15445_v60 = vmax.f32 %v9118_v26, %v9121_v30  ;;  %v1022_v26 = vld [vmem:[%s15424_s1 + $0x1470] sm:$0xff]  ;;  %v1023_v30 = vld [vmem:[%s15424_s1 + $0x1478] sm:$0xff] }
 0x137   : > { %v1757_v6 = vadd.f32 %v1756_v41, %v1691_v29  ;;  %v735_v29 = vld [vmem:[%s15424_s1 + $0xb78] sm:$0xff] }
 0x138   : > { %7378 = vmatmul.msk.f32.gmra.mxu3 %vm1232_vm0, %v8716_v7  ;;  %2196 = vmatpush.msrb.mxu0 %v735_v29  ;;  %v699_v41 = vld [vmem:[%s15424_s1 + $0xa58] sm:$0xff]  ;;  %v1058_v29 = vld [vmem:[%s15424_s1 + $0x1590] sm:$0xff] }
 0x139   : > { %v5978_v3 = vmax.f32 %v1627_v37, %v1757_v6  ;;  %v1694_v49 = vpop.f32.mrf.mxu0  ;;  %2138 = vmatpush.msrb.mxu3 %v1058_v29 }
 0x13a   : > { %v1567_v44 = vpop.f32.mrf.mxu1  ;;  %2197 = vmatpush.msrb.mxu0 %v699_v41 }
 0x13b   : > { %v9381_v62 = vmax.f32 %v15441_v48, %v5978_v3  ;;  %7393 = vmatmul.msk.f32.gmra.mxu2 %vm1232_vm0, %v8680_v61  ;;  %v1632_v2 = vpop.f32.mrf.mxu3  ;;  %v1095_v61 = vld [vmem:[%s15424_s1 + $0x16b8] sm:$0xff]  ;;  %v15443_v48 = vmax.f32 %v9076_v31, %v9079_v36  ;;  %2139 = vmatpush.msrb.mxu3 %v1022_v26  ;;  %v9553_v26 = vld [vmem:[%s8574_s21 + $0x90] sm:$0xff] }
 0x13c   : > { %1953 = vmatmul.f32.gmra.mxu0 %v8719_v8  ;;  %2267 = vmatpush.msrb.mxu2 %v1095_v61  ;;  %v15442_v8 = vmax.f32 %v9058_v15, %v9061_v20  ;;  %v1633_v6 = vadd.f32 %v1632_v2, %v1567_v44  ;;  %v662_v44 = vld [vmem:[%s15424_s1 + $0x930] sm:$0xff]  ;;  %v663_v2 = vld [vmem:[%s15424_s1 + $0x938] sm:$0xff] }
 0x13d   : > { %1826 = vmatmul.f32.gmra.mxu1 %v8743_v14  ;;  %2198 = vmatpush.msrb.mxu0 %v663_v2  ;;  %v9490_v2 = vld [vmem:[%s8574_s21 + $0x78] sm:$0xff] }
 0x13e   : > { %v1759_v58 = vpop.f32.mrf.mxu2  ;;  %2068 = vmatpush.msrb.mxu1 %v662_v44 }
 0x13f   : > { %v1760_v59 = vadd.f32 %v1759_v58, %v1694_v49 }
 0x140   : > { %7379 = vmatmul.msk.f32.gmra.mxu3 %vm1232_vm0, %v8740_v13 }
 0x141   : > { %v5979_v53 = vmax.f32 %v1630_v54, %v1760_v59  ;;  %v1697_v42 = vpop.f32.mrf.mxu0 }
 0x142   : > { %v1570_v1 = vpop.f32.mrf.mxu1 }
 0x143   : > { %v9404_v37 = vmax.f32 %v15442_v8, %v5979_v53  ;;  %7394 = vmatmul.msk.f32.gmra.mxu2 %vm1232_vm0, %v8716_v7  ;;  %v1635_v35 = vpop.f32.mrf.mxu3 }
 0x144   : > { %1956 = vmatmul.f32.gmra.mxu0 %v8743_v14  ;;  %v1636_v31 = vadd.f32 %v1635_v35, %v1570_v1 }
 0x145   : > { %1829 = vmatmul.f32.gmra.mxu1 %v8761_v18 }
 0x146   : > { %v1762_v15 = vpop.f32.mrf.mxu2 }
 0x147   : > { %v1763_v20 = vadd.f32 %v1762_v15, %v1697_v42  ;;  %v626_v42 = vld [vmem:[%s15424_s1 + $0x810] sm:$0xff] }
 0x148   : > { %7380 = vmatmul.msk.f32.gmra.mxu3 %vm1232_vm0, %v8758_v17  ;;  %2069 = vmatpush.msrb.mxu1 %v626_v42  ;;  %v590_v15 = vld [vmem:[%s15424_s1 + $0x6f0] sm:$0xff] }
 0x149   : > { %v5980_v7 = vmax.f32 %v1633_v6, %v1763_v20  ;;  %v1700_v3 = vpop.f32.mrf.mxu0  ;;  %v9464_v6 = vld [vmem:[%s8574_s21 + $0x68] sm:$0xff] }
 0x14a   : > { %v1573_v49 = vpop.f32.mrf.mxu1  ;;  %2070 = vmatpush.msrb.mxu1 %v590_v15  ;;  %v482_v15 = vld [vmem:[%s15424_s1 + $0x390] sm:$0xff] }
 0x14b   : > { %v9421_v25 = vmax.f32 %v15443_v48, %v5980_v7  ;;  %7395 = vmatmul.msk.f32.gmra.mxu2 %vm1232_vm0, %v8740_v13  ;;  %v1638_v14 = vpop.f32.mrf.mxu3  ;;  %v1059_v13 = vld [vmem:[%s15424_s1 + $0x1598] sm:$0xff] }
 0x14c   : > { %1959 = vmatmul.f32.gmra.mxu0 %v8761_v18  ;;  %2268 = vmatpush.msrb.mxu2 %v1059_v13  ;;  %v15444_v18 = vmax.f32 %v9100_v0, %v9103_v5  ;;  %v1639_v1 = vadd.f32 %v1638_v14, %v1573_v49  ;;  %v554_v13 = vld [vmem:[%s15424_s1 + $0x5d0] sm:$0xff] }
 0x14d   : > { %1832 = vmatmul.f32.gmra.mxu1 %v8785_v24 }
 0x14e   : > { %v1765_v36 = vpop.f32.mrf.mxu2  ;;  %2269 = vmatpush.msrb.mxu2 %v1023_v30  ;;  %2071 = vmatpush.msrb.mxu1 %v554_v13  ;;  %v446_v13 = vld [vmem:[%s15424_s1 + $0x270] sm:$0xff] }
 0x14f   : > { %v1766_v16 = vadd.f32 %v1765_v36, %v1700_v3 }
 0x150   : > { %7381 = vmatmul.msk.f32.gmra.mxu3 %vm1232_vm0, %v8782_v23  ;;  %v627_v23 = vld [vmem:[%s15424_s1 + $0x818] sm:$0xff] }
 0x151   : > { %v5981_v61 = vmax.f32 %v1636_v31, %v1766_v16  ;;  %v1703_v54 = vpop.f32.mrf.mxu0  ;;  %2199 = vmatpush.msrb.mxu0 %v627_v23 }
 0x152   : > { %v1576_v58 = vpop.f32.mrf.mxu1 }
 0x153   : > { %v9444_v59 = vmax.f32 %v15444_v18, %v5981_v61  ;;  %7396 = vmatmul.msk.f32.gmra.mxu2 %vm1232_vm0, %v8758_v17  ;;  %v1641_v53 = vpop.f32.mrf.mxu3  ;;  %v518_v18 = vld [vmem:[%s15424_s1 + $0x4b0] sm:$0xff] }
 0x154   : > { %1962 = vmatmul.f32.gmra.mxu0 %v8785_v24  ;;  %v1642_v20 = vadd.f32 %v1641_v53, %v1576_v58  ;;  %2072 = vmatpush.msrb.mxu1 %v518_v18  ;;  %v987_v53 = vld [vmem:[%s15424_s1 + $0x1358] sm:$0xff]  ;;  %v15450_v18 = vmax.f32 %v9226_v21, %v9229_v10 }
 0x155   : > { %1835 = vmatmul.f32.gmra.mxu1 %v8803_v28  ;;  %2270 = vmatpush.msrb.mxu2 %v987_v53  ;;  %v410_v53 = vld [vmem:[%s15424_s1 + $0x150] sm:$0xff] }
 0x156   : > { %v1768_v0 = vpop.f32.mrf.mxu2  ;;  %2073 = vmatpush.msrb.mxu1 %v482_v15 }
 0x157   : > { %v1769_v5 = vadd.f32 %v1768_v0, %v1703_v54  ;;  %v15447_v54 = vmax.f32 %v9160_v47, %v9163_v63  ;;  %v986_v47 = vld [vmem:[%s15424_s1 + $0x1350] sm:$0xff]  ;;  %v9524_v63 = vld [vmem:[%s8574_s21 + $0x80] sm:$0xff]  ;;  %v9532_v0 = vld [vmem:[%s8574_s21 + $0xa8] sm:$0xff] }
 0x158   : > { %7382 = vmatmul.msk.f32.gmra.mxu3 %vm1232_vm0, %v8800_v27  ;;  %v591_v27 = vld [vmem:[%s15424_s1 + $0x6f8] sm:$0xff]  ;;  %2074 = vmatpush.msrb.mxu1 %v446_v13 }
 0x159   : > { %v5982_v17 = vmax.f32 %v1639_v1, %v1769_v5  ;;  %v1706_v8 = vpop.f32.mrf.mxu0  ;;  %2200 = vmatpush.msrb.mxu0 %v591_v27  ;;  %2140 = vmatpush.msrb.mxu3 %v986_v47  ;;  %v483_v27 = vld [vmem:[%s15424_s1 + $0x398] sm:$0xff] }
 0x15a   : > { %v1579_v35 = vpop.f32.mrf.mxu1  ;;  %2075 = vmatpush.msrb.mxu1 %v410_v53 }
 0x15b   : > { %v9461_v41 = vmax.f32 %v15445_v60, %v5982_v17  ;;  %7397 = vmatmul.msk.f32.gmra.mxu2 %vm1232_vm0, %v9464_v6  ;;  %v1644_v24 = vpop.f32.mrf.mxu3  ;;  %v9542_v60 = vld [vmem:[%s8574_s21 + $0x98] sm:$0xff] }
 0x15c   : > { %1965 = vmatmul.f32.gmra.mxu0 %v8803_v28  ;;  %v15446_v28 = vmax.f32 %v9142_v4, %v9145_v12  ;;  %v1645_v4 = vadd.f32 %v1644_v24, %v1579_v35  ;;  %v15448_v35 = vmax.f32 %v9184_v19, %v9187_v51  ;;  %v9557_v51 = vld [vmem:[%s8574_s21 + $0xa0] sm:$0xff] }
 0x15d   : > { %1838 = vmatmul.f32.gmra.mxu1 %v8827_v34 }
 0x15e   : > { %v1771_v7 = vpop.f32.mrf.mxu2 }
 0x15f   : > { %v1772_v3 = vadd.f32 %v1771_v7, %v1706_v8  ;;  %v9561_v7 = vld [vmem:[%s8574_s21 + $0xb8] sm:$0xff] }
 0x160   : > { %7383 = vmatmul.msk.f32.gmra.mxu3 %vm1232_vm0, %v8824_v33  ;;  %v555_v33 = vld [vmem:[%s15424_s1 + $0x5d8] sm:$0xff] }
 0x161   : > { %v5983_v49 = vmax.f32 %v1642_v20, %v1772_v3  ;;  %v1709_v48 = vpop.f32.mrf.mxu0  ;;  %2201 = vmatpush.msrb.mxu0 %v555_v33  ;;  %v447_v33 = vld [vmem:[%s15424_s1 + $0x278] sm:$0xff] }
 0x162   : > { %v1582_v14 = vpop.f32.mrf.mxu1 }
 0x163   : > { %v9487_v44 = vmax.f32 %v15446_v28, %v5983_v49  ;;  %7398 = vmatmul.msk.f32.gmra.mxu2 %vm1232_vm0, %v9490_v2  ;;  %v1647_v29 = vpop.f32.mrf.mxu3 }
 0x164   : > { %1968 = vmatmul.f32.gmra.mxu0 %v8827_v34  ;;  %v9510_v34 = vld [vmem:[%s8574_s21 + $0x88] sm:$0xff]  ;;  %v1648_v42 = vadd.f32 %v1647_v29, %v1582_v14  ;;  %v15449_v14 = vmax.f32 %v9202_v11, %v9205_v22  ;;  %v951_v11 = vld [vmem:[%s15424_s1 + $0x1238] sm:$0xff] }
 0x165   : > { %1841 = vmatmul.f32.gmra.mxu1 %v8845_v39  ;;  %2271 = vmatpush.msrb.mxu2 %v951_v11 }
 0x166   : > { %v1774_v12 = vpop.f32.mrf.mxu2 }
 0x167   : > { %v1775_v31 = vadd.f32 %v1774_v12, %v1709_v48  ;;  %v9586_v12 = vld [vmem:[%s8574_s21 + $0xb0] sm:$0xff] }
 0x168   : > { %7384 = vmatmul.msk.f32.gmra.mxu3 %vm1232_vm0, %v8842_v38  ;;  %v519_v38 = vld [vmem:[%s15424_s1 + $0x4b8] sm:$0xff] }
 0x169   : > { %v5984_v36 = vmax.f32 %v1645_v4, %v1775_v31  ;;  %v1712_v16 = vpop.f32.mrf.mxu0  ;;  %2202 = vmatpush.msrb.mxu0 %v519_v38  ;;  %v950_v4 = vld [vmem:[%s15424_s1 + $0x1230] sm:$0xff] }
 0x16a   : > { %v1585_v61 = vpop.f32.mrf.mxu1  ;;  %2141 = vmatpush.msrb.mxu3 %v950_v4  ;;  %v15452_v4 = vmax.f32 %v9268_v50, %v9271_v57 }
 0x16b   : > { %v9507_v58 = vmax.f32 %v15447_v54, %v5984_v36  ;;  %7399 = vmatmul.msk.f32.gmra.mxu2 %vm1232_vm0, %v9510_v34  ;;  %v1650_v39 = vpop.f32.mrf.mxu3  ;;  %2203 = vmatpush.msrb.mxu0 %v483_v27 }
 0x16c   : > { %1971 = vmatmul.f32.gmra.mxu0 %v9524_v63  ;;  %v1651_v19 = vadd.f32 %v1650_v39, %v1585_v61 }
 0x16d   : > { %1844 = vmatmul.f32.gmra.mxu1 %v8869_v45  ;;  %2204 = vmatpush.msrb.mxu0 %v447_v33 }
 0x16e   : > { %v1777_v23 = vpop.f32.mrf.mxu2 }
 0x16f   : > { %v1778_v1 = vadd.f32 %v1777_v23, %v1712_v16  ;;  %v9590_v16 = vld [vmem:[%s8574_s21 + $0xc8] sm:$0xff] }
 0x170   : > { %7385 = vmatmul.msk.f32.gmra.mxu3 %vm1232_vm0, %v9532_v0 }
 0x171   : > { %v5985_v5 = vmax.f32 %v1648_v42, %v1778_v1  ;;  %v1715_v17 = vpop.f32.mrf.mxu0  ;;  %v411_v42 = vld [vmem:[%s15424_s1 + $0x158] sm:$0xff]  ;;  %v9609_v1 = vld [vmem:[%s8574_s21 + $0xc0] sm:$0xff] }
 0x172   : > { %v1588_v8 = vpop.f32.mrf.mxu1  ;;  %2205 = vmatpush.msrb.mxu0 %v411_v42  ;;  %v15453_v42 = vmax.f32 %v9286_v46, %v9289_v55  ;;  %v1169_v46 = vld [vmem:[%s15424_s1 + $0x1908] sm:$0xff] }
 0x173   : > { %v9539_v45 = vmax.f32 %v15448_v35, %v5985_v5  ;;  %7400 = vmatmul.msk.f32.gmra.mxu2 %vm1232_vm0, %v9542_v60  ;;  %v1653_v24 = vpop.f32.mrf.mxu3  ;;  %v9613_v5 = vld [vmem:[%s8574_s21 + $0xd8] sm:$0xff] }
 0x174   : > { %1974 = vmatmul.f32.gmra.mxu0 %v9553_v26  ;;  %v1654_v22 = vadd.f32 %v1653_v24, %v1588_v8  ;;  %v15451_v24 = vmax.f32 %v9244_v40, %v9247_v32  ;;  %v1205_v40 = vld [vmem:[%s15424_s1 + $0x1a28] sm:$0xff] }
 0x175   : > { %1847 = vmatmul.f32.gmra.mxu1 %v9557_v51  ;;  %2524 = vmatpush.msra.mxu2 %v1205_v40  ;;  %v15454_v40 = vld [vmem:[#allocation2_spill] sm:$0xff] }
 0x176   : > { %v1780_v30 = vpop.f32.mrf.mxu2 }
 0x177   : > { %v1781_v20 = vadd.f32 %v1780_v30, %v1715_v17  ;;  %v375_v30 = vld [vmem:[%s15424_s1 + $0x38] sm:$0xff]  ;;  %2525 = vmatpush.msra.mxu2 %v1169_v46 }
 0x178   : > { %7386 = vmatmul.msk.f32.gmra.mxu3 %vm1232_vm0, %v9561_v7  ;;  %2206 = vmatpush.msrb.mxu0 %v375_v30 }
 0x179   : > { %v5986_v3 = vmax.f32 %v1651_v19, %v1781_v20  ;;  %v1718_v49 = vpop.f32.mrf.mxu0  ;;  %v374_v19 = vld [vmem:[%s15424_s1 + $0x30] sm:$0xff]  ;;  %v1204_v20 = vld [vmem:[%s15424_s1 + $0x1a20] sm:$0xff] }
 0x17a   : > { %v1591_v48 = vpop.f32.mrf.mxu1  ;;  %2076 = vmatpush.msrb.mxu1 %v374_v19  ;;  %2394 = vmatpush.msra.mxu3 %v1204_v20 }
 0x17b   : > { %v9568_v28 = vmax.f32 %v15449_v14, %v5986_v3  ;;  %7401 = vmatmul.msk.f32.gmra.mxu2 %vm1232_vm0, %v9532_v0  ;;  %v1656_v29 = vpop.f32.mrf.mxu3  ;;  %v9638_v3 = vld [vmem:[%s8574_s21 + $0xd0] sm:$0xff]  ;;  %v9642_v14 = vld [vmem:[%s8574_s21 + $0xe8] sm:$0xff] }
 0x17c   : > { %1977 = vmatmul.f32.gmra.mxu0 %v9557_v51  ;;  %v1657_v23 = vadd.f32 %v1656_v29, %v1591_v48 }
 0x17d   : > { %1850 = vmatmul.f32.gmra.mxu1 %v9586_v12 }
 0x17e   : > { %v1783_v31 = vpop.f32.mrf.mxu2 }
 0x17f   : > { %v1784_v36 = vadd.f32 %v1783_v31, %v1718_v49  ;;  %v916_v31 = vld [vmem:[%s15424_s1 + $0x1120] sm:$0xff] }
 0x180   : > { %7387 = vmatmul.msk.f32.gmra.mxu3 %vm1232_vm0, %v9590_v16  ;;  %2321 = vmatpush.msra.mxu1 %v916_v31 }
 0x181   : > { %v5987_v61 = vmax.f32 %v1654_v22, %v1784_v36  ;;  %v1721_v54 = vpop.f32.mrf.mxu0  ;;  %v917_v36 = vld [vmem:[%s15424_s1 + $0x1128] sm:$0xff] }
 0x182   : > { %v1594_v39 = vpop.f32.mrf.mxu1  ;;  %2451 = vmatpush.msra.mxu0 %v917_v36 }
 0x183   : > { %v9597_v38 = vmax.f32 %v15450_v18, %v5987_v61  ;;  %7402 = vmatmul.msk.f32.gmra.mxu2 %vm1232_vm0, %v9561_v7  ;;  %v1659_v47 = vpop.f32.mrf.mxu3 }
 0x184   : > { %1980 = vmatmul.f32.gmra.mxu0 %v9586_v12  ;;  %v1660_v32 = vadd.f32 %v1659_v47, %v1594_v39  ;;  %v9665_v39 = vld [vmem:[%s8574_s21 + $0xf8] sm:$0xff] }
 0x185   : > { %1853 = vmatmul.f32.gmra.mxu1 %v9609_v1 }
 0x186   : > { %v1786_v21 = vpop.f32.mrf.mxu2 }
 0x187   : > { %v1787_v10 = vadd.f32 %v1786_v21, %v1721_v54  ;;  %v9661_v54 = vld [vmem:[%s8574_s21 + $0xe0] sm:$0xff] }
 0x188   : > { %7388 = vmatmul.msk.f32.gmra.mxu3 %vm1232_vm0, %v9613_v5 }
 0x189   : > { %v5988_v17 = vmax.f32 %v1657_v23, %v1787_v10  ;;  %v1724_v8 = vpop.f32.mrf.mxu0  ;;  %v880_v10 = vld [vmem:[%s15424_s1 + $0x1000] sm:$0xff] }
 0x18a   : > { %v1597_v35 = vpop.f32.mrf.mxu1  ;;  %2322 = vmatpush.msra.mxu1 %v880_v10  ;;  %v1132_v10 = vld [vmem:[%s15424_s1 + $0x17e0] sm:$0xff] }
 0x18b   : > { %v9620_v15 = vmax.f32 %v15451_v24, %v5988_v17  ;;  %7403 = vmatmul.msk.f32.gmra.mxu2 %vm1232_vm0, %v9590_v16  ;;  %v1662_v27 = vpop.f32.mrf.mxu3  ;;  %v881_v17 = vld [vmem:[%s15424_s1 + $0x1008] sm:$0xff] }
 0x18c   : > { %1983 = vmatmul.f32.gmra.mxu0 %v9609_v1  ;;  %v1663_v61 = vadd.f32 %v1662_v27, %v1597_v35  ;;  %v9690_v35 = vld [vmem:[%s8574_s21 + $0xf0] sm:$0xff] }
 0x18d   : > { %1856 = vmatmul.f32.gmra.mxu1 %v9638_v3  ;;  %2452 = vmatpush.msra.mxu0 %v881_v17 }
 0x18e   : > { %v1789_v49 = vpop.f32.mrf.mxu2 }
 0x18f   : > { %v1790_v48 = vadd.f32 %v1789_v49, %v1724_v8  ;;  %v1168_v8 = vld [vmem:[%s15424_s1 + $0x1900] sm:$0xff] }
 0x190   : > { %7389 = vmatmul.msk.f32.gmra.mxu3 %vm1232_vm0, %v9642_v14 }
 0x191   : > { %v5989_v29 = vmax.f32 %v1660_v32, %v1790_v48  ;;  %v1727_v13 = vpop.f32.mrf.mxu0  ;;  %2395 = vmatpush.msra.mxu3 %v1168_v8  ;;  %v15455_v32 = vmax.f32 %v9310_v43, %v15454_v40  ;;  %v9736_v8 = vld [vmem:[%s8574_s21 + $0x10] sm:$0xff] }
 0x192   : > { %v1600_v33 = vpop.f32.mrf.mxu1 }
 0x193   : > { %v9649_v11 = vmax.f32 %v15452_v4, %v5989_v29  ;;  %7404 = vmatmul.msk.f32.gmra.mxu2 %vm1232_vm0, %v9613_v5  ;;  %v1665_v22 = vpop.f32.mrf.mxu3  ;;  %v844_v29 = vld [vmem:[%s15424_s1 + $0xee0] sm:$0xff]  ;;  %2396 = vmatpush.msra.mxu3 %v1132_v10 }
 0x194   : > { %1986 = vmatmul.f32.gmra.mxu0 %v9638_v3  ;;  %v1666_v55 = vadd.f32 %v1665_v22, %v1600_v33  ;;  %2323 = vmatpush.msra.mxu1 %v844_v29  ;;  %v9710_v4 = vld [vmem:[%s8574_s21] sm:$0xff] }
 0x195   : > { %1859 = vmatmul.f32.gmra.mxu1 %v9661_v54 }
 0x196   : > { %v1792_v50 = vpop.f32.mrf.mxu2 }
 0x197   : > { %v1793_v57 = vadd.f32 %v1792_v50, %v1727_v13  ;;  %v845_v13 = vld [vmem:[%s15424_s1 + $0xee8] sm:$0xff] }
 0x198   : > { %7390 = vmatmul.msk.f32.gmra.mxu3 %vm1232_vm0, %v9665_v39  ;;  %2453 = vmatpush.msra.mxu0 %v845_v13  ;;  %v15456_v50 = vld [vmem:[#allocation3_spill] sm:$0xff]  ;;  %v9757_v13 = vld [vmem:[%s8574_s21 + $0x20] sm:$0xff] }
 0x199   : > { %v5990_v18 = vmax.f32 %v1663_v61, %v1793_v57  ;;  %v1730_v47 = vpop.f32.mrf.mxu0  ;;  %v15457_v57 = vld [vmem:[#allocation4_spill] sm:$0xff] }
 0x19a   : > { %v1603_v53 = vpop.f32.mrf.mxu1 }
 0x19b   : > { %v9672_v23 = vmax.f32 %v15453_v42, %v5990_v18  ;;  %7405 = vmatmul.msk.f32.gmra.mxu2 %vm1232_vm0, %v9642_v14  ;;  %v1668_v21 = vpop.f32.mrf.mxu3  ;;  %v15458_v18 = vmax.f32 %v15456_v50, %v15457_v57  ;;  %v808_v42 = vld [vmem:[%s15424_s1 + $0xdc0] sm:$0xff]  ;;  %v737_v57 = vld [vmem:[%s15424_s1 + $0xb88] sm:$0xff] }
 0x19c   : > { %1989 = vmatmul.f32.gmra.mxu0 %v9661_v54  ;;  %v1669_v33 = vadd.f32 %v1668_v21, %v1603_v53  ;;  %v809_v21 = vld [vmem:[%s15424_s1 + $0xdc8] sm:$0xff]  ;;  %2324 = vmatpush.msra.mxu1 %v808_v42  ;;  %v736_v50 = vld [vmem:[%s15424_s1 + $0xb80] sm:$0xff]  ;;  %v9784_v42 = vld [vmem:[%s8574_s21 + $0x30] sm:$0xff] }
 0x19d   : > { %1862 = vmatmul.f32.gmra.mxu1 %v9690_v35  ;;  %2454 = vmatpush.msra.mxu0 %v809_v21 }
 0x19e   : > { %v1795_v24 = vpop.f32.mrf.mxu2 }
 0x19f   : > { %v1796_v27 = vadd.f32 %v1795_v24, %v1730_v47  ;;  %v9740_v24 = vld [vmem:[%s8574_s21 + $0x28] sm:$0xff] }
 0x1a0   : > { %7407 = vmatmul.msk.f32.vlgmr.msrb.gmra.mxu3 %vm1232_vm0, %v9338_v9 }
 0x1a1   : > { %v5991_v19 = vmax.f32 %v1666_v55, %v1796_v27  ;;  %v1733_v30 = vpop.f32.mrf.mxu0 }
 0x1a2   : > { %v1818_v20 = vpop.f32.mrf.mxu1 }
 0x1a3   : > { %v9698_v49 = vmax.f32 %v15455_v32, %v5991_v19  ;;  %7406 = vmatmul.msk.f32.gmra.mxu2 %vm1232_vm0, %v9665_v39  ;;  %v1883_v48 = vpop.f32.mrf.mxu3  ;;  %v772_v32 = vld [vmem:[%s15424_s1 + $0xca0] sm:$0xff] }
 0x1a4   : > { %1992 = vmatmul.f32.gmra.mxu0 %v9690_v35  ;;  %v1884_v17 = vadd.f32 %v1883_v48, %v1818_v20  ;;  %v773_v48 = vld [vmem:[%s15424_s1 + $0xca8] sm:$0xff]  ;;  %2325 = vmatpush.msra.mxu1 %v772_v32 }
 0x1a5   : > { %2077 = vmatmul.f32.vlgmr.msrb.gmra.mxu1 %v9710_v4  ;;  %2455 = vmatpush.msra.mxu0 %v773_v48  ;;  %v9805_v48 = vld [vmem:[%s8574_s21 + $0x40] sm:$0xff] }
 0x1a6   : > { %v1798_v43 = vpop.f32.mrf.mxu2  ;;  %2326 = vmatpush.msra.mxu1 %v736_v50 }
 0x1a7   : > { %v1799_v22 = vadd.f32 %v1798_v43, %v1733_v30  ;;  %2456 = vmatpush.msra.mxu0 %v737_v57  ;;  %v665_v57 = vld [vmem:[%s15424_s1 + $0x948] sm:$0xff] }
 0x1a8   : > { %7408 = vmatmul.msk.f32.gmra.mxu3 %vm1232_vm0, %v9364_v52 }
 0x1a9   : > { %v5992_v31 = vmax.f32 %v1669_v33, %v1799_v22  ;;  %v1948_v36 = vpop.f32.mrf.mxu0  ;;  %v9761_v33 = vld [vmem:[%s8574_s21 + $0x38] sm:$0xff] }
 0x1aa   : > { %v1821_v61 = vpop.f32.mrf.mxu1 }
 0x1ab   : > { %v9718_v47 = vmax.f32 %v15458_v18, %v5992_v31  ;;  %7423 = vmatmul.msk.f32.vlgmr.msrb.gmra.mxu2 %vm1232_vm0, %v9338_v9  ;;  %v1886_v53 = vpop.f32.mrf.mxu3  ;;  %v1133_v9 = vld [vmem:[%s15424_s1 + $0x17e8] sm:$0xff]  ;;  %v1096_v18 = vld [vmem:[%s15424_s1 + $0x16c0] sm:$0xff] }
 0x1ac   : > { %2207 = vmatmul.f32.vlgmr.msrb.gmra.mxu0 %v9710_v4  ;;  %2526 = vmatpush.msra.mxu2 %v1133_v9  ;;  %v1887_v29 = vadd.f32 %v1886_v53, %v1821_v61  ;;  %v9788_v9 = vld [vmem:[%s8574_s21 + $0x48] sm:$0xff] }
 0x1ad   : > { %2080 = vmatmul.f32.gmra.mxu1 %v9736_v8  ;;  %2397 = vmatpush.msra.mxu3 %v1096_v18  ;;  %v1060_v18 = vld [vmem:[%s15424_s1 + $0x15a0] sm:$0xff] }
 0x1ae   : > { %v2013_v46 = vpop.f32.mrf.mxu2 }
 0x1af   : > { %v2014_v55 = vadd.f32 %v2013_v46, %v1948_v36  ;;  %2398 = vmatpush.msra.mxu3 %v1060_v18 }
 0x1b0   : > { %7409 = vmatmul.msk.f32.gmra.mxu3 %vm1232_vm0, %v9740_v24 }
 0x1b1   : > { %v5993_v27 = vmax.f32 %v1884_v17, %v2014_v55  ;;  %v1951_v19 = vpop.f32.mrf.mxu0 }
 0x1b2   : > { %v1824_v30 = vpop.f32.mrf.mxu1 }
 0x1b3   : > { %v9745_v20 = vmax.f32 %v5993_v27, %v9361_v56  ;;  %7424 = vmatmul.msk.f32.gmra.mxu2 %vm1232_vm0, %v9364_v52  ;;  %v1889_v40 = vpop.f32.mrf.mxu3 }
 0x1b4   : > { %2210 = vmatmul.f32.gmra.mxu0 %v9736_v8  ;;  %v1890_v53 = vadd.f32 %v1889_v40, %v1824_v30  ;;  %v700_v30 = vld [vmem:[%s15424_s1 + $0xa60] sm:$0xff]  ;;  %v701_v40 = vld [vmem:[%s15424_s1 + $0xa68] sm:$0xff] }
 0x1b5   : > { %2083 = vmatmul.f32.gmra.mxu1 %v9757_v13  ;;  %2457 = vmatpush.msra.mxu0 %v701_v40 }
 0x1b6   : > { %v2016_v56 = vpop.f32.mrf.mxu2  ;;  %2327 = vmatpush.msra.mxu1 %v700_v30 }
 0x1b7   : > { %v2017_v52 = vadd.f32 %v2016_v56, %v1951_v19  ;;  %v9809_v56 = vld [vmem:[%s8574_s21 + $0x58] sm:$0xff]  ;;  %2458 = vmatpush.msra.mxu0 %v665_v57 }
 0x1b8   : > { %7410 = vmatmul.msk.f32.gmra.mxu3 %vm1232_vm0, %v9761_v33 }
 0x1b9   : > { %v5994_v43 = vmax.f32 %v1887_v29, %v2017_v52  ;;  %v1954_v22 = vpop.f32.mrf.mxu0 }
 0x1ba   : > { %v1827_v31 = vpop.f32.mrf.mxu1 }
 0x1bb   : > { %v9766_v36 = vmax.f32 %v5994_v43, %v9381_v62  ;;  %7425 = vmatmul.msk.f32.gmra.mxu2 %vm1232_vm0, %v9740_v24  ;;  %v1892_v61 = vpop.f32.mrf.mxu3  ;;  %v1097_v62 = vld [vmem:[%s15424_s1 + $0x16c8] sm:$0xff] }
 0x1bc   : > { %2213 = vmatmul.f32.gmra.mxu0 %v9757_v13  ;;  %2527 = vmatpush.msra.mxu2 %v1097_v62  ;;  %v1893_v32 = vadd.f32 %v1892_v61, %v1827_v31  ;;  %v664_v61 = vld [vmem:[%s15424_s1 + $0x940] sm:$0xff] }
 0x1bd   : > { %2086 = vmatmul.f32.gmra.mxu1 %v9784_v42 }
 0x1be   : > { %v2019_v21 = vpop.f32.mrf.mxu2  ;;  %2328 = vmatpush.msra.mxu1 %v664_v61 }
 0x1bf   : > { %v2020_v10 = vadd.f32 %v2019_v21, %v1954_v22 }
 0x1c0   : > { %7411 = vmatmul.msk.f32.gmra.mxu3 %vm1232_vm0, %v9788_v9 }
 0x1c1   : > { %v5995_v17 = vmax.f32 %v1890_v53, %v2020_v10  ;;  %v1957_v46 = vpop.f32.mrf.mxu0  ;;  %v9832_v53 = vld [vmem:[%s8574_s21 + $0x50] sm:$0xff] }
 0x1c2   : > { %v1830_v55 = vpop.f32.mrf.mxu1 }
 0x1c3   : > { %v9793_v27 = vmax.f32 %v5995_v17, %v9404_v37  ;;  %7426 = vmatmul.msk.f32.gmra.mxu2 %vm1232_vm0, %v9761_v33  ;;  %v1895_v19 = vpop.f32.mrf.mxu3 }
 0x1c4   : > { %2216 = vmatmul.f32.gmra.mxu0 %v9784_v42  ;;  %v1896_v62 = vadd.f32 %v1895_v19, %v1830_v55  ;;  %v628_v19 = vld [vmem:[%s15424_s1 + $0x820] sm:$0xff] }
 0x1c5   : > { %2089 = vmatmul.f32.gmra.mxu1 %v9805_v48 }
 0x1c6   : > { %v2022_v37 = vpop.f32.mrf.mxu2  ;;  %2329 = vmatpush.msra.mxu1 %v628_v19 }
 0x1c7   : > { %v2023_v29 = vadd.f32 %v2022_v37, %v1957_v46 }
 0x1c8   : > { %7412 = vmatmul.msk.f32.gmra.mxu3 %vm1232_vm0, %v9809_v56 }
 0x1c9   : > { %v5996_v52 = vmax.f32 %v1893_v32, %v2023_v29  ;;  %v1960_v43 = vpop.f32.mrf.mxu0  ;;  %v629_v32 = vld [vmem:[%s15424_s1 + $0x828] sm:$0xff]  ;;  %v9850_v29 = vld [vmem:[%s8574_s21 + $0x60] sm:$0xff] }
 0x1ca   : > { %v1833_v22 = vpop.f32.mrf.mxu1  ;;  %2459 = vmatpush.msra.mxu0 %v629_v32 }
 0x1cb   : > { %v9814_v50 = vmax.f32 %v5996_v52, %v9421_v25  ;;  %7427 = vmatmul.msk.f32.gmra.mxu2 %vm1232_vm0, %v9788_v9  ;;  %v1898_v31 = vpop.f32.mrf.mxu3  ;;  %v1061_v25 = vld [vmem:[%s15424_s1 + $0x15a8] sm:$0xff] }
 0x1cc   : > { %2219 = vmatmul.f32.gmra.mxu0 %v9805_v48  ;;  %2528 = vmatpush.msra.mxu2 %v1061_v25  ;;  %v1899_v37 = vadd.f32 %v1898_v31, %v1833_v22  ;;  %v592_v31 = vld [vmem:[%s15424_s1 + $0x700] sm:$0xff]  ;;  %v593_v25 = vld [vmem:[%s15424_s1 + $0x708] sm:$0xff] }
 0x1cd   : > { %2092 = vmatmul.f32.gmra.mxu1 %v9832_v53  ;;  %2460 = vmatpush.msra.mxu0 %v593_v25 }
 0x1ce   : > { %v2025_v21 = vpop.f32.mrf.mxu2  ;;  %2330 = vmatpush.msra.mxu1 %v592_v31 }
 0x1cf   : > { %v2026_v10 = vadd.f32 %v2025_v21, %v1960_v43  ;;  %v9874_v21 = vld [vmem:[%s8574_s21 + $0x70] sm:$0xff] }
 0x1d0   : > { %7413 = vmatmul.msk.f32.gmra.mxu3 %vm1232_vm0, %v9464_v6 }
 0x1d1   : > { %v5997_v17 = vmax.f32 %v1896_v62, %v2026_v10  ;;  %v1963_v46 = vpop.f32.mrf.mxu0  ;;  %v1024_v62 = vld [vmem:[%s15424_s1 + $0x1480] sm:$0xff] }
 0x1d2   : > { %v1836_v30 = vpop.f32.mrf.mxu1  ;;  %2399 = vmatpush.msra.mxu3 %v1024_v62 }
 0x1d3   : > { %v9838_v40 = vmax.f32 %v5997_v17, %v9444_v59  ;;  %7428 = vmatmul.msk.f32.gmra.mxu2 %vm1232_vm0, %v9809_v56  ;;  %v1901_v55 = vpop.f32.mrf.mxu3 }
 0x1d4   : > { %2222 = vmatmul.f32.gmra.mxu0 %v9832_v53 }
 0x1d5   : > { %2095 = vmatmul.f32.gmra.mxu1 %v9850_v29 }
 0x1d6   : > { %v2028_v59 = vpop.f32.mrf.mxu2 }
 0x1d7   : > { %v2029_v52 = vadd.f32 %v2028_v59, %v1963_v46  ;;  %v557_v59 = vld [vmem:[%s15424_s1 + $0x5e8] sm:$0xff] }
 0x1d8   : > { %7414 = vmatmul.msk.f32.gmra.mxu3 %vm1232_vm0, %v9490_v2  ;;  %2461 = vmatpush.msra.mxu0 %v557_v59 }
 0x1d9   : > { %v5998_v43 = vmax.f32 %v1899_v37, %v2029_v52  ;;  %v1966_v61 = vpop.f32.mrf.mxu0 }
 0x1da   : > { %v1839_v57 = vpop.f32.mrf.mxu1 }
 0x1db   : > { %v9856_v18 = vmax.f32 %v5998_v43, %v9461_v41  ;;  %7429 = vmatmul.msk.f32.gmra.mxu2 %vm1232_vm0, %v9464_v6  ;;  %v1904_v22 = vpop.f32.mrf.mxu3  ;;  %v1025_v41 = vld [vmem:[%s15424_s1 + $0x1488] sm:$0xff]  ;;  %v1902_v6 = vadd.f32 %v1901_v55, %v1836_v30  ;;  %v556_v55 = vld [vmem:[%s15424_s1 + $0x5e0] sm:$0xff] }
 0x1dc   : > { %2225 = vmatmul.f32.gmra.mxu0 %v9850_v29  ;;  %2529 = vmatpush.msra.mxu2 %v1025_v41  ;;  %v1905_v52 = vadd.f32 %v1904_v22, %v1839_v57  ;;  %v520_v57 = vld [vmem:[%s15424_s1 + $0x4c0] sm:$0xff]  ;;  %v521_v22 = vld [vmem:[%s15424_s1 + $0x4c8] sm:$0xff] }
 0x1dd   : > { %2098 = vmatmul.f32.gmra.mxu1 %v9874_v21  ;;  %v988_v41 = vld [vmem:[%s15424_s1 + $0x1360] sm:$0xff]  ;;  %2462 = vmatpush.msra.mxu0 %v521_v22 }
 0x1de   : > { %v2031_v10 = vpop.f32.mrf.mxu2  ;;  %2331 = vmatpush.msra.mxu1 %v556_v55  ;;  %2400 = vmatpush.msra.mxu3 %v988_v41  ;;  %v485_v55 = vld [vmem:[%s15424_s1 + $0x3a8] sm:$0xff] }
 0x1df   : > { %v2032_v17 = vadd.f32 %v2031_v10, %v1966_v61  ;;  %2463 = vmatpush.msra.mxu0 %v485_v55 }
 0x1e0   : > { %7415 = vmatmul.msk.f32.gmra.mxu3 %vm1232_vm0, %v9510_v34  ;;  %2332 = vmatpush.msra.mxu1 %v520_v57 }
 0x1e1   : > { %v5999_v46 = vmax.f32 %v1902_v6, %v2032_v17  ;;  %v1969_v19 = vpop.f32.mrf.mxu0 }
 0x1e2   : > { %v1842_v32 = vpop.f32.mrf.mxu1 }
 0x1e3   : > { %v9880_v37 = vmax.f32 %v5999_v46, %v9487_v44  ;;  %7430 = vmatmul.msk.f32.gmra.mxu2 %vm1232_vm0, %v9490_v2  ;;  %v1907_v30 = vpop.f32.mrf.mxu3 }
 0x1e4   : > { %2228 = vmatmul.f32.gmra.mxu0 %v9874_v21 }
 0x1e5   : > { %2101 = vmatmul.f32.gmra.mxu1 %v9524_v63 }
 0x1e6   : > { %v2034_v44 = vpop.f32.mrf.mxu2 }
 0x1e7   : > { %v2035_v43 = vadd.f32 %v2034_v44, %v1969_v19 }
 0x1e8   : > { %7416 = vmatmul.msk.f32.gmra.mxu3 %vm1232_vm0, %v9542_v60 }
 0x1e9   : > { %v6000_v2 = vmax.f32 %v1905_v52, %v2035_v43  ;;  %v1972_v61 = vpop.f32.mrf.mxu0 }
 0x1ea   : > { %v1845_v31 = vpop.f32.mrf.mxu1 }
 0x1eb   : > { %v9895_v25 = vmax.f32 %v6000_v2, %v9507_v58  ;;  %7431 = vmatmul.msk.f32.gmra.mxu2 %vm1232_vm0, %v9510_v34  ;;  %v1910_v62 = vpop.f32.mrf.mxu3  ;;  %v989_v58 = vld [vmem:[%s15424_s1 + $0x1368] sm:$0xff]  ;;  %v1908_v34 = vadd.f32 %v1907_v30, %v1842_v32  ;;  %v484_v30 = vld [vmem:[%s15424_s1 + $0x3a0] sm:$0xff] }
 0x1ec   : > { %2231 = vmatmul.f32.gmra.mxu0 %v9524_v63  ;;  %2530 = vmatpush.msra.mxu2 %v989_v58  ;;  %v1911_v59 = vadd.f32 %v1910_v62, %v1845_v31  ;;  %v449_v31 = vld [vmem:[%s15424_s1 + $0x288] sm:$0xff]  ;;  %v952_v62 = vld [vmem:[%s15424_s1 + $0x1240] sm:$0xff] }
 0x1ed   : > { %2104 = vmatmul.f32.gmra.mxu1 %v9553_v26  ;;  %2464 = vmatpush.msra.mxu0 %v449_v31 }
 0x1ee   : > { %v2037_v6 = vpop.f32.mrf.mxu2  ;;  %2333 = vmatpush.msra.mxu1 %v484_v30  ;;  %2401 = vmatpush.msra.mxu3 %v952_v62  ;;  %v918_v62 = vld [vmem:[%s15424_s1 + $0x1130] sm:$0xff] }
 0x1ef   : > { %v2038_v10 = vadd.f32 %v2037_v6, %v1972_v61  ;;  %v448_v61 = vld [vmem:[%s15424_s1 + $0x280] sm:$0xff] }
 0x1f0   : > { %7417 = vmatmul.msk.f32.gmra.mxu3 %vm1232_vm0, %v9532_v0  ;;  %2334 = vmatpush.msra.mxu1 %v448_v61 }
 0x1f1   : > { %v6001_v17 = vmax.f32 %v1908_v34, %v2038_v10  ;;  %v1975_v46 = vpop.f32.mrf.mxu0  ;;  %v412_v10 = vld [vmem:[%s15424_s1 + $0x160] sm:$0xff] }
 0x1f2   : > { %v1848_v19 = vpop.f32.mrf.mxu1  ;;  %2335 = vmatpush.msra.mxu1 %v412_v10  ;;  %v1170_v10 = vld [vmem:[%s15424_s1 + $0x1910] sm:$0xff] }
 0x1f3   : > { %v9916_v63 = vmax.f32 %v6001_v17, %v9539_v45  ;;  %7432 = vmatmul.msk.f32.gmra.mxu2 %vm1232_vm0, %v9542_v60  ;;  %v1913_v32 = vpop.f32.mrf.mxu3  ;;  %v413_v17 = vld [vmem:[%s15424_s1 + $0x168] sm:$0xff] }
 0x1f4   : > { %2234 = vmatmul.f32.gmra.mxu0 %v9553_v26 }
 0x1f5   : > { %2107 = vmatmul.f32.gmra.mxu1 %v9557_v51  ;;  %2465 = vmatpush.msra.mxu0 %v413_v17 }
 0x1f6   : > { %v2040_v45 = vpop.f32.mrf.mxu2 }
 0x1f7   : > { %v2041_v52 = vadd.f32 %v2040_v45, %v1975_v46  ;;  %v377_v45 = vld [vmem:[%s15424_s1 + $0x48] sm:$0xff] }
 0x1f8   : > { %7418 = vmatmul.msk.f32.gmra.mxu3 %vm1232_vm0, %v9561_v7  ;;  %2466 = vmatpush.msra.mxu0 %v377_v45 }
 0x1f9   : > { %v6002_v60 = vmax.f32 %v1911_v59, %v2041_v52  ;;  %v1978_v44 = vpop.f32.mrf.mxu0  ;;  %v376_v59 = vld [vmem:[%s15424_s1 + $0x40] sm:$0xff]  ;;  %v1206_v52 = vld [vmem:[%s15424_s1 + $0x1a30] sm:$0xff] }
 0x1fa   : > { %v1851_v43 = vpop.f32.mrf.mxu1  ;;  %2336 = vmatpush.msra.mxu1 %v376_v59  ;;  %2654 = vmatpush.msrb.mxu3 %v1206_v52  ;;  %v847_v59 = vld [vmem:[%s15424_s1 + $0xef8] sm:$0xff] }
 0x1fb   : > { %v9931_v2 = vmax.f32 %v6002_v60, %v9568_v28  ;;  %7433 = vmatmul.msk.f32.gmra.mxu2 %vm1232_vm0, %v9532_v0  ;;  %v1916_v26 = vpop.f32.mrf.mxu3  ;;  %v953_v0 = vld [vmem:[%s15424_s1 + $0x1248] sm:$0xff]  ;;  %v1914_v28 = vadd.f32 %v1913_v32, %v1848_v19 }
 0x1fc   : > { %2237 = vmatmul.f32.gmra.mxu0 %v9557_v51  ;;  %2531 = vmatpush.msra.mxu2 %v953_v0  ;;  %v1917_v46 = vadd.f32 %v1916_v26, %v1851_v43  ;;  %v919_v0 = vld [vmem:[%s15424_s1 + $0x1138] sm:$0xff] }
 0x1fd   : > { %2110 = vmatmul.f32.gmra.mxu1 %v9586_v12  ;;  %2711 = vmatpush.msrb.mxu0 %v919_v0 }
 0x1fe   : > { %v2043_v57 = vpop.f32.mrf.mxu2  ;;  %2581 = vmatpush.msrb.mxu1 %v918_v62  ;;  %2655 = vmatpush.msrb.mxu3 %v1170_v10 }
 0x1ff   : > { %v2044_v22 = vadd.f32 %v2043_v57, %v1978_v44 }
 0x200   : > { %7419 = vmatmul.msk.f32.gmra.mxu3 %vm1232_vm0, %v9590_v16 }
 0x201   : > { %v6003_v41 = vmax.f32 %v1914_v28, %v2044_v22  ;;  %v1981_v58 = vpop.f32.mrf.mxu0 }
 0x202   : > { %v1854_v34 = vpop.f32.mrf.mxu1 }
 0x203   : > { %v9952_v51 = vmax.f32 %v6003_v41, %v9597_v38  ;;  %7434 = vmatmul.msk.f32.gmra.mxu2 %vm1232_vm0, %v9561_v7  ;;  %v1919_v6 = vpop.f32.mrf.mxu3 }
 0x204   : > { %2240 = vmatmul.f32.gmra.mxu0 %v9586_v12 }
 0x205   : > { %2113 = vmatmul.f32.gmra.mxu1 %v9609_v1 }
 0x206   : > { %v2046_v38 = vpop.f32.mrf.mxu2 }
 0x207   : > { %v2047_v19 = vadd.f32 %v2046_v38, %v1981_v58  ;;  %v10022_v38 = vld [vmem:[%s8574_s21 + $0x8] sm:$0xff] }
 0x208   : > { %7420 = vmatmul.msk.f32.gmra.mxu3 %vm1232_vm0, %v9613_v5 }
 0x209   : > { %v6004_v7 = vmax.f32 %v1917_v46, %v2047_v19  ;;  %v1984_v32 = vpop.f32.mrf.mxu0 }
 0x20a   : > { %v1857_v30 = vpop.f32.mrf.mxu1 }
 0x20b   : > { %v9967_v55 = vmax.f32 %v6004_v7, %v9620_v15  ;;  %7435 = vmatmul.msk.f32.gmra.mxu2 %vm1232_vm0, %v9590_v16  ;;  %v1922_v12 = vpop.f32.mrf.mxu3  ;;  %v1207_v16 = vld [vmem:[%s15424_s1 + $0x1a38] sm:$0xff]  ;;  %v1920_v15 = vadd.f32 %v1919_v6, %v1854_v34  ;;  %v882_v34 = vld [vmem:[%s15424_s1 + $0x1010] sm:$0xff] }
 0x20c   : > { %2243 = vmatmul.f32.gmra.mxu0 %v9609_v1  ;;  %2784 = vmatpush.msrb.mxu2 %v1207_v16  ;;  %v1923_v28 = vadd.f32 %v1922_v12, %v1857_v30  ;;  %v883_v6 = vld [vmem:[%s15424_s1 + $0x1018] sm:$0xff]  ;;  %v846_v12 = vld [vmem:[%s15424_s1 + $0xef0] sm:$0xff] }
 0x20d   : > { %2116 = vmatmul.f32.gmra.mxu1 %v9638_v3  ;;  %2712 = vmatpush.msrb.mxu0 %v883_v6  ;;  %v10040_v16 = vld [vmem:[%s8574_s21 + $0x18] sm:$0xff] }
 0x20e   : > { %v2049_v60 = vpop.f32.mrf.mxu2  ;;  %2582 = vmatpush.msrb.mxu1 %v882_v34 }
 0x20f   : > { %v2050_v44 = vadd.f32 %v2049_v60, %v1984_v32  ;;  %2713 = vmatpush.msrb.mxu0 %v847_v59 }
 0x210   : > { %7421 = vmatmul.msk.f32.gmra.mxu3 %vm1232_vm0, %v9642_v14  ;;  %2583 = vmatpush.msrb.mxu1 %v846_v12 }
 0x211   : > { %v6005_v43 = vmax.f32 %v1920_v15, %v2050_v44  ;;  %v1987_v26 = vpop.f32.mrf.mxu0 }
 0x212   : > { %v1860_v61 = vpop.f32.mrf.mxu1 }
 0x213   : > { %v9988_v1 = vmax.f32 %v6005_v43, %v9649_v11  ;;  %7436 = vmatmul.msk.f32.gmra.mxu2 %vm1232_vm0, %v9613_v5  ;;  %v1925_v31 = vpop.f32.mrf.mxu3  ;;  %v810_v43 = vld [vmem:[%s15424_s1 + $0xdd0] sm:$0xff] }
 0x214   : > { %2246 = vmatmul.f32.gmra.mxu0 %v9638_v3  ;;  %2584 = vmatpush.msrb.mxu1 %v810_v43 }
 0x215   : > { %2119 = vmatmul.f32.gmra.mxu1 %v9661_v54 }
 0x216   : > { %v2052_v11 = vpop.f32.mrf.mxu2 }
 0x217   : > { %v2053_v57 = vadd.f32 %v2052_v11, %v1987_v26  ;;  %v811_v26 = vld [vmem:[%s15424_s1 + $0xdd8] sm:$0xff] }
 0x218   : > { %7422 = vmatmul.msk.f32.gmra.mxu3 %vm1232_vm0, %v9665_v39  ;;  %2714 = vmatpush.msrb.mxu0 %v811_v26  ;;  %v666_v26 = vld [vmem:[%s15424_s1 + $0x950] sm:$0xff] }
 0x219   : > { %v6006_v5 = vmax.f32 %v1923_v28, %v2053_v57  ;;  %v1990_v22 = vpop.f32.mrf.mxu0 }
 0x21a   : > { %v1863_v41 = vpop.f32.mrf.mxu1 }
 0x21b   : > { %v10003_v58 = vmax.f32 %v6006_v5, %v9672_v23  ;;  %7437 = vmatmul.msk.f32.gmra.mxu2 %vm1232_vm0, %v9642_v14  ;;  %v1928_v3 = vpop.f32.mrf.mxu3  ;;  %v1171_v14 = vld [vmem:[%s15424_s1 + $0x1918] sm:$0xff]  ;;  %v1926_v23 = vadd.f32 %v1925_v31, %v1860_v61  ;;  %v1134_v61 = vld [vmem:[%s15424_s1 + $0x17f0] sm:$0xff] }
 0x21c   : > { %2249 = vmatmul.f32.gmra.mxu0 %v9661_v54  ;;  %2785 = vmatpush.msrb.mxu2 %v1171_v14  ;;  %v1929_v45 = vadd.f32 %v1928_v3, %v1863_v41  ;;  %v775_v41 = vld [vmem:[%s15424_s1 + $0xcb8] sm:$0xff] }
 0x21d   : > { %2122 = vmatmul.f32.gmra.mxu1 %v9690_v35  ;;  %2656 = vmatpush.msrb.mxu3 %v1134_v61  ;;  %v667_v61 = vld [vmem:[%s15424_s1 + $0x958] sm:$0xff] }
 0x21e   : > { %v2055_v17 = vpop.f32.mrf.mxu2  ;;  %2715 = vmatpush.msrb.mxu0 %v775_v41  ;;  %v631_v41 = vld [vmem:[%s15424_s1 + $0x838] sm:$0xff] }
 0x21f   : > { %v2056_v46 = vadd.f32 %v2055_v17, %v1990_v22  ;;  %v774_v22 = vld [vmem:[%s15424_s1 + $0xcb0] sm:$0xff] }
 0x220   : > { %7439 = vmatmul.msk.f32.vlgmr.msra.gmra.mxu3 %vm1232_vm0, %v10022_v38  ;;  %2585 = vmatpush.msrb.mxu1 %v774_v22  ;;  %v738_v17 = vld [vmem:[%s15424_s1 + $0xb90] sm:$0xff] }
 0x221   : > { %v6007_v54 = vmax.f32 %v1926_v23, %v2056_v46  ;;  %v1993_v19 = vpop.f32.mrf.mxu0  ;;  %v739_v46 = vld [vmem:[%s15424_s1 + $0xb98] sm:$0xff]  ;;  %v630_v22 = vld [vmem:[%s15424_s1 + $0x830] sm:$0xff] }
 0x222   : > { %v2078_v7 = vpop.f32.mrf.mxu1  ;;  %2586 = vmatpush.msrb.mxu1 %v738_v17  ;;  %2716 = vmatpush.msrb.mxu0 %v739_v46  ;;  %v595_v17 = vld [vmem:[%s15424_s1 + $0x718] sm:$0xff]  ;;  %v1026_v46 = vld [vmem:[%s15424_s1 + $0x1490] sm:$0xff] }
 0x223   : > { %v10027_v32 = vmax.f32 %v6007_v54, %v9698_v49  ;;  %7438 = vmatmul.msk.f32.gmra.mxu2 %vm1232_vm0, %v9665_v39  ;;  %v2143_v30 = vpop.f32.mrf.mxu3  ;;  %v1098_v54 = vld [vmem:[%s15424_s1 + $0x16d0] sm:$0xff] }
 0x224   : > { %2252 = vmatmul.f32.gmra.mxu0 %v9690_v35  ;;  %v2144_v31 = vadd.f32 %v2143_v30, %v2078_v7  ;;  %2657 = vmatpush.msrb.mxu3 %v1098_v54 }
 0x225   : > { %2337 = vmatmul.f32.vlgmr.msra.gmra.mxu1 %v9710_v4 }
 0x226   : > { %v2058_v49 = vpop.f32.mrf.mxu2 }
 0x227   : > { %v2059_v52 = vadd.f32 %v2058_v49, %v1993_v19  ;;  %v702_v49 = vld [vmem:[%s15424_s1 + $0xa70] sm:$0xff] }
 0x228   : > { %7440 = vmatmul.msk.f32.gmra.mxu3 %vm1232_vm0, %v10040_v16  ;;  %2587 = vmatpush.msrb.mxu1 %v702_v49  ;;  %v559_v49 = vld [vmem:[%s15424_s1 + $0x5f8] sm:$0xff] }
 0x229   : > { %v6008_v39 = vmax.f32 %v1929_v45, %v2059_v52  ;;  %v2208_v15 = vpop.f32.mrf.mxu0  ;;  %v703_v52 = vld [vmem:[%s15424_s1 + $0xa78] sm:$0xff] }
 0x22a   : > { %v2081_v60 = vpop.f32.mrf.mxu1  ;;  %2717 = vmatpush.msrb.mxu0 %v703_v52  ;;  %2588 = vmatpush.msrb.mxu1 %v666_v26  ;;  %v522_v26 = vld [vmem:[%s15424_s1 + $0x4d0] sm:$0xff] }
 0x22b   : > { %v10045_v44 = vmax.f32 %v6008_v39, %v9718_v47  ;;  %7455 = vmatmul.msk.f32.vlgmr.msra.gmra.mxu2 %vm1232_vm0, %v10022_v38  ;;  %v2146_v35 = vpop.f32.mrf.mxu3  ;;  %v1135_v47 = vld [vmem:[%s15424_s1 + $0x17f8] sm:$0xff] }
 0x22c   : > { %2467 = vmatmul.f32.vlgmr.msra.gmra.mxu0 %v9710_v4  ;;  %2786 = vmatpush.msrb.mxu2 %v1135_v47  ;;  %v2147_v3 = vadd.f32 %v2146_v35, %v2081_v60  ;;  %v1062_v47 = vld [vmem:[%s15424_s1 + $0x15b0] sm:$0xff] }
 0x22d   : > { %2340 = vmatmul.f32.gmra.mxu1 %v9736_v8  ;;  %2718 = vmatpush.msrb.mxu0 %v667_v61  ;;  %v523_v61 = vld [vmem:[%s15424_s1 + $0x4d8] sm:$0xff] }
 0x22e   : > { %v2273_v62 = vpop.f32.mrf.mxu2  ;;  %2658 = vmatpush.msrb.mxu3 %v1062_v47  ;;  %2589 = vmatpush.msrb.mxu1 %v630_v22  ;;  %v990_v47 = vld [vmem:[%s15424_s1 + $0x1370] sm:$0xff] }
 0x22f   : > { %v2274_v0 = vadd.f32 %v2273_v62, %v2208_v15  ;;  %2719 = vmatpush.msrb.mxu0 %v631_v41 }
 0x230   : > { %7441 = vmatmul.msk.f32.gmra.mxu3 %vm1232_vm0, %v9740_v24 }
 0x231   : > { %v6009_v28 = vmax.f32 %v2144_v31, %v2274_v0  ;;  %v2211_v11 = vpop.f32.mrf.mxu0  ;;  %v10136_v0 = vld [vmem:[%s8574_s21 + $0x68] sm:$0xff]  ;;  %2720 = vmatpush.msrb.mxu0 %v595_v17  ;;  %2659 = vmatpush.msrb.mxu3 %v1026_v46 }
 0x232   : > { %v2084_v57 = vpop.f32.mrf.mxu1 }
 0x233   : > { %v10066_v4 = vmax.f32 %v6009_v28, %v9745_v20  ;;  %7456 = vmatmul.msk.f32.gmra.mxu2 %vm1232_vm0, %v10040_v16  ;;  %v2149_v5 = vpop.f32.mrf.mxu3  ;;  %2721 = vmatpush.msrb.mxu0 %v559_v49 }
 0x234   : > { %2470 = vmatmul.f32.gmra.mxu0 %v9736_v8  ;;  %2660 = vmatpush.msrb.mxu3 %v990_v47  ;;  %v10295_v47 = vld [vmem:[%s8574_s21 + $0xd8] sm:$0xff] }
 0x235   : > { %2343 = vmatmul.f32.gmra.mxu1 %v9757_v13  ;;  %2722 = vmatpush.msrb.mxu0 %v523_v61 }
 0x236   : > { %v2276_v20 = vpop.f32.mrf.mxu2 }
 0x237   : > { %v2277_v34 = vadd.f32 %v2276_v20, %v2211_v11 }
 0x238   : > { %7442 = vmatmul.msk.f32.gmra.mxu3 %vm1232_vm0, %v9761_v33 }
 0x239   : > { %v6010_v6 = vmax.f32 %v2147_v3, %v2277_v34  ;;  %v2214_v10 = vpop.f32.mrf.mxu0  ;;  %v10154_v34 = vld [vmem:[%s8574_s21 + $0x78] sm:$0xff] }
 0x23a   : > { %v2087_v14 = vpop.f32.mrf.mxu1 }
 0x23b   : > { %v10081_v23 = vmax.f32 %v6010_v6, %v9766_v36  ;;  %7457 = vmatmul.msk.f32.gmra.mxu2 %vm1232_vm0, %v9740_v24  ;;  %v2152_v8 = vpop.f32.mrf.mxu3  ;;  %v1099_v24 = vld [vmem:[%s15424_s1 + $0x16d8] sm:$0xff]  ;;  %v2150_v36 = vadd.f32 %v2149_v5, %v2084_v57 }
 0x23c   : > { %2473 = vmatmul.f32.gmra.mxu0 %v9757_v13  ;;  %2787 = vmatpush.msrb.mxu2 %v1099_v24  ;;  %v2153_v39 = vadd.f32 %v2152_v8, %v2087_v14  ;;  %v594_v8 = vld [vmem:[%s15424_s1 + $0x710] sm:$0xff] }
 0x23d   : > { %2346 = vmatmul.f32.gmra.mxu1 %v9784_v42 }
 0x23e   : > { %v2279_v19 = vpop.f32.mrf.mxu2  ;;  %2590 = vmatpush.msrb.mxu1 %v594_v8 }
 0x23f   : > { %v2280_v7 = vadd.f32 %v2279_v19, %v2214_v10  ;;  %v10178_v19 = vld [vmem:[%s8574_s21 + $0x88] sm:$0xff] }
 0x240   : > { %7443 = vmatmul.msk.f32.gmra.mxu3 %vm1232_vm0, %v9788_v9 }
 0x241   : > { %v6011_v30 = vmax.f32 %v2150_v36, %v2280_v7  ;;  %v2217_v12 = vpop.f32.mrf.mxu0 }
 0x242   : > { %v2090_v59 = vpop.f32.mrf.mxu1 }
 0x243   : > { %v10102_v13 = vmax.f32 %v6011_v30, %v9793_v27  ;;  %7458 = vmatmul.msk.f32.gmra.mxu2 %vm1232_vm0, %v9761_v33  ;;  %v2155_v45 = vpop.f32.mrf.mxu3 }
 0x244   : > { %2476 = vmatmul.f32.gmra.mxu0 %v9784_v42 }
 0x245   : > { %2349 = vmatmul.f32.gmra.mxu1 %v9805_v48 }
 0x246   : > { %v2282_v27 = vpop.f32.mrf.mxu2 }
 0x247   : > { %v2283_v15 = vadd.f32 %v2282_v27, %v2217_v12 }
 0x248   : > { %7444 = vmatmul.msk.f32.gmra.mxu3 %vm1232_vm0, %v9809_v56 }
 0x249   : > { %v6012_v33 = vmax.f32 %v2153_v39, %v2283_v15  ;;  %v2220_v60 = vpop.f32.mrf.mxu0  ;;  %v10195_v39 = vld [vmem:[%s8574_s21 + $0x80] sm:$0xff]  ;;  %v10199_v15 = vld [vmem:[%s8574_s21 + $0x98] sm:$0xff] }
 0x24a   : > { %v2093_v35 = vpop.f32.mrf.mxu1 }
 0x24b   : > { %v10117_v43 = vmax.f32 %v6012_v33, %v9814_v50  ;;  %7459 = vmatmul.msk.f32.gmra.mxu2 %vm1232_vm0, %v9788_v9  ;;  %v2158_v42 = vpop.f32.mrf.mxu3  ;;  %v1063_v9 = vld [vmem:[%s15424_s1 + $0x15b8] sm:$0xff]  ;;  %v2156_v50 = vadd.f32 %v2155_v45, %v2090_v59  ;;  %v558_v45 = vld [vmem:[%s15424_s1 + $0x5f0] sm:$0xff] }
 0x24c   : > { %2479 = vmatmul.f32.gmra.mxu0 %v9805_v48  ;;  %2788 = vmatpush.msrb.mxu2 %v1063_v9  ;;  %v2159_v3 = vadd.f32 %v2158_v42, %v2093_v35 }
 0x24d   : > { %2352 = vmatmul.f32.gmra.mxu1 %v9832_v53 }
 0x24e   : > { %v2285_v31 = vpop.f32.mrf.mxu2  ;;  %2591 = vmatpush.msrb.mxu1 %v558_v45  ;;  %v10274_v45 = vld [vmem:[%s8574_s21 + $0xc8] sm:$0xff] }
 0x24f   : > { %v2286_v62 = vadd.f32 %v2285_v31, %v2220_v60 }
 0x250   : > { %7445 = vmatmul.msk.f32.gmra.mxu3 %vm1232_vm0, %v10136_v0  ;;  %2592 = vmatpush.msrb.mxu1 %v522_v26  ;;  %v10291_v26 = vld [vmem:[%s8574_s21 + $0xc0] sm:$0xff] }
 0x251   : > { %v6013_v48 = vmax.f32 %v2156_v50, %v2286_v62  ;;  %v2223_v28 = vpop.f32.mrf.mxu0  ;;  %v10222_v50 = vld [vmem:[%s8574_s21 + $0x90] sm:$0xff] }
 0x252   : > { %v2096_v11 = vpop.f32.mrf.mxu1 }
 0x253   : > { %v10141_v57 = vmax.f32 %v6013_v48, %v9838_v40  ;;  %7460 = vmatmul.msk.f32.gmra.mxu2 %vm1232_vm0, %v9809_v56  ;;  %v2161_v5 = vpop.f32.mrf.mxu3  ;;  %v10226_v48 = vld [vmem:[%s8574_s21 + $0xa8] sm:$0xff] }
 0x254   : > { %2482 = vmatmul.f32.gmra.mxu0 %v9832_v53  ;;  %v2162_v54 = vadd.f32 %v2161_v5, %v2096_v11 }
 0x255   : > { %2355 = vmatmul.f32.gmra.mxu1 %v9850_v29 }
 0x256   : > { %v2288_v40 = vpop.f32.mrf.mxu2 }
 0x257   : > { %v2289_v20 = vadd.f32 %v2288_v40, %v2223_v28  ;;  %v487_v40 = vld [vmem:[%s15424_s1 + $0x3b8] sm:$0xff] }
 0x258   : > { %7446 = vmatmul.msk.f32.gmra.mxu3 %vm1232_vm0, %v10154_v34  ;;  %2723 = vmatpush.msrb.mxu0 %v487_v40  ;;  %v10318_v40 = vld [vmem:[%s8574_s21 + $0xd0] sm:$0xff] }
 0x259   : > { %v6014_v56 = vmax.f32 %v2159_v3, %v2289_v20  ;;  %v2226_v6 = vpop.f32.mrf.mxu0  ;;  %v486_v3 = vld [vmem:[%s15424_s1 + $0x3b0] sm:$0xff] }
 0x25a   : > { %v2099_v10 = vpop.f32.mrf.mxu1  ;;  %2593 = vmatpush.msrb.mxu1 %v486_v3 }
 0x25b   : > { %v10159_v14 = vmax.f32 %v6014_v56, %v9856_v18  ;;  %7461 = vmatmul.msk.f32.gmra.mxu2 %vm1232_vm0, %v10136_v0  ;;  %v2164_v53 = vpop.f32.mrf.mxu3  ;;  %v1027_v18 = vld [vmem:[%s15424_s1 + $0x1498] sm:$0xff]  ;;  %v10243_v56 = vld [vmem:[%s8574_s21 + $0xa0] sm:$0xff] }
 0x25c   : > { %2485 = vmatmul.f32.gmra.mxu0 %v9850_v29  ;;  %2789 = vmatpush.msrb.mxu2 %v1027_v18  ;;  %v2165_v52 = vadd.f32 %v2164_v53, %v2099_v10  ;;  %v10247_v10 = vld [vmem:[%s8574_s21 + $0xb8] sm:$0xff] }
 0x25d   : > { %2358 = vmatmul.f32.gmra.mxu1 %v9874_v21 }
 0x25e   : > { %v2291_v24 = vpop.f32.mrf.mxu2 }
 0x25f   : > { %v2292_v36 = vadd.f32 %v2291_v24, %v2226_v6  ;;  %v451_v24 = vld [vmem:[%s15424_s1 + $0x298] sm:$0xff] }
 0x260   : > { %7447 = vmatmul.msk.f32.gmra.mxu3 %vm1232_vm0, %v10178_v19  ;;  %2724 = vmatpush.msrb.mxu0 %v451_v24  ;;  %v920_v24 = vld [vmem:[%s15424_s1 + $0x1140] sm:$0xff] }
 0x261   : > { %v6015_v29 = vmax.f32 %v2162_v54, %v2292_v36  ;;  %v2229_v7 = vpop.f32.mrf.mxu0  ;;  %v450_v54 = vld [vmem:[%s15424_s1 + $0x290] sm:$0xff] }
 0x262   : > { %v2102_v30 = vpop.f32.mrf.mxu1  ;;  %v954_v36 = vld [vmem:[%s15424_s1 + $0x1250] sm:$0xff]  ;;  %2594 = vmatpush.msrb.mxu1 %v450_v54 }
 0x263   : > { %v10183_v12 = vmax.f32 %v6015_v29, %v9880_v37  ;;  %7462 = vmatmul.msk.f32.gmra.mxu2 %vm1232_vm0, %v10154_v34  ;;  %v2167_v59 = vpop.f32.mrf.mxu3  ;;  %2661 = vmatpush.msrb.mxu3 %v954_v36  ;;  %v921_v36 = vld [vmem:[%s15424_s1 + $0x1148] sm:$0xff] }
 0x264   : > { %2488 = vmatmul.f32.gmra.mxu0 %v9874_v21  ;;  %v2168_v9 = vadd.f32 %v2167_v59, %v2102_v30 }
 0x265   : > { %2361 = vmatmul.f32.gmra.mxu1 %v10195_v39 }
 0x266   : > { %v2294_v37 = vpop.f32.mrf.mxu2 }
 0x267   : > { %v2295_v27 = vadd.f32 %v2294_v37, %v2229_v7  ;;  %v10270_v7 = vld [vmem:[%s8574_s21 + $0xb0] sm:$0xff] }
 0x268   : > { %7448 = vmatmul.msk.f32.gmra.mxu3 %vm1232_vm0, %v10199_v15 }
 0x269   : > { %v6016_v33 = vmax.f32 %v2165_v52, %v2295_v27  ;;  %v2232_v60 = vpop.f32.mrf.mxu0 }
 0x26a   : > { %v2105_v35 = vpop.f32.mrf.mxu1 }
 0x26b   : > { %v10204_v21 = vmax.f32 %v6016_v33, %v9895_v25  ;;  %7463 = vmatmul.msk.f32.gmra.mxu2 %vm1232_vm0, %v10178_v19  ;;  %v2170_v42 = vpop.f32.mrf.mxu3  ;;  %v991_v25 = vld [vmem:[%s15424_s1 + $0x1378] sm:$0xff] }
 0x26c   : > { %2491 = vmatmul.f32.gmra.mxu0 %v10195_v39  ;;  %2790 = vmatpush.msrb.mxu2 %v991_v25  ;;  %v2171_v20 = vadd.f32 %v2170_v42, %v2105_v35  ;;  %v415_v35 = vld [vmem:[%s15424_s1 + $0x178] sm:$0xff] }
 0x26d   : > { %2364 = vmatmul.f32.gmra.mxu1 %v10222_v50  ;;  %2725 = vmatpush.msrb.mxu0 %v415_v35  ;;  %v884_v35 = vld [vmem:[%s15424_s1 + $0x1020] sm:$0xff] }
 0x26e   : > { %v2297_v31 = vpop.f32.mrf.mxu2 }
 0x26f   : > { %v2298_v62 = vadd.f32 %v2297_v31, %v2232_v60  ;;  %v414_v60 = vld [vmem:[%s15424_s1 + $0x170] sm:$0xff] }
 0x270   : > { %7449 = vmatmul.msk.f32.gmra.mxu3 %vm1232_vm0, %v10226_v48  ;;  %2595 = vmatpush.msrb.mxu1 %v414_v60 }
 0x271   : > { %v6017_v28 = vmax.f32 %v2168_v9, %v2298_v62  ;;  %v2235_v11 = vpop.f32.mrf.mxu0 }
 0x272   : > { %v2108_v5 = vpop.f32.mrf.mxu1 }
 0x273   : > { %v10231_v22 = vmax.f32 %v6017_v28, %v9916_v63  ;;  %7464 = vmatmul.msk.f32.gmra.mxu2 %vm1232_vm0, %v10199_v15  ;;  %v2173_v41 = vpop.f32.mrf.mxu3 }
 0x274   : > { %2494 = vmatmul.f32.gmra.mxu0 %v10222_v50  ;;  %v2174_v29 = vadd.f32 %v2173_v41, %v2108_v5  ;;  %v379_v5 = vld [vmem:[%s15424_s1 + $0x58] sm:$0xff]  ;;  %v1208_v41 = vld [vmem:[%s15424_s1 + $0x1a40] sm:$0xff] }
 0x275   : > { %2367 = vmatmul.f32.gmra.mxu1 %v10243_v56  ;;  %2726 = vmatpush.msrb.mxu0 %v379_v5 }
 0x276   : > { %v2300_v63 = vpop.f32.mrf.mxu2  ;;  %2914 = vmatpush.msra.mxu3 %v1208_v41 }
 0x277   : > { %v2301_v6 = vadd.f32 %v2300_v63, %v2235_v11  ;;  %v378_v11 = vld [vmem:[%s15424_s1 + $0x50] sm:$0xff]  ;;  %2971 = vmatpush.msra.mxu0 %v921_v36 }
 0x278   : > { %7450 = vmatmul.msk.f32.gmra.mxu3 %vm1232_vm0, %v10247_v10  ;;  %2596 = vmatpush.msrb.mxu1 %v378_v11 }
 0x279   : > { %v6018_v53 = vmax.f32 %v2171_v20, %v2301_v6  ;;  %v2238_v8 = vpop.f32.mrf.mxu0  ;;  %v10322_v6 = vld [vmem:[%s8574_s21 + $0xe8] sm:$0xff] }
 0x27a   : > { %v2111_v17 = vpop.f32.mrf.mxu1  ;;  %2841 = vmatpush.msra.mxu1 %v920_v24 }
 0x27b   : > { %v10252_v46 = vmax.f32 %v6018_v53, %v9931_v2  ;;  %7465 = vmatmul.msk.f32.gmra.mxu2 %vm1232_vm0, %v10226_v48  ;;  %v2176_v18 = vpop.f32.mrf.mxu3  ;;  %v955_v2 = vld [vmem:[%s15424_s1 + $0x1258] sm:$0xff] }
 0x27c   : > { %2497 = vmatmul.f32.gmra.mxu0 %v10243_v56  ;;  %2791 = vmatpush.msrb.mxu2 %v955_v2  ;;  %v2177_v42 = vadd.f32 %v2176_v18, %v2111_v17 }
 0x27d   : > { %2370 = vmatmul.f32.gmra.mxu1 %v10270_v7 }
 0x27e   : > { %v2303_v30 = vpop.f32.mrf.mxu2  ;;  %2842 = vmatpush.msra.mxu1 %v884_v35  ;;  %v10412_v35 = vld [vmem:[%s8574_s21 + $0x28] sm:$0xff] }
 0x27f   : > { %v2304_v59 = vadd.f32 %v2303_v30, %v2238_v8 }
 0x280   : > { %7451 = vmatmul.msk.f32.gmra.mxu3 %vm1232_vm0, %v10274_v45 }
 0x281   : > { %v6019_v49 = vmax.f32 %v2174_v29, %v2304_v59  ;;  %v2241_v52 = vpop.f32.mrf.mxu0  ;;  %v10339_v29 = vld [vmem:[%s8574_s21 + $0xe0] sm:$0xff]  ;;  %v10343_v59 = vld [vmem:[%s8574_s21 + $0xf8] sm:$0xff] }
 0x282   : > { %v2114_v37 = vpop.f32.mrf.mxu1 }
 0x283   : > { %v10279_v27 = vmax.f32 %v6019_v49, %v9952_v51  ;;  %7466 = vmatmul.msk.f32.gmra.mxu2 %vm1232_vm0, %v10247_v10  ;;  %v2179_v33 = vpop.f32.mrf.mxu3 }
 0x284   : > { %2500 = vmatmul.f32.gmra.mxu0 %v10270_v7  ;;  %v2180_v3 = vadd.f32 %v2179_v33, %v2114_v37 }
 0x285   : > { %2373 = vmatmul.f32.gmra.mxu1 %v10291_v26 }
 0x286   : > { %v2306_v51 = vpop.f32.mrf.mxu2 }
 0x287   : > { %v2307_v61 = vadd.f32 %v2306_v51, %v2241_v52  ;;  %v1172_v51 = vld [vmem:[%s15424_s1 + $0x1920] sm:$0xff] }
 0x288   : > { %7452 = vmatmul.msk.f32.gmra.mxu3 %vm1232_vm0, %v10295_v47 }
 0x289   : > { %v6020_v25 = vmax.f32 %v2177_v42, %v2307_v61  ;;  %v2244_v9 = vpop.f32.mrf.mxu0  ;;  %v885_v42 = vld [vmem:[%s15424_s1 + $0x1028] sm:$0xff]  ;;  %2915 = vmatpush.msra.mxu3 %v1172_v51 }
 0x28a   : > { %v2117_v31 = vpop.f32.mrf.mxu1  ;;  %2972 = vmatpush.msra.mxu0 %v885_v42 }
 0x28b   : > { %v10300_v62 = vmax.f32 %v6020_v25, %v9967_v55  ;;  %7467 = vmatmul.msk.f32.gmra.mxu2 %vm1232_vm0, %v10274_v45  ;;  %v2182_v28 = vpop.f32.mrf.mxu3  ;;  %v1209_v55 = vld [vmem:[%s15424_s1 + $0x1a48] sm:$0xff]  ;;  %v10366_v25 = vld [vmem:[%s8574_s21 + $0xf0] sm:$0xff] }
 0x28c   : > { %2503 = vmatmul.f32.gmra.mxu0 %v10291_v26  ;;  %3044 = vmatpush.msra.mxu2 %v1209_v55  ;;  %v2183_v2 = vadd.f32 %v2182_v28, %v2117_v31 }
 0x28d   : > { %2376 = vmatmul.f32.gmra.mxu1 %v10318_v40 }
 0x28e   : > { %v2309_v20 = vpop.f32.mrf.mxu2 }
 0x28f   : > { %v2310_v63 = vadd.f32 %v2309_v20, %v2244_v9  ;;  %v849_v20 = vld [vmem:[%s15424_s1 + $0xf08] sm:$0xff] }
 0x290   : > { %7453 = vmatmul.msk.f32.gmra.mxu3 %vm1232_vm0, %v10322_v6  ;;  %2973 = vmatpush.msra.mxu0 %v849_v20 }
 0x291   : > { %v6021_v53 = vmax.f32 %v2180_v3, %v2310_v63  ;;  %v2247_v8 = vpop.f32.mrf.mxu0  ;;  %v848_v3 = vld [vmem:[%s15424_s1 + $0xf00] sm:$0xff] }
 0x292   : > { %v2120_v17 = vpop.f32.mrf.mxu1  ;;  %2843 = vmatpush.msra.mxu1 %v848_v3 }
 0x293   : > { %v10327_v18 = vmax.f32 %v6021_v53, %v9988_v1  ;;  %7468 = vmatmul.msk.f32.gmra.mxu2 %vm1232_vm0, %v10295_v47  ;;  %v2185_v54 = vpop.f32.mrf.mxu3  ;;  %v10384_v53 = vld [vmem:[%s8574_s21] sm:$0xff] }
 0x294   : > { %2506 = vmatmul.f32.gmra.mxu0 %v10318_v40  ;;  %v2186_v61 = vadd.f32 %v2185_v54, %v2120_v17 }
 0x295   : > { %2379 = vmatmul.f32.gmra.mxu1 %v10339_v29 }
 0x296   : > { %v2312_v1 = vpop.f32.mrf.mxu2 }
 0x297   : > { %v2313_v30 = vadd.f32 %v2312_v1, %v2247_v8  ;;  %v812_v1 = vld [vmem:[%s15424_s1 + $0xde0] sm:$0xff] }
 0x298   : > { %7454 = vmatmul.msk.f32.gmra.mxu3 %vm1232_vm0, %v10343_v59  ;;  %2844 = vmatpush.msra.mxu1 %v812_v1  ;;  %v10456_v1 = vld [vmem:[%s8574_s21 + $0x30] sm:$0xff] }
 0x299   : > { %v6022_v49 = vmax.f32 %v2183_v2, %v2313_v30  ;;  %v2250_v52 = vpop.f32.mrf.mxu0  ;;  %v813_v30 = vld [vmem:[%s15424_s1 + $0xde8] sm:$0xff] }
 0x29a   : > { %v2123_v37 = vpop.f32.mrf.mxu1  ;;  %2974 = vmatpush.msra.mxu0 %v813_v30 }
 0x29b   : > { %v10348_v33 = vmax.f32 %v6022_v49, %v10003_v58  ;;  %7469 = vmatmul.msk.f32.gmra.mxu2 %vm1232_vm0, %v10322_v6  ;;  %v2188_v60 = vpop.f32.mrf.mxu3  ;;  %v1173_v58 = vld [vmem:[%s15424_s1 + $0x1928] sm:$0xff]  ;;  %v1136_v49 = vld [vmem:[%s15424_s1 + $0x1800] sm:$0xff] }
 0x29c   : > { %2509 = vmatmul.f32.gmra.mxu0 %v10339_v29  ;;  %3045 = vmatpush.msra.mxu2 %v1173_v58  ;;  %v2189_v63 = vadd.f32 %v2188_v60, %v2123_v37 }
 0x29d   : > { %2382 = vmatmul.f32.gmra.mxu1 %v10366_v25  ;;  %2916 = vmatpush.msra.mxu3 %v1136_v49 }
 0x29e   : > { %v2315_v9 = vpop.f32.mrf.mxu2 }
 0x29f   : > { %v2316_v31 = vadd.f32 %v2315_v9, %v2250_v52  ;;  %v10408_v52 = vld [vmem:[%s8574_s21 + $0x10] sm:$0xff] }
 0x2a0   : > { %7471 = vmatmul.msk.f32.vlgmr.msrb.gmra.mxu3 %vm1232_vm0, %v10022_v38 }
 0x2a1   : > { %v6023_v28 = vmax.f32 %v2186_v61, %v2316_v31  ;;  %v2253_v11 = vpop.f32.mrf.mxu0  ;;  %v776_v31 = vld [vmem:[%s15424_s1 + $0xcc0] sm:$0xff] }
 0x2a2   : > { %v2338_v5 = vpop.f32.mrf.mxu1  ;;  %2845 = vmatpush.msra.mxu1 %v776_v31 }
 0x2a3   : > { %v10372_v41 = vmax.f32 %v6023_v28, %v10027_v32  ;;  %7470 = vmatmul.msk.f32.gmra.mxu2 %vm1232_vm0, %v10343_v59  ;;  %v2403_v55 = vpop.f32.mrf.mxu3  ;;  %v777_v28 = vld [vmem:[%s15424_s1 + $0xcc8] sm:$0xff] }
 0x2a4   : > { %2512 = vmatmul.f32.gmra.mxu0 %v10366_v25 }
 0x2a5   : > { %2597 = vmatmul.f32.vlgmr.msrb.gmra.mxu1 %v10384_v53  ;;  %2975 = vmatpush.msra.mxu0 %v777_v28  ;;  %v10477_v28 = vld [vmem:[%s8574_s21 + $0x40] sm:$0xff] }
 0x2a6   : > { %v2318_v32 = vpop.f32.mrf.mxu2 }
 0x2a7   : > { %v2319_v8 = vadd.f32 %v2318_v32, %v2253_v11 }
 0x2a8   : > { %7472 = vmatmul.msk.f32.gmra.mxu3 %vm1232_vm0, %v10040_v16 }
 0x2a9   : > { %v6024_v17 = vmax.f32 %v2189_v63, %v2319_v8  ;;  %v2468_v54 = vpop.f32.mrf.mxu0 }
 0x2aa   : > { %v2341_v24 = vpop.f32.mrf.mxu1 }
 0x2ab   : > { %v10390_v36 = vmax.f32 %v6024_v17, %v10045_v44  ;;  %7487 = vmatmul.msk.f32.vlgmr.msrb.gmra.mxu2 %vm1232_vm0, %v10022_v38  ;;  %v2406_v2 = vpop.f32.mrf.mxu3  ;;  %v1137_v38 = vld [vmem:[%s15424_s1 + $0x1808] sm:$0xff]  ;;  %v2404_v44 = vadd.f32 %v2403_v55, %v2338_v5  ;;  %v10429_v5 = vld [vmem:[%s8574_s21 + $0x20] sm:$0xff]  ;;  %v10433_v55 = vld [vmem:[%s8574_s21 + $0x38] sm:$0xff] }
 0x2ac   : > { %2727 = vmatmul.f32.vlgmr.msrb.gmra.mxu0 %v10384_v53  ;;  %3046 = vmatpush.msra.mxu2 %v1137_v38  ;;  %v2407_v11 = vadd.f32 %v2406_v2, %v2341_v24  ;;  %v740_v17 = vld [vmem:[%s15424_s1 + $0xba0] sm:$0xff]  ;;  %v10460_v38 = vld [vmem:[%s8574_s21 + $0x48] sm:$0xff] }
 0x2ad   : > { %2600 = vmatmul.f32.gmra.mxu1 %v10408_v52  ;;  %v1100_v24 = vld [vmem:[%s15424_s1 + $0x16e0] sm:$0xff] }
 0x2ae   : > { %v2533_v37 = vpop.f32.mrf.mxu2  ;;  %2846 = vmatpush.msra.mxu1 %v740_v17  ;;  %2917 = vmatpush.msra.mxu3 %v1100_v24  ;;  %v1064_v24 = vld [vmem:[%s15424_s1 + $0x15c0] sm:$0xff] }
 0x2af   : > { %v2534_v60 = vadd.f32 %v2533_v37, %v2468_v54  ;;  %v741_v54 = vld [vmem:[%s15424_s1 + $0xba8] sm:$0xff] }
 0x2b0   : > { %7473 = vmatmul.msk.f32.gmra.mxu3 %vm1232_vm0, %v10412_v35  ;;  %2976 = vmatpush.msra.mxu0 %v741_v54  ;;  %v669_v54 = vld [vmem:[%s15424_s1 + $0x968] sm:$0xff] }
 0x2b1   : > { %v6025_v42 = vmax.f32 %v2404_v44, %v2534_v60  ;;  %v2471_v51 = vpop.f32.mrf.mxu0  ;;  %2918 = vmatpush.msra.mxu3 %v1064_v24 }
 0x2b2   : > { %v2344_v58 = vpop.f32.mrf.mxu1 }
 0x2b3   : > { %v10417_v61 = vmax.f32 %v6025_v42, %v10066_v4  ;;  %7488 = vmatmul.msk.f32.gmra.mxu2 %vm1232_vm0, %v10040_v16  ;;  %v2409_v9 = vpop.f32.mrf.mxu3 }
 0x2b4   : > { %2730 = vmatmul.f32.gmra.mxu0 %v10408_v52  ;;  %v2410_v2 = vadd.f32 %v2409_v9, %v2344_v58  ;;  %v704_v58 = vld [vmem:[%s15424_s1 + $0xa80] sm:$0xff]  ;;  %v705_v9 = vld [vmem:[%s15424_s1 + $0xa88] sm:$0xff] }
 0x2b5   : > { %2603 = vmatmul.f32.gmra.mxu1 %v10429_v5  ;;  %2977 = vmatpush.msra.mxu0 %v705_v9 }
 0x2b6   : > { %v2536_v4 = vpop.f32.mrf.mxu2  ;;  %2847 = vmatpush.msra.mxu1 %v704_v58 }
 0x2b7   : > { %v2537_v16 = vadd.f32 %v2536_v4, %v2471_v51  ;;  %v10481_v4 = vld [vmem:[%s8574_s21 + $0x58] sm:$0xff]  ;;  %2978 = vmatpush.msra.mxu0 %v669_v54 }
 0x2b8   : > { %7474 = vmatmul.msk.f32.gmra.mxu3 %vm1232_vm0, %v10433_v55 }
 0x2b9   : > { %v6026_v3 = vmax.f32 %v2407_v11, %v2537_v16  ;;  %v2474_v20 = vpop.f32.mrf.mxu0 }
 0x2ba   : > { %v2347_v63 = vpop.f32.mrf.mxu1 }
 0x2bb   : > { %v10438_v32 = vmax.f32 %v6026_v3, %v10081_v23  ;;  %7489 = vmatmul.msk.f32.gmra.mxu2 %vm1232_vm0, %v10412_v35  ;;  %v2412_v8 = vpop.f32.mrf.mxu3  ;;  %v1101_v23 = vld [vmem:[%s15424_s1 + $0x16e8] sm:$0xff] }
 0x2bc   : > { %2733 = vmatmul.f32.gmra.mxu0 %v10429_v5  ;;  %3047 = vmatpush.msra.mxu2 %v1101_v23  ;;  %v2413_v31 = vadd.f32 %v2412_v8, %v2347_v63  ;;  %v668_v8 = vld [vmem:[%s15424_s1 + $0x960] sm:$0xff] }
 0x2bd   : > { %2606 = vmatmul.f32.gmra.mxu1 %v10456_v1 }
 0x2be   : > { %v2539_v30 = vpop.f32.mrf.mxu2  ;;  %2848 = vmatpush.msra.mxu1 %v668_v8 }
 0x2bf   : > { %v2540_v49 = vadd.f32 %v2539_v30, %v2474_v20 }
 0x2c0   : > { %7475 = vmatmul.msk.f32.gmra.mxu3 %vm1232_vm0, %v10460_v38 }
 0x2c1   : > { %v6027_v44 = vmax.f32 %v2410_v2, %v2540_v49  ;;  %v2477_v37 = vpop.f32.mrf.mxu0  ;;  %v10504_v2 = vld [vmem:[%s8574_s21 + $0x50] sm:$0xff] }
 0x2c2   : > { %v2350_v60 = vpop.f32.mrf.mxu1 }
 0x2c3   : > { %v10465_v42 = vmax.f32 %v6027_v44, %v10102_v13  ;;  %7490 = vmatmul.msk.f32.gmra.mxu2 %vm1232_vm0, %v10433_v55  ;;  %v2415_v51 = vpop.f32.mrf.mxu3 }
 0x2c4   : > { %2736 = vmatmul.f32.gmra.mxu0 %v10456_v1  ;;  %v2416_v23 = vadd.f32 %v2415_v51, %v2350_v60  ;;  %v632_v51 = vld [vmem:[%s15424_s1 + $0x840] sm:$0xff] }
 0x2c5   : > { %2609 = vmatmul.f32.gmra.mxu1 %v10477_v28 }
 0x2c6   : > { %v2542_v13 = vpop.f32.mrf.mxu2  ;;  %2849 = vmatpush.msra.mxu1 %v632_v51 }
 0x2c7   : > { %v2543_v11 = vadd.f32 %v2542_v13, %v2477_v37 }
 0x2c8   : > { %7476 = vmatmul.msk.f32.gmra.mxu3 %vm1232_vm0, %v10481_v4 }
 0x2c9   : > { %v6028_v16 = vmax.f32 %v2413_v31, %v2543_v11  ;;  %v2480_v3 = vpop.f32.mrf.mxu0  ;;  %v633_v31 = vld [vmem:[%s15424_s1 + $0x848] sm:$0xff]  ;;  %v10522_v11 = vld [vmem:[%s8574_s21 + $0x60] sm:$0xff] }
 0x2ca   : > { %v2353_v20 = vpop.f32.mrf.mxu1  ;;  %2979 = vmatpush.msra.mxu0 %v633_v31 }
 0x2cb   : > { %v10486_v17 = vmax.f32 %v6028_v16, %v10117_v43  ;;  %7491 = vmatmul.msk.f32.gmra.mxu2 %vm1232_vm0, %v10460_v38  ;;  %v2418_v63 = vpop.f32.mrf.mxu3  ;;  %v1065_v43 = vld [vmem:[%s15424_s1 + $0x15c8] sm:$0xff] }
 0x2cc   : > { %2739 = vmatmul.f32.gmra.mxu0 %v10477_v28  ;;  %3048 = vmatpush.msra.mxu2 %v1065_v43  ;;  %v2419_v13 = vadd.f32 %v2418_v63, %v2353_v20  ;;  %v596_v63 = vld [vmem:[%s15424_s1 + $0x720] sm:$0xff]  ;;  %v597_v43 = vld [vmem:[%s15424_s1 + $0x728] sm:$0xff] }
 0x2cd   : > { %2612 = vmatmul.f32.gmra.mxu1 %v10504_v2  ;;  %2980 = vmatpush.msra.mxu0 %v597_v43 }
 0x2ce   : > { %v2545_v30 = vpop.f32.mrf.mxu2  ;;  %2850 = vmatpush.msra.mxu1 %v596_v63 }
 0x2cf   : > { %v2546_v49 = vadd.f32 %v2545_v30, %v2480_v3  ;;  %v10546_v30 = vld [vmem:[%s8574_s21 + $0x70] sm:$0xff] }
 0x2d0   : > { %7477 = vmatmul.msk.f32.gmra.mxu3 %vm1232_vm0, %v10136_v0 }
 0x2d1   : > { %v6029_v44 = vmax.f32 %v2416_v23, %v2546_v49  ;;  %v2483_v37 = vpop.f32.mrf.mxu0  ;;  %v1028_v23 = vld [vmem:[%s15424_s1 + $0x14a0] sm:$0xff] }
 0x2d2   : > { %v2356_v58 = vpop.f32.mrf.mxu1  ;;  %2919 = vmatpush.msra.mxu3 %v1028_v23 }
 0x2d3   : > { %v10510_v9 = vmax.f32 %v6029_v44, %v10141_v57  ;;  %7492 = vmatmul.msk.f32.gmra.mxu2 %vm1232_vm0, %v10481_v4  ;;  %v2421_v60 = vpop.f32.mrf.mxu3 }
 0x2d4   : > { %2742 = vmatmul.f32.gmra.mxu0 %v10504_v2 }
 0x2d5   : > { %2615 = vmatmul.f32.gmra.mxu1 %v10522_v11 }
 0x2d6   : > { %v2548_v57 = vpop.f32.mrf.mxu2 }
 0x2d7   : > { %v2549_v16 = vadd.f32 %v2548_v57, %v2483_v37  ;;  %v561_v57 = vld [vmem:[%s15424_s1 + $0x608] sm:$0xff] }
 0x2d8   : > { %7478 = vmatmul.msk.f32.gmra.mxu3 %vm1232_vm0, %v10154_v34  ;;  %2981 = vmatpush.msra.mxu0 %v561_v57 }
 0x2d9   : > { %v6030_v3 = vmax.f32 %v2419_v13, %v2549_v16  ;;  %v2486_v8 = vpop.f32.mrf.mxu0 }
 0x2da   : > { %v2359_v54 = vpop.f32.mrf.mxu1 }
 0x2db   : > { %v10528_v24 = vmax.f32 %v6030_v3, %v10159_v14  ;;  %7493 = vmatmul.msk.f32.gmra.mxu2 %vm1232_vm0, %v10136_v0  ;;  %v2424_v20 = vpop.f32.mrf.mxu3  ;;  %v1029_v0 = vld [vmem:[%s15424_s1 + $0x14a8] sm:$0xff]  ;;  %v2422_v14 = vadd.f32 %v2421_v60, %v2356_v58  ;;  %v560_v60 = vld [vmem:[%s15424_s1 + $0x600] sm:$0xff] }
 0x2dc   : > { %2745 = vmatmul.f32.gmra.mxu0 %v10522_v11  ;;  %3049 = vmatpush.msra.mxu2 %v1029_v0  ;;  %v2425_v16 = vadd.f32 %v2424_v20, %v2359_v54  ;;  %v524_v54 = vld [vmem:[%s15424_s1 + $0x4e0] sm:$0xff]  ;;  %v525_v20 = vld [vmem:[%s15424_s1 + $0x4e8] sm:$0xff] }
 0x2dd   : > { %2618 = vmatmul.f32.gmra.mxu1 %v10546_v30  ;;  %v992_v0 = vld [vmem:[%s15424_s1 + $0x1380] sm:$0xff]  ;;  %2982 = vmatpush.msra.mxu0 %v525_v20 }
 0x2de   : > { %v2551_v49 = vpop.f32.mrf.mxu2  ;;  %2851 = vmatpush.msra.mxu1 %v560_v60  ;;  %2920 = vmatpush.msra.mxu3 %v992_v0  ;;  %v489_v60 = vld [vmem:[%s15424_s1 + $0x3c8] sm:$0xff] }
 0x2df   : > { %v2552_v44 = vadd.f32 %v2551_v49, %v2486_v8  ;;  %2983 = vmatpush.msra.mxu0 %v489_v60 }
 0x2e0   : > { %7479 = vmatmul.msk.f32.gmra.mxu3 %vm1232_vm0, %v10178_v19  ;;  %2852 = vmatpush.msra.mxu1 %v524_v54 }
 0x2e1   : > { %v6031_v37 = vmax.f32 %v2422_v14, %v2552_v44  ;;  %v2489_v51 = vpop.f32.mrf.mxu0 }
 0x2e2   : > { %v2362_v31 = vpop.f32.mrf.mxu1 }
 0x2e3   : > { %v10552_v13 = vmax.f32 %v6031_v37, %v10183_v12  ;;  %7494 = vmatmul.msk.f32.gmra.mxu2 %vm1232_vm0, %v10154_v34  ;;  %v2427_v58 = vpop.f32.mrf.mxu3 }
 0x2e4   : > { %2748 = vmatmul.f32.gmra.mxu0 %v10546_v30 }
 0x2e5   : > { %2621 = vmatmul.f32.gmra.mxu1 %v10195_v39 }
 0x2e6   : > { %v2554_v12 = vpop.f32.mrf.mxu2 }
 0x2e7   : > { %v2555_v3 = vadd.f32 %v2554_v12, %v2489_v51 }
 0x2e8   : > { %7480 = vmatmul.msk.f32.gmra.mxu3 %vm1232_vm0, %v10199_v15 }
 0x2e9   : > { %v6032_v34 = vmax.f32 %v2425_v16, %v2555_v3  ;;  %v2492_v8 = vpop.f32.mrf.mxu0 }
 0x2ea   : > { %v2365_v63 = vpop.f32.mrf.mxu1 }
 0x2eb   : > { %v10567_v43 = vmax.f32 %v6032_v34, %v10204_v21  ;;  %7495 = vmatmul.msk.f32.gmra.mxu2 %vm1232_vm0, %v10178_v19  ;;  %v2430_v23 = vpop.f32.mrf.mxu3  ;;  %v993_v19 = vld [vmem:[%s15424_s1 + $0x1388] sm:$0xff]  ;;  %v2428_v21 = vadd.f32 %v2427_v58, %v2362_v31  ;;  %v488_v58 = vld [vmem:[%s15424_s1 + $0x3c0] sm:$0xff] }
 0x2ec   : > { %2751 = vmatmul.f32.gmra.mxu0 %v10195_v39  ;;  %3050 = vmatpush.msra.mxu2 %v993_v19  ;;  %v2431_v57 = vadd.f32 %v2430_v23, %v2365_v63  ;;  %v453_v63 = vld [vmem:[%s15424_s1 + $0x2a8] sm:$0xff]  ;;  %v956_v23 = vld [vmem:[%s15424_s1 + $0x1260] sm:$0xff] }
 0x2ed   : > { %2624 = vmatmul.f32.gmra.mxu1 %v10222_v50  ;;  %2984 = vmatpush.msra.mxu0 %v453_v63 }
 0x2ee   : > { %v2557_v14 = vpop.f32.mrf.mxu2  ;;  %2853 = vmatpush.msra.mxu1 %v488_v58  ;;  %2921 = vmatpush.msra.mxu3 %v956_v23  ;;  %v922_v23 = vld [vmem:[%s15424_s1 + $0x1150] sm:$0xff] }
 0x2ef   : > { %v2558_v49 = vadd.f32 %v2557_v14, %v2492_v8  ;;  %v452_v8 = vld [vmem:[%s15424_s1 + $0x2a0] sm:$0xff] }
 0x2f0   : > { %7481 = vmatmul.msk.f32.gmra.mxu3 %vm1232_vm0, %v10226_v48  ;;  %2854 = vmatpush.msra.mxu1 %v452_v8 }
 0x2f1   : > { %v6033_v44 = vmax.f32 %v2428_v21, %v2558_v49  ;;  %v2495_v37 = vpop.f32.mrf.mxu0  ;;  %v416_v49 = vld [vmem:[%s15424_s1 + $0x180] sm:$0xff] }
 0x2f2   : > { %v2368_v51 = vpop.f32.mrf.mxu1  ;;  %2855 = vmatpush.msra.mxu1 %v416_v49  ;;  %v1174_v49 = vld [vmem:[%s15424_s1 + $0x1930] sm:$0xff] }
 0x2f3   : > { %v10588_v39 = vmax.f32 %v6033_v44, %v10231_v22  ;;  %7496 = vmatmul.msk.f32.gmra.mxu2 %vm1232_vm0, %v10199_v15  ;;  %v2433_v31 = vpop.f32.mrf.mxu3  ;;  %v417_v44 = vld [vmem:[%s15424_s1 + $0x188] sm:$0xff] }
 0x2f4   : > { %2754 = vmatmul.f32.gmra.mxu0 %v10222_v50 }
 0x2f5   : > { %2627 = vmatmul.f32.gmra.mxu1 %v10243_v56  ;;  %2985 = vmatpush.msra.mxu0 %v417_v44 }
 0x2f6   : > { %v2560_v22 = vpop.f32.mrf.mxu2 }
 0x2f7   : > { %v2561_v16 = vadd.f32 %v2560_v22, %v2495_v37  ;;  %v381_v22 = vld [vmem:[%s15424_s1 + $0x68] sm:$0xff] }
 0x2f8   : > { %7482 = vmatmul.msk.f32.gmra.mxu3 %vm1232_vm0, %v10247_v10  ;;  %2986 = vmatpush.msra.mxu0 %v381_v22 }
 0x2f9   : > { %v6034_v15 = vmax.f32 %v2431_v57, %v2561_v16  ;;  %v2498_v12 = vpop.f32.mrf.mxu0  ;;  %v380_v57 = vld [vmem:[%s15424_s1 + $0x60] sm:$0xff]  ;;  %v1210_v16 = vld [vmem:[%s15424_s1 + $0x1a50] sm:$0xff] }
 0x2fa   : > { %v2371_v3 = vpop.f32.mrf.mxu1  ;;  %2856 = vmatpush.msra.mxu1 %v380_v57  ;;  %3174 = vmatpush.msrb.mxu3 %v1210_v16  ;;  %v851_v57 = vld [vmem:[%s15424_s1 + $0xf18] sm:$0xff] }
 0x2fb   : > { %v10603_v34 = vmax.f32 %v6034_v15, %v10252_v46  ;;  %7497 = vmatmul.msk.f32.gmra.mxu2 %vm1232_vm0, %v10226_v48  ;;  %v2436_v50 = vpop.f32.mrf.mxu3  ;;  %v957_v48 = vld [vmem:[%s15424_s1 + $0x1268] sm:$0xff]  ;;  %v2434_v46 = vadd.f32 %v2433_v31, %v2368_v51 }
 0x2fc   : > { %2757 = vmatmul.f32.gmra.mxu0 %v10243_v56  ;;  %3051 = vmatpush.msra.mxu2 %v957_v48  ;;  %v2437_v37 = vadd.f32 %v2436_v50, %v2371_v3  ;;  %v923_v48 = vld [vmem:[%s15424_s1 + $0x1158] sm:$0xff] }
 0x2fd   : > { %2630 = vmatmul.f32.gmra.mxu1 %v10270_v7  ;;  %3231 = vmatpush.msrb.mxu0 %v923_v48 }
 0x2fe   : > { %v2563_v54 = vpop.f32.mrf.mxu2  ;;  %3101 = vmatpush.msrb.mxu1 %v922_v23  ;;  %3175 = vmatpush.msrb.mxu3 %v1174_v49 }
 0x2ff   : > { %v2564_v20 = vadd.f32 %v2563_v54, %v2498_v12 }
 0x300   : > { %7483 = vmatmul.msk.f32.gmra.mxu3 %vm1232_vm0, %v10274_v45 }
 0x301   : > { %v6035_v0 = vmax.f32 %v2434_v46, %v2564_v20  ;;  %v2501_v19 = vpop.f32.mrf.mxu0 }
 0x302   : > { %v2374_v21 = vpop.f32.mrf.mxu1 }
 0x303   : > { %v10624_v56 = vmax.f32 %v6035_v0, %v10279_v27  ;;  %7498 = vmatmul.msk.f32.gmra.mxu2 %vm1232_vm0, %v10247_v10  ;;  %v2439_v14 = vpop.f32.mrf.mxu3 }
 0x304   : > { %2760 = vmatmul.f32.gmra.mxu0 %v10270_v7 }
 0x305   : > { %2633 = vmatmul.f32.gmra.mxu1 %v10291_v26 }
 0x306   : > { %v2566_v27 = vpop.f32.mrf.mxu2 }
 0x307   : > { %v2567_v51 = vadd.f32 %v2566_v27, %v2501_v19  ;;  %v10694_v27 = vld [vmem:[%s8574_s21 + $0x8] sm:$0xff] }
 0x308   : > { %7484 = vmatmul.msk.f32.gmra.mxu3 %vm1232_vm0, %v10295_v47 }
 0x309   : > { %v6036_v10 = vmax.f32 %v2437_v37, %v2567_v51  ;;  %v2504_v31 = vpop.f32.mrf.mxu0 }
 0x30a   : > { %v2377_v58 = vpop.f32.mrf.mxu1 }
 0x30b   : > { %v10639_v60 = vmax.f32 %v6036_v10, %v10300_v62  ;;  %7499 = vmatmul.msk.f32.gmra.mxu2 %vm1232_vm0, %v10274_v45  ;;  %v2442_v7 = vpop.f32.mrf.mxu3  ;;  %v1211_v45 = vld [vmem:[%s15424_s1 + $0x1a58] sm:$0xff]  ;;  %v2440_v62 = vadd.f32 %v2439_v14, %v2374_v21  ;;  %v886_v21 = vld [vmem:[%s15424_s1 + $0x1030] sm:$0xff] }
 0x30c   : > { %2763 = vmatmul.f32.gmra.mxu0 %v10291_v26  ;;  %3304 = vmatpush.msrb.mxu2 %v1211_v45  ;;  %v2443_v46 = vadd.f32 %v2442_v7, %v2377_v58  ;;  %v887_v14 = vld [vmem:[%s15424_s1 + $0x1038] sm:$0xff]  ;;  %v850_v7 = vld [vmem:[%s15424_s1 + $0xf10] sm:$0xff] }
 0x30d   : > { %2636 = vmatmul.f32.gmra.mxu1 %v10318_v40  ;;  %3232 = vmatpush.msrb.mxu0 %v887_v14  ;;  %v10712_v45 = vld [vmem:[%s8574_s21 + $0x18] sm:$0xff] }
 0x30e   : > { %v2569_v15 = vpop.f32.mrf.mxu2  ;;  %3102 = vmatpush.msrb.mxu1 %v886_v21 }
 0x30f   : > { %v2570_v12 = vadd.f32 %v2569_v15, %v2504_v31  ;;  %3233 = vmatpush.msrb.mxu0 %v851_v57 }
 0x310   : > { %7485 = vmatmul.msk.f32.gmra.mxu3 %vm1232_vm0, %v10322_v6  ;;  %3103 = vmatpush.msrb.mxu1 %v850_v7 }
 0x311   : > { %v6037_v3 = vmax.f32 %v2440_v62, %v2570_v12  ;;  %v2507_v50 = vpop.f32.mrf.mxu0 }
 0x312   : > { %v2380_v8 = vpop.f32.mrf.mxu1 }
 0x313   : > { %v10660_v26 = vmax.f32 %v6037_v3, %v10327_v18  ;;  %7500 = vmatmul.msk.f32.gmra.mxu2 %vm1232_vm0, %v10295_v47  ;;  %v2445_v63 = vpop.f32.mrf.mxu3  ;;  %v814_v3 = vld [vmem:[%s15424_s1 + $0xdf0] sm:$0xff] }
 0x314   : > { %2766 = vmatmul.f32.gmra.mxu0 %v10318_v40  ;;  %3104 = vmatpush.msrb.mxu1 %v814_v3 }
 0x315   : > { %2639 = vmatmul.f32.gmra.mxu1 %v10339_v29 }
 0x316   : > { %v2572_v18 = vpop.f32.mrf.mxu2 }
 0x317   : > { %v2573_v54 = vadd.f32 %v2572_v18, %v2507_v50  ;;  %v815_v50 = vld [vmem:[%s15424_s1 + $0xdf8] sm:$0xff] }
 0x318   : > { %7486 = vmatmul.msk.f32.gmra.mxu3 %vm1232_vm0, %v10343_v59  ;;  %3234 = vmatpush.msrb.mxu0 %v815_v50  ;;  %v670_v50 = vld [vmem:[%s15424_s1 + $0x970] sm:$0xff] }
 0x319   : > { %v6038_v47 = vmax.f32 %v2443_v46, %v2573_v54  ;;  %v2510_v20 = vpop.f32.mrf.mxu0 }
 0x31a   : > { %v2383_v0 = vpop.f32.mrf.mxu1 }
 0x31b   : > { %v10675_v19 = vmax.f32 %v6038_v47, %v10348_v33  ;;  %7501 = vmatmul.msk.f32.gmra.mxu2 %vm1232_vm0, %v10322_v6  ;;  %v2448_v40 = vpop.f32.mrf.mxu3  ;;  %v1175_v6 = vld [vmem:[%s15424_s1 + $0x1938] sm:$0xff]  ;;  %v2446_v33 = vadd.f32 %v2445_v63, %v2380_v8  ;;  %v1138_v8 = vld [vmem:[%s15424_s1 + $0x1810] sm:$0xff] }
 0x31c   : > { %2769 = vmatmul.f32.gmra.mxu0 %v10339_v29  ;;  %3305 = vmatpush.msrb.mxu2 %v1175_v6  ;;  %v2449_v22 = vadd.f32 %v2448_v40, %v2383_v0  ;;  %v779_v0 = vld [vmem:[%s15424_s1 + $0xcd8] sm:$0xff] }
 0x31d   : > { %2642 = vmatmul.f32.gmra.mxu1 %v10366_v25  ;;  %3176 = vmatpush.msrb.mxu3 %v1138_v8  ;;  %v671_v8 = vld [vmem:[%s15424_s1 + $0x978] sm:$0xff] }
 0x31e   : > { %v2575_v44 = vpop.f32.mrf.mxu2  ;;  %3235 = vmatpush.msrb.mxu0 %v779_v0  ;;  %v635_v0 = vld [vmem:[%s15424_s1 + $0x858] sm:$0xff] }
 0x31f   : > { %v2576_v37 = vadd.f32 %v2575_v44, %v2510_v20  ;;  %v778_v20 = vld [vmem:[%s15424_s1 + $0xcd0] sm:$0xff] }
 0x320   : > { %7503 = vmatmul.msk.f32.vlgmr.msra.gmra.mxu3 %vm1232_vm0, %v10694_v27  ;;  %3105 = vmatpush.msrb.mxu1 %v778_v20  ;;  %v742_v44 = vld [vmem:[%s15424_s1 + $0xbb0] sm:$0xff] }
 0x321   : > { %v6039_v29 = vmax.f32 %v2446_v33, %v2576_v37  ;;  %v2513_v51 = vpop.f32.mrf.mxu0  ;;  %v743_v37 = vld [vmem:[%s15424_s1 + $0xbb8] sm:$0xff]  ;;  %v634_v20 = vld [vmem:[%s15424_s1 + $0x850] sm:$0xff] }
 0x322   : > { %v2598_v10 = vpop.f32.mrf.mxu1  ;;  %3106 = vmatpush.msrb.mxu1 %v742_v44  ;;  %3236 = vmatpush.msrb.mxu0 %v743_v37  ;;  %v599_v44 = vld [vmem:[%s15424_s1 + $0x738] sm:$0xff]  ;;  %v1030_v37 = vld [vmem:[%s15424_s1 + $0x14b0] sm:$0xff] }
 0x323   : > { %v10699_v31 = vmax.f32 %v6039_v29, %v10372_v41  ;;  %7502 = vmatmul.msk.f32.gmra.mxu2 %vm1232_vm0, %v10343_v59  ;;  %v2663_v58 = vpop.f32.mrf.mxu3  ;;  %v1102_v29 = vld [vmem:[%s15424_s1 + $0x16f0] sm:$0xff] }
 0x324   : > { %2772 = vmatmul.f32.gmra.mxu0 %v10366_v25  ;;  %v2664_v63 = vadd.f32 %v2663_v58, %v2598_v10  ;;  %3177 = vmatpush.msrb.mxu3 %v1102_v29 }
 0x325   : > { %2857 = vmatmul.f32.vlgmr.msra.gmra.mxu1 %v10384_v53 }
 0x326   : > { %v2578_v41 = vpop.f32.mrf.mxu2 }
 0x327   : > { %v2579_v16 = vadd.f32 %v2578_v41, %v2513_v51  ;;  %v706_v41 = vld [vmem:[%s15424_s1 + $0xa90] sm:$0xff] }
 0x328   : > { %7504 = vmatmul.msk.f32.gmra.mxu3 %vm1232_vm0, %v10712_v45  ;;  %3107 = vmatpush.msrb.mxu1 %v706_v41  ;;  %v563_v41 = vld [vmem:[%s15424_s1 + $0x618] sm:$0xff] }
 0x329   : > { %v6040_v59 = vmax.f32 %v2449_v22, %v2579_v16  ;;  %v2728_v62 = vpop.f32.mrf.mxu0  ;;  %v707_v16 = vld [vmem:[%s15424_s1 + $0xa98] sm:$0xff] }
 0x32a   : > { %v2601_v15 = vpop.f32.mrf.mxu1  ;;  %3237 = vmatpush.msrb.mxu0 %v707_v16  ;;  %3108 = vmatpush.msrb.mxu1 %v670_v50  ;;  %v526_v50 = vld [vmem:[%s15424_s1 + $0x4f0] sm:$0xff] }
 0x32b   : > { %v10717_v12 = vmax.f32 %v6040_v59, %v10390_v36  ;;  %7519 = vmatmul.msk.f32.vlgmr.msra.gmra.mxu2 %vm1232_vm0, %v10694_v27  ;;  %v2666_v25 = vpop.f32.mrf.mxu3  ;;  %v1139_v36 = vld [vmem:[%s15424_s1 + $0x1818] sm:$0xff] }
 0x32c   : > { %2987 = vmatmul.f32.vlgmr.msra.gmra.mxu0 %v10384_v53  ;;  %3306 = vmatpush.msrb.mxu2 %v1139_v36  ;;  %v2667_v40 = vadd.f32 %v2666_v25, %v2601_v15  ;;  %v1066_v36 = vld [vmem:[%s15424_s1 + $0x15d0] sm:$0xff] }
 0x32d   : > { %2860 = vmatmul.f32.gmra.mxu1 %v10408_v52  ;;  %3238 = vmatpush.msrb.mxu0 %v671_v8  ;;  %v527_v8 = vld [vmem:[%s15424_s1 + $0x4f8] sm:$0xff] }
 0x32e   : > { %v2793_v23 = vpop.f32.mrf.mxu2  ;;  %3178 = vmatpush.msrb.mxu3 %v1066_v36  ;;  %3109 = vmatpush.msrb.mxu1 %v634_v20  ;;  %v994_v36 = vld [vmem:[%s15424_s1 + $0x1390] sm:$0xff] }
 0x32f   : > { %v2794_v48 = vadd.f32 %v2793_v23, %v2728_v62  ;;  %3239 = vmatpush.msrb.mxu0 %v635_v0 }
 0x330   : > { %7505 = vmatmul.msk.f32.gmra.mxu3 %vm1232_vm0, %v10412_v35 }
 0x331   : > { %v6041_v46 = vmax.f32 %v2664_v63, %v2794_v48  ;;  %v2731_v18 = vpop.f32.mrf.mxu0  ;;  %v10808_v48 = vld [vmem:[%s8574_s21 + $0x68] sm:$0xff]  ;;  %3240 = vmatpush.msrb.mxu0 %v599_v44  ;;  %3179 = vmatpush.msrb.mxu3 %v1030_v37 }
 0x332   : > { %v2604_v54 = vpop.f32.mrf.mxu1 }
 0x333   : > { %v10738_v53 = vmax.f32 %v6041_v46, %v10417_v61  ;;  %7520 = vmatmul.msk.f32.gmra.mxu2 %vm1232_vm0, %v10712_v45  ;;  %v2669_v47 = vpop.f32.mrf.mxu3  ;;  %3241 = vmatpush.msrb.mxu0 %v563_v41 }
 0x334   : > { %2990 = vmatmul.f32.gmra.mxu0 %v10408_v52  ;;  %3180 = vmatpush.msrb.mxu3 %v994_v36  ;;  %v10967_v36 = vld [vmem:[%s8574_s21 + $0xd8] sm:$0xff] }
 0x335   : > { %2863 = vmatmul.f32.gmra.mxu1 %v10429_v5  ;;  %3242 = vmatpush.msrb.mxu0 %v527_v8 }
 0x336   : > { %v2796_v61 = vpop.f32.mrf.mxu2 }
 0x337   : > { %v2797_v21 = vadd.f32 %v2796_v61, %v2731_v18 }
 0x338   : > { %7506 = vmatmul.msk.f32.gmra.mxu3 %vm1232_vm0, %v10433_v55 }
 0x339   : > { %v6042_v14 = vmax.f32 %v2667_v40, %v2797_v21  ;;  %v2734_v49 = vpop.f32.mrf.mxu0  ;;  %v10826_v21 = vld [vmem:[%s8574_s21 + $0x78] sm:$0xff] }
 0x33a   : > { %v2607_v6 = vpop.f32.mrf.mxu1 }
 0x33b   : > { %v10753_v33 = vmax.f32 %v6042_v14, %v10438_v32  ;;  %7521 = vmatmul.msk.f32.gmra.mxu2 %vm1232_vm0, %v10412_v35  ;;  %v2672_v52 = vpop.f32.mrf.mxu3  ;;  %v1103_v35 = vld [vmem:[%s15424_s1 + $0x16f8] sm:$0xff]  ;;  %v2670_v32 = vadd.f32 %v2669_v47, %v2604_v54 }
 0x33c   : > { %2993 = vmatmul.f32.gmra.mxu0 %v10429_v5  ;;  %3307 = vmatpush.msrb.mxu2 %v1103_v35  ;;  %v2673_v59 = vadd.f32 %v2672_v52, %v2607_v6  ;;  %v598_v52 = vld [vmem:[%s15424_s1 + $0x730] sm:$0xff] }
 0x33d   : > { %2866 = vmatmul.f32.gmra.mxu1 %v10456_v1 }
 0x33e   : > { %v2799_v51 = vpop.f32.mrf.mxu2  ;;  %3110 = vmatpush.msrb.mxu1 %v598_v52 }
 0x33f   : > { %v2800_v10 = vadd.f32 %v2799_v51, %v2734_v49  ;;  %v10850_v51 = vld [vmem:[%s8574_s21 + $0x88] sm:$0xff] }
 0x340   : > { %7507 = vmatmul.msk.f32.gmra.mxu3 %vm1232_vm0, %v10460_v38 }
 0x341   : > { %v6043_v58 = vmax.f32 %v2670_v32, %v2800_v10  ;;  %v2737_v7 = vpop.f32.mrf.mxu0 }
 0x342   : > { %v2610_v57 = vpop.f32.mrf.mxu1 }
 0x343   : > { %v10774_v5 = vmax.f32 %v6043_v58, %v10465_v42  ;;  %7522 = vmatmul.msk.f32.gmra.mxu2 %vm1232_vm0, %v10433_v55  ;;  %v2675_v22 = vpop.f32.mrf.mxu3 }
 0x344   : > { %2996 = vmatmul.f32.gmra.mxu0 %v10456_v1 }
 0x345   : > { %2869 = vmatmul.f32.gmra.mxu1 %v10477_v28 }
 0x346   : > { %v2802_v42 = vpop.f32.mrf.mxu2 }
 0x347   : > { %v2803_v62 = vadd.f32 %v2802_v42, %v2737_v7 }
 0x348   : > { %7508 = vmatmul.msk.f32.gmra.mxu3 %vm1232_vm0, %v10481_v4 }
 0x349   : > { %v6044_v55 = vmax.f32 %v2673_v59, %v2803_v62  ;;  %v2740_v15 = vpop.f32.mrf.mxu0  ;;  %v10867_v59 = vld [vmem:[%s8574_s21 + $0x80] sm:$0xff]  ;;  %v10871_v62 = vld [vmem:[%s8574_s21 + $0x98] sm:$0xff] }
 0x34a   : > { %v2613_v25 = vpop.f32.mrf.mxu1 }
 0x34b   : > { %v10789_v3 = vmax.f32 %v6044_v55, %v10486_v17  ;;  %7523 = vmatmul.msk.f32.gmra.mxu2 %vm1232_vm0, %v10460_v38  ;;  %v2678_v1 = vpop.f32.mrf.mxu3  ;;  %v1067_v38 = vld [vmem:[%s15424_s1 + $0x15d8] sm:$0xff]  ;;  %v2676_v17 = vadd.f32 %v2675_v22, %v2610_v57  ;;  %v562_v22 = vld [vmem:[%s15424_s1 + $0x610] sm:$0xff] }
 0x34c   : > { %2999 = vmatmul.f32.gmra.mxu0 %v10477_v28  ;;  %3308 = vmatpush.msrb.mxu2 %v1067_v38  ;;  %v2679_v40 = vadd.f32 %v2678_v1, %v2613_v25 }
 0x34d   : > { %2872 = vmatmul.f32.gmra.mxu1 %v10504_v2 }
 0x34e   : > { %v2805_v63 = vpop.f32.mrf.mxu2  ;;  %3111 = vmatpush.msrb.mxu1 %v562_v22  ;;  %v10946_v22 = vld [vmem:[%s8574_s21 + $0xc8] sm:$0xff] }
 0x34f   : > { %v2806_v23 = vadd.f32 %v2805_v63, %v2740_v15 }
 0x350   : > { %7509 = vmatmul.msk.f32.gmra.mxu3 %vm1232_vm0, %v10808_v48  ;;  %3112 = vmatpush.msrb.mxu1 %v526_v50  ;;  %v10963_v50 = vld [vmem:[%s8574_s21 + $0xc0] sm:$0xff] }
 0x351   : > { %v6045_v28 = vmax.f32 %v2676_v17, %v2806_v23  ;;  %v2743_v46 = vpop.f32.mrf.mxu0  ;;  %v10894_v17 = vld [vmem:[%s8574_s21 + $0x90] sm:$0xff] }
 0x352   : > { %v2616_v18 = vpop.f32.mrf.mxu1 }
 0x353   : > { %v10813_v54 = vmax.f32 %v6045_v28, %v10510_v9  ;;  %7524 = vmatmul.msk.f32.gmra.mxu2 %vm1232_vm0, %v10481_v4  ;;  %v2681_v47 = vpop.f32.mrf.mxu3  ;;  %v10898_v28 = vld [vmem:[%s8574_s21 + $0xa8] sm:$0xff] }
 0x354   : > { %3002 = vmatmul.f32.gmra.mxu0 %v10504_v2  ;;  %v2682_v29 = vadd.f32 %v2681_v47, %v2616_v18 }
 0x355   : > { %2875 = vmatmul.f32.gmra.mxu1 %v10522_v11 }
 0x356   : > { %v2808_v9 = vpop.f32.mrf.mxu2 }
 0x357   : > { %v2809_v61 = vadd.f32 %v2808_v9, %v2743_v46  ;;  %v491_v9 = vld [vmem:[%s15424_s1 + $0x3d8] sm:$0xff] }
 0x358   : > { %7510 = vmatmul.msk.f32.gmra.mxu3 %vm1232_vm0, %v10826_v21  ;;  %3243 = vmatpush.msrb.mxu0 %v491_v9  ;;  %v10990_v9 = vld [vmem:[%s8574_s21 + $0xd0] sm:$0xff] }
 0x359   : > { %v6046_v4 = vmax.f32 %v2679_v40, %v2809_v61  ;;  %v2746_v14 = vpop.f32.mrf.mxu0  ;;  %v490_v40 = vld [vmem:[%s15424_s1 + $0x3d0] sm:$0xff] }
 0x35a   : > { %v2619_v49 = vpop.f32.mrf.mxu1  ;;  %3113 = vmatpush.msrb.mxu1 %v490_v40 }
 0x35b   : > { %v10831_v6 = vmax.f32 %v6046_v4, %v10528_v24  ;;  %7525 = vmatmul.msk.f32.gmra.mxu2 %vm1232_vm0, %v10808_v48  ;;  %v2684_v2 = vpop.f32.mrf.mxu3  ;;  %v1031_v24 = vld [vmem:[%s15424_s1 + $0x14b8] sm:$0xff]  ;;  %v10915_v4 = vld [vmem:[%s8574_s21 + $0xa0] sm:$0xff] }
 0x35c   : > { %3005 = vmatmul.f32.gmra.mxu0 %v10522_v11  ;;  %3309 = vmatpush.msrb.mxu2 %v1031_v24  ;;  %v2685_v16 = vadd.f32 %v2684_v2, %v2619_v49  ;;  %v10919_v49 = vld [vmem:[%s8574_s21 + $0xb8] sm:$0xff] }
 0x35d   : > { %2878 = vmatmul.f32.gmra.mxu1 %v10546_v30 }
 0x35e   : > { %v2811_v35 = vpop.f32.mrf.mxu2 }
 0x35f   : > { %v2812_v32 = vadd.f32 %v2811_v35, %v2746_v14  ;;  %v455_v35 = vld [vmem:[%s15424_s1 + $0x2b8] sm:$0xff] }
 0x360   : > { %7511 = vmatmul.msk.f32.gmra.mxu3 %vm1232_vm0, %v10850_v51  ;;  %3244 = vmatpush.msrb.mxu0 %v455_v35  ;;  %v924_v35 = vld [vmem:[%s15424_s1 + $0x1160] sm:$0xff] }
 0x361   : > { %v6047_v11 = vmax.f32 %v2682_v29, %v2812_v32  ;;  %v2749_v10 = vpop.f32.mrf.mxu0  ;;  %v454_v29 = vld [vmem:[%s15424_s1 + $0x2b0] sm:$0xff] }
 0x362   : > { %v2622_v58 = vpop.f32.mrf.mxu1  ;;  %v958_v32 = vld [vmem:[%s15424_s1 + $0x1270] sm:$0xff]  ;;  %3114 = vmatpush.msrb.mxu1 %v454_v29 }
 0x363   : > { %v10855_v7 = vmax.f32 %v6047_v11, %v10552_v13  ;;  %7526 = vmatmul.msk.f32.gmra.mxu2 %vm1232_vm0, %v10826_v21  ;;  %v2687_v57 = vpop.f32.mrf.mxu3  ;;  %3181 = vmatpush.msrb.mxu3 %v958_v32  ;;  %v925_v32 = vld [vmem:[%s15424_s1 + $0x1168] sm:$0xff] }
 0x364   : > { %3008 = vmatmul.f32.gmra.mxu0 %v10546_v30  ;;  %v2688_v38 = vadd.f32 %v2687_v57, %v2622_v58 }
 0x365   : > { %2881 = vmatmul.f32.gmra.mxu1 %v10867_v59 }
 0x366   : > { %v2814_v13 = vpop.f32.mrf.mxu2 }
 0x367   : > { %v2815_v42 = vadd.f32 %v2814_v13, %v2749_v10  ;;  %v10942_v10 = vld [vmem:[%s8574_s21 + $0xb0] sm:$0xff] }
 0x368   : > { %7512 = vmatmul.msk.f32.gmra.mxu3 %vm1232_vm0, %v10871_v62 }
 0x369   : > { %v6048_v55 = vmax.f32 %v2685_v16, %v2815_v42  ;;  %v2752_v15 = vpop.f32.mrf.mxu0 }
 0x36a   : > { %v2625_v25 = vpop.f32.mrf.mxu1 }
 0x36b   : > { %v10876_v30 = vmax.f32 %v6048_v55, %v10567_v43  ;;  %7527 = vmatmul.msk.f32.gmra.mxu2 %vm1232_vm0, %v10850_v51  ;;  %v2690_v1 = vpop.f32.mrf.mxu3  ;;  %v995_v43 = vld [vmem:[%s15424_s1 + $0x1398] sm:$0xff] }
 0x36c   : > { %3011 = vmatmul.f32.gmra.mxu0 %v10867_v59  ;;  %3310 = vmatpush.msrb.mxu2 %v995_v43  ;;  %v2691_v61 = vadd.f32 %v2690_v1, %v2625_v25  ;;  %v419_v25 = vld [vmem:[%s15424_s1 + $0x198] sm:$0xff] }
 0x36d   : > { %2884 = vmatmul.f32.gmra.mxu1 %v10894_v17  ;;  %3245 = vmatpush.msrb.mxu0 %v419_v25  ;;  %v888_v25 = vld [vmem:[%s15424_s1 + $0x1040] sm:$0xff] }
 0x36e   : > { %v2817_v63 = vpop.f32.mrf.mxu2 }
 0x36f   : > { %v2818_v23 = vadd.f32 %v2817_v63, %v2752_v15  ;;  %v418_v15 = vld [vmem:[%s15424_s1 + $0x190] sm:$0xff] }
 0x370   : > { %7513 = vmatmul.msk.f32.gmra.mxu3 %vm1232_vm0, %v10898_v28  ;;  %3115 = vmatpush.msrb.mxu1 %v418_v15 }
 0x371   : > { %v6049_v46 = vmax.f32 %v2688_v38, %v2818_v23  ;;  %v2755_v18 = vpop.f32.mrf.mxu0 }
 0x372   : > { %v2628_v47 = vpop.f32.mrf.mxu1 }
 0x373   : > { %v10903_v20 = vmax.f32 %v6049_v46, %v10588_v39  ;;  %7528 = vmatmul.msk.f32.gmra.mxu2 %vm1232_vm0, %v10871_v62  ;;  %v2693_v0 = vpop.f32.mrf.mxu3 }
 0x374   : > { %3014 = vmatmul.f32.gmra.mxu0 %v10894_v17  ;;  %v2694_v11 = vadd.f32 %v2693_v0, %v2628_v47  ;;  %v383_v47 = vld [vmem:[%s15424_s1 + $0x78] sm:$0xff]  ;;  %v1212_v0 = vld [vmem:[%s15424_s1 + $0x1a60] sm:$0xff] }
 0x375   : > { %2887 = vmatmul.f32.gmra.mxu1 %v10915_v4  ;;  %3246 = vmatpush.msrb.mxu0 %v383_v47 }
 0x376   : > { %v2820_v39 = vpop.f32.mrf.mxu2  ;;  %3434 = vmatpush.msra.mxu3 %v1212_v0 }
 0x377   : > { %v2821_v14 = vadd.f32 %v2820_v39, %v2755_v18  ;;  %v382_v18 = vld [vmem:[%s15424_s1 + $0x70] sm:$0xff]  ;;  %3491 = vmatpush.msra.mxu0 %v925_v32 }
 0x378   : > { %7514 = vmatmul.msk.f32.gmra.mxu3 %vm1232_vm0, %v10919_v49  ;;  %3116 = vmatpush.msrb.mxu1 %v382_v18 }
 0x379   : > { %v6050_v2 = vmax.f32 %v2691_v61, %v2821_v14  ;;  %v2758_v52 = vpop.f32.mrf.mxu0  ;;  %v10994_v14 = vld [vmem:[%s8574_s21 + $0xe8] sm:$0xff] }
 0x37a   : > { %v2631_v44 = vpop.f32.mrf.mxu1  ;;  %3361 = vmatpush.msra.mxu1 %v924_v35 }
 0x37b   : > { %v10924_v37 = vmax.f32 %v6050_v2, %v10603_v34  ;;  %7529 = vmatmul.msk.f32.gmra.mxu2 %vm1232_vm0, %v10898_v28  ;;  %v2696_v24 = vpop.f32.mrf.mxu3  ;;  %v959_v34 = vld [vmem:[%s15424_s1 + $0x1278] sm:$0xff] }
 0x37c   : > { %3017 = vmatmul.f32.gmra.mxu0 %v10915_v4  ;;  %3311 = vmatpush.msrb.mxu2 %v959_v34  ;;  %v2697_v1 = vadd.f32 %v2696_v24, %v2631_v44 }
 0x37d   : > { %2890 = vmatmul.f32.gmra.mxu1 %v10942_v10 }
 0x37e   : > { %v2823_v58 = vpop.f32.mrf.mxu2  ;;  %3362 = vmatpush.msra.mxu1 %v888_v25  ;;  %v11084_v25 = vld [vmem:[%s8574_s21 + $0x28] sm:$0xff] }
 0x37f   : > { %v2824_v57 = vadd.f32 %v2823_v58, %v2758_v52 }
 0x380   : > { %7515 = vmatmul.msk.f32.gmra.mxu3 %vm1232_vm0, %v10946_v22 }
 0x381   : > { %v6051_v41 = vmax.f32 %v2694_v11, %v2824_v57  ;;  %v2761_v16 = vpop.f32.mrf.mxu0  ;;  %v11011_v11 = vld [vmem:[%s8574_s21 + $0xe0] sm:$0xff]  ;;  %v11015_v57 = vld [vmem:[%s8574_s21 + $0xf8] sm:$0xff] }
 0x382   : > { %v2634_v13 = vpop.f32.mrf.mxu1 }
 0x383   : > { %v10951_v42 = vmax.f32 %v6051_v41, %v10624_v56  ;;  %7530 = vmatmul.msk.f32.gmra.mxu2 %vm1232_vm0, %v10919_v49  ;;  %v2699_v55 = vpop.f32.mrf.mxu3 }
 0x384   : > { %3020 = vmatmul.f32.gmra.mxu0 %v10942_v10  ;;  %v2700_v40 = vadd.f32 %v2699_v55, %v2634_v13 }
 0x385   : > { %2893 = vmatmul.f32.gmra.mxu1 %v10963_v50 }
 0x386   : > { %v2826_v56 = vpop.f32.mrf.mxu2 }
 0x387   : > { %v2827_v8 = vadd.f32 %v2826_v56, %v2761_v16  ;;  %v1176_v56 = vld [vmem:[%s15424_s1 + $0x1940] sm:$0xff] }
 0x388   : > { %7516 = vmatmul.msk.f32.gmra.mxu3 %vm1232_vm0, %v10967_v36 }
 0x389   : > { %v6052_v43 = vmax.f32 %v2697_v1, %v2827_v8  ;;  %v2764_v38 = vpop.f32.mrf.mxu0  ;;  %v889_v1 = vld [vmem:[%s15424_s1 + $0x1048] sm:$0xff]  ;;  %3435 = vmatpush.msra.mxu3 %v1176_v56 }
 0x38a   : > { %v2637_v63 = vpop.f32.mrf.mxu1  ;;  %3492 = vmatpush.msra.mxu0 %v889_v1 }
 0x38b   : > { %v10972_v23 = vmax.f32 %v6052_v43, %v10639_v60  ;;  %7531 = vmatmul.msk.f32.gmra.mxu2 %vm1232_vm0, %v10946_v22  ;;  %v2702_v46 = vpop.f32.mrf.mxu3  ;;  %v1213_v60 = vld [vmem:[%s15424_s1 + $0x1a68] sm:$0xff]  ;;  %v11038_v43 = vld [vmem:[%s8574_s21 + $0xf0] sm:$0xff] }
 0x38c   : > { %3023 = vmatmul.f32.gmra.mxu0 %v10963_v50  ;;  %3564 = vmatpush.msra.mxu2 %v1213_v60  ;;  %v2703_v34 = vadd.f32 %v2702_v46, %v2637_v63 }
 0x38d   : > { %2896 = vmatmul.f32.gmra.mxu1 %v10990_v9 }
 0x38e   : > { %v2829_v61 = vpop.f32.mrf.mxu2 }
 0x38f   : > { %v2830_v39 = vadd.f32 %v2829_v61, %v2764_v38  ;;  %v853_v61 = vld [vmem:[%s15424_s1 + $0xf28] sm:$0xff] }
 0x390   : > { %7517 = vmatmul.msk.f32.gmra.mxu3 %vm1232_vm0, %v10994_v14  ;;  %3493 = vmatpush.msra.mxu0 %v853_v61 }
 0x391   : > { %v6053_v2 = vmax.f32 %v2700_v40, %v2830_v39  ;;  %v2767_v52 = vpop.f32.mrf.mxu0  ;;  %v852_v40 = vld [vmem:[%s15424_s1 + $0xf20] sm:$0xff] }
 0x392   : > { %v2640_v44 = vpop.f32.mrf.mxu1  ;;  %3363 = vmatpush.msra.mxu1 %v852_v40 }
 0x393   : > { %v10999_v24 = vmax.f32 %v6053_v2, %v10660_v26  ;;  %7532 = vmatmul.msk.f32.gmra.mxu2 %vm1232_vm0, %v10967_v36  ;;  %v2705_v29 = vpop.f32.mrf.mxu3  ;;  %v11056_v2 = vld [vmem:[%s8574_s21] sm:$0xff] }
 0x394   : > { %3026 = vmatmul.f32.gmra.mxu0 %v10990_v9  ;;  %v2706_v8 = vadd.f32 %v2705_v29, %v2640_v44 }
 0x395   : > { %2899 = vmatmul.f32.gmra.mxu1 %v11011_v11 }
 0x396   : > { %v2832_v26 = vpop.f32.mrf.mxu2 }
 0x397   : > { %v2833_v58 = vadd.f32 %v2832_v26, %v2767_v52  ;;  %v816_v26 = vld [vmem:[%s15424_s1 + $0xe00] sm:$0xff] }
 0x398   : > { %7518 = vmatmul.msk.f32.gmra.mxu3 %vm1232_vm0, %v11015_v57  ;;  %3364 = vmatpush.msra.mxu1 %v816_v26  ;;  %v11128_v26 = vld [vmem:[%s8574_s21 + $0x30] sm:$0xff] }
 0x399   : > { %v6054_v41 = vmax.f32 %v2703_v34, %v2833_v58  ;;  %v2770_v16 = vpop.f32.mrf.mxu0  ;;  %v817_v58 = vld [vmem:[%s15424_s1 + $0xe08] sm:$0xff] }
 0x39a   : > { %v2643_v13 = vpop.f32.mrf.mxu1  ;;  %3494 = vmatpush.msra.mxu0 %v817_v58 }
 0x39b   : > { %v11020_v55 = vmax.f32 %v6054_v41, %v10675_v19  ;;  %7533 = vmatmul.msk.f32.gmra.mxu2 %vm1232_vm0, %v10994_v14  ;;  %v2708_v15 = vpop.f32.mrf.mxu3  ;;  %v1177_v19 = vld [vmem:[%s15424_s1 + $0x1948] sm:$0xff]  ;;  %v1140_v41 = vld [vmem:[%s15424_s1 + $0x1820] sm:$0xff] }
 0x39c   : > { %3029 = vmatmul.f32.gmra.mxu0 %v11011_v11  ;;  %3565 = vmatpush.msra.mxu2 %v1177_v19  ;;  %v2709_v39 = vadd.f32 %v2708_v15, %v2643_v13 }
 0x39d   : > { %2902 = vmatmul.f32.gmra.mxu1 %v11038_v43  ;;  %3436 = vmatpush.msra.mxu3 %v1140_v41 }
 0x39e   : > { %v2835_v38 = vpop.f32.mrf.mxu2 }
 0x39f   : > { %v2836_v63 = vadd.f32 %v2835_v38, %v2770_v16  ;;  %v11080_v16 = vld [vmem:[%s8574_s21 + $0x10] sm:$0xff] }
 0x3a0   : > { %7535 = vmatmul.msk.f32.vlgmr.msrb.gmra.mxu3 %vm1232_vm0, %v10694_v27 }
 0x3a1   : > { %v6055_v46 = vmax.f32 %v2706_v8, %v2836_v63  ;;  %v2773_v18 = vpop.f32.mrf.mxu0  ;;  %v780_v63 = vld [vmem:[%s15424_s1 + $0xce0] sm:$0xff] }
 0x3a2   : > { %v2858_v47 = vpop.f32.mrf.mxu1  ;;  %3365 = vmatpush.msra.mxu1 %v780_v63 }
 0x3a3   : > { %v11044_v0 = vmax.f32 %v6055_v46, %v10699_v31  ;;  %7534 = vmatmul.msk.f32.gmra.mxu2 %vm1232_vm0, %v11015_v57  ;;  %v2923_v60 = vpop.f32.mrf.mxu3  ;;  %v781_v46 = vld [vmem:[%s15424_s1 + $0xce8] sm:$0xff] }
 0x3a4   : > { %3032 = vmatmul.f32.gmra.mxu0 %v11038_v43 }
 0x3a5   : > { %3117 = vmatmul.f32.vlgmr.msrb.gmra.mxu1 %v11056_v2  ;;  %3495 = vmatpush.msra.mxu0 %v781_v46  ;;  %v11149_v46 = vld [vmem:[%s8574_s21 + $0x40] sm:$0xff] }
 0x3a6   : > { %v2838_v31 = vpop.f32.mrf.mxu2 }
 0x3a7   : > { %v2839_v52 = vadd.f32 %v2838_v31, %v2773_v18 }
 0x3a8   : > { %7536 = vmatmul.msk.f32.gmra.mxu3 %vm1232_vm0, %v10712_v45 }
 0x3a9   : > { %v6056_v44 = vmax.f32 %v2709_v39, %v2839_v52  ;;  %v2988_v29 = vpop.f32.mrf.mxu0 }
 0x3aa   : > { %v2861_v35 = vpop.f32.mrf.mxu1 }
 0x3ab   : > { %v11062_v32 = vmax.f32 %v6056_v44, %v10717_v12  ;;  %7551 = vmatmul.msk.f32.vlgmr.msrb.gmra.mxu2 %vm1232_vm0, %v10694_v27  ;;  %v2926_v34 = vpop.f32.mrf.mxu3  ;;  %v1141_v27 = vld [vmem:[%s15424_s1 + $0x1828] sm:$0xff]  ;;  %v2924_v12 = vadd.f32 %v2923_v60, %v2858_v47  ;;  %v11101_v47 = vld [vmem:[%s8574_s21 + $0x20] sm:$0xff]  ;;  %v11105_v60 = vld [vmem:[%s8574_s21 + $0x38] sm:$0xff] }
 0x3ac   : > { %3247 = vmatmul.f32.vlgmr.msrb.gmra.mxu0 %v11056_v2  ;;  %3566 = vmatpush.msra.mxu2 %v1141_v27  ;;  %v2927_v18 = vadd.f32 %v2926_v34, %v2861_v35  ;;  %v744_v44 = vld [vmem:[%s15424_s1 + $0xbc0] sm:$0xff]  ;;  %v11132_v27 = vld [vmem:[%s8574_s21 + $0x48] sm:$0xff] }
 0x3ad   : > { %3120 = vmatmul.f32.gmra.mxu1 %v11080_v16  ;;  %v1104_v35 = vld [vmem:[%s15424_s1 + $0x1700] sm:$0xff] }
 0x3ae   : > { %v3053_v13 = vpop.f32.mrf.mxu2  ;;  %3366 = vmatpush.msra.mxu1 %v744_v44  ;;  %3437 = vmatpush.msra.mxu3 %v1104_v35  ;;  %v1068_v35 = vld [vmem:[%s15424_s1 + $0x15e0] sm:$0xff] }
 0x3af   : > { %v3054_v15 = vadd.f32 %v3053_v13, %v2988_v29  ;;  %v745_v29 = vld [vmem:[%s15424_s1 + $0xbc8] sm:$0xff] }
 0x3b0   : > { %7537 = vmatmul.msk.f32.gmra.mxu3 %vm1232_vm0, %v11084_v25  ;;  %3496 = vmatpush.msra.mxu0 %v745_v29  ;;  %v673_v29 = vld [vmem:[%s15424_s1 + $0x988] sm:$0xff] }
 0x3b1   : > { %v6057_v1 = vmax.f32 %v2924_v12, %v3054_v15  ;;  %v2991_v56 = vpop.f32.mrf.mxu0  ;;  %3438 = vmatpush.msra.mxu3 %v1068_v35 }
 0x3b2   : > { %v2864_v19 = vpop.f32.mrf.mxu1 }
 0x3b3   : > { %v11089_v8 = vmax.f32 %v6057_v1, %v10738_v53  ;;  %7552 = vmatmul.msk.f32.gmra.mxu2 %vm1232_vm0, %v10712_v45  ;;  %v2929_v38 = vpop.f32.mrf.mxu3 }
 0x3b4   : > { %3250 = vmatmul.f32.gmra.mxu0 %v11080_v16  ;;  %v2930_v34 = vadd.f32 %v2929_v38, %v2864_v19  ;;  %v708_v19 = vld [vmem:[%s15424_s1 + $0xaa0] sm:$0xff]  ;;  %v709_v38 = vld [vmem:[%s15424_s1 + $0xaa8] sm:$0xff] }
 0x3b5   : > { %3123 = vmatmul.f32.gmra.mxu1 %v11101_v47  ;;  %3497 = vmatpush.msra.mxu0 %v709_v38 }
 0x3b6   : > { %v3056_v53 = vpop.f32.mrf.mxu2  ;;  %3367 = vmatpush.msra.mxu1 %v708_v19 }
 0x3b7   : > { %v3057_v45 = vadd.f32 %v3056_v53, %v2991_v56  ;;  %v11153_v53 = vld [vmem:[%s8574_s21 + $0x58] sm:$0xff]  ;;  %3498 = vmatpush.msra.mxu0 %v673_v29 }
 0x3b8   : > { %7538 = vmatmul.msk.f32.gmra.mxu3 %vm1232_vm0, %v11105_v60 }
 0x3b9   : > { %v6058_v40 = vmax.f32 %v2927_v18, %v3057_v45  ;;  %v2994_v61 = vpop.f32.mrf.mxu0 }
 0x3ba   : > { %v2867_v39 = vpop.f32.mrf.mxu1 }
 0x3bb   : > { %v11110_v31 = vmax.f32 %v6058_v40, %v10753_v33  ;;  %7553 = vmatmul.msk.f32.gmra.mxu2 %vm1232_vm0, %v11084_v25  ;;  %v2932_v52 = vpop.f32.mrf.mxu3  ;;  %v1105_v33 = vld [vmem:[%s15424_s1 + $0x1708] sm:$0xff] }
 0x3bc   : > { %3253 = vmatmul.f32.gmra.mxu0 %v11101_v47  ;;  %3567 = vmatpush.msra.mxu2 %v1105_v33  ;;  %v2933_v63 = vadd.f32 %v2932_v52, %v2867_v39  ;;  %v672_v52 = vld [vmem:[%s15424_s1 + $0x980] sm:$0xff] }
 0x3bd   : > { %3126 = vmatmul.f32.gmra.mxu1 %v11128_v26 }
 0x3be   : > { %v3059_v58 = vpop.f32.mrf.mxu2  ;;  %3368 = vmatpush.msra.mxu1 %v672_v52 }
 0x3bf   : > { %v3060_v41 = vadd.f32 %v3059_v58, %v2994_v61 }
 0x3c0   : > { %7539 = vmatmul.msk.f32.gmra.mxu3 %vm1232_vm0, %v11132_v27 }
 0x3c1   : > { %v6059_v12 = vmax.f32 %v2930_v34, %v3060_v41  ;;  %v2997_v13 = vpop.f32.mrf.mxu0  ;;  %v11176_v34 = vld [vmem:[%s8574_s21 + $0x50] sm:$0xff] }
 0x3c2   : > { %v2870_v15 = vpop.f32.mrf.mxu1 }
 0x3c3   : > { %v11137_v1 = vmax.f32 %v6059_v12, %v10774_v5  ;;  %7554 = vmatmul.msk.f32.gmra.mxu2 %vm1232_vm0, %v11105_v60  ;;  %v2935_v56 = vpop.f32.mrf.mxu3 }
 0x3c4   : > { %3256 = vmatmul.f32.gmra.mxu0 %v11128_v26  ;;  %v2936_v33 = vadd.f32 %v2935_v56, %v2870_v15  ;;  %v636_v56 = vld [vmem:[%s15424_s1 + $0x860] sm:$0xff] }
 0x3c5   : > { %3129 = vmatmul.f32.gmra.mxu1 %v11149_v46 }
 0x3c6   : > { %v3062_v5 = vpop.f32.mrf.mxu2  ;;  %3369 = vmatpush.msra.mxu1 %v636_v56 }
 0x3c7   : > { %v3063_v18 = vadd.f32 %v3062_v5, %v2997_v13 }
 0x3c8   : > { %7540 = vmatmul.msk.f32.gmra.mxu3 %vm1232_vm0, %v11153_v53 }
 0x3c9   : > { %v6060_v45 = vmax.f32 %v2933_v63, %v3063_v18  ;;  %v3000_v40 = vpop.f32.mrf.mxu0  ;;  %v637_v63 = vld [vmem:[%s15424_s1 + $0x868] sm:$0xff]  ;;  %v11194_v18 = vld [vmem:[%s8574_s21 + $0x60] sm:$0xff] }
 0x3ca   : > { %v2873_v61 = vpop.f32.mrf.mxu1  ;;  %3499 = vmatpush.msra.mxu0 %v637_v63 }
 0x3cb   : > { %v11158_v44 = vmax.f32 %v6060_v45, %v10789_v3  ;;  %7555 = vmatmul.msk.f32.gmra.mxu2 %vm1232_vm0, %v11132_v27  ;;  %v2938_v39 = vpop.f32.mrf.mxu3  ;;  %v1069_v3 = vld [vmem:[%s15424_s1 + $0x15e8] sm:$0xff] }
 0x3cc   : > { %3259 = vmatmul.f32.gmra.mxu0 %v11149_v46  ;;  %3568 = vmatpush.msra.mxu2 %v1069_v3  ;;  %v2939_v5 = vadd.f32 %v2938_v39, %v2873_v61  ;;  %v600_v39 = vld [vmem:[%s15424_s1 + $0x740] sm:$0xff]  ;;  %v601_v3 = vld [vmem:[%s15424_s1 + $0x748] sm:$0xff] }
 0x3cd   : > { %3132 = vmatmul.f32.gmra.mxu1 %v11176_v34  ;;  %3500 = vmatpush.msra.mxu0 %v601_v3 }
 0x3ce   : > { %v3065_v58 = vpop.f32.mrf.mxu2  ;;  %3370 = vmatpush.msra.mxu1 %v600_v39 }
 0x3cf   : > { %v3066_v41 = vadd.f32 %v3065_v58, %v3000_v40  ;;  %v11218_v58 = vld [vmem:[%s8574_s21 + $0x70] sm:$0xff] }
 0x3d0   : > { %7541 = vmatmul.msk.f32.gmra.mxu3 %vm1232_vm0, %v10808_v48 }
 0x3d1   : > { %v6061_v12 = vmax.f32 %v2936_v33, %v3066_v41  ;;  %v3003_v13 = vpop.f32.mrf.mxu0  ;;  %v1032_v33 = vld [vmem:[%s15424_s1 + $0x14c0] sm:$0xff] }
 0x3d2   : > { %v2876_v19 = vpop.f32.mrf.mxu1  ;;  %3439 = vmatpush.msra.mxu3 %v1032_v33 }
 0x3d3   : > { %v11182_v38 = vmax.f32 %v6061_v12, %v10813_v54  ;;  %7556 = vmatmul.msk.f32.gmra.mxu2 %vm1232_vm0, %v11153_v53  ;;  %v2941_v15 = vpop.f32.mrf.mxu3 }
 0x3d4   : > { %3262 = vmatmul.f32.gmra.mxu0 %v11176_v34 }
 0x3d5   : > { %3135 = vmatmul.f32.gmra.mxu1 %v11194_v18 }
 0x3d6   : > { %v3068_v54 = vpop.f32.mrf.mxu2 }
 0x3d7   : > { %v3069_v45 = vadd.f32 %v3068_v54, %v3003_v13  ;;  %v565_v54 = vld [vmem:[%s15424_s1 + $0x628] sm:$0xff] }
 0x3d8   : > { %7542 = vmatmul.msk.f32.gmra.mxu3 %vm1232_vm0, %v10826_v21  ;;  %3501 = vmatpush.msra.mxu0 %v565_v54 }
 0x3d9   : > { %v6062_v40 = vmax.f32 %v2939_v5, %v3069_v45  ;;  %v3006_v52 = vpop.f32.mrf.mxu0 }
 0x3da   : > { %v2879_v29 = vpop.f32.mrf.mxu1 }
 0x3db   : > { %v11200_v35 = vmax.f32 %v6062_v40, %v10831_v6  ;;  %7557 = vmatmul.msk.f32.gmra.mxu2 %vm1232_vm0, %v10808_v48  ;;  %v2944_v61 = vpop.f32.mrf.mxu3  ;;  %v1033_v48 = vld [vmem:[%s15424_s1 + $0x14c8] sm:$0xff]  ;;  %v2942_v6 = vadd.f32 %v2941_v15, %v2876_v19  ;;  %v564_v15 = vld [vmem:[%s15424_s1 + $0x620] sm:$0xff] }
 0x3dc   : > { %3265 = vmatmul.f32.gmra.mxu0 %v11194_v18  ;;  %3569 = vmatpush.msra.mxu2 %v1033_v48  ;;  %v2945_v45 = vadd.f32 %v2944_v61, %v2879_v29  ;;  %v528_v29 = vld [vmem:[%s15424_s1 + $0x500] sm:$0xff]  ;;  %v529_v61 = vld [vmem:[%s15424_s1 + $0x508] sm:$0xff] }
 0x3dd   : > { %3138 = vmatmul.f32.gmra.mxu1 %v11218_v58  ;;  %v996_v48 = vld [vmem:[%s15424_s1 + $0x13a0] sm:$0xff]  ;;  %3502 = vmatpush.msra.mxu0 %v529_v61 }
 0x3de   : > { %v3071_v41 = vpop.f32.mrf.mxu2  ;;  %3371 = vmatpush.msra.mxu1 %v564_v15  ;;  %3440 = vmatpush.msra.mxu3 %v996_v48  ;;  %v493_v15 = vld [vmem:[%s15424_s1 + $0x3e8] sm:$0xff] }
 0x3df   : > { %v3072_v12 = vadd.f32 %v3071_v41, %v3006_v52  ;;  %3503 = vmatpush.msra.mxu0 %v493_v15 }
 0x3e0   : > { %7543 = vmatmul.msk.f32.gmra.mxu3 %vm1232_vm0, %v10850_v51  ;;  %3372 = vmatpush.msra.mxu1 %v528_v29 }
 0x3e1   : > { %v6063_v13 = vmax.f32 %v2942_v6, %v3072_v12  ;;  %v3009_v56 = vpop.f32.mrf.mxu0 }
 0x3e2   : > { %v2882_v63 = vpop.f32.mrf.mxu1 }
 0x3e3   : > { %v11224_v5 = vmax.f32 %v6063_v13, %v10855_v7  ;;  %7558 = vmatmul.msk.f32.gmra.mxu2 %vm1232_vm0, %v10826_v21  ;;  %v2947_v19 = vpop.f32.mrf.mxu3 }
 0x3e4   : > { %3268 = vmatmul.f32.gmra.mxu0 %v11218_v58 }
 0x3e5   : > { %3141 = vmatmul.f32.gmra.mxu1 %v10867_v59 }
 0x3e6   : > { %v3074_v7 = vpop.f32.mrf.mxu2 }
 0x3e7   : > { %v3075_v40 = vadd.f32 %v3074_v7, %v3009_v56 }
 0x3e8   : > { %7544 = vmatmul.msk.f32.gmra.mxu3 %vm1232_vm0, %v10871_v62 }
 0x3e9   : > { %v6064_v21 = vmax.f32 %v2945_v45, %v3075_v40  ;;  %v3012_v52 = vpop.f32.mrf.mxu0 }
 0x3ea   : > { %v2885_v39 = vpop.f32.mrf.mxu1 }
 0x3eb   : > { %v11239_v3 = vmax.f32 %v6064_v21, %v10876_v30  ;;  %7559 = vmatmul.msk.f32.gmra.mxu2 %vm1232_vm0, %v10850_v51  ;;  %v2950_v33 = vpop.f32.mrf.mxu3  ;;  %v997_v51 = vld [vmem:[%s15424_s1 + $0x13a8] sm:$0xff]  ;;  %v2948_v30 = vadd.f32 %v2947_v19, %v2882_v63  ;;  %v492_v19 = vld [vmem:[%s15424_s1 + $0x3e0] sm:$0xff] }
 0x3ec   : > { %3271 = vmatmul.f32.gmra.mxu0 %v10867_v59  ;;  %3570 = vmatpush.msra.mxu2 %v997_v51  ;;  %v2951_v54 = vadd.f32 %v2950_v33, %v2885_v39  ;;  %v457_v39 = vld [vmem:[%s15424_s1 + $0x2c8] sm:$0xff]  ;;  %v960_v33 = vld [vmem:[%s15424_s1 + $0x1280] sm:$0xff] }
 0x3ed   : > { %3144 = vmatmul.f32.gmra.mxu1 %v10894_v17  ;;  %3504 = vmatpush.msra.mxu0 %v457_v39 }
 0x3ee   : > { %v3077_v6 = vpop.f32.mrf.mxu2  ;;  %3373 = vmatpush.msra.mxu1 %v492_v19  ;;  %3441 = vmatpush.msra.mxu3 %v960_v33  ;;  %v926_v33 = vld [vmem:[%s15424_s1 + $0x1170] sm:$0xff] }
 0x3ef   : > { %v3078_v41 = vadd.f32 %v3077_v6, %v3012_v52  ;;  %v456_v52 = vld [vmem:[%s15424_s1 + $0x2c0] sm:$0xff] }
 0x3f0   : > { %7545 = vmatmul.msk.f32.gmra.mxu3 %vm1232_vm0, %v10898_v28  ;;  %3374 = vmatpush.msra.mxu1 %v456_v52 }
 0x3f1   : > { %v6065_v12 = vmax.f32 %v2948_v30, %v3078_v41  ;;  %v3015_v13 = vpop.f32.mrf.mxu0  ;;  %v420_v41 = vld [vmem:[%s15424_s1 + $0x1a0] sm:$0xff] }
 0x3f2   : > { %v2888_v56 = vpop.f32.mrf.mxu1  ;;  %3375 = vmatpush.msra.mxu1 %v420_v41  ;;  %v1178_v41 = vld [vmem:[%s15424_s1 + $0x1950] sm:$0xff] }
 0x3f3   : > { %v11260_v59 = vmax.f32 %v6065_v12, %v10903_v20  ;;  %7560 = vmatmul.msk.f32.gmra.mxu2 %vm1232_vm0, %v10871_v62  ;;  %v2953_v63 = vpop.f32.mrf.mxu3  ;;  %v421_v12 = vld [vmem:[%s15424_s1 + $0x1a8] sm:$0xff] }
 0x3f4   : > { %3274 = vmatmul.f32.gmra.mxu0 %v10894_v17 }
 0x3f5   : > { %3147 = vmatmul.f32.gmra.mxu1 %v10915_v4  ;;  %3505 = vmatpush.msra.mxu0 %v421_v12 }
 0x3f6   : > { %v3080_v20 = vpop.f32.mrf.mxu2 }
 0x3f7   : > { %v3081_v45 = vadd.f32 %v3080_v20, %v3015_v13  ;;  %v385_v20 = vld [vmem:[%s15424_s1 + $0x88] sm:$0xff] }
 0x3f8   : > { %7546 = vmatmul.msk.f32.gmra.mxu3 %vm1232_vm0, %v10919_v49  ;;  %3506 = vmatpush.msra.mxu0 %v385_v20 }
 0x3f9   : > { %v6066_v62 = vmax.f32 %v2951_v54, %v3081_v45  ;;  %v3018_v7 = vpop.f32.mrf.mxu0  ;;  %v384_v54 = vld [vmem:[%s15424_s1 + $0x80] sm:$0xff]  ;;  %v1214_v45 = vld [vmem:[%s15424_s1 + $0x1a70] sm:$0xff] }
 0x3fa   : > { %v2891_v40 = vpop.f32.mrf.mxu1  ;;  %3376 = vmatpush.msra.mxu1 %v384_v54  ;;  %3694 = vmatpush.msrb.mxu3 %v1214_v45  ;;  %v855_v54 = vld [vmem:[%s15424_s1 + $0xf38] sm:$0xff] }
 0x3fb   : > { %v11275_v21 = vmax.f32 %v6066_v62, %v10924_v37  ;;  %7561 = vmatmul.msk.f32.gmra.mxu2 %vm1232_vm0, %v10898_v28  ;;  %v2956_v17 = vpop.f32.mrf.mxu3  ;;  %v961_v28 = vld [vmem:[%s15424_s1 + $0x1288] sm:$0xff]  ;;  %v2954_v37 = vadd.f32 %v2953_v63, %v2888_v56 }
 0x3fc   : > { %3277 = vmatmul.f32.gmra.mxu0 %v10915_v4  ;;  %3571 = vmatpush.msra.mxu2 %v961_v28  ;;  %v2957_v13 = vadd.f32 %v2956_v17, %v2891_v40  ;;  %v927_v28 = vld [vmem:[%s15424_s1 + $0x1178] sm:$0xff] }
 0x3fd   : > { %3150 = vmatmul.f32.gmra.mxu1 %v10942_v10  ;;  %3751 = vmatpush.msrb.mxu0 %v927_v28 }
 0x3fe   : > { %v3083_v29 = vpop.f32.mrf.mxu2  ;;  %3621 = vmatpush.msrb.mxu1 %v926_v33  ;;  %3695 = vmatpush.msrb.mxu3 %v1178_v41 }
 0x3ff   : > { %v3084_v61 = vadd.f32 %v3083_v29, %v3018_v7 }
 0x400   : > { %7547 = vmatmul.msk.f32.gmra.mxu3 %vm1232_vm0, %v10946_v22 }
 0x401   : > { %v6067_v48 = vmax.f32 %v2954_v37, %v3084_v61  ;;  %v3021_v51 = vpop.f32.mrf.mxu0 }
 0x402   : > { %v2894_v30 = vpop.f32.mrf.mxu1 }
 0x403   : > { %v11296_v4 = vmax.f32 %v6067_v48, %v10951_v42  ;;  %7562 = vmatmul.msk.f32.gmra.mxu2 %vm1232_vm0, %v10919_v49  ;;  %v2959_v6 = vpop.f32.mrf.mxu3 }
 0x404   : > { %3280 = vmatmul.f32.gmra.mxu0 %v10942_v10 }
 0x405   : > { %3153 = vmatmul.f32.gmra.mxu1 %v10963_v50 }
 0x406   : > { %v3086_v42 = vpop.f32.mrf.mxu2 }
 0x407   : > { %v3087_v56 = vadd.f32 %v3086_v42, %v3021_v51  ;;  %v11366_v42 = vld [vmem:[%s8574_s21 + $0x8] sm:$0xff] }
 0x408   : > { %7548 = vmatmul.msk.f32.gmra.mxu3 %vm1232_vm0, %v10967_v36 }
 0x409   : > { %v6068_v49 = vmax.f32 %v2957_v13, %v3087_v56  ;;  %v3024_v63 = vpop.f32.mrf.mxu0 }
 0x40a   : > { %v2897_v19 = vpop.f32.mrf.mxu1 }
 0x40b   : > { %v11311_v15 = vmax.f32 %v6068_v49, %v10972_v23  ;;  %7563 = vmatmul.msk.f32.gmra.mxu2 %vm1232_vm0, %v10946_v22  ;;  %v2962_v10 = vpop.f32.mrf.mxu3  ;;  %v1215_v22 = vld [vmem:[%s15424_s1 + $0x1a78] sm:$0xff]  ;;  %v2960_v23 = vadd.f32 %v2959_v6, %v2894_v30  ;;  %v890_v30 = vld [vmem:[%s15424_s1 + $0x1050] sm:$0xff] }
 0x40c   : > { %3283 = vmatmul.f32.gmra.mxu0 %v10963_v50  ;;  %3824 = vmatpush.msrb.mxu2 %v1215_v22  ;;  %v2963_v37 = vadd.f32 %v2962_v10, %v2897_v19  ;;  %v891_v6 = vld [vmem:[%s15424_s1 + $0x1058] sm:$0xff]  ;;  %v854_v10 = vld [vmem:[%s15424_s1 + $0xf30] sm:$0xff] }
 0x40d   : > { %3156 = vmatmul.f32.gmra.mxu1 %v10990_v9  ;;  %3752 = vmatpush.msrb.mxu0 %v891_v6  ;;  %v11384_v22 = vld [vmem:[%s8574_s21 + $0x18] sm:$0xff] }
 0x40e   : > { %v3089_v62 = vpop.f32.mrf.mxu2  ;;  %3622 = vmatpush.msrb.mxu1 %v890_v30 }
 0x40f   : > { %v3090_v7 = vadd.f32 %v3089_v62, %v3024_v63  ;;  %3753 = vmatpush.msrb.mxu0 %v855_v54 }
 0x410   : > { %7549 = vmatmul.msk.f32.gmra.mxu3 %vm1232_vm0, %v10994_v14  ;;  %3623 = vmatpush.msrb.mxu1 %v854_v10 }
 0x411   : > { %v6069_v40 = vmax.f32 %v2960_v23, %v3090_v7  ;;  %v3027_v17 = vpop.f32.mrf.mxu0 }
 0x412   : > { %v2900_v52 = vpop.f32.mrf.mxu1 }
 0x413   : > { %v11332_v50 = vmax.f32 %v6069_v40, %v10999_v24  ;;  %7564 = vmatmul.msk.f32.gmra.mxu2 %vm1232_vm0, %v10967_v36  ;;  %v2965_v39 = vpop.f32.mrf.mxu3  ;;  %v818_v40 = vld [vmem:[%s15424_s1 + $0xe10] sm:$0xff] }
 0x414   : > { %3286 = vmatmul.f32.gmra.mxu0 %v10990_v9  ;;  %3624 = vmatpush.msrb.mxu1 %v818_v40 }
 0x415   : > { %3159 = vmatmul.f32.gmra.mxu1 %v11011_v11 }
 0x416   : > { %v3092_v24 = vpop.f32.mrf.mxu2 }
 0x417   : > { %v3093_v29 = vadd.f32 %v3092_v24, %v3027_v17  ;;  %v819_v17 = vld [vmem:[%s15424_s1 + $0xe18] sm:$0xff] }
 0x418   : > { %7550 = vmatmul.msk.f32.gmra.mxu3 %vm1232_vm0, %v11015_v57  ;;  %3754 = vmatpush.msrb.mxu0 %v819_v17  ;;  %v674_v17 = vld [vmem:[%s15424_s1 + $0x990] sm:$0xff] }
 0x419   : > { %v6070_v36 = vmax.f32 %v2963_v37, %v3093_v29  ;;  %v3030_v61 = vpop.f32.mrf.mxu0 }
 0x41a   : > { %v2903_v48 = vpop.f32.mrf.mxu1 }
 0x41b   : > { %v11347_v51 = vmax.f32 %v6070_v36, %v11020_v55  ;;  %7565 = vmatmul.msk.f32.gmra.mxu2 %vm1232_vm0, %v10994_v14  ;;  %v2968_v9 = vpop.f32.mrf.mxu3  ;;  %v1179_v14 = vld [vmem:[%s15424_s1 + $0x1958] sm:$0xff]  ;;  %v2966_v55 = vadd.f32 %v2965_v39, %v2900_v52  ;;  %v1142_v52 = vld [vmem:[%s15424_s1 + $0x1830] sm:$0xff] }
 0x41c   : > { %3289 = vmatmul.f32.gmra.mxu0 %v11011_v11  ;;  %3825 = vmatpush.msrb.mxu2 %v1179_v14  ;;  %v2969_v20 = vadd.f32 %v2968_v9, %v2903_v48  ;;  %v783_v48 = vld [vmem:[%s15424_s1 + $0xcf8] sm:$0xff] }
 0x41d   : > { %3162 = vmatmul.f32.gmra.mxu1 %v11038_v43  ;;  %3696 = vmatpush.msrb.mxu3 %v1142_v52  ;;  %v675_v52 = vld [vmem:[%s15424_s1 + $0x998] sm:$0xff] }
 0x41e   : > { %v3095_v12 = vpop.f32.mrf.mxu2  ;;  %3755 = vmatpush.msrb.mxu0 %v783_v48  ;;  %v639_v48 = vld [vmem:[%s15424_s1 + $0x878] sm:$0xff] }
 0x41f   : > { %v3096_v13 = vadd.f32 %v3095_v12, %v3030_v61  ;;  %v782_v61 = vld [vmem:[%s15424_s1 + $0xcf0] sm:$0xff] }
 0x420   : > { %7567 = vmatmul.msk.f32.vlgmr.msra.gmra.mxu3 %vm1232_vm0, %v11366_v42  ;;  %3625 = vmatpush.msrb.mxu1 %v782_v61  ;;  %v746_v12 = vld [vmem:[%s15424_s1 + $0xbd0] sm:$0xff] }
 0x421   : > { %v6071_v11 = vmax.f32 %v2966_v55, %v3096_v13  ;;  %v3033_v56 = vpop.f32.mrf.mxu0  ;;  %v747_v13 = vld [vmem:[%s15424_s1 + $0xbd8] sm:$0xff]  ;;  %v638_v61 = vld [vmem:[%s15424_s1 + $0x870] sm:$0xff] }
 0x422   : > { %v3118_v49 = vpop.f32.mrf.mxu1  ;;  %3626 = vmatpush.msrb.mxu1 %v746_v12  ;;  %3756 = vmatpush.msrb.mxu0 %v747_v13  ;;  %v603_v12 = vld [vmem:[%s15424_s1 + $0x758] sm:$0xff]  ;;  %v1034_v13 = vld [vmem:[%s15424_s1 + $0x14d0] sm:$0xff] }
 0x423   : > { %v11371_v63 = vmax.f32 %v6071_v11, %v11044_v0  ;;  %7566 = vmatmul.msk.f32.gmra.mxu2 %vm1232_vm0, %v11015_v57  ;;  %v3183_v19 = vpop.f32.mrf.mxu3  ;;  %v1106_v11 = vld [vmem:[%s15424_s1 + $0x1710] sm:$0xff] }
 0x424   : > { %3292 = vmatmul.f32.gmra.mxu0 %v11038_v43  ;;  %v3184_v39 = vadd.f32 %v3183_v19, %v3118_v49  ;;  %3697 = vmatpush.msrb.mxu3 %v1106_v11 }
 0x425   : > { %3377 = vmatmul.f32.vlgmr.msra.gmra.mxu1 %v11056_v2 }
 0x426   : > { %v3098_v0 = vpop.f32.mrf.mxu2 }
 0x427   : > { %v3099_v45 = vadd.f32 %v3098_v0, %v3033_v56  ;;  %v710_v0 = vld [vmem:[%s15424_s1 + $0xab0] sm:$0xff] }
 0x428   : > { %7568 = vmatmul.msk.f32.gmra.mxu3 %vm1232_vm0, %v11384_v22  ;;  %3627 = vmatpush.msrb.mxu1 %v710_v0  ;;  %v567_v0 = vld [vmem:[%s15424_s1 + $0x638] sm:$0xff] }
 0x429   : > { %v6072_v57 = vmax.f32 %v2969_v20, %v3099_v45  ;;  %v3248_v23 = vpop.f32.mrf.mxu0  ;;  %v711_v45 = vld [vmem:[%s15424_s1 + $0xab8] sm:$0xff] }
 0x42a   : > { %v3121_v62 = vpop.f32.mrf.mxu1  ;;  %3757 = vmatpush.msrb.mxu0 %v711_v45  ;;  %3628 = vmatpush.msrb.mxu1 %v674_v17  ;;  %v530_v17 = vld [vmem:[%s15424_s1 + $0x510] sm:$0xff] }
 0x42b   : > { %v11389_v7 = vmax.f32 %v6072_v57, %v11062_v32  ;;  %7583 = vmatmul.msk.f32.vlgmr.msra.gmra.mxu2 %vm1232_vm0, %v11366_v42  ;;  %v3186_v43 = vpop.f32.mrf.mxu3  ;;  %v1143_v32 = vld [vmem:[%s15424_s1 + $0x1838] sm:$0xff] }
 0x42c   : > { %3507 = vmatmul.f32.vlgmr.msra.gmra.mxu0 %v11056_v2  ;;  %3826 = vmatpush.msrb.mxu2 %v1143_v32  ;;  %v3187_v9 = vadd.f32 %v3186_v43, %v3121_v62  ;;  %v1070_v32 = vld [vmem:[%s15424_s1 + $0x15f0] sm:$0xff] }
 0x42d   : > { %3380 = vmatmul.f32.gmra.mxu1 %v11080_v16  ;;  %3758 = vmatpush.msrb.mxu0 %v675_v52  ;;  %v531_v52 = vld [vmem:[%s15424_s1 + $0x518] sm:$0xff] }
 0x42e   : > { %v3313_v33 = vpop.f32.mrf.mxu2  ;;  %3698 = vmatpush.msrb.mxu3 %v1070_v32  ;;  %3629 = vmatpush.msrb.mxu1 %v638_v61  ;;  %v998_v32 = vld [vmem:[%s15424_s1 + $0x13b0] sm:$0xff] }
 0x42f   : > { %v3314_v28 = vadd.f32 %v3313_v33, %v3248_v23  ;;  %3759 = vmatpush.msrb.mxu0 %v639_v48 }
 0x430   : > { %7569 = vmatmul.msk.f32.gmra.mxu3 %vm1232_vm0, %v11084_v25 }
 0x431   : > { %v6073_v37 = vmax.f32 %v3184_v39, %v3314_v28  ;;  %v3251_v24 = vpop.f32.mrf.mxu0  ;;  %v11480_v28 = vld [vmem:[%s8574_s21 + $0x68] sm:$0xff]  ;;  %3760 = vmatpush.msrb.mxu0 %v603_v12  ;;  %3699 = vmatpush.msrb.mxu3 %v1034_v13 }
 0x432   : > { %v3124_v29 = vpop.f32.mrf.mxu1 }
 0x433   : > { %v11410_v2 = vmax.f32 %v6073_v37, %v11089_v8  ;;  %7584 = vmatmul.msk.f32.gmra.mxu2 %vm1232_vm0, %v11384_v22  ;;  %v3189_v36 = vpop.f32.mrf.mxu3  ;;  %3761 = vmatpush.msrb.mxu0 %v567_v0 }
 0x434   : > { %3510 = vmatmul.f32.gmra.mxu0 %v11080_v16  ;;  %3700 = vmatpush.msrb.mxu3 %v998_v32  ;;  %v11639_v32 = vld [vmem:[%s8574_s21 + $0xd8] sm:$0xff] }
 0x435   : > { %3383 = vmatmul.f32.gmra.mxu1 %v11101_v47  ;;  %3762 = vmatpush.msrb.mxu0 %v531_v52 }
 0x436   : > { %v3316_v8 = vpop.f32.mrf.mxu2 }
 0x437   : > { %v3317_v30 = vadd.f32 %v3316_v8, %v3251_v24 }
 0x438   : > { %7570 = vmatmul.msk.f32.gmra.mxu3 %vm1232_vm0, %v11105_v60 }
 0x439   : > { %v6074_v6 = vmax.f32 %v3187_v9, %v3317_v30  ;;  %v3254_v41 = vpop.f32.mrf.mxu0  ;;  %v11498_v30 = vld [vmem:[%s8574_s21 + $0x78] sm:$0xff] }
 0x43a   : > { %v3127_v14 = vpop.f32.mrf.mxu1 }
 0x43b   : > { %v11425_v55 = vmax.f32 %v6074_v6, %v11110_v31  ;;  %7585 = vmatmul.msk.f32.gmra.mxu2 %vm1232_vm0, %v11084_v25  ;;  %v3192_v16 = vpop.f32.mrf.mxu3  ;;  %v1107_v25 = vld [vmem:[%s15424_s1 + $0x1718] sm:$0xff]  ;;  %v3190_v31 = vadd.f32 %v3189_v36, %v3124_v29 }
 0x43c   : > { %3513 = vmatmul.f32.gmra.mxu0 %v11101_v47  ;;  %3827 = vmatpush.msrb.mxu2 %v1107_v25  ;;  %v3193_v57 = vadd.f32 %v3192_v16, %v3127_v14  ;;  %v602_v16 = vld [vmem:[%s15424_s1 + $0x750] sm:$0xff] }
 0x43d   : > { %3386 = vmatmul.f32.gmra.mxu1 %v11128_v26 }
 0x43e   : > { %v3319_v56 = vpop.f32.mrf.mxu2  ;;  %3630 = vmatpush.msrb.mxu1 %v602_v16 }
 0x43f   : > { %v3320_v49 = vadd.f32 %v3319_v56, %v3254_v41  ;;  %v11522_v56 = vld [vmem:[%s8574_s21 + $0x88] sm:$0xff] }
 0x440   : > { %7571 = vmatmul.msk.f32.gmra.mxu3 %vm1232_vm0, %v11132_v27 }
 0x441   : > { %v6075_v19 = vmax.f32 %v3190_v31, %v3320_v49  ;;  %v3257_v10 = vpop.f32.mrf.mxu0 }
 0x442   : > { %v3130_v54 = vpop.f32.mrf.mxu1 }
 0x443   : > { %v11446_v47 = vmax.f32 %v6075_v19, %v11137_v1  ;;  %7586 = vmatmul.msk.f32.gmra.mxu2 %vm1232_vm0, %v11105_v60  ;;  %v3195_v20 = vpop.f32.mrf.mxu3 }
 0x444   : > { %3516 = vmatmul.f32.gmra.mxu0 %v11128_v26 }
 0x445   : > { %3389 = vmatmul.f32.gmra.mxu1 %v11149_v46 }
 0x446   : > { %v3322_v1 = vpop.f32.mrf.mxu2 }
 0x447   : > { %v3323_v23 = vadd.f32 %v3322_v1, %v3257_v10 }
 0x448   : > { %7572 = vmatmul.msk.f32.gmra.mxu3 %vm1232_vm0, %v11153_v53 }
 0x449   : > { %v6076_v60 = vmax.f32 %v3193_v57, %v3323_v23  ;;  %v3260_v62 = vpop.f32.mrf.mxu0  ;;  %v11539_v57 = vld [vmem:[%s8574_s21 + $0x80] sm:$0xff]  ;;  %v11543_v23 = vld [vmem:[%s8574_s21 + $0x98] sm:$0xff] }
 0x44a   : > { %v3133_v43 = vpop.f32.mrf.mxu1 }
 0x44b   : > { %v11461_v40 = vmax.f32 %v6076_v60, %v11158_v44  ;;  %7587 = vmatmul.msk.f32.gmra.mxu2 %vm1232_vm0, %v11132_v27  ;;  %v3198_v26 = vpop.f32.mrf.mxu3  ;;  %v1071_v27 = vld [vmem:[%s15424_s1 + $0x15f8] sm:$0xff]  ;;  %v3196_v44 = vadd.f32 %v3195_v20, %v3130_v54  ;;  %v566_v20 = vld [vmem:[%s15424_s1 + $0x630] sm:$0xff] }
 0x44c   : > { %3519 = vmatmul.f32.gmra.mxu0 %v11149_v46  ;;  %3828 = vmatpush.msrb.mxu2 %v1071_v27  ;;  %v3199_v9 = vadd.f32 %v3198_v26, %v3133_v43 }
 0x44d   : > { %3392 = vmatmul.f32.gmra.mxu1 %v11176_v34 }
 0x44e   : > { %v3325_v39 = vpop.f32.mrf.mxu2  ;;  %3631 = vmatpush.msrb.mxu1 %v566_v20  ;;  %v11618_v20 = vld [vmem:[%s8574_s21 + $0xc8] sm:$0xff] }
 0x44f   : > { %v3326_v33 = vadd.f32 %v3325_v39, %v3260_v62 }
 0x450   : > { %7573 = vmatmul.msk.f32.gmra.mxu3 %vm1232_vm0, %v11480_v28  ;;  %3632 = vmatpush.msrb.mxu1 %v530_v17  ;;  %v11635_v17 = vld [vmem:[%s8574_s21 + $0xc0] sm:$0xff] }
 0x451   : > { %v6077_v46 = vmax.f32 %v3196_v44, %v3326_v33  ;;  %v3263_v37 = vpop.f32.mrf.mxu0  ;;  %v11566_v44 = vld [vmem:[%s8574_s21 + $0x90] sm:$0xff] }
 0x452   : > { %v3136_v24 = vpop.f32.mrf.mxu1 }
 0x453   : > { %v11485_v29 = vmax.f32 %v6077_v46, %v11182_v38  ;;  %7588 = vmatmul.msk.f32.gmra.mxu2 %vm1232_vm0, %v11153_v53  ;;  %v3201_v36 = vpop.f32.mrf.mxu3  ;;  %v11570_v46 = vld [vmem:[%s8574_s21 + $0xa8] sm:$0xff] }
 0x454   : > { %3522 = vmatmul.f32.gmra.mxu0 %v11176_v34  ;;  %v3202_v11 = vadd.f32 %v3201_v36, %v3136_v24 }
 0x455   : > { %3395 = vmatmul.f32.gmra.mxu1 %v11194_v18 }
 0x456   : > { %v3328_v38 = vpop.f32.mrf.mxu2 }
 0x457   : > { %v3329_v8 = vadd.f32 %v3328_v38, %v3263_v37  ;;  %v495_v38 = vld [vmem:[%s15424_s1 + $0x3f8] sm:$0xff] }
 0x458   : > { %7574 = vmatmul.msk.f32.gmra.mxu3 %vm1232_vm0, %v11498_v30  ;;  %3763 = vmatpush.msrb.mxu0 %v495_v38  ;;  %v11662_v38 = vld [vmem:[%s8574_s21 + $0xd0] sm:$0xff] }
 0x459   : > { %v6078_v53 = vmax.f32 %v3199_v9, %v3329_v8  ;;  %v3266_v6 = vpop.f32.mrf.mxu0  ;;  %v494_v9 = vld [vmem:[%s15424_s1 + $0x3f0] sm:$0xff] }
 0x45a   : > { %v3139_v41 = vpop.f32.mrf.mxu1  ;;  %3633 = vmatpush.msrb.mxu1 %v494_v9 }
 0x45b   : > { %v11503_v14 = vmax.f32 %v6078_v53, %v11200_v35  ;;  %7589 = vmatmul.msk.f32.gmra.mxu2 %vm1232_vm0, %v11480_v28  ;;  %v3204_v34 = vpop.f32.mrf.mxu3  ;;  %v1035_v35 = vld [vmem:[%s15424_s1 + $0x14d8] sm:$0xff]  ;;  %v11587_v53 = vld [vmem:[%s8574_s21 + $0xa0] sm:$0xff] }
 0x45c   : > { %3525 = vmatmul.f32.gmra.mxu0 %v11194_v18  ;;  %3829 = vmatpush.msrb.mxu2 %v1035_v35  ;;  %v3205_v45 = vadd.f32 %v3204_v34, %v3139_v41  ;;  %v11591_v41 = vld [vmem:[%s8574_s21 + $0xb8] sm:$0xff] }
 0x45d   : > { %3398 = vmatmul.f32.gmra.mxu1 %v11218_v58 }
 0x45e   : > { %v3331_v25 = vpop.f32.mrf.mxu2 }
 0x45f   : > { %v3332_v31 = vadd.f32 %v3331_v25, %v3266_v6  ;;  %v459_v25 = vld [vmem:[%s15424_s1 + $0x2d8] sm:$0xff] }
 0x460   : > { %7575 = vmatmul.msk.f32.gmra.mxu3 %vm1232_vm0, %v11522_v56  ;;  %3764 = vmatpush.msrb.mxu0 %v459_v25  ;;  %v928_v25 = vld [vmem:[%s15424_s1 + $0x1180] sm:$0xff] }
 0x461   : > { %v6079_v18 = vmax.f32 %v3202_v11, %v3332_v31  ;;  %v3269_v49 = vpop.f32.mrf.mxu0  ;;  %v458_v11 = vld [vmem:[%s15424_s1 + $0x2d0] sm:$0xff] }
 0x462   : > { %v3142_v19 = vpop.f32.mrf.mxu1  ;;  %v962_v31 = vld [vmem:[%s15424_s1 + $0x1290] sm:$0xff]  ;;  %3634 = vmatpush.msrb.mxu1 %v458_v11 }
 0x463   : > { %v11527_v10 = vmax.f32 %v6079_v18, %v11224_v5  ;;  %7590 = vmatmul.msk.f32.gmra.mxu2 %vm1232_vm0, %v11498_v30  ;;  %v3207_v54 = vpop.f32.mrf.mxu3  ;;  %3701 = vmatpush.msrb.mxu3 %v962_v31  ;;  %v929_v31 = vld [vmem:[%s15424_s1 + $0x1188] sm:$0xff] }
 0x464   : > { %3528 = vmatmul.f32.gmra.mxu0 %v11218_v58  ;;  %v3208_v27 = vadd.f32 %v3207_v54, %v3142_v19 }
 0x465   : > { %3401 = vmatmul.f32.gmra.mxu1 %v11539_v57 }
 0x466   : > { %v3334_v5 = vpop.f32.mrf.mxu2 }
 0x467   : > { %v3335_v1 = vadd.f32 %v3334_v5, %v3269_v49  ;;  %v11614_v49 = vld [vmem:[%s8574_s21 + $0xb0] sm:$0xff] }
 0x468   : > { %7576 = vmatmul.msk.f32.gmra.mxu3 %vm1232_vm0, %v11543_v23 }
 0x469   : > { %v6080_v60 = vmax.f32 %v3205_v45, %v3335_v1  ;;  %v3272_v62 = vpop.f32.mrf.mxu0 }
 0x46a   : > { %v3145_v43 = vpop.f32.mrf.mxu1 }
 0x46b   : > { %v11548_v58 = vmax.f32 %v6080_v60, %v11239_v3  ;;  %7591 = vmatmul.msk.f32.gmra.mxu2 %vm1232_vm0, %v11522_v56  ;;  %v3210_v26 = vpop.f32.mrf.mxu3  ;;  %v999_v3 = vld [vmem:[%s15424_s1 + $0x13b8] sm:$0xff] }
 0x46c   : > { %3531 = vmatmul.f32.gmra.mxu0 %v11539_v57  ;;  %3830 = vmatpush.msrb.mxu2 %v999_v3  ;;  %v3211_v8 = vadd.f32 %v3210_v26, %v3145_v43  ;;  %v423_v43 = vld [vmem:[%s15424_s1 + $0x1b8] sm:$0xff] }
 0x46d   : > { %3404 = vmatmul.f32.gmra.mxu1 %v11566_v44  ;;  %3765 = vmatpush.msrb.mxu0 %v423_v43  ;;  %v892_v43 = vld [vmem:[%s15424_s1 + $0x1060] sm:$0xff] }
 0x46e   : > { %v3337_v39 = vpop.f32.mrf.mxu2 }
 0x46f   : > { %v3338_v33 = vadd.f32 %v3337_v39, %v3272_v62  ;;  %v422_v62 = vld [vmem:[%s15424_s1 + $0x1b0] sm:$0xff] }
 0x470   : > { %7577 = vmatmul.msk.f32.gmra.mxu3 %vm1232_vm0, %v11570_v46  ;;  %3635 = vmatpush.msrb.mxu1 %v422_v62 }
 0x471   : > { %v6081_v37 = vmax.f32 %v3208_v27, %v3338_v33  ;;  %v3275_v24 = vpop.f32.mrf.mxu0 }
 0x472   : > { %v3148_v36 = vpop.f32.mrf.mxu1 }
 0x473   : > { %v11575_v61 = vmax.f32 %v6081_v37, %v11260_v59  ;;  %7592 = vmatmul.msk.f32.gmra.mxu2 %vm1232_vm0, %v11543_v23  ;;  %v3213_v48 = vpop.f32.mrf.mxu3 }
 0x474   : > { %3534 = vmatmul.f32.gmra.mxu0 %v11566_v44  ;;  %v3214_v18 = vadd.f32 %v3213_v48, %v3148_v36  ;;  %v387_v36 = vld [vmem:[%s15424_s1 + $0x98] sm:$0xff]  ;;  %v1216_v48 = vld [vmem:[%s15424_s1 + $0x1a80] sm:$0xff] }
 0x475   : > { %3407 = vmatmul.f32.gmra.mxu1 %v11587_v53  ;;  %3766 = vmatpush.msrb.mxu0 %v387_v36 }
 0x476   : > { %v3340_v59 = vpop.f32.mrf.mxu2  ;;  %3954 = vmatpush.msra.mxu3 %v1216_v48 }
 0x477   : > { %v3341_v6 = vadd.f32 %v3340_v59, %v3275_v24  ;;  %v386_v24 = vld [vmem:[%s15424_s1 + $0x90] sm:$0xff]  ;;  %4011 = vmatpush.msra.mxu0 %v929_v31 }
 0x478   : > { %7578 = vmatmul.msk.f32.gmra.mxu3 %vm1232_vm0, %v11591_v41  ;;  %3636 = vmatpush.msrb.mxu1 %v386_v24 }
 0x479   : > { %v6082_v34 = vmax.f32 %v3211_v8, %v3341_v6  ;;  %v3278_v16 = vpop.f32.mrf.mxu0  ;;  %v11666_v6 = vld [vmem:[%s8574_s21 + $0xe8] sm:$0xff] }
 0x47a   : > { %v3151_v12 = vpop.f32.mrf.mxu1  ;;  %3881 = vmatpush.msra.mxu1 %v928_v25 }
 0x47b   : > { %v11596_v13 = vmax.f32 %v6082_v34, %v11275_v21  ;;  %7593 = vmatmul.msk.f32.gmra.mxu2 %vm1232_vm0, %v11570_v46  ;;  %v3216_v35 = vpop.f32.mrf.mxu3  ;;  %v963_v21 = vld [vmem:[%s15424_s1 + $0x1298] sm:$0xff] }
 0x47c   : > { %3537 = vmatmul.f32.gmra.mxu0 %v11587_v53  ;;  %3831 = vmatpush.msrb.mxu2 %v963_v21  ;;  %v3217_v26 = vadd.f32 %v3216_v35, %v3151_v12 }
 0x47d   : > { %3410 = vmatmul.f32.gmra.mxu1 %v11614_v49 }
 0x47e   : > { %v3343_v19 = vpop.f32.mrf.mxu2  ;;  %3882 = vmatpush.msra.mxu1 %v892_v43  ;;  %v11756_v43 = vld [vmem:[%s8574_s21 + $0x28] sm:$0xff] }
 0x47f   : > { %v3344_v54 = vadd.f32 %v3343_v19, %v3278_v16 }
 0x480   : > { %7579 = vmatmul.msk.f32.gmra.mxu3 %vm1232_vm0, %v11618_v20 }
 0x481   : > { %v6083_v0 = vmax.f32 %v3214_v18, %v3344_v54  ;;  %v3281_v45 = vpop.f32.mrf.mxu0  ;;  %v11683_v18 = vld [vmem:[%s8574_s21 + $0xe0] sm:$0xff]  ;;  %v11687_v54 = vld [vmem:[%s8574_s21 + $0xf8] sm:$0xff] }
 0x482   : > { %v3154_v5 = vpop.f32.mrf.mxu1 }
 0x483   : > { %v11623_v1 = vmax.f32 %v6083_v0, %v11296_v4  ;;  %7594 = vmatmul.msk.f32.gmra.mxu2 %vm1232_vm0, %v11591_v41  ;;  %v3219_v60 = vpop.f32.mrf.mxu3 }
 0x484   : > { %3540 = vmatmul.f32.gmra.mxu0 %v11614_v49  ;;  %v3220_v9 = vadd.f32 %v3219_v60, %v3154_v5 }
 0x485   : > { %3413 = vmatmul.f32.gmra.mxu1 %v11635_v17 }
 0x486   : > { %v3346_v4 = vpop.f32.mrf.mxu2 }
 0x487   : > { %v3347_v52 = vadd.f32 %v3346_v4, %v3281_v45  ;;  %v1180_v4 = vld [vmem:[%s15424_s1 + $0x1960] sm:$0xff] }
 0x488   : > { %7580 = vmatmul.msk.f32.gmra.mxu3 %vm1232_vm0, %v11639_v32 }
 0x489   : > { %v6084_v3 = vmax.f32 %v3217_v26, %v3347_v52  ;;  %v3284_v27 = vpop.f32.mrf.mxu0  ;;  %v893_v26 = vld [vmem:[%s15424_s1 + $0x1068] sm:$0xff]  ;;  %3955 = vmatpush.msra.mxu3 %v1180_v4 }
 0x48a   : > { %v3157_v39 = vpop.f32.mrf.mxu1  ;;  %4012 = vmatpush.msra.mxu0 %v893_v26 }
 0x48b   : > { %v11644_v33 = vmax.f32 %v6084_v3, %v11311_v15  ;;  %7595 = vmatmul.msk.f32.gmra.mxu2 %vm1232_vm0, %v11618_v20  ;;  %v3222_v37 = vpop.f32.mrf.mxu3  ;;  %v1217_v15 = vld [vmem:[%s15424_s1 + $0x1a88] sm:$0xff]  ;;  %v11710_v3 = vld [vmem:[%s8574_s21 + $0xf0] sm:$0xff] }
 0x48c   : > { %3543 = vmatmul.f32.gmra.mxu0 %v11635_v17  ;;  %4084 = vmatpush.msra.mxu2 %v1217_v15  ;;  %v3223_v21 = vadd.f32 %v3222_v37, %v3157_v39 }
 0x48d   : > { %3416 = vmatmul.f32.gmra.mxu1 %v11662_v38 }
 0x48e   : > { %v3349_v8 = vpop.f32.mrf.mxu2 }
 0x48f   : > { %v3350_v59 = vadd.f32 %v3349_v8, %v3284_v27  ;;  %v857_v8 = vld [vmem:[%s15424_s1 + $0xf48] sm:$0xff] }
 0x490   : > { %7581 = vmatmul.msk.f32.gmra.mxu3 %vm1232_vm0, %v11666_v6  ;;  %4013 = vmatpush.msra.mxu0 %v857_v8 }
 0x491   : > { %v6085_v34 = vmax.f32 %v3220_v9, %v3350_v59  ;;  %v3287_v16 = vpop.f32.mrf.mxu0  ;;  %v856_v9 = vld [vmem:[%s15424_s1 + $0xf40] sm:$0xff] }
 0x492   : > { %v3160_v12 = vpop.f32.mrf.mxu1  ;;  %3883 = vmatpush.msra.mxu1 %v856_v9 }
 0x493   : > { %v11671_v35 = vmax.f32 %v6085_v34, %v11332_v50  ;;  %7596 = vmatmul.msk.f32.gmra.mxu2 %vm1232_vm0, %v11639_v32  ;;  %v3225_v11 = vpop.f32.mrf.mxu3  ;;  %v11728_v34 = vld [vmem:[%s8574_s21] sm:$0xff] }
 0x494   : > { %3546 = vmatmul.f32.gmra.mxu0 %v11662_v38  ;;  %v3226_v52 = vadd.f32 %v3225_v11, %v3160_v12 }
 0x495   : > { %3419 = vmatmul.f32.gmra.mxu1 %v11683_v18 }
 0x496   : > { %v3352_v50 = vpop.f32.mrf.mxu2 }
 0x497   : > { %v3353_v19 = vadd.f32 %v3352_v50, %v3287_v16  ;;  %v820_v50 = vld [vmem:[%s15424_s1 + $0xe20] sm:$0xff] }
 0x498   : > { %7582 = vmatmul.msk.f32.gmra.mxu3 %vm1232_vm0, %v11687_v54  ;;  %3884 = vmatpush.msra.mxu1 %v820_v50  ;;  %v11800_v50 = vld [vmem:[%s8574_s21 + $0x30] sm:$0xff] }
 0x499   : > { %v6086_v0 = vmax.f32 %v3223_v21, %v3353_v19  ;;  %v3290_v45 = vpop.f32.mrf.mxu0  ;;  %v821_v19 = vld [vmem:[%s15424_s1 + $0xe28] sm:$0xff] }
 0x49a   : > { %v3163_v5 = vpop.f32.mrf.mxu1  ;;  %4014 = vmatpush.msra.mxu0 %v821_v19 }
 0x49b   : > { %v11692_v60 = vmax.f32 %v6086_v0, %v11347_v51  ;;  %7597 = vmatmul.msk.f32.gmra.mxu2 %vm1232_vm0, %v11666_v6  ;;  %v3228_v62 = vpop.f32.mrf.mxu3  ;;  %v1181_v51 = vld [vmem:[%s15424_s1 + $0x1968] sm:$0xff]  ;;  %v1144_v0 = vld [vmem:[%s15424_s1 + $0x1840] sm:$0xff] }
 0x49c   : > { %3549 = vmatmul.f32.gmra.mxu0 %v11683_v18  ;;  %4085 = vmatpush.msra.mxu2 %v1181_v51  ;;  %v3229_v59 = vadd.f32 %v3228_v62, %v3163_v5 }
 0x49d   : > { %3422 = vmatmul.f32.gmra.mxu1 %v11710_v3  ;;  %3956 = vmatpush.msra.mxu3 %v1144_v0 }
 0x49e   : > { %v3355_v27 = vpop.f32.mrf.mxu2 }
 0x49f   : > { %v3356_v39 = vadd.f32 %v3355_v27, %v3290_v45  ;;  %v11752_v45 = vld [vmem:[%s8574_s21 + $0x10] sm:$0xff] }
 0x4a0   : > { %7599 = vmatmul.msk.f32.vlgmr.msrb.gmra.mxu3 %vm1232_vm0, %v11366_v42 }
 0x4a1   : > { %v6087_v37 = vmax.f32 %v3226_v52, %v3356_v39  ;;  %v3293_v24 = vpop.f32.mrf.mxu0  ;;  %v784_v39 = vld [vmem:[%s15424_s1 + $0xd00] sm:$0xff] }
 0x4a2   : > { %v3378_v36 = vpop.f32.mrf.mxu1  ;;  %3885 = vmatpush.msra.mxu1 %v784_v39 }
 0x4a3   : > { %v11716_v48 = vmax.f32 %v6087_v37, %v11371_v63  ;;  %7598 = vmatmul.msk.f32.gmra.mxu2 %vm1232_vm0, %v11687_v54  ;;  %v3443_v15 = vpop.f32.mrf.mxu3  ;;  %v785_v37 = vld [vmem:[%s15424_s1 + $0xd08] sm:$0xff] }
 0x4a4   : > { %3552 = vmatmul.f32.gmra.mxu0 %v11710_v3 }
 0x4a5   : > { %3637 = vmatmul.f32.vlgmr.msrb.gmra.mxu1 %v11728_v34  ;;  %4015 = vmatpush.msra.mxu0 %v785_v37  ;;  %v11821_v37 = vld [vmem:[%s8574_s21 + $0x40] sm:$0xff] }
 0x4a6   : > { %v3358_v63 = vpop.f32.mrf.mxu2 }
 0x4a7   : > { %v3359_v16 = vadd.f32 %v3358_v63, %v3293_v24 }
 0x4a8   : > { %7600 = vmatmul.msk.f32.gmra.mxu3 %vm1232_vm0, %v11384_v22 }
 0x4a9   : > { %v6088_v12 = vmax.f32 %v3229_v59, %v3359_v16  ;;  %v3508_v11 = vpop.f32.mrf.mxu0 }
 0x4aa   : > { %v3381_v25 = vpop.f32.mrf.mxu1 }
 0x4ab   : > { %v11734_v31 = vmax.f32 %v6088_v12, %v11389_v7  ;;  %7615 = vmatmul.msk.f32.vlgmr.msrb.gmra.mxu2 %vm1232_vm0, %v11366_v42  ;;  %v3446_v21 = vpop.f32.mrf.mxu3  ;;  %v1145_v42 = vld [vmem:[%s15424_s1 + $0x1848] sm:$0xff]  ;;  %v3444_v7 = vadd.f32 %v3443_v15, %v3378_v36  ;;  %v11773_v36 = vld [vmem:[%s8574_s21 + $0x20] sm:$0xff]  ;;  %v11777_v15 = vld [vmem:[%s8574_s21 + $0x38] sm:$0xff] }
 0x4ac   : > { %3767 = vmatmul.f32.vlgmr.msrb.gmra.mxu0 %v11728_v34  ;;  %4086 = vmatpush.msra.mxu2 %v1145_v42  ;;  %v3447_v24 = vadd.f32 %v3446_v21, %v3381_v25  ;;  %v748_v12 = vld [vmem:[%s15424_s1 + $0xbe0] sm:$0xff]  ;;  %v11804_v42 = vld [vmem:[%s8574_s21 + $0x48] sm:$0xff] }
 0x4ad   : > { %3640 = vmatmul.f32.gmra.mxu1 %v11752_v45  ;;  %v1108_v25 = vld [vmem:[%s15424_s1 + $0x1720] sm:$0xff] }
 0x4ae   : > { %v3573_v5 = vpop.f32.mrf.mxu2  ;;  %3886 = vmatpush.msra.mxu1 %v748_v12  ;;  %3957 = vmatpush.msra.mxu3 %v1108_v25  ;;  %v1072_v25 = vld [vmem:[%s15424_s1 + $0x1600] sm:$0xff] }
 0x4af   : > { %v3574_v62 = vadd.f32 %v3573_v5, %v3508_v11  ;;  %v749_v11 = vld [vmem:[%s15424_s1 + $0xbe8] sm:$0xff] }
 0x4b0   : > { %7601 = vmatmul.msk.f32.gmra.mxu3 %vm1232_vm0, %v11756_v43  ;;  %4016 = vmatpush.msra.mxu0 %v749_v11  ;;  %v677_v11 = vld [vmem:[%s15424_s1 + $0x9a8] sm:$0xff] }
 0x4b1   : > { %v6089_v26 = vmax.f32 %v3444_v7, %v3574_v62  ;;  %v3511_v4 = vpop.f32.mrf.mxu0  ;;  %3958 = vmatpush.msra.mxu3 %v1072_v25 }
 0x4b2   : > { %v3384_v51 = vpop.f32.mrf.mxu1 }
 0x4b3   : > { %v11761_v52 = vmax.f32 %v6089_v26, %v11410_v2  ;;  %7616 = vmatmul.msk.f32.gmra.mxu2 %vm1232_vm0, %v11384_v22  ;;  %v3449_v27 = vpop.f32.mrf.mxu3 }
 0x4b4   : > { %3770 = vmatmul.f32.gmra.mxu0 %v11752_v45  ;;  %v3450_v21 = vadd.f32 %v3449_v27, %v3384_v51  ;;  %v712_v51 = vld [vmem:[%s15424_s1 + $0xac0] sm:$0xff]  ;;  %v713_v27 = vld [vmem:[%s15424_s1 + $0xac8] sm:$0xff] }
 0x4b5   : > { %3643 = vmatmul.f32.gmra.mxu1 %v11773_v36  ;;  %4017 = vmatpush.msra.mxu0 %v713_v27 }
 0x4b6   : > { %v3576_v2 = vpop.f32.mrf.mxu2  ;;  %3887 = vmatpush.msra.mxu1 %v712_v51 }
 0x4b7   : > { %v3577_v22 = vadd.f32 %v3576_v2, %v3511_v4  ;;  %v11825_v2 = vld [vmem:[%s8574_s21 + $0x58] sm:$0xff]  ;;  %4018 = vmatpush.msra.mxu0 %v677_v11 }
 0x4b8   : > { %7602 = vmatmul.msk.f32.gmra.mxu3 %vm1232_vm0, %v11777_v15 }
 0x4b9   : > { %v6090_v9 = vmax.f32 %v3447_v24, %v3577_v22  ;;  %v3514_v8 = vpop.f32.mrf.mxu0 }
 0x4ba   : > { %v3387_v59 = vpop.f32.mrf.mxu1 }
 0x4bb   : > { %v11782_v63 = vmax.f32 %v6090_v9, %v11425_v55  ;;  %7617 = vmatmul.msk.f32.gmra.mxu2 %vm1232_vm0, %v11756_v43  ;;  %v3452_v16 = vpop.f32.mrf.mxu3  ;;  %v1109_v55 = vld [vmem:[%s15424_s1 + $0x1728] sm:$0xff] }
 0x4bc   : > { %3773 = vmatmul.f32.gmra.mxu0 %v11773_v36  ;;  %4087 = vmatpush.msra.mxu2 %v1109_v55  ;;  %v3453_v39 = vadd.f32 %v3452_v16, %v3387_v59  ;;  %v676_v16 = vld [vmem:[%s15424_s1 + $0x9a0] sm:$0xff] }
 0x4bd   : > { %3646 = vmatmul.f32.gmra.mxu1 %v11800_v50 }
 0x4be   : > { %v3579_v19 = vpop.f32.mrf.mxu2  ;;  %3888 = vmatpush.msra.mxu1 %v676_v16 }
 0x4bf   : > { %v3580_v0 = vadd.f32 %v3579_v19, %v3514_v8 }
 0x4c0   : > { %7603 = vmatmul.msk.f32.gmra.mxu3 %vm1232_vm0, %v11804_v42 }
 0x4c1   : > { %v6091_v7 = vmax.f32 %v3450_v21, %v3580_v0  ;;  %v3517_v5 = vpop.f32.mrf.mxu0  ;;  %v11848_v21 = vld [vmem:[%s8574_s21 + $0x50] sm:$0xff] }
 0x4c2   : > { %v3390_v62 = vpop.f32.mrf.mxu1 }
 0x4c3   : > { %v11809_v26 = vmax.f32 %v6091_v7, %v11446_v47  ;;  %7618 = vmatmul.msk.f32.gmra.mxu2 %vm1232_vm0, %v11777_v15  ;;  %v3455_v4 = vpop.f32.mrf.mxu3 }
 0x4c4   : > { %3776 = vmatmul.f32.gmra.mxu0 %v11800_v50  ;;  %v3456_v55 = vadd.f32 %v3455_v4, %v3390_v62  ;;  %v640_v4 = vld [vmem:[%s15424_s1 + $0x880] sm:$0xff] }
 0x4c5   : > { %3649 = vmatmul.f32.gmra.mxu1 %v11821_v37 }
 0x4c6   : > { %v3582_v47 = vpop.f32.mrf.mxu2  ;;  %3889 = vmatpush.msra.mxu1 %v640_v4 }
 0x4c7   : > { %v3583_v24 = vadd.f32 %v3582_v47, %v3517_v5 }
 0x4c8   : > { %7604 = vmatmul.msk.f32.gmra.mxu3 %vm1232_vm0, %v11825_v2 }
 0x4c9   : > { %v6092_v22 = vmax.f32 %v3453_v39, %v3583_v24  ;;  %v3520_v9 = vpop.f32.mrf.mxu0  ;;  %v641_v39 = vld [vmem:[%s15424_s1 + $0x888] sm:$0xff]  ;;  %v11866_v24 = vld [vmem:[%s8574_s21 + $0x60] sm:$0xff] }
 0x4ca   : > { %v3393_v8 = vpop.f32.mrf.mxu1  ;;  %4019 = vmatpush.msra.mxu0 %v641_v39 }
 0x4cb   : > { %v11830_v12 = vmax.f32 %v6092_v22, %v11461_v40  ;;  %7619 = vmatmul.msk.f32.gmra.mxu2 %vm1232_vm0, %v11804_v42  ;;  %v3458_v59 = vpop.f32.mrf.mxu3  ;;  %v1073_v40 = vld [vmem:[%s15424_s1 + $0x1608] sm:$0xff] }
 0x4cc   : > { %3779 = vmatmul.f32.gmra.mxu0 %v11821_v37  ;;  %4088 = vmatpush.msra.mxu2 %v1073_v40  ;;  %v3459_v47 = vadd.f32 %v3458_v59, %v3393_v8  ;;  %v604_v59 = vld [vmem:[%s15424_s1 + $0x760] sm:$0xff]  ;;  %v605_v40 = vld [vmem:[%s15424_s1 + $0x768] sm:$0xff] }
 0x4cd   : > { %3652 = vmatmul.f32.gmra.mxu1 %v11848_v21  ;;  %4020 = vmatpush.msra.mxu0 %v605_v40 }
 0x4ce   : > { %v3585_v19 = vpop.f32.mrf.mxu2  ;;  %3890 = vmatpush.msra.mxu1 %v604_v59 }
 0x4cf   : > { %v3586_v0 = vadd.f32 %v3585_v19, %v3520_v9  ;;  %v11890_v19 = vld [vmem:[%s8574_s21 + $0x70] sm:$0xff] }
 0x4d0   : > { %7605 = vmatmul.msk.f32.gmra.mxu3 %vm1232_vm0, %v11480_v28 }
 0x4d1   : > { %v6093_v7 = vmax.f32 %v3456_v55, %v3586_v0  ;;  %v3523_v5 = vpop.f32.mrf.mxu0  ;;  %v1036_v55 = vld [vmem:[%s15424_s1 + $0x14e0] sm:$0xff] }
 0x4d2   : > { %v3396_v51 = vpop.f32.mrf.mxu1  ;;  %3959 = vmatpush.msra.mxu3 %v1036_v55 }
 0x4d3   : > { %v11854_v27 = vmax.f32 %v6093_v7, %v11485_v29  ;;  %7620 = vmatmul.msk.f32.gmra.mxu2 %vm1232_vm0, %v11825_v2  ;;  %v3461_v62 = vpop.f32.mrf.mxu3 }
 0x4d4   : > { %3782 = vmatmul.f32.gmra.mxu0 %v11848_v21 }
 0x4d5   : > { %3655 = vmatmul.f32.gmra.mxu1 %v11866_v24 }
 0x4d6   : > { %v3588_v29 = vpop.f32.mrf.mxu2 }
 0x4d7   : > { %v3589_v22 = vadd.f32 %v3588_v29, %v3523_v5  ;;  %v569_v29 = vld [vmem:[%s15424_s1 + $0x648] sm:$0xff] }
 0x4d8   : > { %7606 = vmatmul.msk.f32.gmra.mxu3 %vm1232_vm0, %v11498_v30  ;;  %4021 = vmatpush.msra.mxu0 %v569_v29 }
 0x4d9   : > { %v6094_v9 = vmax.f32 %v3459_v47, %v3589_v22  ;;  %v3526_v16 = vpop.f32.mrf.mxu0 }
 0x4da   : > { %v3399_v11 = vpop.f32.mrf.mxu1 }
 0x4db   : > { %v11872_v25 = vmax.f32 %v6094_v9, %v11503_v14  ;;  %7621 = vmatmul.msk.f32.gmra.mxu2 %vm1232_vm0, %v11480_v28  ;;  %v3464_v8 = vpop.f32.mrf.mxu3  ;;  %v1037_v28 = vld [vmem:[%s15424_s1 + $0x14e8] sm:$0xff]  ;;  %v3462_v14 = vadd.f32 %v3461_v62, %v3396_v51  ;;  %v568_v62 = vld [vmem:[%s15424_s1 + $0x640] sm:$0xff] }
 0x4dc   : > { %3785 = vmatmul.f32.gmra.mxu0 %v11866_v24  ;;  %4089 = vmatpush.msra.mxu2 %v1037_v28  ;;  %v3465_v22 = vadd.f32 %v3464_v8, %v3399_v11  ;;  %v532_v11 = vld [vmem:[%s15424_s1 + $0x520] sm:$0xff]  ;;  %v533_v8 = vld [vmem:[%s15424_s1 + $0x528] sm:$0xff] }
 0x4dd   : > { %3658 = vmatmul.f32.gmra.mxu1 %v11890_v19  ;;  %v1000_v28 = vld [vmem:[%s15424_s1 + $0x13c0] sm:$0xff]  ;;  %4022 = vmatpush.msra.mxu0 %v533_v8 }
 0x4de   : > { %v3591_v0 = vpop.f32.mrf.mxu2  ;;  %3891 = vmatpush.msra.mxu1 %v568_v62  ;;  %3960 = vmatpush.msra.mxu3 %v1000_v28  ;;  %v497_v62 = vld [vmem:[%s15424_s1 + $0x408] sm:$0xff] }
 0x4df   : > { %v3592_v7 = vadd.f32 %v3591_v0, %v3526_v16  ;;  %4023 = vmatpush.msra.mxu0 %v497_v62 }
 0x4e0   : > { %7607 = vmatmul.msk.f32.gmra.mxu3 %vm1232_vm0, %v11522_v56  ;;  %3892 = vmatpush.msra.mxu1 %v532_v11 }
 0x4e1   : > { %v6095_v5 = vmax.f32 %v3462_v14, %v3592_v7  ;;  %v3529_v4 = vpop.f32.mrf.mxu0 }
 0x4e2   : > { %v3402_v39 = vpop.f32.mrf.mxu1 }
 0x4e3   : > { %v11896_v47 = vmax.f32 %v6095_v5, %v11527_v10  ;;  %7622 = vmatmul.msk.f32.gmra.mxu2 %vm1232_vm0, %v11498_v30  ;;  %v3467_v51 = vpop.f32.mrf.mxu3 }
 0x4e4   : > { %3788 = vmatmul.f32.gmra.mxu0 %v11890_v19 }
 0x4e5   : > { %3661 = vmatmul.f32.gmra.mxu1 %v11539_v57 }
 0x4e6   : > { %v3594_v10 = vpop.f32.mrf.mxu2 }
 0x4e7   : > { %v3595_v9 = vadd.f32 %v3594_v10, %v3529_v4 }
 0x4e8   : > { %7608 = vmatmul.msk.f32.gmra.mxu3 %vm1232_vm0, %v11543_v23 }
 0x4e9   : > { %v6096_v30 = vmax.f32 %v3465_v22, %v3595_v9  ;;  %v3532_v16 = vpop.f32.mrf.mxu0 }
 0x4ea   : > { %v3405_v59 = vpop.f32.mrf.mxu1 }
 0x4eb   : > { %v11911_v40 = vmax.f32 %v6096_v30, %v11548_v58  ;;  %7623 = vmatmul.msk.f32.gmra.mxu2 %vm1232_vm0, %v11522_v56  ;;  %v3470_v55 = vpop.f32.mrf.mxu3  ;;  %v1001_v56 = vld [vmem:[%s15424_s1 + $0x13c8] sm:$0xff]  ;;  %v3468_v58 = vadd.f32 %v3467_v51, %v3402_v39  ;;  %v496_v51 = vld [vmem:[%s15424_s1 + $0x400] sm:$0xff] }
 0x4ec   : > { %3791 = vmatmul.f32.gmra.mxu0 %v11539_v57  ;;  %4090 = vmatpush.msra.mxu2 %v1001_v56  ;;  %v3471_v29 = vadd.f32 %v3470_v55, %v3405_v59  ;;  %v461_v59 = vld [vmem:[%s15424_s1 + $0x2e8] sm:$0xff]  ;;  %v964_v55 = vld [vmem:[%s15424_s1 + $0x12a0] sm:$0xff] }
 0x4ed   : > { %3664 = vmatmul.f32.gmra.mxu1 %v11566_v44  ;;  %4024 = vmatpush.msra.mxu0 %v461_v59 }
 0x4ee   : > { %v3597_v14 = vpop.f32.mrf.mxu2  ;;  %3893 = vmatpush.msra.mxu1 %v496_v51  ;;  %3961 = vmatpush.msra.mxu3 %v964_v55  ;;  %v930_v55 = vld [vmem:[%s15424_s1 + $0x1190] sm:$0xff] }
 0x4ef   : > { %v3598_v0 = vadd.f32 %v3597_v14, %v3532_v16  ;;  %v460_v16 = vld [vmem:[%s15424_s1 + $0x2e0] sm:$0xff] }
 0x4f0   : > { %7609 = vmatmul.msk.f32.gmra.mxu3 %vm1232_vm0, %v11570_v46  ;;  %3894 = vmatpush.msra.mxu1 %v460_v16 }
 0x4f1   : > { %v6097_v7 = vmax.f32 %v3468_v58, %v3598_v0  ;;  %v3535_v5 = vpop.f32.mrf.mxu0  ;;  %v424_v0 = vld [vmem:[%s15424_s1 + $0x1c0] sm:$0xff] }
 0x4f2   : > { %v3408_v4 = vpop.f32.mrf.mxu1  ;;  %3895 = vmatpush.msra.mxu1 %v424_v0  ;;  %v1182_v0 = vld [vmem:[%s15424_s1 + $0x1970] sm:$0xff] }
 0x4f3   : > { %v11932_v57 = vmax.f32 %v6097_v7, %v11575_v61  ;;  %7624 = vmatmul.msk.f32.gmra.mxu2 %vm1232_vm0, %v11543_v23  ;;  %v3473_v39 = vpop.f32.mrf.mxu3  ;;  %v425_v7 = vld [vmem:[%s15424_s1 + $0x1c8] sm:$0xff] }
 0x4f4   : > { %3794 = vmatmul.f32.gmra.mxu0 %v11566_v44 }
 0x4f5   : > { %3667 = vmatmul.f32.gmra.mxu1 %v11587_v53  ;;  %4025 = vmatpush.msra.mxu0 %v425_v7 }
 0x4f6   : > { %v3600_v61 = vpop.f32.mrf.mxu2 }
 0x4f7   : > { %v3601_v22 = vadd.f32 %v3600_v61, %v3535_v5  ;;  %v389_v61 = vld [vmem:[%s15424_s1 + $0xa8] sm:$0xff] }
 0x4f8   : > { %7610 = vmatmul.msk.f32.gmra.mxu3 %vm1232_vm0, %v11591_v41  ;;  %4026 = vmatpush.msra.mxu0 %v389_v61 }
 0x4f9   : > { %v6098_v23 = vmax.f32 %v3471_v29, %v3601_v22  ;;  %v3538_v10 = vpop.f32.mrf.mxu0  ;;  %v388_v29 = vld [vmem:[%s15424_s1 + $0xa0] sm:$0xff]  ;;  %v1218_v22 = vld [vmem:[%s15424_s1 + $0x1a90] sm:$0xff] }
 0x4fa   : > { %v3411_v9 = vpop.f32.mrf.mxu1  ;;  %3896 = vmatpush.msra.mxu1 %v388_v29  ;;  %4214 = vmatpush.msrb.mxu3 %v1218_v22  ;;  %v859_v29 = vld [vmem:[%s15424_s1 + $0xf58] sm:$0xff] }
 0x4fb   : > { %v11947_v30 = vmax.f32 %v6098_v23, %v11596_v13  ;;  %7625 = vmatmul.msk.f32.gmra.mxu2 %vm1232_vm0, %v11570_v46  ;;  %v3476_v44 = vpop.f32.mrf.mxu3  ;;  %v965_v46 = vld [vmem:[%s15424_s1 + $0x12a8] sm:$0xff]  ;;  %v3474_v13 = vadd.f32 %v3473_v39, %v3408_v4 }
 0x4fc   : > { %3797 = vmatmul.f32.gmra.mxu0 %v11587_v53  ;;  %4091 = vmatpush.msra.mxu2 %v965_v46  ;;  %v3477_v5 = vadd.f32 %v3476_v44, %v3411_v9  ;;  %v931_v46 = vld [vmem:[%s15424_s1 + $0x1198] sm:$0xff] }
 0x4fd   : > { %3670 = vmatmul.f32.gmra.mxu1 %v11614_v49  ;;  %4271 = vmatpush.msrb.mxu0 %v931_v46 }
 0x4fe   : > { %v3603_v11 = vpop.f32.mrf.mxu2  ;;  %4141 = vmatpush.msrb.mxu1 %v930_v55  ;;  %4215 = vmatpush.msrb.mxu3 %v1182_v0 }
 0x4ff   : > { %v3604_v8 = vadd.f32 %v3603_v11, %v3538_v10 }
 0x500   : > { %7611 = vmatmul.msk.f32.gmra.mxu3 %vm1232_vm0, %v11618_v20 }
 0x501   : > { %v6099_v28 = vmax.f32 %v3474_v13, %v3604_v8  ;;  %v3541_v56 = vpop.f32.mrf.mxu0 }
 0x502   : > { %v3414_v58 = vpop.f32.mrf.mxu1 }
 0x503   : > { %v11968_v53 = vmax.f32 %v6099_v28, %v11623_v1  ;;  %7626 = vmatmul.msk.f32.gmra.mxu2 %vm1232_vm0, %v11591_v41  ;;  %v3479_v14 = vpop.f32.mrf.mxu3 }
 0x504   : > { %3800 = vmatmul.f32.gmra.mxu0 %v11614_v49 }
 0x505   : > { %3673 = vmatmul.f32.gmra.mxu1 %v11635_v17 }
 0x506   : > { %v3606_v1 = vpop.f32.mrf.mxu2 }
 0x507   : > { %v3607_v4 = vadd.f32 %v3606_v1, %v3541_v56  ;;  %v12038_v1 = vld [vmem:[%s8574_s21 + $0x8] sm:$0xff] }
 0x508   : > { %7612 = vmatmul.msk.f32.gmra.mxu3 %vm1232_vm0, %v11639_v32 }
 0x509   : > { %v6100_v41 = vmax.f32 %v3477_v5, %v3607_v4  ;;  %v3544_v39 = vpop.f32.mrf.mxu0 }
 0x50a   : > { %v3417_v51 = vpop.f32.mrf.mxu1 }
 0x50b   : > { %v11983_v62 = vmax.f32 %v6100_v41, %v11644_v33  ;;  %7627 = vmatmul.msk.f32.gmra.mxu2 %vm1232_vm0, %v11618_v20  ;;  %v3482_v49 = vpop.f32.mrf.mxu3  ;;  %v1219_v20 = vld [vmem:[%s15424_s1 + $0x1a98] sm:$0xff]  ;;  %v3480_v33 = vadd.f32 %v3479_v14, %v3414_v58  ;;  %v894_v58 = vld [vmem:[%s15424_s1 + $0x1070] sm:$0xff] }
 0x50c   : > { %3803 = vmatmul.f32.gmra.mxu0 %v11635_v17  ;;  %4344 = vmatpush.msrb.mxu2 %v1219_v20  ;;  %v3483_v13 = vadd.f32 %v3482_v49, %v3417_v51  ;;  %v895_v14 = vld [vmem:[%s15424_s1 + $0x1078] sm:$0xff]  ;;  %v858_v49 = vld [vmem:[%s15424_s1 + $0xf50] sm:$0xff] }
 0x50d   : > { %3676 = vmatmul.f32.gmra.mxu1 %v11662_v38  ;;  %4272 = vmatpush.msrb.mxu0 %v895_v14  ;;  %v12056_v20 = vld [vmem:[%s8574_s21 + $0x18] sm:$0xff] }
 0x50e   : > { %v3609_v23 = vpop.f32.mrf.mxu2  ;;  %4142 = vmatpush.msrb.mxu1 %v894_v58 }
 0x50f   : > { %v3610_v10 = vadd.f32 %v3609_v23, %v3544_v39  ;;  %4273 = vmatpush.msrb.mxu0 %v859_v29 }
 0x510   : > { %7613 = vmatmul.msk.f32.gmra.mxu3 %vm1232_vm0, %v11666_v6  ;;  %4143 = vmatpush.msrb.mxu1 %v858_v49 }
 0x511   : > { %v6101_v9 = vmax.f32 %v3480_v33, %v3610_v10  ;;  %v3547_v44 = vpop.f32.mrf.mxu0 }
 0x512   : > { %v3420_v16 = vpop.f32.mrf.mxu1 }
 0x513   : > { %v12004_v17 = vmax.f32 %v6101_v9, %v11671_v35  ;;  %7628 = vmatmul.msk.f32.gmra.mxu2 %vm1232_vm0, %v11639_v32  ;;  %v3485_v59 = vpop.f32.mrf.mxu3  ;;  %v822_v9 = vld [vmem:[%s15424_s1 + $0xe30] sm:$0xff] }
 0x514   : > { %3806 = vmatmul.f32.gmra.mxu0 %v11662_v38  ;;  %4144 = vmatpush.msrb.mxu1 %v822_v9 }
 0x515   : > { %3679 = vmatmul.f32.gmra.mxu1 %v11683_v18 }
 0x516   : > { %v3612_v35 = vpop.f32.mrf.mxu2 }
 0x517   : > { %v3613_v11 = vadd.f32 %v3612_v35, %v3547_v44  ;;  %v823_v44 = vld [vmem:[%s15424_s1 + $0xe38] sm:$0xff] }
 0x518   : > { %7614 = vmatmul.msk.f32.gmra.mxu3 %vm1232_vm0, %v11687_v54  ;;  %4274 = vmatpush.msrb.mxu0 %v823_v44  ;;  %v678_v44 = vld [vmem:[%s15424_s1 + $0x9b0] sm:$0xff] }
 0x519   : > { %v6102_v32 = vmax.f32 %v3483_v13, %v3613_v11  ;;  %v3550_v8 = vpop.f32.mrf.mxu0 }
 0x51a   : > { %v3423_v28 = vpop.f32.mrf.mxu1 }
 0x51b   : > { %v12019_v56 = vmax.f32 %v6102_v32, %v11692_v60  ;;  %7629 = vmatmul.msk.f32.gmra.mxu2 %vm1232_vm0, %v11666_v6  ;;  %v3488_v38 = vpop.f32.mrf.mxu3  ;;  %v1183_v6 = vld [vmem:[%s15424_s1 + $0x1978] sm:$0xff]  ;;  %v3486_v60 = vadd.f32 %v3485_v59, %v3420_v16  ;;  %v1146_v16 = vld [vmem:[%s15424_s1 + $0x1850] sm:$0xff] }
 0x51c   : > { %3809 = vmatmul.f32.gmra.mxu0 %v11683_v18  ;;  %4345 = vmatpush.msrb.mxu2 %v1183_v6  ;;  %v3489_v61 = vadd.f32 %v3488_v38, %v3423_v28  ;;  %v787_v28 = vld [vmem:[%s15424_s1 + $0xd18] sm:$0xff] }
 0x51d   : > { %3682 = vmatmul.f32.gmra.mxu1 %v11710_v3  ;;  %4216 = vmatpush.msrb.mxu3 %v1146_v16  ;;  %v679_v16 = vld [vmem:[%s15424_s1 + $0x9b8] sm:$0xff] }
 0x51e   : > { %v3615_v7 = vpop.f32.mrf.mxu2  ;;  %4275 = vmatpush.msrb.mxu0 %v787_v28  ;;  %v643_v28 = vld [vmem:[%s15424_s1 + $0x898] sm:$0xff] }
 0x51f   : > { %v3616_v5 = vadd.f32 %v3615_v7, %v3550_v8  ;;  %v786_v8 = vld [vmem:[%s15424_s1 + $0xd10] sm:$0xff] }
 0x520   : > { %7631 = vmatmul.msk.f32.vlgmr.msra.gmra.mxu3 %vm1232_vm0, %v12038_v1  ;;  %4145 = vmatpush.msrb.mxu1 %v786_v8  ;;  %v750_v7 = vld [vmem:[%s15424_s1 + $0xbf0] sm:$0xff] }
 0x521   : > { %v6103_v18 = vmax.f32 %v3486_v60, %v3616_v5  ;;  %v3553_v4 = vpop.f32.mrf.mxu0  ;;  %v751_v5 = vld [vmem:[%s15424_s1 + $0xbf8] sm:$0xff]  ;;  %v642_v8 = vld [vmem:[%s15424_s1 + $0x890] sm:$0xff] }
 0x522   : > { %v3638_v41 = vpop.f32.mrf.mxu1  ;;  %4146 = vmatpush.msrb.mxu1 %v750_v7  ;;  %4276 = vmatpush.msrb.mxu0 %v751_v5  ;;  %v607_v7 = vld [vmem:[%s15424_s1 + $0x778] sm:$0xff]  ;;  %v1038_v5 = vld [vmem:[%s15424_s1 + $0x14f0] sm:$0xff] }
 0x523   : > { %v12043_v39 = vmax.f32 %v6103_v18, %v11716_v48  ;;  %7630 = vmatmul.msk.f32.gmra.mxu2 %vm1232_vm0, %v11687_v54  ;;  %v3703_v51 = vpop.f32.mrf.mxu3  ;;  %v1110_v18 = vld [vmem:[%s15424_s1 + $0x1730] sm:$0xff] }
 0x524   : > { %3812 = vmatmul.f32.gmra.mxu0 %v11710_v3  ;;  %v3704_v59 = vadd.f32 %v3703_v51, %v3638_v41  ;;  %4217 = vmatpush.msrb.mxu3 %v1110_v18 }
 0x525   : > { %3897 = vmatmul.f32.vlgmr.msra.gmra.mxu1 %v11728_v34 }
 0x526   : > { %v3618_v48 = vpop.f32.mrf.mxu2 }
 0x527   : > { %v3619_v22 = vadd.f32 %v3618_v48, %v3553_v4  ;;  %v714_v48 = vld [vmem:[%s15424_s1 + $0xad0] sm:$0xff] }
 0x528   : > { %7632 = vmatmul.msk.f32.gmra.mxu3 %vm1232_vm0, %v12056_v20  ;;  %4147 = vmatpush.msrb.mxu1 %v714_v48  ;;  %v571_v48 = vld [vmem:[%s15424_s1 + $0x658] sm:$0xff] }
 0x529   : > { %v6104_v54 = vmax.f32 %v3489_v61, %v3619_v22  ;;  %v3768_v33 = vpop.f32.mrf.mxu0  ;;  %v715_v22 = vld [vmem:[%s15424_s1 + $0xad8] sm:$0xff] }
 0x52a   : > { %v3641_v23 = vpop.f32.mrf.mxu1  ;;  %4277 = vmatpush.msrb.mxu0 %v715_v22  ;;  %4148 = vmatpush.msrb.mxu1 %v678_v44  ;;  %v534_v44 = vld [vmem:[%s15424_s1 + $0x530] sm:$0xff] }
 0x52b   : > { %v12061_v10 = vmax.f32 %v6104_v54, %v11734_v31  ;;  %7647 = vmatmul.msk.f32.vlgmr.msra.gmra.mxu2 %vm1232_vm0, %v12038_v1  ;;  %v3706_v3 = vpop.f32.mrf.mxu3  ;;  %v1147_v31 = vld [vmem:[%s15424_s1 + $0x1858] sm:$0xff] }
 0x52c   : > { %4027 = vmatmul.f32.vlgmr.msra.gmra.mxu0 %v11728_v34  ;;  %4346 = vmatpush.msrb.mxu2 %v1147_v31  ;;  %v3707_v38 = vadd.f32 %v3706_v3, %v3641_v23  ;;  %v1074_v31 = vld [vmem:[%s15424_s1 + $0x1610] sm:$0xff] }
 0x52d   : > { %3900 = vmatmul.f32.gmra.mxu1 %v11752_v45  ;;  %4278 = vmatpush.msrb.mxu0 %v679_v16  ;;  %v535_v16 = vld [vmem:[%s15424_s1 + $0x538] sm:$0xff] }
 0x52e   : > { %v3833_v55 = vpop.f32.mrf.mxu2  ;;  %4218 = vmatpush.msrb.mxu3 %v1074_v31  ;;  %4149 = vmatpush.msrb.mxu1 %v642_v8  ;;  %v1002_v31 = vld [vmem:[%s15424_s1 + $0x13d0] sm:$0xff] }
 0x52f   : > { %v3834_v46 = vadd.f32 %v3833_v55, %v3768_v33  ;;  %4279 = vmatpush.msrb.mxu0 %v643_v28 }
 0x530   : > { %7633 = vmatmul.msk.f32.gmra.mxu3 %vm1232_vm0, %v11756_v43 }
 0x531   : > { %v6105_v13 = vmax.f32 %v3704_v59, %v3834_v46  ;;  %v3771_v35 = vpop.f32.mrf.mxu0  ;;  %v12152_v46 = vld [vmem:[%s8574_s21 + $0x68] sm:$0xff]  ;;  %4280 = vmatpush.msrb.mxu0 %v607_v7  ;;  %4219 = vmatpush.msrb.mxu3 %v1038_v5 }
 0x532   : > { %v3644_v11 = vpop.f32.mrf.mxu1 }
 0x533   : > { %v12082_v34 = vmax.f32 %v6105_v13, %v11761_v52  ;;  %7648 = vmatmul.msk.f32.gmra.mxu2 %vm1232_vm0, %v12056_v20  ;;  %v3709_v32 = vpop.f32.mrf.mxu3  ;;  %4281 = vmatpush.msrb.mxu0 %v571_v48 }
 0x534   : > { %4030 = vmatmul.f32.gmra.mxu0 %v11752_v45  ;;  %4220 = vmatpush.msrb.mxu3 %v1002_v31  ;;  %v12311_v31 = vld [vmem:[%s8574_s21 + $0xd8] sm:$0xff] }
 0x535   : > { %3903 = vmatmul.f32.gmra.mxu1 %v11773_v36  ;;  %4282 = vmatpush.msrb.mxu0 %v535_v16 }
 0x536   : > { %v3836_v52 = vpop.f32.mrf.mxu2 }
 0x537   : > { %v3837_v58 = vadd.f32 %v3836_v52, %v3771_v35 }
 0x538   : > { %7634 = vmatmul.msk.f32.gmra.mxu3 %vm1232_vm0, %v11777_v15 }
 0x539   : > { %v6106_v14 = vmax.f32 %v3707_v38, %v3837_v58  ;;  %v3774_v0 = vpop.f32.mrf.mxu0  ;;  %v12170_v58 = vld [vmem:[%s8574_s21 + $0x78] sm:$0xff] }
 0x53a   : > { %v3647_v6 = vpop.f32.mrf.mxu1 }
 0x53b   : > { %v12097_v60 = vmax.f32 %v6106_v14, %v11782_v63  ;;  %7649 = vmatmul.msk.f32.gmra.mxu2 %vm1232_vm0, %v11756_v43  ;;  %v3712_v45 = vpop.f32.mrf.mxu3  ;;  %v1111_v43 = vld [vmem:[%s15424_s1 + $0x1738] sm:$0xff]  ;;  %v3710_v63 = vadd.f32 %v3709_v32, %v3644_v11 }
 0x53c   : > { %4033 = vmatmul.f32.gmra.mxu0 %v11773_v36  ;;  %4347 = vmatpush.msrb.mxu2 %v1111_v43  ;;  %v3713_v54 = vadd.f32 %v3712_v45, %v3647_v6  ;;  %v606_v45 = vld [vmem:[%s15424_s1 + $0x770] sm:$0xff] }
 0x53d   : > { %3906 = vmatmul.f32.gmra.mxu1 %v11800_v50 }
 0x53e   : > { %v3839_v4 = vpop.f32.mrf.mxu2  ;;  %4150 = vmatpush.msrb.mxu1 %v606_v45 }
 0x53f   : > { %v3840_v41 = vadd.f32 %v3839_v4, %v3774_v0  ;;  %v12194_v4 = vld [vmem:[%s8574_s21 + $0x88] sm:$0xff] }
 0x540   : > { %7635 = vmatmul.msk.f32.gmra.mxu3 %vm1232_vm0, %v11804_v42 }
 0x541   : > { %v6107_v51 = vmax.f32 %v3710_v63, %v3840_v41  ;;  %v3777_v49 = vpop.f32.mrf.mxu0 }
 0x542   : > { %v3650_v29 = vpop.f32.mrf.mxu1 }
 0x543   : > { %v12118_v36 = vmax.f32 %v6107_v51, %v11809_v26  ;;  %7650 = vmatmul.msk.f32.gmra.mxu2 %vm1232_vm0, %v11777_v15  ;;  %v3715_v61 = vpop.f32.mrf.mxu3 }
 0x544   : > { %4036 = vmatmul.f32.gmra.mxu0 %v11800_v50 }
 0x545   : > { %3909 = vmatmul.f32.gmra.mxu1 %v11821_v37 }
 0x546   : > { %v3842_v26 = vpop.f32.mrf.mxu2 }
 0x547   : > { %v3843_v33 = vadd.f32 %v3842_v26, %v3777_v49 }
 0x548   : > { %7636 = vmatmul.msk.f32.gmra.mxu3 %vm1232_vm0, %v11825_v2 }
 0x549   : > { %v6108_v15 = vmax.f32 %v3713_v54, %v3843_v33  ;;  %v3780_v23 = vpop.f32.mrf.mxu0  ;;  %v12211_v54 = vld [vmem:[%s8574_s21 + $0x80] sm:$0xff]  ;;  %v12215_v33 = vld [vmem:[%s8574_s21 + $0x98] sm:$0xff] }
 0x54a   : > { %v3653_v3 = vpop.f32.mrf.mxu1 }
 0x54b   : > { %v12133_v9 = vmax.f32 %v6108_v15, %v11830_v12  ;;  %7651 = vmatmul.msk.f32.gmra.mxu2 %vm1232_vm0, %v11804_v42  ;;  %v3718_v50 = vpop.f32.mrf.mxu3  ;;  %v1075_v42 = vld [vmem:[%s15424_s1 + $0x1618] sm:$0xff]  ;;  %v3716_v12 = vadd.f32 %v3715_v61, %v3650_v29  ;;  %v570_v61 = vld [vmem:[%s15424_s1 + $0x650] sm:$0xff] }
 0x54c   : > { %4039 = vmatmul.f32.gmra.mxu0 %v11821_v37  ;;  %4348 = vmatpush.msrb.mxu2 %v1075_v42  ;;  %v3719_v38 = vadd.f32 %v3718_v50, %v3653_v3 }
 0x54d   : > { %3912 = vmatmul.f32.gmra.mxu1 %v11848_v21 }
 0x54e   : > { %v3845_v59 = vpop.f32.mrf.mxu2  ;;  %4151 = vmatpush.msrb.mxu1 %v570_v61  ;;  %v12290_v61 = vld [vmem:[%s8574_s21 + $0xc8] sm:$0xff] }
 0x54f   : > { %v3846_v55 = vadd.f32 %v3845_v59, %v3780_v23 }
 0x550   : > { %7637 = vmatmul.msk.f32.gmra.mxu3 %vm1232_vm0, %v12152_v46  ;;  %4152 = vmatpush.msrb.mxu1 %v534_v44  ;;  %v12307_v44 = vld [vmem:[%s8574_s21 + $0xc0] sm:$0xff] }
 0x551   : > { %v6109_v37 = vmax.f32 %v3716_v12, %v3846_v55  ;;  %v3783_v13 = vpop.f32.mrf.mxu0  ;;  %v12238_v12 = vld [vmem:[%s8574_s21 + $0x90] sm:$0xff] }
 0x552   : > { %v3656_v35 = vpop.f32.mrf.mxu1 }
 0x553   : > { %v12157_v11 = vmax.f32 %v6109_v37, %v11854_v27  ;;  %7652 = vmatmul.msk.f32.gmra.mxu2 %vm1232_vm0, %v11825_v2  ;;  %v3721_v32 = vpop.f32.mrf.mxu3  ;;  %v12242_v37 = vld [vmem:[%s8574_s21 + $0xa8] sm:$0xff] }
 0x554   : > { %4042 = vmatmul.f32.gmra.mxu0 %v11848_v21  ;;  %v3722_v18 = vadd.f32 %v3721_v32, %v3656_v35 }
 0x555   : > { %3915 = vmatmul.f32.gmra.mxu1 %v11866_v24 }
 0x556   : > { %v3848_v27 = vpop.f32.mrf.mxu2 }
 0x557   : > { %v3849_v52 = vadd.f32 %v3848_v27, %v3783_v13  ;;  %v499_v27 = vld [vmem:[%s15424_s1 + $0x418] sm:$0xff] }
 0x558   : > { %7638 = vmatmul.msk.f32.gmra.mxu3 %vm1232_vm0, %v12170_v58  ;;  %4283 = vmatpush.msrb.mxu0 %v499_v27  ;;  %v12334_v27 = vld [vmem:[%s8574_s21 + $0xd0] sm:$0xff] }
 0x559   : > { %v6110_v2 = vmax.f32 %v3719_v38, %v3849_v52  ;;  %v3786_v14 = vpop.f32.mrf.mxu0  ;;  %v498_v38 = vld [vmem:[%s15424_s1 + $0x410] sm:$0xff] }
 0x55a   : > { %v3659_v0 = vpop.f32.mrf.mxu1  ;;  %4153 = vmatpush.msrb.mxu1 %v498_v38 }
 0x55b   : > { %v12175_v6 = vmax.f32 %v6110_v2, %v11872_v25  ;;  %7653 = vmatmul.msk.f32.gmra.mxu2 %vm1232_vm0, %v12152_v46  ;;  %v3724_v21 = vpop.f32.mrf.mxu3  ;;  %v1039_v25 = vld [vmem:[%s15424_s1 + $0x14f8] sm:$0xff]  ;;  %v12259_v2 = vld [vmem:[%s8574_s21 + $0xa0] sm:$0xff] }
 0x55c   : > { %4045 = vmatmul.f32.gmra.mxu0 %v11866_v24  ;;  %4349 = vmatpush.msrb.mxu2 %v1039_v25  ;;  %v3725_v22 = vadd.f32 %v3724_v21, %v3659_v0  ;;  %v12263_v0 = vld [vmem:[%s8574_s21 + $0xb8] sm:$0xff] }
 0x55d   : > { %3918 = vmatmul.f32.gmra.mxu1 %v11890_v19 }
 0x55e   : > { %v3851_v43 = vpop.f32.mrf.mxu2 }
 0x55f   : > { %v3852_v63 = vadd.f32 %v3851_v43, %v3786_v14  ;;  %v463_v43 = vld [vmem:[%s15424_s1 + $0x2f8] sm:$0xff] }
 0x560   : > { %7639 = vmatmul.msk.f32.gmra.mxu3 %vm1232_vm0, %v12194_v4  ;;  %4284 = vmatpush.msrb.mxu0 %v463_v43  ;;  %v932_v43 = vld [vmem:[%s15424_s1 + $0x11a0] sm:$0xff] }
 0x561   : > { %v6111_v24 = vmax.f32 %v3722_v18, %v3852_v63  ;;  %v3789_v41 = vpop.f32.mrf.mxu0  ;;  %v462_v18 = vld [vmem:[%s15424_s1 + $0x2f0] sm:$0xff] }
 0x562   : > { %v3662_v51 = vpop.f32.mrf.mxu1  ;;  %v966_v63 = vld [vmem:[%s15424_s1 + $0x12b0] sm:$0xff]  ;;  %4154 = vmatpush.msrb.mxu1 %v462_v18 }
 0x563   : > { %v12199_v49 = vmax.f32 %v6111_v24, %v11896_v47  ;;  %7654 = vmatmul.msk.f32.gmra.mxu2 %vm1232_vm0, %v12170_v58  ;;  %v3727_v29 = vpop.f32.mrf.mxu3  ;;  %4221 = vmatpush.msrb.mxu3 %v966_v63  ;;  %v933_v63 = vld [vmem:[%s15424_s1 + $0x11a8] sm:$0xff] }
 0x564   : > { %4048 = vmatmul.f32.gmra.mxu0 %v11890_v19  ;;  %v3728_v42 = vadd.f32 %v3727_v29, %v3662_v51 }
 0x565   : > { %3921 = vmatmul.f32.gmra.mxu1 %v12211_v54 }
 0x566   : > { %v3854_v47 = vpop.f32.mrf.mxu2 }
 0x567   : > { %v3855_v26 = vadd.f32 %v3854_v47, %v3789_v41  ;;  %v12286_v41 = vld [vmem:[%s8574_s21 + $0xb0] sm:$0xff] }
 0x568   : > { %7640 = vmatmul.msk.f32.gmra.mxu3 %vm1232_vm0, %v12215_v33 }
 0x569   : > { %v6112_v15 = vmax.f32 %v3725_v22, %v3855_v26  ;;  %v3792_v23 = vpop.f32.mrf.mxu0 }
 0x56a   : > { %v3665_v3 = vpop.f32.mrf.mxu1 }
 0x56b   : > { %v12220_v19 = vmax.f32 %v6112_v15, %v11911_v40  ;;  %7655 = vmatmul.msk.f32.gmra.mxu2 %vm1232_vm0, %v12194_v4  ;;  %v3730_v50 = vpop.f32.mrf.mxu3  ;;  %v1003_v40 = vld [vmem:[%s15424_s1 + $0x13d8] sm:$0xff] }
 0x56c   : > { %4051 = vmatmul.f32.gmra.mxu0 %v12211_v54  ;;  %4350 = vmatpush.msrb.mxu2 %v1003_v40  ;;  %v3731_v52 = vadd.f32 %v3730_v50, %v3665_v3  ;;  %v427_v3 = vld [vmem:[%s15424_s1 + $0x1d8] sm:$0xff] }
 0x56d   : > { %3924 = vmatmul.f32.gmra.mxu1 %v12238_v12  ;;  %4285 = vmatpush.msrb.mxu0 %v427_v3  ;;  %v896_v3 = vld [vmem:[%s15424_s1 + $0x1080] sm:$0xff] }
 0x56e   : > { %v3857_v59 = vpop.f32.mrf.mxu2 }
 0x56f   : > { %v3858_v55 = vadd.f32 %v3857_v59, %v3792_v23  ;;  %v426_v23 = vld [vmem:[%s15424_s1 + $0x1d0] sm:$0xff] }
 0x570   : > { %7641 = vmatmul.msk.f32.gmra.mxu3 %vm1232_vm0, %v12242_v37  ;;  %4155 = vmatpush.msrb.mxu1 %v426_v23 }
 0x571   : > { %v6113_v13 = vmax.f32 %v3728_v42, %v3858_v55  ;;  %v3795_v35 = vpop.f32.mrf.mxu0 }
 0x572   : > { %v3668_v32 = vpop.f32.mrf.mxu1 }
 0x573   : > { %v12247_v8 = vmax.f32 %v6113_v13, %v11932_v57  ;;  %7656 = vmatmul.msk.f32.gmra.mxu2 %vm1232_vm0, %v12215_v33  ;;  %v3733_v28 = vpop.f32.mrf.mxu3 }
 0x574   : > { %4054 = vmatmul.f32.gmra.mxu0 %v12238_v12  ;;  %v3734_v24 = vadd.f32 %v3733_v28, %v3668_v32  ;;  %v391_v32 = vld [vmem:[%s15424_s1 + $0xb8] sm:$0xff]  ;;  %v1220_v28 = vld [vmem:[%s15424_s1 + $0x1aa0] sm:$0xff] }
 0x575   : > { %3927 = vmatmul.f32.gmra.mxu1 %v12259_v2  ;;  %4286 = vmatpush.msrb.mxu0 %v391_v32 }
 0x576   : > { %v3860_v57 = vpop.f32.mrf.mxu2  ;;  %4474 = vmatpush.msra.mxu3 %v1220_v28 }
 0x577   : > { %v3861_v14 = vadd.f32 %v3860_v57, %v3795_v35  ;;  %v390_v35 = vld [vmem:[%s15424_s1 + $0xb0] sm:$0xff]  ;;  %4531 = vmatpush.msra.mxu0 %v933_v63 }
 0x578   : > { %7642 = vmatmul.msk.f32.gmra.mxu3 %vm1232_vm0, %v12263_v0  ;;  %4156 = vmatpush.msrb.mxu1 %v390_v35 }
 0x579   : > { %v6114_v21 = vmax.f32 %v3731_v52, %v3861_v14  ;;  %v3798_v45 = vpop.f32.mrf.mxu0  ;;  %v12338_v14 = vld [vmem:[%s8574_s21 + $0xe8] sm:$0xff] }
 0x57a   : > { %v3671_v7 = vpop.f32.mrf.mxu1  ;;  %4401 = vmatpush.msra.mxu1 %v932_v43 }
 0x57b   : > { %v12268_v5 = vmax.f32 %v6114_v21, %v11947_v30  ;;  %7657 = vmatmul.msk.f32.gmra.mxu2 %vm1232_vm0, %v12242_v37  ;;  %v3736_v25 = vpop.f32.mrf.mxu3  ;;  %v967_v30 = vld [vmem:[%s15424_s1 + $0x12b8] sm:$0xff] }
 0x57c   : > { %4057 = vmatmul.f32.gmra.mxu0 %v12259_v2  ;;  %4351 = vmatpush.msrb.mxu2 %v967_v30  ;;  %v3737_v50 = vadd.f32 %v3736_v25, %v3671_v7 }
 0x57d   : > { %3930 = vmatmul.f32.gmra.mxu1 %v12286_v41 }
 0x57e   : > { %v3863_v51 = vpop.f32.mrf.mxu2  ;;  %4402 = vmatpush.msra.mxu1 %v896_v3  ;;  %v12428_v3 = vld [vmem:[%s8574_s21 + $0x28] sm:$0xff] }
 0x57f   : > { %v3864_v29 = vadd.f32 %v3863_v51, %v3798_v45 }
 0x580   : > { %7643 = vmatmul.msk.f32.gmra.mxu3 %vm1232_vm0, %v12290_v61 }
 0x581   : > { %v6115_v48 = vmax.f32 %v3734_v24, %v3864_v29  ;;  %v3801_v22 = vpop.f32.mrf.mxu0  ;;  %v12355_v24 = vld [vmem:[%s8574_s21 + $0xe0] sm:$0xff]  ;;  %v12359_v29 = vld [vmem:[%s8574_s21 + $0xf8] sm:$0xff] }
 0x582   : > { %v3674_v47 = vpop.f32.mrf.mxu1 }
 0x583   : > { %v12295_v26 = vmax.f32 %v6115_v48, %v11968_v53  ;;  %7658 = vmatmul.msk.f32.gmra.mxu2 %vm1232_vm0, %v12263_v0  ;;  %v3739_v15 = vpop.f32.mrf.mxu3 }
 0x584   : > { %4060 = vmatmul.f32.gmra.mxu0 %v12286_v41  ;;  %v3740_v38 = vadd.f32 %v3739_v15, %v3674_v47 }
 0x585   : > { %3933 = vmatmul.f32.gmra.mxu1 %v12307_v44 }
 0x586   : > { %v3866_v53 = vpop.f32.mrf.mxu2 }
 0x587   : > { %v3867_v16 = vadd.f32 %v3866_v53, %v3801_v22  ;;  %v1184_v53 = vld [vmem:[%s15424_s1 + $0x1980] sm:$0xff] }
 0x588   : > { %7644 = vmatmul.msk.f32.gmra.mxu3 %vm1232_vm0, %v12311_v31 }
 0x589   : > { %v6116_v40 = vmax.f32 %v3737_v50, %v3867_v16  ;;  %v3804_v42 = vpop.f32.mrf.mxu0  ;;  %v897_v50 = vld [vmem:[%s15424_s1 + $0x1088] sm:$0xff]  ;;  %4475 = vmatpush.msra.mxu3 %v1184_v53 }
 0x58a   : > { %v3677_v59 = vpop.f32.mrf.mxu1  ;;  %4532 = vmatpush.msra.mxu0 %v897_v50 }
 0x58b   : > { %v12316_v55 = vmax.f32 %v6116_v40, %v11983_v62  ;;  %7659 = vmatmul.msk.f32.gmra.mxu2 %vm1232_vm0, %v12290_v61  ;;  %v3742_v13 = vpop.f32.mrf.mxu3  ;;  %v1221_v62 = vld [vmem:[%s15424_s1 + $0x1aa8] sm:$0xff]  ;;  %v12382_v40 = vld [vmem:[%s8574_s21 + $0xf0] sm:$0xff] }
 0x58c   : > { %4063 = vmatmul.f32.gmra.mxu0 %v12307_v44  ;;  %4604 = vmatpush.msra.mxu2 %v1221_v62  ;;  %v3743_v30 = vadd.f32 %v3742_v13, %v3677_v59 }
 0x58d   : > { %3936 = vmatmul.f32.gmra.mxu1 %v12334_v27 }
 0x58e   : > { %v3869_v52 = vpop.f32.mrf.mxu2 }
 0x58f   : > { %v3870_v57 = vadd.f32 %v3869_v52, %v3804_v42  ;;  %v861_v52 = vld [vmem:[%s15424_s1 + $0xf68] sm:$0xff] }
 0x590   : > { %7645 = vmatmul.msk.f32.gmra.mxu3 %vm1232_vm0, %v12338_v14  ;;  %4533 = vmatpush.msra.mxu0 %v861_v52 }
 0x591   : > { %v6117_v21 = vmax.f32 %v3740_v38, %v3870_v57  ;;  %v3807_v45 = vpop.f32.mrf.mxu0  ;;  %v860_v38 = vld [vmem:[%s15424_s1 + $0xf60] sm:$0xff] }
 0x592   : > { %v3680_v7 = vpop.f32.mrf.mxu1  ;;  %4403 = vmatpush.msra.mxu1 %v860_v38 }
 0x593   : > { %v12343_v25 = vmax.f32 %v6117_v21, %v12004_v17  ;;  %7660 = vmatmul.msk.f32.gmra.mxu2 %vm1232_vm0, %v12311_v31  ;;  %v3745_v18 = vpop.f32.mrf.mxu3  ;;  %v12400_v21 = vld [vmem:[%s8574_s21] sm:$0xff] }
 0x594   : > { %4066 = vmatmul.f32.gmra.mxu0 %v12334_v27  ;;  %v3746_v16 = vadd.f32 %v3745_v18, %v3680_v7 }
 0x595   : > { %3939 = vmatmul.f32.gmra.mxu1 %v12355_v24 }
 0x596   : > { %v3872_v17 = vpop.f32.mrf.mxu2 }
 0x597   : > { %v3873_v51 = vadd.f32 %v3872_v17, %v3807_v45  ;;  %v824_v17 = vld [vmem:[%s15424_s1 + $0xe40] sm:$0xff] }
 0x598   : > { %7646 = vmatmul.msk.f32.gmra.mxu3 %vm1232_vm0, %v12359_v29  ;;  %4404 = vmatpush.msra.mxu1 %v824_v17  ;;  %v12472_v17 = vld [vmem:[%s8574_s21 + $0x30] sm:$0xff] }
 0x599   : > { %v6118_v48 = vmax.f32 %v3743_v30, %v3873_v51  ;;  %v3810_v22 = vpop.f32.mrf.mxu0  ;;  %v825_v51 = vld [vmem:[%s15424_s1 + $0xe48] sm:$0xff] }
 0x59a   : > { %v3683_v47 = vpop.f32.mrf.mxu1  ;;  %4534 = vmatpush.msra.mxu0 %v825_v51 }
 0x59b   : > { %v12364_v15 = vmax.f32 %v6118_v48, %v12019_v56  ;;  %7661 = vmatmul.msk.f32.gmra.mxu2 %vm1232_vm0, %v12338_v14  ;;  %v3748_v23 = vpop.f32.mrf.mxu3  ;;  %v1185_v56 = vld [vmem:[%s15424_s1 + $0x1988] sm:$0xff]  ;;  %v1148_v48 = vld [vmem:[%s15424_s1 + $0x1860] sm:$0xff] }
 0x59c   : > { %4069 = vmatmul.f32.gmra.mxu0 %v12355_v24  ;;  %4605 = vmatpush.msra.mxu2 %v1185_v56  ;;  %v3749_v57 = vadd.f32 %v3748_v23, %v3683_v47 }
 0x59d   : > { %3942 = vmatmul.f32.gmra.mxu1 %v12382_v40  ;;  %4476 = vmatpush.msra.mxu3 %v1148_v48 }
 0x59e   : > { %v3875_v42 = vpop.f32.mrf.mxu2 }
 0x59f   : > { %v3876_v59 = vadd.f32 %v3875_v42, %v3810_v22  ;;  %v12424_v22 = vld [vmem:[%s8574_s21 + $0x10] sm:$0xff] }
 0x5a0   : > { %7663 = vmatmul.msk.f32.vlgmr.msrb.gmra.mxu3 %vm1232_vm0, %v12038_v1 }
 0x5a1   : > { %v6119_v13 = vmax.f32 %v3746_v16, %v3876_v59  ;;  %v3813_v35 = vpop.f32.mrf.mxu0  ;;  %v788_v59 = vld [vmem:[%s15424_s1 + $0xd20] sm:$0xff] }
 0x5a2   : > { %v3898_v32 = vpop.f32.mrf.mxu1  ;;  %4405 = vmatpush.msra.mxu1 %v788_v59 }
 0x5a3   : > { %v12388_v28 = vmax.f32 %v6119_v13, %v12043_v39  ;;  %7662 = vmatmul.msk.f32.gmra.mxu2 %vm1232_vm0, %v12359_v29  ;;  %v3963_v62 = vpop.f32.mrf.mxu3  ;;  %v789_v13 = vld [vmem:[%s15424_s1 + $0xd28] sm:$0xff] }
 0x5a4   : > { %4072 = vmatmul.f32.gmra.mxu0 %v12382_v40 }
 0x5a5   : > { %4157 = vmatmul.f32.vlgmr.msrb.gmra.mxu1 %v12400_v21  ;;  %4535 = vmatpush.msra.mxu0 %v789_v13  ;;  %v12493_v13 = vld [vmem:[%s8574_s21 + $0x40] sm:$0xff] }
 0x5a6   : > { %v3878_v39 = vpop.f32.mrf.mxu2 }
 0x5a7   : > { %v3879_v45 = vadd.f32 %v3878_v39, %v3813_v35 }
 0x5a8   : > { %7664 = vmatmul.msk.f32.gmra.mxu3 %vm1232_vm0, %v12056_v20 }
 0x5a9   : > { %v6120_v7 = vmax.f32 %v3749_v57, %v3879_v45  ;;  %v4028_v18 = vpop.f32.mrf.mxu0 }
 0x5aa   : > { %v3901_v43 = vpop.f32.mrf.mxu1 }
 0x5ab   : > { %v12406_v63 = vmax.f32 %v6120_v7, %v12061_v10  ;;  %7679 = vmatmul.msk.f32.vlgmr.msrb.gmra.mxu2 %vm1232_vm0, %v12038_v1  ;;  %v3966_v30 = vpop.f32.mrf.mxu3  ;;  %v1149_v1 = vld [vmem:[%s15424_s1 + $0x1868] sm:$0xff]  ;;  %v3964_v10 = vadd.f32 %v3963_v62, %v3898_v32  ;;  %v12445_v32 = vld [vmem:[%s8574_s21 + $0x20] sm:$0xff]  ;;  %v12449_v62 = vld [vmem:[%s8574_s21 + $0x38] sm:$0xff] }
 0x5ac   : > { %4287 = vmatmul.f32.vlgmr.msrb.gmra.mxu0 %v12400_v21  ;;  %4606 = vmatpush.msra.mxu2 %v1149_v1  ;;  %v3967_v35 = vadd.f32 %v3966_v30, %v3901_v43  ;;  %v752_v7 = vld [vmem:[%s15424_s1 + $0xc00] sm:$0xff]  ;;  %v12476_v1 = vld [vmem:[%s8574_s21 + $0x48] sm:$0xff] }
 0x5ad   : > { %4160 = vmatmul.f32.gmra.mxu1 %v12424_v22  ;;  %v1112_v43 = vld [vmem:[%s15424_s1 + $0x1740] sm:$0xff] }
 0x5ae   : > { %v4093_v47 = vpop.f32.mrf.mxu2  ;;  %4406 = vmatpush.msra.mxu1 %v752_v7  ;;  %4477 = vmatpush.msra.mxu3 %v1112_v43  ;;  %v1076_v43 = vld [vmem:[%s15424_s1 + $0x1620] sm:$0xff] }
 0x5af   : > { %v4094_v23 = vadd.f32 %v4093_v47, %v4028_v18  ;;  %v753_v18 = vld [vmem:[%s15424_s1 + $0xc08] sm:$0xff] }
 0x5b0   : > { %7665 = vmatmul.msk.f32.gmra.mxu3 %vm1232_vm0, %v12428_v3  ;;  %4536 = vmatpush.msra.mxu0 %v753_v18  ;;  %v681_v18 = vld [vmem:[%s15424_s1 + $0x9c8] sm:$0xff] }
 0x5b1   : > { %v6121_v50 = vmax.f32 %v3964_v10, %v4094_v23  ;;  %v4031_v53 = vpop.f32.mrf.mxu0  ;;  %4478 = vmatpush.msra.mxu3 %v1076_v43 }
 0x5b2   : > { %v3904_v56 = vpop.f32.mrf.mxu1 }
 0x5b3   : > { %v12433_v16 = vmax.f32 %v6121_v50, %v12082_v34  ;;  %7680 = vmatmul.msk.f32.gmra.mxu2 %vm1232_vm0, %v12056_v20  ;;  %v3969_v42 = vpop.f32.mrf.mxu3 }
 0x5b4   : > { %4290 = vmatmul.f32.gmra.mxu0 %v12424_v22  ;;  %v3970_v30 = vadd.f32 %v3969_v42, %v3904_v56  ;;  %v716_v56 = vld [vmem:[%s15424_s1 + $0xae0] sm:$0xff]  ;;  %v717_v42 = vld [vmem:[%s15424_s1 + $0xae8] sm:$0xff] }
 0x5b5   : > { %4163 = vmatmul.f32.gmra.mxu1 %v12445_v32  ;;  %4537 = vmatpush.msra.mxu0 %v717_v42 }
 0x5b6   : > { %v4096_v34 = vpop.f32.mrf.mxu2  ;;  %4407 = vmatpush.msra.mxu1 %v716_v56 }
 0x5b7   : > { %v4097_v20 = vadd.f32 %v4096_v34, %v4031_v53  ;;  %v12497_v34 = vld [vmem:[%s8574_s21 + $0x58] sm:$0xff]  ;;  %4538 = vmatpush.msra.mxu0 %v681_v18 }
 0x5b8   : > { %7666 = vmatmul.msk.f32.gmra.mxu3 %vm1232_vm0, %v12449_v62 }
 0x5b9   : > { %v6122_v38 = vmax.f32 %v3967_v35, %v4097_v20  ;;  %v4034_v52 = vpop.f32.mrf.mxu0 }
 0x5ba   : > { %v3907_v57 = vpop.f32.mrf.mxu1 }
 0x5bb   : > { %v12454_v39 = vmax.f32 %v6122_v38, %v12097_v60  ;;  %7681 = vmatmul.msk.f32.gmra.mxu2 %vm1232_vm0, %v12428_v3  ;;  %v3972_v45 = vpop.f32.mrf.mxu3  ;;  %v1113_v60 = vld [vmem:[%s15424_s1 + $0x1748] sm:$0xff] }
 0x5bc   : > { %4293 = vmatmul.f32.gmra.mxu0 %v12445_v32  ;;  %4607 = vmatpush.msra.mxu2 %v1113_v60  ;;  %v3973_v59 = vadd.f32 %v3972_v45, %v3907_v57  ;;  %v680_v45 = vld [vmem:[%s15424_s1 + $0x9c0] sm:$0xff] }
 0x5bd   : > { %4166 = vmatmul.f32.gmra.mxu1 %v12472_v17 }
 0x5be   : > { %v4099_v51 = vpop.f32.mrf.mxu2  ;;  %4408 = vmatpush.msra.mxu1 %v680_v45 }
 0x5bf   : > { %v4100_v48 = vadd.f32 %v4099_v51, %v4034_v52 }
 0x5c0   : > { %7667 = vmatmul.msk.f32.gmra.mxu3 %vm1232_vm0, %v12476_v1 }
 0x5c1   : > { %v6123_v10 = vmax.f32 %v3970_v30, %v4100_v48  ;;  %v4037_v47 = vpop.f32.mrf.mxu0  ;;  %v12520_v30 = vld [vmem:[%s8574_s21 + $0x50] sm:$0xff] }
 0x5c2   : > { %v3910_v23 = vpop.f32.mrf.mxu1 }
 0x5c3   : > { %v12481_v50 = vmax.f32 %v6123_v10, %v12118_v36  ;;  %7682 = vmatmul.msk.f32.gmra.mxu2 %vm1232_vm0, %v12449_v62  ;;  %v3975_v53 = vpop.f32.mrf.mxu3 }
 0x5c4   : > { %4296 = vmatmul.f32.gmra.mxu0 %v12472_v17  ;;  %v3976_v60 = vadd.f32 %v3975_v53, %v3910_v23  ;;  %v644_v53 = vld [vmem:[%s15424_s1 + $0x8a0] sm:$0xff] }
 0x5c5   : > { %4169 = vmatmul.f32.gmra.mxu1 %v12493_v13 }
 0x5c6   : > { %v4102_v36 = vpop.f32.mrf.mxu2  ;;  %4409 = vmatpush.msra.mxu1 %v644_v53 }
 0x5c7   : > { %v4103_v35 = vadd.f32 %v4102_v36, %v4037_v47 }
 0x5c8   : > { %7668 = vmatmul.msk.f32.gmra.mxu3 %vm1232_vm0, %v12497_v34 }
 0x5c9   : > { %v6124_v20 = vmax.f32 %v3973_v59, %v4103_v35  ;;  %v4040_v38 = vpop.f32.mrf.mxu0  ;;  %v645_v59 = vld [vmem:[%s15424_s1 + $0x8a8] sm:$0xff]  ;;  %v12538_v35 = vld [vmem:[%s8574_s21 + $0x60] sm:$0xff] }
 0x5ca   : > { %v3913_v52 = vpop.f32.mrf.mxu1  ;;  %4539 = vmatpush.msra.mxu0 %v645_v59 }
 0x5cb   : > { %v12502_v7 = vmax.f32 %v6124_v20, %v12133_v9  ;;  %7683 = vmatmul.msk.f32.gmra.mxu2 %vm1232_vm0, %v12476_v1  ;;  %v3978_v57 = vpop.f32.mrf.mxu3  ;;  %v1077_v9 = vld [vmem:[%s15424_s1 + $0x1628] sm:$0xff] }
 0x5cc   : > { %4299 = vmatmul.f32.gmra.mxu0 %v12493_v13  ;;  %4608 = vmatpush.msra.mxu2 %v1077_v9  ;;  %v3979_v36 = vadd.f32 %v3978_v57, %v3913_v52  ;;  %v608_v57 = vld [vmem:[%s15424_s1 + $0x780] sm:$0xff]  ;;  %v609_v9 = vld [vmem:[%s15424_s1 + $0x788] sm:$0xff] }
 0x5cd   : > { %4172 = vmatmul.f32.gmra.mxu1 %v12520_v30  ;;  %4540 = vmatpush.msra.mxu0 %v609_v9 }
 0x5ce   : > { %v4105_v51 = vpop.f32.mrf.mxu2  ;;  %4410 = vmatpush.msra.mxu1 %v608_v57 }
 0x5cf   : > { %v4106_v48 = vadd.f32 %v4105_v51, %v4040_v38  ;;  %v12562_v51 = vld [vmem:[%s8574_s21 + $0x70] sm:$0xff] }
 0x5d0   : > { %7669 = vmatmul.msk.f32.gmra.mxu3 %vm1232_vm0, %v12152_v46 }
 0x5d1   : > { %v6125_v10 = vmax.f32 %v3976_v60, %v4106_v48  ;;  %v4043_v47 = vpop.f32.mrf.mxu0  ;;  %v1040_v60 = vld [vmem:[%s15424_s1 + $0x1500] sm:$0xff] }
 0x5d2   : > { %v3916_v56 = vpop.f32.mrf.mxu1  ;;  %4479 = vmatpush.msra.mxu3 %v1040_v60 }
 0x5d3   : > { %v12526_v42 = vmax.f32 %v6125_v10, %v12157_v11  ;;  %7684 = vmatmul.msk.f32.gmra.mxu2 %vm1232_vm0, %v12497_v34  ;;  %v3981_v23 = vpop.f32.mrf.mxu3 }
 0x5d4   : > { %4302 = vmatmul.f32.gmra.mxu0 %v12520_v30 }
 0x5d5   : > { %4175 = vmatmul.f32.gmra.mxu1 %v12538_v35 }
 0x5d6   : > { %v4108_v11 = vpop.f32.mrf.mxu2 }
 0x5d7   : > { %v4109_v20 = vadd.f32 %v4108_v11, %v4043_v47  ;;  %v573_v11 = vld [vmem:[%s15424_s1 + $0x668] sm:$0xff] }
 0x5d8   : > { %7670 = vmatmul.msk.f32.gmra.mxu3 %vm1232_vm0, %v12170_v58  ;;  %4541 = vmatpush.msra.mxu0 %v573_v11 }
 0x5d9   : > { %v6126_v38 = vmax.f32 %v3979_v36, %v4109_v20  ;;  %v4046_v45 = vpop.f32.mrf.mxu0 }
 0x5da   : > { %v3919_v18 = vpop.f32.mrf.mxu1 }
 0x5db   : > { %v12544_v43 = vmax.f32 %v6126_v38, %v12175_v6  ;;  %7685 = vmatmul.msk.f32.gmra.mxu2 %vm1232_vm0, %v12152_v46  ;;  %v3984_v52 = vpop.f32.mrf.mxu3  ;;  %v1041_v46 = vld [vmem:[%s15424_s1 + $0x1508] sm:$0xff]  ;;  %v3982_v6 = vadd.f32 %v3981_v23, %v3916_v56  ;;  %v572_v23 = vld [vmem:[%s15424_s1 + $0x660] sm:$0xff] }
 0x5dc   : > { %4305 = vmatmul.f32.gmra.mxu0 %v12538_v35  ;;  %4609 = vmatpush.msra.mxu2 %v1041_v46  ;;  %v3985_v20 = vadd.f32 %v3984_v52, %v3919_v18  ;;  %v536_v18 = vld [vmem:[%s15424_s1 + $0x540] sm:$0xff]  ;;  %v537_v52 = vld [vmem:[%s15424_s1 + $0x548] sm:$0xff] }
 0x5dd   : > { %4178 = vmatmul.f32.gmra.mxu1 %v12562_v51  ;;  %v1004_v46 = vld [vmem:[%s15424_s1 + $0x13e0] sm:$0xff]  ;;  %4542 = vmatpush.msra.mxu0 %v537_v52 }
 0x5de   : > { %v4111_v48 = vpop.f32.mrf.mxu2  ;;  %4411 = vmatpush.msra.mxu1 %v572_v23  ;;  %4480 = vmatpush.msra.mxu3 %v1004_v46  ;;  %v501_v23 = vld [vmem:[%s15424_s1 + $0x428] sm:$0xff] }
 0x5df   : > { %v4112_v10 = vadd.f32 %v4111_v48, %v4046_v45  ;;  %4543 = vmatpush.msra.mxu0 %v501_v23 }
 0x5e0   : > { %7671 = vmatmul.msk.f32.gmra.mxu3 %vm1232_vm0, %v12194_v4  ;;  %4412 = vmatpush.msra.mxu1 %v536_v18 }
 0x5e1   : > { %v6127_v47 = vmax.f32 %v3982_v6, %v4112_v10  ;;  %v4049_v53 = vpop.f32.mrf.mxu0 }
 0x5e2   : > { %v3922_v59 = vpop.f32.mrf.mxu1 }
 0x5e3   : > { %v12568_v36 = vmax.f32 %v6127_v47, %v12199_v49  ;;  %7686 = vmatmul.msk.f32.gmra.mxu2 %vm1232_vm0, %v12170_v58  ;;  %v3987_v56 = vpop.f32.mrf.mxu3 }
 0x5e4   : > { %4308 = vmatmul.f32.gmra.mxu0 %v12562_v51 }
 0x5e5   : > { %4181 = vmatmul.f32.gmra.mxu1 %v12211_v54 }
 0x5e6   : > { %v4114_v49 = vpop.f32.mrf.mxu2 }
 0x5e7   : > { %v4115_v38 = vadd.f32 %v4114_v49, %v4049_v53 }
 0x5e8   : > { %7672 = vmatmul.msk.f32.gmra.mxu3 %vm1232_vm0, %v12215_v33 }
 0x5e9   : > { %v6128_v58 = vmax.f32 %v3985_v20, %v4115_v38  ;;  %v4052_v45 = vpop.f32.mrf.mxu0 }
 0x5ea   : > { %v3925_v57 = vpop.f32.mrf.mxu1 }
 0x5eb   : > { %v12583_v9 = vmax.f32 %v6128_v58, %v12220_v19  ;;  %7687 = vmatmul.msk.f32.gmra.mxu2 %vm1232_vm0, %v12194_v4  ;;  %v3990_v60 = vpop.f32.mrf.mxu3  ;;  %v1005_v4 = vld [vmem:[%s15424_s1 + $0x13e8] sm:$0xff]  ;;  %v3988_v19 = vadd.f32 %v3987_v56, %v3922_v59  ;;  %v500_v56 = vld [vmem:[%s15424_s1 + $0x420] sm:$0xff] }
 0x5ec   : > { %4311 = vmatmul.f32.gmra.mxu0 %v12211_v54  ;;  %4610 = vmatpush.msra.mxu2 %v1005_v4  ;;  %v3991_v11 = vadd.f32 %v3990_v60, %v3925_v57  ;;  %v465_v57 = vld [vmem:[%s15424_s1 + $0x308] sm:$0xff]  ;;  %v968_v60 = vld [vmem:[%s15424_s1 + $0x12c0] sm:$0xff] }
 0x5ed   : > { %4184 = vmatmul.f32.gmra.mxu1 %v12238_v12  ;;  %4544 = vmatpush.msra.mxu0 %v465_v57 }
 0x5ee   : > { %v4117_v6 = vpop.f32.mrf.mxu2  ;;  %4413 = vmatpush.msra.mxu1 %v500_v56  ;;  %4481 = vmatpush.msra.mxu3 %v968_v60  ;;  %v934_v60 = vld [vmem:[%s15424_s1 + $0x11b0] sm:$0xff] }
 0x5ef   : > { %v4118_v48 = vadd.f32 %v4117_v6, %v4052_v45  ;;  %v464_v45 = vld [vmem:[%s15424_s1 + $0x300] sm:$0xff] }
 0x5f0   : > { %7673 = vmatmul.msk.f32.gmra.mxu3 %vm1232_vm0, %v12242_v37  ;;  %4414 = vmatpush.msra.mxu1 %v464_v45 }
 0x5f1   : > { %v6129_v10 = vmax.f32 %v3988_v19, %v4118_v48  ;;  %v4055_v47 = vpop.f32.mrf.mxu0  ;;  %v428_v48 = vld [vmem:[%s15424_s1 + $0x1e0] sm:$0xff] }
 0x5f2   : > { %v3928_v53 = vpop.f32.mrf.mxu1  ;;  %4415 = vmatpush.msra.mxu1 %v428_v48  ;;  %v1186_v48 = vld [vmem:[%s15424_s1 + $0x1990] sm:$0xff] }
 0x5f3   : > { %v12604_v54 = vmax.f32 %v6129_v10, %v12247_v8  ;;  %7688 = vmatmul.msk.f32.gmra.mxu2 %vm1232_vm0, %v12215_v33  ;;  %v3993_v59 = vpop.f32.mrf.mxu3  ;;  %v429_v10 = vld [vmem:[%s15424_s1 + $0x1e8] sm:$0xff] }
 0x5f4   : > { %4314 = vmatmul.f32.gmra.mxu0 %v12238_v12 }
 0x5f5   : > { %4187 = vmatmul.f32.gmra.mxu1 %v12259_v2  ;;  %4545 = vmatpush.msra.mxu0 %v429_v10 }
 0x5f6   : > { %v4120_v8 = vpop.f32.mrf.mxu2 }
 0x5f7   : > { %v4121_v20 = vadd.f32 %v4120_v8, %v4055_v47  ;;  %v393_v8 = vld [vmem:[%s15424_s1 + $0xc8] sm:$0xff] }
 0x5f8   : > { %7674 = vmatmul.msk.f32.gmra.mxu3 %vm1232_vm0, %v12263_v0  ;;  %4546 = vmatpush.msra.mxu0 %v393_v8 }
 0x5f9   : > { %v6130_v33 = vmax.f32 %v3991_v11, %v4121_v20  ;;  %v4058_v49 = vpop.f32.mrf.mxu0  ;;  %v392_v11 = vld [vmem:[%s15424_s1 + $0xc0] sm:$0xff]  ;;  %v1222_v20 = vld [vmem:[%s15424_s1 + $0x1ab0] sm:$0xff] }
 0x5fa   : > { %v3931_v38 = vpop.f32.mrf.mxu1  ;;  %4416 = vmatpush.msra.mxu1 %v392_v11  ;;  %4734 = vmatpush.msrb.mxu3 %v1222_v20  ;;  %v863_v11 = vld [vmem:[%s15424_s1 + $0xf78] sm:$0xff] }
 0x5fb   : > { %v12619_v58 = vmax.f32 %v6130_v33, %v12268_v5  ;;  %7689 = vmatmul.msk.f32.gmra.mxu2 %vm1232_vm0, %v12242_v37  ;;  %v3996_v12 = vpop.f32.mrf.mxu3  ;;  %v969_v37 = vld [vmem:[%s15424_s1 + $0x12c8] sm:$0xff]  ;;  %v3994_v5 = vadd.f32 %v3993_v59, %v3928_v53 }
 0x5fc   : > { %4317 = vmatmul.f32.gmra.mxu0 %v12259_v2  ;;  %4611 = vmatpush.msra.mxu2 %v969_v37  ;;  %v3997_v47 = vadd.f32 %v3996_v12, %v3931_v38  ;;  %v935_v37 = vld [vmem:[%s15424_s1 + $0x11b8] sm:$0xff] }
 0x5fd   : > { %4190 = vmatmul.f32.gmra.mxu1 %v12286_v41  ;;  %4791 = vmatpush.msrb.mxu0 %v935_v37 }
 0x5fe   : > { %v4123_v18 = vpop.f32.mrf.mxu2  ;;  %4661 = vmatpush.msrb.mxu1 %v934_v60  ;;  %4735 = vmatpush.msrb.mxu3 %v1186_v48 }
 0x5ff   : > { %v4124_v52 = vadd.f32 %v4123_v18, %v4058_v49 }
 0x600   : > { %7675 = vmatmul.msk.f32.gmra.mxu3 %vm1232_vm0, %v12290_v61 }
 0x601   : > { %v6131_v46 = vmax.f32 %v3994_v5, %v4124_v52  ;;  %v4061_v4 = vpop.f32.mrf.mxu0 }
 0x602   : > { %v3934_v19 = vpop.f32.mrf.mxu1 }
 0x603   : > { %v12640_v2 = vmax.f32 %v6131_v46, %v12295_v26  ;;  %7690 = vmatmul.msk.f32.gmra.mxu2 %vm1232_vm0, %v12263_v0  ;;  %v3999_v6 = vpop.f32.mrf.mxu3 }
 0x604   : > { %4320 = vmatmul.f32.gmra.mxu0 %v12286_v41 }
 0x605   : > { %4193 = vmatmul.f32.gmra.mxu1 %v12307_v44 }
 0x606   : > { %v4126_v26 = vpop.f32.mrf.mxu2 }
 0x607   : > { %v4127_v53 = vadd.f32 %v4126_v26, %v4061_v4  ;;  %v12710_v26 = vld [vmem:[%s8574_s21 + $0x8] sm:$0xff] }
 0x608   : > { %7676 = vmatmul.msk.f32.gmra.mxu3 %vm1232_vm0, %v12311_v31 }
 0x609   : > { %v6132_v0 = vmax.f32 %v3997_v47, %v4127_v53  ;;  %v4064_v59 = vpop.f32.mrf.mxu0 }
 0x60a   : > { %v3937_v56 = vpop.f32.mrf.mxu1 }
 0x60b   : > { %v12655_v23 = vmax.f32 %v6132_v0, %v12316_v55  ;;  %7691 = vmatmul.msk.f32.gmra.mxu2 %vm1232_vm0, %v12290_v61  ;;  %v4002_v41 = vpop.f32.mrf.mxu3  ;;  %v1223_v61 = vld [vmem:[%s15424_s1 + $0x1ab8] sm:$0xff]  ;;  %v4000_v55 = vadd.f32 %v3999_v6, %v3934_v19  ;;  %v898_v19 = vld [vmem:[%s15424_s1 + $0x1090] sm:$0xff] }
 0x60c   : > { %4323 = vmatmul.f32.gmra.mxu0 %v12307_v44  ;;  %4864 = vmatpush.msrb.mxu2 %v1223_v61  ;;  %v4003_v5 = vadd.f32 %v4002_v41, %v3937_v56  ;;  %v899_v6 = vld [vmem:[%s15424_s1 + $0x1098] sm:$0xff]  ;;  %v862_v41 = vld [vmem:[%s15424_s1 + $0xf70] sm:$0xff] }
 0x60d   : > { %4196 = vmatmul.f32.gmra.mxu1 %v12334_v27  ;;  %4792 = vmatpush.msrb.mxu0 %v899_v6  ;;  %v12728_v61 = vld [vmem:[%s8574_s21 + $0x18] sm:$0xff] }
 0x60e   : > { %v4129_v33 = vpop.f32.mrf.mxu2  ;;  %4662 = vmatpush.msrb.mxu1 %v898_v19 }
 0x60f   : > { %v4130_v49 = vadd.f32 %v4129_v33, %v4064_v59  ;;  %4793 = vmatpush.msrb.mxu0 %v863_v11 }
 0x610   : > { %7677 = vmatmul.msk.f32.gmra.mxu3 %vm1232_vm0, %v12338_v14  ;;  %4663 = vmatpush.msrb.mxu1 %v862_v41 }
 0x611   : > { %v6133_v38 = vmax.f32 %v4000_v55, %v4130_v49  ;;  %v4067_v12 = vpop.f32.mrf.mxu0 }
 0x612   : > { %v3940_v45 = vpop.f32.mrf.mxu1 }
 0x613   : > { %v12676_v44 = vmax.f32 %v6133_v38, %v12343_v25  ;;  %7692 = vmatmul.msk.f32.gmra.mxu2 %vm1232_vm0, %v12311_v31  ;;  %v4005_v57 = vpop.f32.mrf.mxu3  ;;  %v826_v38 = vld [vmem:[%s15424_s1 + $0xe50] sm:$0xff] }
 0x614   : > { %4326 = vmatmul.f32.gmra.mxu0 %v12334_v27  ;;  %4664 = vmatpush.msrb.mxu1 %v826_v38 }
 0x615   : > { %4199 = vmatmul.f32.gmra.mxu1 %v12355_v24 }
 0x616   : > { %v4132_v25 = vpop.f32.mrf.mxu2 }
 0x617   : > { %v4133_v18 = vadd.f32 %v4132_v25, %v4067_v12  ;;  %v827_v12 = vld [vmem:[%s15424_s1 + $0xe58] sm:$0xff] }
 0x618   : > { %7678 = vmatmul.msk.f32.gmra.mxu3 %vm1232_vm0, %v12359_v29  ;;  %4794 = vmatpush.msrb.mxu0 %v827_v12  ;;  %v682_v12 = vld [vmem:[%s15424_s1 + $0x9d0] sm:$0xff] }
 0x619   : > { %v6134_v31 = vmax.f32 %v4003_v5, %v4133_v18  ;;  %v4070_v52 = vpop.f32.mrf.mxu0 }
 0x61a   : > { %v3943_v46 = vpop.f32.mrf.mxu1 }
 0x61b   : > { %v12691_v4 = vmax.f32 %v6134_v31, %v12364_v15  ;;  %7693 = vmatmul.msk.f32.gmra.mxu2 %vm1232_vm0, %v12338_v14  ;;  %v4008_v27 = vpop.f32.mrf.mxu3  ;;  %v1187_v14 = vld [vmem:[%s15424_s1 + $0x1998] sm:$0xff]  ;;  %v4006_v15 = vadd.f32 %v4005_v57, %v3940_v45  ;;  %v1150_v45 = vld [vmem:[%s15424_s1 + $0x1870] sm:$0xff] }
 0x61c   : > { %4329 = vmatmul.f32.gmra.mxu0 %v12355_v24  ;;  %4865 = vmatpush.msrb.mxu2 %v1187_v14  ;;  %v4009_v8 = vadd.f32 %v4008_v27, %v3943_v46  ;;  %v791_v46 = vld [vmem:[%s15424_s1 + $0xd38] sm:$0xff] }
 0x61d   : > { %4202 = vmatmul.f32.gmra.mxu1 %v12382_v40  ;;  %4736 = vmatpush.msrb.mxu3 %v1150_v45  ;;  %v683_v45 = vld [vmem:[%s15424_s1 + $0x9d8] sm:$0xff] }
 0x61e   : > { %v4135_v10 = vpop.f32.mrf.mxu2  ;;  %4795 = vmatpush.msrb.mxu0 %v791_v46  ;;  %v647_v46 = vld [vmem:[%s15424_s1 + $0x8b8] sm:$0xff] }
 0x61f   : > { %v4136_v47 = vadd.f32 %v4135_v10, %v4070_v52  ;;  %v790_v52 = vld [vmem:[%s15424_s1 + $0xd30] sm:$0xff] }
 0x620   : > { %7695 = vmatmul.msk.f32.vlgmr.msra.gmra.mxu3 %vm1232_vm0, %v12710_v26  ;;  %4665 = vmatpush.msrb.mxu1 %v790_v52  ;;  %v754_v10 = vld [vmem:[%s15424_s1 + $0xc10] sm:$0xff] }
 0x621   : > { %v6135_v24 = vmax.f32 %v4006_v15, %v4136_v47  ;;  %v4073_v53 = vpop.f32.mrf.mxu0  ;;  %v755_v47 = vld [vmem:[%s15424_s1 + $0xc18] sm:$0xff]  ;;  %v646_v52 = vld [vmem:[%s15424_s1 + $0x8b0] sm:$0xff] }
 0x622   : > { %v4158_v0 = vpop.f32.mrf.mxu1  ;;  %4666 = vmatpush.msrb.mxu1 %v754_v10  ;;  %4796 = vmatpush.msrb.mxu0 %v755_v47  ;;  %v611_v10 = vld [vmem:[%s15424_s1 + $0x798] sm:$0xff]  ;;  %v1042_v47 = vld [vmem:[%s15424_s1 + $0x1510] sm:$0xff] }
 0x623   : > { %v12715_v59 = vmax.f32 %v6135_v24, %v12388_v28  ;;  %7694 = vmatmul.msk.f32.gmra.mxu2 %vm1232_vm0, %v12359_v29  ;;  %v4223_v56 = vpop.f32.mrf.mxu3  ;;  %v1114_v24 = vld [vmem:[%s15424_s1 + $0x1750] sm:$0xff] }
 0x624   : > { %4332 = vmatmul.f32.gmra.mxu0 %v12382_v40  ;;  %v4224_v57 = vadd.f32 %v4223_v56, %v4158_v0  ;;  %4737 = vmatpush.msrb.mxu3 %v1114_v24 }
 0x625   : > { %4417 = vmatmul.f32.vlgmr.msra.gmra.mxu1 %v12400_v21 }
 0x626   : > { %v4138_v28 = vpop.f32.mrf.mxu2 }
 0x627   : > { %v4139_v20 = vadd.f32 %v4138_v28, %v4073_v53  ;;  %v718_v28 = vld [vmem:[%s15424_s1 + $0xaf0] sm:$0xff] }
 0x628   : > { %7696 = vmatmul.msk.f32.gmra.mxu3 %vm1232_vm0, %v12728_v61  ;;  %4667 = vmatpush.msrb.mxu1 %v718_v28  ;;  %v575_v28 = vld [vmem:[%s15424_s1 + $0x678] sm:$0xff] }
 0x629   : > { %v6136_v29 = vmax.f32 %v4009_v8, %v4139_v20  ;;  %v4288_v55 = vpop.f32.mrf.mxu0  ;;  %v719_v20 = vld [vmem:[%s15424_s1 + $0xaf8] sm:$0xff] }
 0x62a   : > { %v4161_v33 = vpop.f32.mrf.mxu1  ;;  %4797 = vmatpush.msrb.mxu0 %v719_v20  ;;  %4668 = vmatpush.msrb.mxu1 %v682_v12  ;;  %v538_v12 = vld [vmem:[%s15424_s1 + $0x550] sm:$0xff] }
 0x62b   : > { %v12733_v49 = vmax.f32 %v6136_v29, %v12406_v63  ;;  %7711 = vmatmul.msk.f32.vlgmr.msra.gmra.mxu2 %vm1232_vm0, %v12710_v26  ;;  %v4226_v40 = vpop.f32.mrf.mxu3  ;;  %v1151_v63 = vld [vmem:[%s15424_s1 + $0x1878] sm:$0xff] }
 0x62c   : > { %4547 = vmatmul.f32.vlgmr.msra.gmra.mxu0 %v12400_v21  ;;  %4866 = vmatpush.msrb.mxu2 %v1151_v63  ;;  %v4227_v27 = vadd.f32 %v4226_v40, %v4161_v33  ;;  %v1078_v63 = vld [vmem:[%s15424_s1 + $0x1630] sm:$0xff] }
 0x62d   : > { %4420 = vmatmul.f32.gmra.mxu1 %v12424_v22  ;;  %4798 = vmatpush.msrb.mxu0 %v683_v45  ;;  %v539_v45 = vld [vmem:[%s15424_s1 + $0x558] sm:$0xff] }
 0x62e   : > { %v4353_v60 = vpop.f32.mrf.mxu2  ;;  %4738 = vmatpush.msrb.mxu3 %v1078_v63  ;;  %4669 = vmatpush.msrb.mxu1 %v646_v52  ;;  %v1006_v63 = vld [vmem:[%s15424_s1 + $0x13f0] sm:$0xff] }
 0x62f   : > { %v4354_v37 = vadd.f32 %v4353_v60, %v4288_v55  ;;  %4799 = vmatpush.msrb.mxu0 %v647_v46 }
 0x630   : > { %7697 = vmatmul.msk.f32.gmra.mxu3 %vm1232_vm0, %v12428_v3 }
 0x631   : > { %v6137_v5 = vmax.f32 %v4224_v57, %v4354_v37  ;;  %v4291_v25 = vpop.f32.mrf.mxu0  ;;  %v12824_v37 = vld [vmem:[%s8574_s21 + $0x68] sm:$0xff]  ;;  %4800 = vmatpush.msrb.mxu0 %v611_v10  ;;  %4739 = vmatpush.msrb.mxu3 %v1042_v47 }
 0x632   : > { %v4164_v18 = vpop.f32.mrf.mxu1 }
 0x633   : > { %v12754_v21 = vmax.f32 %v6137_v5, %v12433_v16  ;;  %7712 = vmatmul.msk.f32.gmra.mxu2 %vm1232_vm0, %v12728_v61  ;;  %v4229_v31 = vpop.f32.mrf.mxu3  ;;  %4801 = vmatpush.msrb.mxu0 %v575_v28 }
 0x634   : > { %4550 = vmatmul.f32.gmra.mxu0 %v12424_v22  ;;  %4740 = vmatpush.msrb.mxu3 %v1006_v63  ;;  %v12983_v63 = vld [vmem:[%s8574_s21 + $0xd8] sm:$0xff] }
 0x635   : > { %4423 = vmatmul.f32.gmra.mxu1 %v12445_v32  ;;  %4802 = vmatpush.msrb.mxu0 %v539_v45 }
 0x636   : > { %v4356_v16 = vpop.f32.mrf.mxu2 }
 0x637   : > { %v4357_v19 = vadd.f32 %v4356_v16, %v4291_v25 }
 0x638   : > { %7698 = vmatmul.msk.f32.gmra.mxu3 %vm1232_vm0, %v12449_v62 }
 0x639   : > { %v6138_v6 = vmax.f32 %v4227_v27, %v4357_v19  ;;  %v4294_v48 = vpop.f32.mrf.mxu0  ;;  %v12842_v19 = vld [vmem:[%s8574_s21 + $0x78] sm:$0xff] }
 0x63a   : > { %v4167_v14 = vpop.f32.mrf.mxu1 }
 0x63b   : > { %v12769_v15 = vmax.f32 %v6138_v6, %v12454_v39  ;;  %7713 = vmatmul.msk.f32.gmra.mxu2 %vm1232_vm0, %v12428_v3  ;;  %v4232_v22 = vpop.f32.mrf.mxu3  ;;  %v1115_v3 = vld [vmem:[%s15424_s1 + $0x1758] sm:$0xff]  ;;  %v4230_v39 = vadd.f32 %v4229_v31, %v4164_v18 }
 0x63c   : > { %4553 = vmatmul.f32.gmra.mxu0 %v12445_v32  ;;  %4867 = vmatpush.msrb.mxu2 %v1115_v3  ;;  %v4233_v29 = vadd.f32 %v4232_v22, %v4167_v14  ;;  %v610_v22 = vld [vmem:[%s15424_s1 + $0x790] sm:$0xff] }
 0x63d   : > { %4426 = vmatmul.f32.gmra.mxu1 %v12472_v17 }
 0x63e   : > { %v4359_v53 = vpop.f32.mrf.mxu2  ;;  %4670 = vmatpush.msrb.mxu1 %v610_v22 }
 0x63f   : > { %v4360_v0 = vadd.f32 %v4359_v53, %v4294_v48  ;;  %v12866_v53 = vld [vmem:[%s8574_s21 + $0x88] sm:$0xff] }
 0x640   : > { %7699 = vmatmul.msk.f32.gmra.mxu3 %vm1232_vm0, %v12476_v1 }
 0x641   : > { %v6139_v56 = vmax.f32 %v4230_v39, %v4360_v0  ;;  %v4297_v41 = vpop.f32.mrf.mxu0 }
 0x642   : > { %v4170_v11 = vpop.f32.mrf.mxu1 }
 0x643   : > { %v12790_v32 = vmax.f32 %v6139_v56, %v12481_v50  ;;  %7714 = vmatmul.msk.f32.gmra.mxu2 %vm1232_vm0, %v12449_v62  ;;  %v4235_v8 = vpop.f32.mrf.mxu3 }
 0x644   : > { %4556 = vmatmul.f32.gmra.mxu0 %v12472_v17 }
 0x645   : > { %4429 = vmatmul.f32.gmra.mxu1 %v12493_v13 }
 0x646   : > { %v4362_v50 = vpop.f32.mrf.mxu2 }
 0x647   : > { %v4363_v55 = vadd.f32 %v4362_v50, %v4297_v41 }
 0x648   : > { %7700 = vmatmul.msk.f32.gmra.mxu3 %vm1232_vm0, %v12497_v34 }
 0x649   : > { %v6140_v62 = vmax.f32 %v4233_v29, %v4363_v55  ;;  %v4300_v33 = vpop.f32.mrf.mxu0  ;;  %v12883_v29 = vld [vmem:[%s8574_s21 + $0x80] sm:$0xff]  ;;  %v12887_v55 = vld [vmem:[%s8574_s21 + $0x98] sm:$0xff] }
 0x64a   : > { %v4173_v40 = vpop.f32.mrf.mxu1 }
 0x64b   : > { %v12805_v38 = vmax.f32 %v6140_v62, %v12502_v7  ;;  %7715 = vmatmul.msk.f32.gmra.mxu2 %vm1232_vm0, %v12476_v1  ;;  %v4238_v17 = vpop.f32.mrf.mxu3  ;;  %v1079_v1 = vld [vmem:[%s15424_s1 + $0x1638] sm:$0xff]  ;;  %v4236_v7 = vadd.f32 %v4235_v8, %v4170_v11  ;;  %v574_v8 = vld [vmem:[%s15424_s1 + $0x670] sm:$0xff] }
 0x64c   : > { %4559 = vmatmul.f32.gmra.mxu0 %v12493_v13  ;;  %4868 = vmatpush.msrb.mxu2 %v1079_v1  ;;  %v4239_v27 = vadd.f32 %v4238_v17, %v4173_v40 }
 0x64d   : > { %4432 = vmatmul.f32.gmra.mxu1 %v12520_v30 }
 0x64e   : > { %v4365_v57 = vpop.f32.mrf.mxu2  ;;  %4671 = vmatpush.msrb.mxu1 %v574_v8  ;;  %v12962_v8 = vld [vmem:[%s8574_s21 + $0xc8] sm:$0xff] }
 0x64f   : > { %v4366_v60 = vadd.f32 %v4365_v57, %v4300_v33 }
 0x650   : > { %7701 = vmatmul.msk.f32.gmra.mxu3 %vm1232_vm0, %v12824_v37  ;;  %4672 = vmatpush.msrb.mxu1 %v538_v12  ;;  %v12979_v12 = vld [vmem:[%s8574_s21 + $0xc0] sm:$0xff] }
 0x651   : > { %v6141_v13 = vmax.f32 %v4236_v7, %v4366_v60  ;;  %v4303_v5 = vpop.f32.mrf.mxu0  ;;  %v12910_v7 = vld [vmem:[%s8574_s21 + $0x90] sm:$0xff] }
 0x652   : > { %v4176_v25 = vpop.f32.mrf.mxu1 }
 0x653   : > { %v12829_v18 = vmax.f32 %v6141_v13, %v12526_v42  ;;  %7716 = vmatmul.msk.f32.gmra.mxu2 %vm1232_vm0, %v12497_v34  ;;  %v4241_v31 = vpop.f32.mrf.mxu3  ;;  %v12914_v13 = vld [vmem:[%s8574_s21 + $0xa8] sm:$0xff] }
 0x654   : > { %4562 = vmatmul.f32.gmra.mxu0 %v12520_v30  ;;  %v4242_v24 = vadd.f32 %v4241_v31, %v4176_v25 }
 0x655   : > { %4435 = vmatmul.f32.gmra.mxu1 %v12538_v35 }
 0x656   : > { %v4368_v42 = vpop.f32.mrf.mxu2 }
 0x657   : > { %v4369_v16 = vadd.f32 %v4368_v42, %v4303_v5  ;;  %v503_v42 = vld [vmem:[%s15424_s1 + $0x438] sm:$0xff] }
 0x658   : > { %7702 = vmatmul.msk.f32.gmra.mxu3 %vm1232_vm0, %v12842_v19  ;;  %4803 = vmatpush.msrb.mxu0 %v503_v42  ;;  %v13006_v42 = vld [vmem:[%s8574_s21 + $0xd0] sm:$0xff] }
 0x659   : > { %v6142_v34 = vmax.f32 %v4239_v27, %v4369_v16  ;;  %v4306_v6 = vpop.f32.mrf.mxu0  ;;  %v502_v27 = vld [vmem:[%s15424_s1 + $0x430] sm:$0xff] }
 0x65a   : > { %v4179_v48 = vpop.f32.mrf.mxu1  ;;  %4673 = vmatpush.msrb.mxu1 %v502_v27 }
 0x65b   : > { %v12847_v14 = vmax.f32 %v6142_v34, %v12544_v43  ;;  %7717 = vmatmul.msk.f32.gmra.mxu2 %vm1232_vm0, %v12824_v37  ;;  %v4244_v30 = vpop.f32.mrf.mxu3  ;;  %v1043_v43 = vld [vmem:[%s15424_s1 + $0x1518] sm:$0xff]  ;;  %v12931_v34 = vld [vmem:[%s8574_s21 + $0xa0] sm:$0xff] }
 0x65c   : > { %4565 = vmatmul.f32.gmra.mxu0 %v12538_v35  ;;  %4869 = vmatpush.msrb.mxu2 %v1043_v43  ;;  %v4245_v20 = vadd.f32 %v4244_v30, %v4179_v48  ;;  %v12935_v48 = vld [vmem:[%s8574_s21 + $0xb8] sm:$0xff] }
 0x65d   : > { %4438 = vmatmul.f32.gmra.mxu1 %v12562_v51 }
 0x65e   : > { %v4371_v3 = vpop.f32.mrf.mxu2 }
 0x65f   : > { %v4372_v39 = vadd.f32 %v4371_v3, %v4306_v6  ;;  %v467_v3 = vld [vmem:[%s15424_s1 + $0x318] sm:$0xff] }
 0x660   : > { %7703 = vmatmul.msk.f32.gmra.mxu3 %vm1232_vm0, %v12866_v53  ;;  %4804 = vmatpush.msrb.mxu0 %v467_v3  ;;  %v936_v3 = vld [vmem:[%s15424_s1 + $0x11c0] sm:$0xff] }
 0x661   : > { %v6143_v35 = vmax.f32 %v4242_v24, %v4372_v39  ;;  %v4309_v0 = vpop.f32.mrf.mxu0  ;;  %v466_v24 = vld [vmem:[%s15424_s1 + $0x310] sm:$0xff] }
 0x662   : > { %v4182_v56 = vpop.f32.mrf.mxu1  ;;  %v970_v39 = vld [vmem:[%s15424_s1 + $0x12d0] sm:$0xff]  ;;  %4674 = vmatpush.msrb.mxu1 %v466_v24 }
 0x663   : > { %v12871_v41 = vmax.f32 %v6143_v35, %v12568_v36  ;;  %7718 = vmatmul.msk.f32.gmra.mxu2 %vm1232_vm0, %v12842_v19  ;;  %v4247_v11 = vpop.f32.mrf.mxu3  ;;  %4741 = vmatpush.msrb.mxu3 %v970_v39  ;;  %v937_v39 = vld [vmem:[%s15424_s1 + $0x11c8] sm:$0xff] }
 0x664   : > { %4568 = vmatmul.f32.gmra.mxu0 %v12562_v51  ;;  %v4248_v1 = vadd.f32 %v4247_v11, %v4182_v56 }
 0x665   : > { %4441 = vmatmul.f32.gmra.mxu1 %v12883_v29 }
 0x666   : > { %v4374_v36 = vpop.f32.mrf.mxu2 }
 0x667   : > { %v4375_v50 = vadd.f32 %v4374_v36, %v4309_v0  ;;  %v12958_v0 = vld [vmem:[%s8574_s21 + $0xb0] sm:$0xff] }
 0x668   : > { %7704 = vmatmul.msk.f32.gmra.mxu3 %vm1232_vm0, %v12887_v55 }
 0x669   : > { %v6144_v62 = vmax.f32 %v4245_v20, %v4375_v50  ;;  %v4312_v33 = vpop.f32.mrf.mxu0 }
 0x66a   : > { %v4185_v40 = vpop.f32.mrf.mxu1 }
 0x66b   : > { %v12892_v51 = vmax.f32 %v6144_v62, %v12583_v9  ;;  %7719 = vmatmul.msk.f32.gmra.mxu2 %vm1232_vm0, %v12866_v53  ;;  %v4250_v17 = vpop.f32.mrf.mxu3  ;;  %v1007_v9 = vld [vmem:[%s15424_s1 + $0x13f8] sm:$0xff] }
 0x66c   : > { %4571 = vmatmul.f32.gmra.mxu0 %v12883_v29  ;;  %4870 = vmatpush.msrb.mxu2 %v1007_v9  ;;  %v4251_v16 = vadd.f32 %v4250_v17, %v4185_v40  ;;  %v431_v40 = vld [vmem:[%s15424_s1 + $0x1f8] sm:$0xff] }
 0x66d   : > { %4444 = vmatmul.f32.gmra.mxu1 %v12910_v7  ;;  %4805 = vmatpush.msrb.mxu0 %v431_v40  ;;  %v900_v40 = vld [vmem:[%s15424_s1 + $0x10a0] sm:$0xff] }
 0x66e   : > { %v4377_v57 = vpop.f32.mrf.mxu2 }
 0x66f   : > { %v4378_v60 = vadd.f32 %v4377_v57, %v4312_v33  ;;  %v430_v33 = vld [vmem:[%s15424_s1 + $0x1f0] sm:$0xff] }
 0x670   : > { %7705 = vmatmul.msk.f32.gmra.mxu3 %vm1232_vm0, %v12914_v13  ;;  %4675 = vmatpush.msrb.mxu1 %v430_v33 }
 0x671   : > { %v6145_v5 = vmax.f32 %v4248_v1, %v4378_v60  ;;  %v4315_v25 = vpop.f32.mrf.mxu0 }
 0x672   : > { %v4188_v31 = vpop.f32.mrf.mxu1 }
 0x673   : > { %v12919_v52 = vmax.f32 %v6145_v5, %v12604_v54  ;;  %7720 = vmatmul.msk.f32.gmra.mxu2 %vm1232_vm0, %v12887_v55  ;;  %v4253_v46 = vpop.f32.mrf.mxu3 }
 0x674   : > { %4574 = vmatmul.f32.gmra.mxu0 %v12910_v7  ;;  %v4254_v35 = vadd.f32 %v4253_v46, %v4188_v31  ;;  %v395_v31 = vld [vmem:[%s15424_s1 + $0xd8] sm:$0xff]  ;;  %v1224_v46 = vld [vmem:[%s15424_s1 + $0x1ac0] sm:$0xff] }
 0x675   : > { %4447 = vmatmul.f32.gmra.mxu1 %v12931_v34  ;;  %4806 = vmatpush.msrb.mxu0 %v395_v31 }
 0x676   : > { %v4380_v54 = vpop.f32.mrf.mxu2  ;;  %4994 = vmatpush.msra.mxu3 %v1224_v46 }
 0x677   : > { %v4381_v6 = vadd.f32 %v4380_v54, %v4315_v25  ;;  %v394_v25 = vld [vmem:[%s15424_s1 + $0xd0] sm:$0xff]  ;;  %5051 = vmatpush.msra.mxu0 %v937_v39 }
 0x678   : > { %7706 = vmatmul.msk.f32.gmra.mxu3 %vm1232_vm0, %v12935_v48  ;;  %4676 = vmatpush.msrb.mxu1 %v394_v25 }
 0x679   : > { %v6146_v30 = vmax.f32 %v4251_v16, %v4381_v6  ;;  %v4318_v22 = vpop.f32.mrf.mxu0  ;;  %v13010_v6 = vld [vmem:[%s8574_s21 + $0xe8] sm:$0xff] }
 0x67a   : > { %v4191_v10 = vpop.f32.mrf.mxu1  ;;  %4921 = vmatpush.msra.mxu1 %v936_v3 }
 0x67b   : > { %v12940_v47 = vmax.f32 %v6146_v30, %v12619_v58  ;;  %7721 = vmatmul.msk.f32.gmra.mxu2 %vm1232_vm0, %v12914_v13  ;;  %v4256_v43 = vpop.f32.mrf.mxu3  ;;  %v971_v58 = vld [vmem:[%s15424_s1 + $0x12d8] sm:$0xff] }
 0x67c   : > { %4577 = vmatmul.f32.gmra.mxu0 %v12931_v34  ;;  %4871 = vmatpush.msrb.mxu2 %v971_v58  ;;  %v4257_v17 = vadd.f32 %v4256_v43, %v4191_v10 }
 0x67d   : > { %4450 = vmatmul.f32.gmra.mxu1 %v12958_v0 }
 0x67e   : > { %v4383_v56 = vpop.f32.mrf.mxu2  ;;  %4922 = vmatpush.msra.mxu1 %v900_v40  ;;  %v13100_v40 = vld [vmem:[%s8574_s21 + $0x28] sm:$0xff] }
 0x67f   : > { %v4384_v11 = vadd.f32 %v4383_v56, %v4318_v22 }
 0x680   : > { %7707 = vmatmul.msk.f32.gmra.mxu3 %vm1232_vm0, %v12962_v8 }
 0x681   : > { %v6147_v28 = vmax.f32 %v4254_v35, %v4384_v11  ;;  %v4321_v20 = vpop.f32.mrf.mxu0  ;;  %v13027_v35 = vld [vmem:[%s8574_s21 + $0xe0] sm:$0xff]  ;;  %v13031_v11 = vld [vmem:[%s8574_s21 + $0xf8] sm:$0xff] }
 0x682   : > { %v4194_v36 = vpop.f32.mrf.mxu1 }
 0x683   : > { %v12967_v50 = vmax.f32 %v6147_v28, %v12640_v2  ;;  %7722 = vmatmul.msk.f32.gmra.mxu2 %vm1232_vm0, %v12935_v48  ;;  %v4259_v62 = vpop.f32.mrf.mxu3 }
 0x684   : > { %4580 = vmatmul.f32.gmra.mxu0 %v12958_v0  ;;  %v4260_v27 = vadd.f32 %v4259_v62, %v4194_v36 }
 0x685   : > { %4453 = vmatmul.f32.gmra.mxu1 %v12979_v12 }
 0x686   : > { %v4386_v2 = vpop.f32.mrf.mxu2 }
 0x687   : > { %v4387_v45 = vadd.f32 %v4386_v2, %v4321_v20  ;;  %v1188_v2 = vld [vmem:[%s15424_s1 + $0x19a0] sm:$0xff] }
 0x688   : > { %7708 = vmatmul.msk.f32.gmra.mxu3 %vm1232_vm0, %v12983_v63 }
 0x689   : > { %v6148_v9 = vmax.f32 %v4257_v17, %v4387_v45  ;;  %v4324_v1 = vpop.f32.mrf.mxu0  ;;  %v901_v17 = vld [vmem:[%s15424_s1 + $0x10a8] sm:$0xff]  ;;  %4995 = vmatpush.msra.mxu3 %v1188_v2 }
 0x68a   : > { %v4197_v57 = vpop.f32.mrf.mxu1  ;;  %5052 = vmatpush.msra.mxu0 %v901_v17 }
 0x68b   : > { %v12988_v60 = vmax.f32 %v6148_v9, %v12655_v23  ;;  %7723 = vmatmul.msk.f32.gmra.mxu2 %vm1232_vm0, %v12962_v8  ;;  %v4262_v5 = vpop.f32.mrf.mxu3  ;;  %v1225_v23 = vld [vmem:[%s15424_s1 + $0x1ac8] sm:$0xff]  ;;  %v13054_v9 = vld [vmem:[%s8574_s21 + $0xf0] sm:$0xff] }
 0x68c   : > { %4583 = vmatmul.f32.gmra.mxu0 %v12979_v12  ;;  %5124 = vmatpush.msra.mxu2 %v1225_v23  ;;  %v4263_v58 = vadd.f32 %v4262_v5, %v4197_v57 }
 0x68d   : > { %4456 = vmatmul.f32.gmra.mxu1 %v13006_v42 }
 0x68e   : > { %v4389_v16 = vpop.f32.mrf.mxu2 }
 0x68f   : > { %v4390_v54 = vadd.f32 %v4389_v16, %v4324_v1  ;;  %v865_v16 = vld [vmem:[%s15424_s1 + $0xf88] sm:$0xff] }
 0x690   : > { %7709 = vmatmul.msk.f32.gmra.mxu3 %vm1232_vm0, %v13010_v6  ;;  %5053 = vmatpush.msra.mxu0 %v865_v16 }
 0x691   : > { %v6149_v30 = vmax.f32 %v4260_v27, %v4390_v54  ;;  %v4327_v22 = vpop.f32.mrf.mxu0  ;;  %v864_v27 = vld [vmem:[%s15424_s1 + $0xf80] sm:$0xff] }
 0x692   : > { %v4200_v10 = vpop.f32.mrf.mxu1  ;;  %4923 = vmatpush.msra.mxu1 %v864_v27 }
 0x693   : > { %v13015_v43 = vmax.f32 %v6149_v30, %v12676_v44  ;;  %7724 = vmatmul.msk.f32.gmra.mxu2 %vm1232_vm0, %v12983_v63  ;;  %v4265_v24 = vpop.f32.mrf.mxu3  ;;  %v13072_v30 = vld [vmem:[%s8574_s21] sm:$0xff] }
 0x694   : > { %4586 = vmatmul.f32.gmra.mxu0 %v13006_v42  ;;  %v4266_v45 = vadd.f32 %v4265_v24, %v4200_v10 }
 0x695   : > { %4459 = vmatmul.f32.gmra.mxu1 %v13027_v35 }
 0x696   : > { %v4392_v44 = vpop.f32.mrf.mxu2 }
 0x697   : > { %v4393_v56 = vadd.f32 %v4392_v44, %v4327_v22  ;;  %v828_v44 = vld [vmem:[%s15424_s1 + $0xe60] sm:$0xff] }
 0x698   : > { %7710 = vmatmul.msk.f32.gmra.mxu3 %vm1232_vm0, %v13031_v11  ;;  %4924 = vmatpush.msra.mxu1 %v828_v44  ;;  %v13144_v44 = vld [vmem:[%s8574_s21 + $0x30] sm:$0xff] }
 0x699   : > { %v6150_v28 = vmax.f32 %v4263_v58, %v4393_v56  ;;  %v4330_v20 = vpop.f32.mrf.mxu0  ;;  %v829_v56 = vld [vmem:[%s15424_s1 + $0xe68] sm:$0xff] }
 0x69a   : > { %v4203_v36 = vpop.f32.mrf.mxu1  ;;  %5054 = vmatpush.msra.mxu0 %v829_v56 }
 0x69b   : > { %v13036_v62 = vmax.f32 %v6150_v28, %v12691_v4  ;;  %7725 = vmatmul.msk.f32.gmra.mxu2 %vm1232_vm0, %v13010_v6  ;;  %v4268_v33 = vpop.f32.mrf.mxu3  ;;  %v1189_v4 = vld [vmem:[%s15424_s1 + $0x19a8] sm:$0xff]  ;;  %v1152_v28 = vld [vmem:[%s15424_s1 + $0x1880] sm:$0xff] }
 0x69c   : > { %4589 = vmatmul.f32.gmra.mxu0 %v13027_v35  ;;  %5125 = vmatpush.msra.mxu2 %v1189_v4  ;;  %v4269_v54 = vadd.f32 %v4268_v33, %v4203_v36 }
 0x69d   : > { %4462 = vmatmul.f32.gmra.mxu1 %v13054_v9  ;;  %4996 = vmatpush.msra.mxu3 %v1152_v28 }
 0x69e   : > { %v4395_v1 = vpop.f32.mrf.mxu2 }
 0x69f   : > { %v4396_v57 = vadd.f32 %v4395_v1, %v4330_v20  ;;  %v13096_v20 = vld [vmem:[%s8574_s21 + $0x10] sm:$0xff] }
 0x6a0   : > { %7727 = vmatmul.msk.f32.vlgmr.msrb.gmra.mxu3 %vm1232_vm0, %v12710_v26 }
 0x6a1   : > { %v6151_v5 = vmax.f32 %v4266_v45, %v4396_v57  ;;  %v4333_v25 = vpop.f32.mrf.mxu0  ;;  %v792_v57 = vld [vmem:[%s15424_s1 + $0xd40] sm:$0xff] }
 0x6a2   : > { %v4418_v31 = vpop.f32.mrf.mxu1  ;;  %4925 = vmatpush.msra.mxu1 %v792_v57 }
 0x6a3   : > { %v13060_v46 = vmax.f32 %v6151_v5, %v12715_v59  ;;  %7726 = vmatmul.msk.f32.gmra.mxu2 %vm1232_vm0, %v13031_v11  ;;  %v4483_v23 = vpop.f32.mrf.mxu3  ;;  %v793_v5 = vld [vmem:[%s15424_s1 + $0xd48] sm:$0xff] }
 0x6a4   : > { %4592 = vmatmul.f32.gmra.mxu0 %v13054_v9 }
 0x6a5   : > { %4677 = vmatmul.f32.vlgmr.msrb.gmra.mxu1 %v13072_v30  ;;  %5055 = vmatpush.msra.mxu0 %v793_v5  ;;  %v13165_v5 = vld [vmem:[%s8574_s21 + $0x40] sm:$0xff] }
 0x6a6   : > { %v4398_v59 = vpop.f32.mrf.mxu2 }
 0x6a7   : > { %v4399_v22 = vadd.f32 %v4398_v59, %v4333_v25 }
 0x6a8   : > { %7728 = vmatmul.msk.f32.gmra.mxu3 %vm1232_vm0, %v12728_v61 }
 0x6a9   : > { %v6152_v10 = vmax.f32 %v4269_v54, %v4399_v22  ;;  %v4548_v24 = vpop.f32.mrf.mxu0 }
 0x6aa   : > { %v4421_v3 = vpop.f32.mrf.mxu1 }
 0x6ab   : > { %v13078_v39 = vmax.f32 %v6152_v10, %v12733_v49  ;;  %7743 = vmatmul.msk.f32.vlgmr.msrb.gmra.mxu2 %vm1232_vm0, %v12710_v26  ;;  %v4486_v58 = vpop.f32.mrf.mxu3  ;;  %v1153_v26 = vld [vmem:[%s15424_s1 + $0x1888] sm:$0xff]  ;;  %v4484_v49 = vadd.f32 %v4483_v23, %v4418_v31  ;;  %v13117_v31 = vld [vmem:[%s8574_s21 + $0x20] sm:$0xff]  ;;  %v13121_v23 = vld [vmem:[%s8574_s21 + $0x38] sm:$0xff] }
 0x6ac   : > { %4807 = vmatmul.f32.vlgmr.msrb.gmra.mxu0 %v13072_v30  ;;  %5126 = vmatpush.msra.mxu2 %v1153_v26  ;;  %v4487_v25 = vadd.f32 %v4486_v58, %v4421_v3  ;;  %v756_v10 = vld [vmem:[%s15424_s1 + $0xc20] sm:$0xff]  ;;  %v13148_v26 = vld [vmem:[%s8574_s21 + $0x48] sm:$0xff] }
 0x6ad   : > { %4680 = vmatmul.f32.gmra.mxu1 %v13096_v20  ;;  %v1116_v3 = vld [vmem:[%s15424_s1 + $0x1760] sm:$0xff] }
 0x6ae   : > { %v4613_v36 = vpop.f32.mrf.mxu2  ;;  %4926 = vmatpush.msra.mxu1 %v756_v10  ;;  %4997 = vmatpush.msra.mxu3 %v1116_v3  ;;  %v1080_v3 = vld [vmem:[%s15424_s1 + $0x1640] sm:$0xff] }
 0x6af   : > { %v4614_v33 = vadd.f32 %v4613_v36, %v4548_v24  ;;  %v757_v24 = vld [vmem:[%s15424_s1 + $0xc28] sm:$0xff] }
 0x6b0   : > { %7729 = vmatmul.msk.f32.gmra.mxu3 %vm1232_vm0, %v13100_v40  ;;  %5056 = vmatpush.msra.mxu0 %v757_v24  ;;  %v685_v24 = vld [vmem:[%s15424_s1 + $0x9e8] sm:$0xff] }
 0x6b1   : > { %v6153_v17 = vmax.f32 %v4484_v49, %v4614_v33  ;;  %v4551_v2 = vpop.f32.mrf.mxu0  ;;  %4998 = vmatpush.msra.mxu3 %v1080_v3 }
 0x6b2   : > { %v4424_v4 = vpop.f32.mrf.mxu1 }
 0x6b3   : > { %v13105_v45 = vmax.f32 %v6153_v17, %v12754_v21  ;;  %7744 = vmatmul.msk.f32.gmra.mxu2 %vm1232_vm0, %v12728_v61  ;;  %v4489_v1 = vpop.f32.mrf.mxu3 }
 0x6b4   : > { %4810 = vmatmul.f32.gmra.mxu0 %v13096_v20  ;;  %v4490_v58 = vadd.f32 %v4489_v1, %v4424_v4  ;;  %v720_v4 = vld [vmem:[%s15424_s1 + $0xb00] sm:$0xff]  ;;  %v721_v1 = vld [vmem:[%s15424_s1 + $0xb08] sm:$0xff] }
 0x6b5   : > { %4683 = vmatmul.f32.gmra.mxu1 %v13117_v31  ;;  %5057 = vmatpush.msra.mxu0 %v721_v1 }
 0x6b6   : > { %v4616_v21 = vpop.f32.mrf.mxu2  ;;  %4927 = vmatpush.msra.mxu1 %v720_v4 }
 0x6b7   : > { %v4617_v61 = vadd.f32 %v4616_v21, %v4551_v2  ;;  %v13169_v21 = vld [vmem:[%s8574_s21 + $0x58] sm:$0xff]  ;;  %5058 = vmatpush.msra.mxu0 %v685_v24 }
 0x6b8   : > { %7730 = vmatmul.msk.f32.gmra.mxu3 %vm1232_vm0, %v13121_v23 }
 0x6b9   : > { %v6154_v27 = vmax.f32 %v4487_v25, %v4617_v61  ;;  %v4554_v16 = vpop.f32.mrf.mxu0 }
 0x6ba   : > { %v4427_v54 = vpop.f32.mrf.mxu1 }
 0x6bb   : > { %v13126_v59 = vmax.f32 %v6154_v27, %v12769_v15  ;;  %7745 = vmatmul.msk.f32.gmra.mxu2 %vm1232_vm0, %v13100_v40  ;;  %v4492_v22 = vpop.f32.mrf.mxu3  ;;  %v1117_v15 = vld [vmem:[%s15424_s1 + $0x1768] sm:$0xff] }
 0x6bc   : > { %4813 = vmatmul.f32.gmra.mxu0 %v13117_v31  ;;  %5127 = vmatpush.msra.mxu2 %v1117_v15  ;;  %v4493_v57 = vadd.f32 %v4492_v22, %v4427_v54  ;;  %v684_v22 = vld [vmem:[%s15424_s1 + $0x9e0] sm:$0xff] }
 0x6bd   : > { %4686 = vmatmul.f32.gmra.mxu1 %v13144_v44 }
 0x6be   : > { %v4619_v56 = vpop.f32.mrf.mxu2  ;;  %4928 = vmatpush.msra.mxu1 %v684_v22 }
 0x6bf   : > { %v4620_v28 = vadd.f32 %v4619_v56, %v4554_v16 }
 0x6c0   : > { %7731 = vmatmul.msk.f32.gmra.mxu3 %vm1232_vm0, %v13148_v26 }
 0x6c1   : > { %v6155_v49 = vmax.f32 %v4490_v58, %v4620_v28  ;;  %v4557_v36 = vpop.f32.mrf.mxu0  ;;  %v13192_v58 = vld [vmem:[%s8574_s21 + $0x50] sm:$0xff] }
 0x6c2   : > { %v4430_v33 = vpop.f32.mrf.mxu1 }
 0x6c3   : > { %v13153_v17 = vmax.f32 %v6155_v49, %v12790_v32  ;;  %7746 = vmatmul.msk.f32.gmra.mxu2 %vm1232_vm0, %v13121_v23  ;;  %v4495_v2 = vpop.f32.mrf.mxu3 }
 0x6c4   : > { %4816 = vmatmul.f32.gmra.mxu0 %v13144_v44  ;;  %v4496_v15 = vadd.f32 %v4495_v2, %v4430_v33  ;;  %v648_v2 = vld [vmem:[%s15424_s1 + $0x8c0] sm:$0xff] }
 0x6c5   : > { %4689 = vmatmul.f32.gmra.mxu1 %v13165_v5 }
 0x6c6   : > { %v4622_v32 = vpop.f32.mrf.mxu2  ;;  %4929 = vmatpush.msra.mxu1 %v648_v2 }
 0x6c7   : > { %v4623_v25 = vadd.f32 %v4622_v32, %v4557_v36 }
 0x6c8   : > { %7732 = vmatmul.msk.f32.gmra.mxu3 %vm1232_vm0, %v13169_v21 }
 0x6c9   : > { %v6156_v61 = vmax.f32 %v4493_v57, %v4623_v25  ;;  %v4560_v27 = vpop.f32.mrf.mxu0  ;;  %v649_v57 = vld [vmem:[%s15424_s1 + $0x8c8] sm:$0xff]  ;;  %v13210_v25 = vld [vmem:[%s8574_s21 + $0x60] sm:$0xff] }
 0x6ca   : > { %v4433_v16 = vpop.f32.mrf.mxu1  ;;  %5059 = vmatpush.msra.mxu0 %v649_v57 }
 0x6cb   : > { %v13174_v10 = vmax.f32 %v6156_v61, %v12805_v38  ;;  %7747 = vmatmul.msk.f32.gmra.mxu2 %vm1232_vm0, %v13148_v26  ;;  %v4498_v54 = vpop.f32.mrf.mxu3  ;;  %v1081_v38 = vld [vmem:[%s15424_s1 + $0x1648] sm:$0xff] }
 0x6cc   : > { %4819 = vmatmul.f32.gmra.mxu0 %v13165_v5  ;;  %5128 = vmatpush.msra.mxu2 %v1081_v38  ;;  %v4499_v32 = vadd.f32 %v4498_v54, %v4433_v16  ;;  %v612_v54 = vld [vmem:[%s15424_s1 + $0x7a0] sm:$0xff]  ;;  %v613_v38 = vld [vmem:[%s15424_s1 + $0x7a8] sm:$0xff] }
 0x6cd   : > { %4692 = vmatmul.f32.gmra.mxu1 %v13192_v58  ;;  %5060 = vmatpush.msra.mxu0 %v613_v38 }
 0x6ce   : > { %v4625_v56 = vpop.f32.mrf.mxu2  ;;  %4930 = vmatpush.msra.mxu1 %v612_v54 }
 0x6cf   : > { %v4626_v28 = vadd.f32 %v4625_v56, %v4560_v27  ;;  %v13234_v56 = vld [vmem:[%s8574_s21 + $0x70] sm:$0xff] }
 0x6d0   : > { %7733 = vmatmul.msk.f32.gmra.mxu3 %vm1232_vm0, %v12824_v37 }
 0x6d1   : > { %v6157_v49 = vmax.f32 %v4496_v15, %v4626_v28  ;;  %v4563_v36 = vpop.f32.mrf.mxu0  ;;  %v1044_v15 = vld [vmem:[%s15424_s1 + $0x1520] sm:$0xff] }
 0x6d2   : > { %v4436_v4 = vpop.f32.mrf.mxu1  ;;  %4999 = vmatpush.msra.mxu3 %v1044_v15 }
 0x6d3   : > { %v13198_v1 = vmax.f32 %v6157_v49, %v12829_v18  ;;  %7748 = vmatmul.msk.f32.gmra.mxu2 %vm1232_vm0, %v13169_v21  ;;  %v4501_v33 = vpop.f32.mrf.mxu3 }
 0x6d4   : > { %4822 = vmatmul.f32.gmra.mxu0 %v13192_v58 }
 0x6d5   : > { %4695 = vmatmul.f32.gmra.mxu1 %v13210_v25 }
 0x6d6   : > { %v4628_v18 = vpop.f32.mrf.mxu2 }
 0x6d7   : > { %v4629_v61 = vadd.f32 %v4628_v18, %v4563_v36  ;;  %v577_v18 = vld [vmem:[%s15424_s1 + $0x688] sm:$0xff] }
 0x6d8   : > { %7734 = vmatmul.msk.f32.gmra.mxu3 %vm1232_vm0, %v12842_v19  ;;  %5061 = vmatpush.msra.mxu0 %v577_v18 }
 0x6d9   : > { %v6158_v27 = vmax.f32 %v4499_v32, %v4629_v61  ;;  %v4566_v22 = vpop.f32.mrf.mxu0 }
 0x6da   : > { %v4439_v24 = vpop.f32.mrf.mxu1 }
 0x6db   : > { %v13216_v3 = vmax.f32 %v6158_v27, %v12847_v14  ;;  %7749 = vmatmul.msk.f32.gmra.mxu2 %vm1232_vm0, %v12824_v37  ;;  %v4504_v16 = vpop.f32.mrf.mxu3  ;;  %v1045_v37 = vld [vmem:[%s15424_s1 + $0x1528] sm:$0xff]  ;;  %v4502_v14 = vadd.f32 %v4501_v33, %v4436_v4  ;;  %v576_v33 = vld [vmem:[%s15424_s1 + $0x680] sm:$0xff] }
 0x6dc   : > { %4825 = vmatmul.f32.gmra.mxu0 %v13210_v25  ;;  %5129 = vmatpush.msra.mxu2 %v1045_v37  ;;  %v4505_v61 = vadd.f32 %v4504_v16, %v4439_v24  ;;  %v540_v24 = vld [vmem:[%s15424_s1 + $0x560] sm:$0xff]  ;;  %v541_v16 = vld [vmem:[%s15424_s1 + $0x568] sm:$0xff] }
 0x6dd   : > { %4698 = vmatmul.f32.gmra.mxu1 %v13234_v56  ;;  %v1008_v37 = vld [vmem:[%s15424_s1 + $0x1400] sm:$0xff]  ;;  %5062 = vmatpush.msra.mxu0 %v541_v16 }
 0x6de   : > { %v4631_v28 = vpop.f32.mrf.mxu2  ;;  %4931 = vmatpush.msra.mxu1 %v576_v33  ;;  %5000 = vmatpush.msra.mxu3 %v1008_v37  ;;  %v505_v33 = vld [vmem:[%s15424_s1 + $0x448] sm:$0xff] }
 0x6df   : > { %v4632_v49 = vadd.f32 %v4631_v28, %v4566_v22  ;;  %5063 = vmatpush.msra.mxu0 %v505_v33 }
 0x6e0   : > { %7735 = vmatmul.msk.f32.gmra.mxu3 %vm1232_vm0, %v12866_v53  ;;  %4932 = vmatpush.msra.mxu1 %v540_v24 }
 0x6e1   : > { %v6159_v36 = vmax.f32 %v4502_v14, %v4632_v49  ;;  %v4569_v2 = vpop.f32.mrf.mxu0 }
 0x6e2   : > { %v4442_v57 = vpop.f32.mrf.mxu1 }
 0x6e3   : > { %v13240_v32 = vmax.f32 %v6159_v36, %v12871_v41  ;;  %7750 = vmatmul.msk.f32.gmra.mxu2 %vm1232_vm0, %v12842_v19  ;;  %v4507_v4 = vpop.f32.mrf.mxu3 }
 0x6e4   : > { %4828 = vmatmul.f32.gmra.mxu0 %v13234_v56 }
 0x6e5   : > { %4701 = vmatmul.f32.gmra.mxu1 %v12883_v29 }
 0x6e6   : > { %v4634_v41 = vpop.f32.mrf.mxu2 }
 0x6e7   : > { %v4635_v27 = vadd.f32 %v4634_v41, %v4569_v2 }
 0x6e8   : > { %7736 = vmatmul.msk.f32.gmra.mxu3 %vm1232_vm0, %v12887_v55 }
 0x6e9   : > { %v6160_v19 = vmax.f32 %v4505_v61, %v4635_v27  ;;  %v4572_v22 = vpop.f32.mrf.mxu0 }
 0x6ea   : > { %v4445_v54 = vpop.f32.mrf.mxu1 }
 0x6eb   : > { %v13255_v38 = vmax.f32 %v6160_v19, %v12892_v51  ;;  %7751 = vmatmul.msk.f32.gmra.mxu2 %vm1232_vm0, %v12866_v53  ;;  %v4510_v15 = vpop.f32.mrf.mxu3  ;;  %v1009_v53 = vld [vmem:[%s15424_s1 + $0x1408] sm:$0xff]  ;;  %v4508_v51 = vadd.f32 %v4507_v4, %v4442_v57  ;;  %v504_v4 = vld [vmem:[%s15424_s1 + $0x440] sm:$0xff] }
 0x6ec   : > { %4831 = vmatmul.f32.gmra.mxu0 %v12883_v29  ;;  %5130 = vmatpush.msra.mxu2 %v1009_v53  ;;  %v4511_v18 = vadd.f32 %v4510_v15, %v4445_v54  ;;  %v469_v54 = vld [vmem:[%s15424_s1 + $0x328] sm:$0xff]  ;;  %v972_v15 = vld [vmem:[%s15424_s1 + $0x12e0] sm:$0xff] }
 0x6ed   : > { %4704 = vmatmul.f32.gmra.mxu1 %v12910_v7  ;;  %5064 = vmatpush.msra.mxu0 %v469_v54 }
 0x6ee   : > { %v4637_v14 = vpop.f32.mrf.mxu2  ;;  %4933 = vmatpush.msra.mxu1 %v504_v4  ;;  %5001 = vmatpush.msra.mxu3 %v972_v15  ;;  %v938_v15 = vld [vmem:[%s15424_s1 + $0x11d0] sm:$0xff] }
 0x6ef   : > { %v4638_v28 = vadd.f32 %v4637_v14, %v4572_v22  ;;  %v468_v22 = vld [vmem:[%s15424_s1 + $0x320] sm:$0xff] }
 0x6f0   : > { %7737 = vmatmul.msk.f32.gmra.mxu3 %vm1232_vm0, %v12914_v13  ;;  %4934 = vmatpush.msra.mxu1 %v468_v22 }
 0x6f1   : > { %v6161_v49 = vmax.f32 %v4508_v51, %v4638_v28  ;;  %v4575_v36 = vpop.f32.mrf.mxu0  ;;  %v432_v28 = vld [vmem:[%s15424_s1 + $0x200] sm:$0xff] }
 0x6f2   : > { %v4448_v2 = vpop.f32.mrf.mxu1  ;;  %4935 = vmatpush.msra.mxu1 %v432_v28  ;;  %v1190_v28 = vld [vmem:[%s15424_s1 + $0x19b0] sm:$0xff] }
 0x6f3   : > { %v13276_v29 = vmax.f32 %v6161_v49, %v12919_v52  ;;  %7752 = vmatmul.msk.f32.gmra.mxu2 %vm1232_vm0, %v12887_v55  ;;  %v4513_v57 = vpop.f32.mrf.mxu3  ;;  %v433_v49 = vld [vmem:[%s15424_s1 + $0x208] sm:$0xff] }
 0x6f4   : > { %4834 = vmatmul.f32.gmra.mxu0 %v12910_v7 }
 0x6f5   : > { %4707 = vmatmul.f32.gmra.mxu1 %v12931_v34  ;;  %5065 = vmatpush.msra.mxu0 %v433_v49 }
 0x6f6   : > { %v4640_v52 = vpop.f32.mrf.mxu2 }
 0x6f7   : > { %v4641_v61 = vadd.f32 %v4640_v52, %v4575_v36  ;;  %v397_v52 = vld [vmem:[%s15424_s1 + $0xe8] sm:$0xff] }
 0x6f8   : > { %7738 = vmatmul.msk.f32.gmra.mxu3 %vm1232_vm0, %v12935_v48  ;;  %5066 = vmatpush.msra.mxu0 %v397_v52 }
 0x6f9   : > { %v6162_v55 = vmax.f32 %v4511_v18, %v4641_v61  ;;  %v4578_v41 = vpop.f32.mrf.mxu0  ;;  %v396_v18 = vld [vmem:[%s15424_s1 + $0xe0] sm:$0xff]  ;;  %v1226_v61 = vld [vmem:[%s15424_s1 + $0x1ad0] sm:$0xff] }
 0x6fa   : > { %v4451_v27 = vpop.f32.mrf.mxu1  ;;  %4936 = vmatpush.msra.mxu1 %v396_v18  ;;  %5254 = vmatpush.msrb.mxu3 %v1226_v61  ;;  %v867_v18 = vld [vmem:[%s15424_s1 + $0xf98] sm:$0xff] }
 0x6fb   : > { %v13291_v19 = vmax.f32 %v6162_v55, %v12940_v47  ;;  %7753 = vmatmul.msk.f32.gmra.mxu2 %vm1232_vm0, %v12914_v13  ;;  %v4516_v7 = vpop.f32.mrf.mxu3  ;;  %v973_v13 = vld [vmem:[%s15424_s1 + $0x12e8] sm:$0xff]  ;;  %v4514_v47 = vadd.f32 %v4513_v57, %v4448_v2 }
 0x6fc   : > { %4837 = vmatmul.f32.gmra.mxu0 %v12931_v34  ;;  %5131 = vmatpush.msra.mxu2 %v973_v13  ;;  %v4517_v36 = vadd.f32 %v4516_v7, %v4451_v27  ;;  %v939_v13 = vld [vmem:[%s15424_s1 + $0x11d8] sm:$0xff] }
 0x6fd   : > { %4710 = vmatmul.f32.gmra.mxu1 %v12958_v0  ;;  %5311 = vmatpush.msrb.mxu0 %v939_v13 }
 0x6fe   : > { %v4643_v24 = vpop.f32.mrf.mxu2  ;;  %5181 = vmatpush.msrb.mxu1 %v938_v15  ;;  %5255 = vmatpush.msrb.mxu3 %v1190_v28 }
 0x6ff   : > { %v4644_v16 = vadd.f32 %v4643_v24, %v4578_v41 }
 0x700   : > { %7739 = vmatmul.msk.f32.gmra.mxu3 %vm1232_vm0, %v12962_v8 }
 0x701   : > { %v6163_v37 = vmax.f32 %v4514_v47, %v4644_v16  ;;  %v4581_v53 = vpop.f32.mrf.mxu0 }
 0x702   : > { %v4454_v51 = vpop.f32.mrf.mxu1 }
 0x703   : > { %v13312_v34 = vmax.f32 %v6163_v37, %v12967_v50  ;;  %7754 = vmatmul.msk.f32.gmra.mxu2 %vm1232_vm0, %v12935_v48  ;;  %v4519_v14 = vpop.f32.mrf.mxu3 }
 0x704   : > { %4840 = vmatmul.f32.gmra.mxu0 %v12958_v0 }
 0x705   : > { %4713 = vmatmul.f32.gmra.mxu1 %v12979_v12 }
 0x706   : > { %v4646_v50 = vpop.f32.mrf.mxu2 }
 0x707   : > { %v4647_v2 = vadd.f32 %v4646_v50, %v4581_v53  ;;  %v13382_v50 = vld [vmem:[%s8574_s21 + $0x8] sm:$0xff] }
 0x708   : > { %7740 = vmatmul.msk.f32.gmra.mxu3 %vm1232_vm0, %v12983_v63 }
 0x709   : > { %v6164_v48 = vmax.f32 %v4517_v36, %v4647_v2  ;;  %v4584_v57 = vpop.f32.mrf.mxu0 }
 0x70a   : > { %v4457_v4 = vpop.f32.mrf.mxu1 }
 0x70b   : > { %v13327_v33 = vmax.f32 %v6164_v48, %v12988_v60  ;;  %7755 = vmatmul.msk.f32.gmra.mxu2 %vm1232_vm0, %v12962_v8  ;;  %v4522_v0 = vpop.f32.mrf.mxu3  ;;  %v1227_v8 = vld [vmem:[%s15424_s1 + $0x1ad8] sm:$0xff]  ;;  %v4520_v60 = vadd.f32 %v4519_v14, %v4454_v51  ;;  %v902_v51 = vld [vmem:[%s15424_s1 + $0x10b0] sm:$0xff] }
 0x70c   : > { %4843 = vmatmul.f32.gmra.mxu0 %v12979_v12  ;;  %5384 = vmatpush.msrb.mxu2 %v1227_v8  ;;  %v4523_v47 = vadd.f32 %v4522_v0, %v4457_v4  ;;  %v903_v14 = vld [vmem:[%s15424_s1 + $0x10b8] sm:$0xff]  ;;  %v866_v0 = vld [vmem:[%s15424_s1 + $0xf90] sm:$0xff] }
 0x70d   : > { %4716 = vmatmul.f32.gmra.mxu1 %v13006_v42  ;;  %5312 = vmatpush.msrb.mxu0 %v903_v14  ;;  %v13400_v8 = vld [vmem:[%s8574_s21 + $0x18] sm:$0xff] }
 0x70e   : > { %v4649_v55 = vpop.f32.mrf.mxu2  ;;  %5182 = vmatpush.msrb.mxu1 %v902_v51 }
 0x70f   : > { %v4650_v41 = vadd.f32 %v4649_v55, %v4584_v57  ;;  %5313 = vmatpush.msrb.mxu0 %v867_v18 }
 0x710   : > { %7741 = vmatmul.msk.f32.gmra.mxu3 %vm1232_vm0, %v13010_v6  ;;  %5183 = vmatpush.msrb.mxu1 %v866_v0 }
 0x711   : > { %v6165_v27 = vmax.f32 %v4520_v60, %v4650_v41  ;;  %v4587_v7 = vpop.f32.mrf.mxu0 }
 0x712   : > { %v4460_v22 = vpop.f32.mrf.mxu1 }
 0x713   : > { %v13348_v12 = vmax.f32 %v6165_v27, %v13015_v43  ;;  %7756 = vmatmul.msk.f32.gmra.mxu2 %vm1232_vm0, %v12983_v63  ;;  %v4525_v54 = vpop.f32.mrf.mxu3  ;;  %v830_v27 = vld [vmem:[%s15424_s1 + $0xe70] sm:$0xff] }
 0x714   : > { %4846 = vmatmul.f32.gmra.mxu0 %v13006_v42  ;;  %5184 = vmatpush.msrb.mxu1 %v830_v27 }
 0x715   : > { %4719 = vmatmul.f32.gmra.mxu1 %v13027_v35 }
 0x716   : > { %v4652_v43 = vpop.f32.mrf.mxu2 }
 0x717   : > { %v4653_v24 = vadd.f32 %v4652_v43, %v4587_v7  ;;  %v831_v7 = vld [vmem:[%s15424_s1 + $0xe78] sm:$0xff] }
 0x718   : > { %7742 = vmatmul.msk.f32.gmra.mxu3 %vm1232_vm0, %v13031_v11  ;;  %5314 = vmatpush.msrb.mxu0 %v831_v7  ;;  %v686_v7 = vld [vmem:[%s15424_s1 + $0x9f0] sm:$0xff] }
 0x719   : > { %v6166_v63 = vmax.f32 %v4523_v47, %v4653_v24  ;;  %v4590_v16 = vpop.f32.mrf.mxu0 }
 0x71a   : > { %v4463_v37 = vpop.f32.mrf.mxu1 }
 0x71b   : > { %v13363_v53 = vmax.f32 %v6166_v63, %v13036_v62  ;;  %7757 = vmatmul.msk.f32.gmra.mxu2 %vm1232_vm0, %v13010_v6  ;;  %v4528_v42 = vpop.f32.mrf.mxu3  ;;  %v1191_v6 = vld [vmem:[%s15424_s1 + $0x19b8] sm:$0xff]  ;;  %v4526_v62 = vadd.f32 %v4525_v54, %v4460_v22  ;;  %v1154_v22 = vld [vmem:[%s15424_s1 + $0x1890] sm:$0xff] }
 0x71c   : > { %4849 = vmatmul.f32.gmra.mxu0 %v13027_v35  ;;  %5385 = vmatpush.msrb.mxu2 %v1191_v6  ;;  %v4529_v52 = vadd.f32 %v4528_v42, %v4463_v37  ;;  %v795_v37 = vld [vmem:[%s15424_s1 + $0xd58] sm:$0xff] }
 0x71d   : > { %4722 = vmatmul.f32.gmra.mxu1 %v13054_v9  ;;  %5256 = vmatpush.msrb.mxu3 %v1154_v22  ;;  %v687_v22 = vld [vmem:[%s15424_s1 + $0x9f8] sm:$0xff] }
 0x71e   : > { %v4655_v49 = vpop.f32.mrf.mxu2  ;;  %5315 = vmatpush.msrb.mxu0 %v795_v37  ;;  %v651_v37 = vld [vmem:[%s15424_s1 + $0x8d8] sm:$0xff] }
 0x71f   : > { %v4656_v36 = vadd.f32 %v4655_v49, %v4590_v16  ;;  %v794_v16 = vld [vmem:[%s15424_s1 + $0xd50] sm:$0xff] }
 0x720   : > { %7759 = vmatmul.msk.f32.vlgmr.msra.gmra.mxu3 %vm1232_vm0, %v13382_v50  ;;  %5185 = vmatpush.msrb.mxu1 %v794_v16  ;;  %v758_v49 = vld [vmem:[%s15424_s1 + $0xc30] sm:$0xff] }
 0x721   : > { %v6167_v35 = vmax.f32 %v4526_v62, %v4656_v36  ;;  %v4593_v2 = vpop.f32.mrf.mxu0  ;;  %v759_v36 = vld [vmem:[%s15424_s1 + $0xc38] sm:$0xff]  ;;  %v650_v16 = vld [vmem:[%s15424_s1 + $0x8d0] sm:$0xff] }
 0x722   : > { %v4678_v48 = vpop.f32.mrf.mxu1  ;;  %5186 = vmatpush.msrb.mxu1 %v758_v49  ;;  %5316 = vmatpush.msrb.mxu0 %v759_v36  ;;  %v615_v49 = vld [vmem:[%s15424_s1 + $0x7b8] sm:$0xff]  ;;  %v1046_v36 = vld [vmem:[%s15424_s1 + $0x1530] sm:$0xff] }
 0x723   : > { %v13387_v57 = vmax.f32 %v6167_v35, %v13060_v46  ;;  %7758 = vmatmul.msk.f32.gmra.mxu2 %vm1232_vm0, %v13031_v11  ;;  %v4743_v4 = vpop.f32.mrf.mxu3  ;;  %v1118_v35 = vld [vmem:[%s15424_s1 + $0x1770] sm:$0xff] }
 0x724   : > { %4852 = vmatmul.f32.gmra.mxu0 %v13054_v9  ;;  %v4744_v54 = vadd.f32 %v4743_v4, %v4678_v48  ;;  %5257 = vmatpush.msrb.mxu3 %v1118_v35 }
 0x725   : > { %4937 = vmatmul.f32.vlgmr.msra.gmra.mxu1 %v13072_v30 }
 0x726   : > { %v4658_v46 = vpop.f32.mrf.mxu2 }
 0x727   : > { %v4659_v61 = vadd.f32 %v4658_v46, %v4593_v2  ;;  %v722_v46 = vld [vmem:[%s15424_s1 + $0xb10] sm:$0xff] }
 0x728   : > { %7760 = vmatmul.msk.f32.gmra.mxu3 %vm1232_vm0, %v13400_v8  ;;  %5187 = vmatpush.msrb.mxu1 %v722_v46  ;;  %v579_v46 = vld [vmem:[%s15424_s1 + $0x698] sm:$0xff] }
 0x729   : > { %v6168_v11 = vmax.f32 %v4529_v52, %v4659_v61  ;;  %v4808_v60 = vpop.f32.mrf.mxu0  ;;  %v723_v61 = vld [vmem:[%s15424_s1 + $0xb18] sm:$0xff] }
 0x72a   : > { %v4681_v55 = vpop.f32.mrf.mxu1  ;;  %5317 = vmatpush.msrb.mxu0 %v723_v61  ;;  %5188 = vmatpush.msrb.mxu1 %v686_v7  ;;  %v542_v7 = vld [vmem:[%s15424_s1 + $0x570] sm:$0xff] }
 0x72b   : > { %v13405_v41 = vmax.f32 %v6168_v11, %v13078_v39  ;;  %7775 = vmatmul.msk.f32.vlgmr.msra.gmra.mxu2 %vm1232_vm0, %v13382_v50  ;;  %v4746_v9 = vpop.f32.mrf.mxu3  ;;  %v1155_v39 = vld [vmem:[%s15424_s1 + $0x1898] sm:$0xff] }
 0x72c   : > { %5067 = vmatmul.f32.vlgmr.msra.gmra.mxu0 %v13072_v30  ;;  %5386 = vmatpush.msrb.mxu2 %v1155_v39  ;;  %v4747_v42 = vadd.f32 %v4746_v9, %v4681_v55  ;;  %v1082_v39 = vld [vmem:[%s15424_s1 + $0x1650] sm:$0xff] }
 0x72d   : > { %4940 = vmatmul.f32.gmra.mxu1 %v13096_v20  ;;  %5318 = vmatpush.msrb.mxu0 %v687_v22  ;;  %v543_v22 = vld [vmem:[%s15424_s1 + $0x578] sm:$0xff] }
 0x72e   : > { %v4873_v15 = vpop.f32.mrf.mxu2  ;;  %5258 = vmatpush.msrb.mxu3 %v1082_v39  ;;  %5189 = vmatpush.msrb.mxu1 %v650_v16  ;;  %v1010_v39 = vld [vmem:[%s15424_s1 + $0x1410] sm:$0xff] }
 0x72f   : > { %v4874_v13 = vadd.f32 %v4873_v15, %v4808_v60  ;;  %5319 = vmatpush.msrb.mxu0 %v651_v37 }
 0x730   : > { %7761 = vmatmul.msk.f32.gmra.mxu3 %vm1232_vm0, %v13100_v40 }
 0x731   : > { %v6169_v47 = vmax.f32 %v4744_v54, %v4874_v13  ;;  %v4811_v43 = vpop.f32.mrf.mxu0  ;;  %v13496_v13 = vld [vmem:[%s8574_s21 + $0x68] sm:$0xff]  ;;  %5320 = vmatpush.msrb.mxu0 %v615_v49  ;;  %5259 = vmatpush.msrb.mxu3 %v1046_v36 }
 0x732   : > { %v4684_v24 = vpop.f32.mrf.mxu1 }
 0x733   : > { %v13426_v30 = vmax.f32 %v6169_v47, %v13105_v45  ;;  %7776 = vmatmul.msk.f32.gmra.mxu2 %vm1232_vm0, %v13400_v8  ;;  %v4749_v63 = vpop.f32.mrf.mxu3  ;;  %5321 = vmatpush.msrb.mxu0 %v579_v46 }
 0x734   : > { %5070 = vmatmul.f32.gmra.mxu0 %v13096_v20  ;;  %5260 = vmatpush.msrb.mxu3 %v1010_v39  ;;  %v13655_v39 = vld [vmem:[%s8574_s21 + $0xd8] sm:$0xff] }
 0x735   : > { %4943 = vmatmul.f32.gmra.mxu1 %v13117_v31  ;;  %5322 = vmatpush.msrb.mxu0 %v543_v22 }
 0x736   : > { %v4876_v45 = vpop.f32.mrf.mxu2 }
 0x737   : > { %v4877_v51 = vadd.f32 %v4876_v45, %v4811_v43 }
 0x738   : > { %7762 = vmatmul.msk.f32.gmra.mxu3 %vm1232_vm0, %v13121_v23 }
 0x739   : > { %v6170_v14 = vmax.f32 %v4747_v42, %v4877_v51  ;;  %v4814_v28 = vpop.f32.mrf.mxu0  ;;  %v13514_v51 = vld [vmem:[%s8574_s21 + $0x78] sm:$0xff] }
 0x73a   : > { %v4687_v6 = vpop.f32.mrf.mxu1 }
 0x73b   : > { %v13441_v62 = vmax.f32 %v6170_v14, %v13126_v59  ;;  %7777 = vmatmul.msk.f32.gmra.mxu2 %vm1232_vm0, %v13100_v40  ;;  %v4752_v20 = vpop.f32.mrf.mxu3  ;;  %v1119_v40 = vld [vmem:[%s15424_s1 + $0x1778] sm:$0xff]  ;;  %v4750_v59 = vadd.f32 %v4749_v63, %v4684_v24 }
 0x73c   : > { %5073 = vmatmul.f32.gmra.mxu0 %v13117_v31  ;;  %5387 = vmatpush.msrb.mxu2 %v1119_v40  ;;  %v4753_v11 = vadd.f32 %v4752_v20, %v4687_v6  ;;  %v614_v20 = vld [vmem:[%s15424_s1 + $0x7b0] sm:$0xff] }
 0x73d   : > { %4946 = vmatmul.f32.gmra.mxu1 %v13144_v44 }
 0x73e   : > { %v4879_v2 = vpop.f32.mrf.mxu2  ;;  %5190 = vmatpush.msrb.mxu1 %v614_v20 }
 0x73f   : > { %v4880_v48 = vadd.f32 %v4879_v2, %v4814_v28  ;;  %v13538_v2 = vld [vmem:[%s8574_s21 + $0x88] sm:$0xff] }
 0x740   : > { %7763 = vmatmul.msk.f32.gmra.mxu3 %vm1232_vm0, %v13148_v26 }
 0x741   : > { %v6171_v4 = vmax.f32 %v4750_v59, %v4880_v48  ;;  %v4817_v0 = vpop.f32.mrf.mxu0 }
 0x742   : > { %v4690_v18 = vpop.f32.mrf.mxu1 }
 0x743   : > { %v13462_v31 = vmax.f32 %v6171_v4, %v13153_v17  ;;  %7778 = vmatmul.msk.f32.gmra.mxu2 %vm1232_vm0, %v13121_v23  ;;  %v4755_v52 = vpop.f32.mrf.mxu3 }
 0x744   : > { %5076 = vmatmul.f32.gmra.mxu0 %v13144_v44 }
 0x745   : > { %4949 = vmatmul.f32.gmra.mxu1 %v13165_v5 }
 0x746   : > { %v4882_v17 = vpop.f32.mrf.mxu2 }
 0x747   : > { %v4883_v60 = vadd.f32 %v4882_v17, %v4817_v0 }
 0x748   : > { %7764 = vmatmul.msk.f32.gmra.mxu3 %vm1232_vm0, %v13169_v21 }
 0x749   : > { %v6172_v23 = vmax.f32 %v4753_v11, %v4883_v60  ;;  %v4820_v55 = vpop.f32.mrf.mxu0  ;;  %v13555_v11 = vld [vmem:[%s8574_s21 + $0x80] sm:$0xff]  ;;  %v13559_v60 = vld [vmem:[%s8574_s21 + $0x98] sm:$0xff] }
 0x74a   : > { %v4693_v9 = vpop.f32.mrf.mxu1 }
 0x74b   : > { %v13477_v27 = vmax.f32 %v6172_v23, %v13174_v10  ;;  %7779 = vmatmul.msk.f32.gmra.mxu2 %vm1232_vm0, %v13148_v26  ;;  %v4758_v44 = vpop.f32.mrf.mxu3  ;;  %v1083_v26 = vld [vmem:[%s15424_s1 + $0x1658] sm:$0xff]  ;;  %v4756_v10 = vadd.f32 %v4755_v52, %v4690_v18  ;;  %v578_v52 = vld [vmem:[%s15424_s1 + $0x690] sm:$0xff] }
 0x74c   : > { %5079 = vmatmul.f32.gmra.mxu0 %v13165_v5  ;;  %5388 = vmatpush.msrb.mxu2 %v1083_v26  ;;  %v4759_v42 = vadd.f32 %v4758_v44, %v4693_v9 }
 0x74d   : > { %4952 = vmatmul.f32.gmra.mxu1 %v13192_v58 }
 0x74e   : > { %v4885_v54 = vpop.f32.mrf.mxu2  ;;  %5191 = vmatpush.msrb.mxu1 %v578_v52  ;;  %v13634_v52 = vld [vmem:[%s8574_s21 + $0xc8] sm:$0xff] }
 0x74f   : > { %v4886_v15 = vadd.f32 %v4885_v54, %v4820_v55 }
 0x750   : > { %7765 = vmatmul.msk.f32.gmra.mxu3 %vm1232_vm0, %v13496_v13  ;;  %5192 = vmatpush.msrb.mxu1 %v542_v7  ;;  %v13651_v7 = vld [vmem:[%s8574_s21 + $0xc0] sm:$0xff] }
 0x751   : > { %v6173_v5 = vmax.f32 %v4756_v10, %v4886_v15  ;;  %v4823_v47 = vpop.f32.mrf.mxu0  ;;  %v13582_v10 = vld [vmem:[%s8574_s21 + $0x90] sm:$0xff] }
 0x752   : > { %v4696_v43 = vpop.f32.mrf.mxu1 }
 0x753   : > { %v13501_v24 = vmax.f32 %v6173_v5, %v13198_v1  ;;  %7780 = vmatmul.msk.f32.gmra.mxu2 %vm1232_vm0, %v13169_v21  ;;  %v4761_v63 = vpop.f32.mrf.mxu3  ;;  %v13586_v5 = vld [vmem:[%s8574_s21 + $0xa8] sm:$0xff] }
 0x754   : > { %5082 = vmatmul.f32.gmra.mxu0 %v13192_v58  ;;  %v4762_v35 = vadd.f32 %v4761_v63, %v4696_v43 }
 0x755   : > { %4955 = vmatmul.f32.gmra.mxu1 %v13210_v25 }
 0x756   : > { %v4888_v1 = vpop.f32.mrf.mxu2 }
 0x757   : > { %v4889_v45 = vadd.f32 %v4888_v1, %v4823_v47  ;;  %v507_v1 = vld [vmem:[%s15424_s1 + $0x458] sm:$0xff] }
 0x758   : > { %7766 = vmatmul.msk.f32.gmra.mxu3 %vm1232_vm0, %v13514_v51  ;;  %5323 = vmatpush.msrb.mxu0 %v507_v1  ;;  %v13678_v1 = vld [vmem:[%s8574_s21 + $0xd0] sm:$0xff] }
 0x759   : > { %v6174_v21 = vmax.f32 %v4759_v42, %v4889_v45  ;;  %v4826_v14 = vpop.f32.mrf.mxu0  ;;  %v506_v42 = vld [vmem:[%s15424_s1 + $0x450] sm:$0xff] }
 0x75a   : > { %v4699_v28 = vpop.f32.mrf.mxu1  ;;  %5193 = vmatpush.msrb.mxu1 %v506_v42 }
 0x75b   : > { %v13519_v6 = vmax.f32 %v6174_v21, %v13216_v3  ;;  %7781 = vmatmul.msk.f32.gmra.mxu2 %vm1232_vm0, %v13496_v13  ;;  %v4764_v58 = vpop.f32.mrf.mxu3  ;;  %v1047_v3 = vld [vmem:[%s15424_s1 + $0x1538] sm:$0xff]  ;;  %v13603_v21 = vld [vmem:[%s8574_s21 + $0xa0] sm:$0xff] }
 0x75c   : > { %5085 = vmatmul.f32.gmra.mxu0 %v13210_v25  ;;  %5389 = vmatpush.msrb.mxu2 %v1047_v3  ;;  %v4765_v61 = vadd.f32 %v4764_v58, %v4699_v28  ;;  %v13607_v28 = vld [vmem:[%s8574_s21 + $0xb8] sm:$0xff] }
 0x75d   : > { %4958 = vmatmul.f32.gmra.mxu1 %v13234_v56 }
 0x75e   : > { %v4891_v40 = vpop.f32.mrf.mxu2 }
 0x75f   : > { %v4892_v59 = vadd.f32 %v4891_v40, %v4826_v14  ;;  %v471_v40 = vld [vmem:[%s15424_s1 + $0x338] sm:$0xff] }
 0x760   : > { %7767 = vmatmul.msk.f32.gmra.mxu3 %vm1232_vm0, %v13538_v2  ;;  %5324 = vmatpush.msrb.mxu0 %v471_v40  ;;  %v940_v40 = vld [vmem:[%s15424_s1 + $0x11e0] sm:$0xff] }
 0x761   : > { %v6175_v25 = vmax.f32 %v4762_v35, %v4892_v59  ;;  %v4829_v48 = vpop.f32.mrf.mxu0  ;;  %v470_v35 = vld [vmem:[%s15424_s1 + $0x330] sm:$0xff] }
 0x762   : > { %v4702_v4 = vpop.f32.mrf.mxu1  ;;  %v974_v59 = vld [vmem:[%s15424_s1 + $0x12f0] sm:$0xff]  ;;  %5194 = vmatpush.msrb.mxu1 %v470_v35 }
 0x763   : > { %v13543_v0 = vmax.f32 %v6175_v25, %v13240_v32  ;;  %7782 = vmatmul.msk.f32.gmra.mxu2 %vm1232_vm0, %v13514_v51  ;;  %v4767_v18 = vpop.f32.mrf.mxu3  ;;  %5261 = vmatpush.msrb.mxu3 %v974_v59  ;;  %v941_v59 = vld [vmem:[%s15424_s1 + $0x11e8] sm:$0xff] }
 0x764   : > { %5088 = vmatmul.f32.gmra.mxu0 %v13234_v56  ;;  %v4768_v26 = vadd.f32 %v4767_v18, %v4702_v4 }
 0x765   : > { %4961 = vmatmul.f32.gmra.mxu1 %v13555_v11 }
 0x766   : > { %v4894_v32 = vpop.f32.mrf.mxu2 }
 0x767   : > { %v4895_v17 = vadd.f32 %v4894_v32, %v4829_v48  ;;  %v13630_v48 = vld [vmem:[%s8574_s21 + $0xb0] sm:$0xff] }
 0x768   : > { %7768 = vmatmul.msk.f32.gmra.mxu3 %vm1232_vm0, %v13559_v60 }
 0x769   : > { %v6176_v23 = vmax.f32 %v4765_v61, %v4895_v17  ;;  %v4832_v55 = vpop.f32.mrf.mxu0 }
 0x76a   : > { %v4705_v9 = vpop.f32.mrf.mxu1 }
 0x76b   : > { %v13564_v56 = vmax.f32 %v6176_v23, %v13255_v38  ;;  %7783 = vmatmul.msk.f32.gmra.mxu2 %vm1232_vm0, %v13538_v2  ;;  %v4770_v44 = vpop.f32.mrf.mxu3  ;;  %v1011_v38 = vld [vmem:[%s15424_s1 + $0x1418] sm:$0xff] }
 0x76c   : > { %5091 = vmatmul.f32.gmra.mxu0 %v13555_v11  ;;  %5390 = vmatpush.msrb.mxu2 %v1011_v38  ;;  %v4771_v45 = vadd.f32 %v4770_v44, %v4705_v9  ;;  %v435_v9 = vld [vmem:[%s15424_s1 + $0x218] sm:$0xff] }
 0x76d   : > { %4964 = vmatmul.f32.gmra.mxu1 %v13582_v10  ;;  %5325 = vmatpush.msrb.mxu0 %v435_v9  ;;  %v904_v9 = vld [vmem:[%s15424_s1 + $0x10c0] sm:$0xff] }
 0x76e   : > { %v4897_v54 = vpop.f32.mrf.mxu2 }
 0x76f   : > { %v4898_v15 = vadd.f32 %v4897_v54, %v4832_v55  ;;  %v434_v55 = vld [vmem:[%s15424_s1 + $0x210] sm:$0xff] }
 0x770   : > { %7769 = vmatmul.msk.f32.gmra.mxu3 %vm1232_vm0, %v13586_v5  ;;  %5195 = vmatpush.msrb.mxu1 %v434_v55 }
 0x771   : > { %v6177_v47 = vmax.f32 %v4768_v26, %v4898_v15  ;;  %v4835_v43 = vpop.f32.mrf.mxu0 }
 0x772   : > { %v4708_v63 = vpop.f32.mrf.mxu1 }
 0x773   : > { %v13591_v16 = vmax.f32 %v6177_v47, %v13276_v29  ;;  %7784 = vmatmul.msk.f32.gmra.mxu2 %vm1232_vm0, %v13559_v60  ;;  %v4773_v37 = vpop.f32.mrf.mxu3 }
 0x774   : > { %5094 = vmatmul.f32.gmra.mxu0 %v13582_v10  ;;  %v4774_v25 = vadd.f32 %v4773_v37, %v4708_v63  ;;  %v399_v63 = vld [vmem:[%s15424_s1 + $0xf8] sm:$0xff]  ;;  %v1228_v37 = vld [vmem:[%s15424_s1 + $0x1ae0] sm:$0xff] }
 0x775   : > { %4967 = vmatmul.f32.gmra.mxu1 %v13603_v21  ;;  %5326 = vmatpush.msrb.mxu0 %v399_v63 }
 0x776   : > { %v4900_v29 = vpop.f32.mrf.mxu2  ;;  %5514 = vmatpush.msra.mxu3 %v1228_v37 }
 0x777   : > { %v4901_v14 = vadd.f32 %v4900_v29, %v4835_v43  ;;  %v398_v43 = vld [vmem:[%s15424_s1 + $0xf0] sm:$0xff]  ;;  %5571 = vmatpush.msra.mxu0 %v941_v59 }
 0x778   : > { %7770 = vmatmul.msk.f32.gmra.mxu3 %vm1232_vm0, %v13607_v28  ;;  %5196 = vmatpush.msrb.mxu1 %v398_v43 }
 0x779   : > { %v6178_v58 = vmax.f32 %v4771_v45, %v4901_v14  ;;  %v4838_v20 = vpop.f32.mrf.mxu0  ;;  %v13682_v14 = vld [vmem:[%s8574_s21 + $0xe8] sm:$0xff] }
 0x77a   : > { %v4711_v49 = vpop.f32.mrf.mxu1  ;;  %5441 = vmatpush.msra.mxu1 %v940_v40 }
 0x77b   : > { %v13612_v36 = vmax.f32 %v6178_v58, %v13291_v19  ;;  %7785 = vmatmul.msk.f32.gmra.mxu2 %vm1232_vm0, %v13586_v5  ;;  %v4776_v3 = vpop.f32.mrf.mxu3  ;;  %v975_v19 = vld [vmem:[%s15424_s1 + $0x12f8] sm:$0xff] }
 0x77c   : > { %5097 = vmatmul.f32.gmra.mxu0 %v13603_v21  ;;  %5391 = vmatpush.msrb.mxu2 %v975_v19  ;;  %v4777_v44 = vadd.f32 %v4776_v3, %v4711_v49 }
 0x77d   : > { %4970 = vmatmul.f32.gmra.mxu1 %v13630_v48 }
 0x77e   : > { %v4903_v4 = vpop.f32.mrf.mxu2  ;;  %5442 = vmatpush.msra.mxu1 %v904_v9  ;;  %v13772_v9 = vld [vmem:[%s8574_s21 + $0x28] sm:$0xff] }
 0x77f   : > { %v4904_v18 = vadd.f32 %v4903_v4, %v4838_v20 }
 0x780   : > { %7771 = vmatmul.msk.f32.gmra.mxu3 %vm1232_vm0, %v13634_v52 }
 0x781   : > { %v6179_v46 = vmax.f32 %v4774_v25, %v4904_v18  ;;  %v4841_v61 = vpop.f32.mrf.mxu0  ;;  %v13699_v25 = vld [vmem:[%s8574_s21 + $0xe0] sm:$0xff]  ;;  %v13703_v18 = vld [vmem:[%s8574_s21 + $0xf8] sm:$0xff] }
 0x782   : > { %v4714_v32 = vpop.f32.mrf.mxu1 }
 0x783   : > { %v13639_v17 = vmax.f32 %v6179_v46, %v13312_v34  ;;  %7786 = vmatmul.msk.f32.gmra.mxu2 %vm1232_vm0, %v13607_v28  ;;  %v4779_v23 = vpop.f32.mrf.mxu3 }
 0x784   : > { %5100 = vmatmul.f32.gmra.mxu0 %v13630_v48  ;;  %v4780_v42 = vadd.f32 %v4779_v23, %v4714_v32 }
 0x785   : > { %4973 = vmatmul.f32.gmra.mxu1 %v13651_v7 }
 0x786   : > { %v4906_v34 = vpop.f32.mrf.mxu2 }
 0x787   : > { %v4907_v22 = vadd.f32 %v4906_v34, %v4841_v61  ;;  %v1192_v34 = vld [vmem:[%s15424_s1 + $0x19c0] sm:$0xff] }
 0x788   : > { %7772 = vmatmul.msk.f32.gmra.mxu3 %vm1232_vm0, %v13655_v39 }
 0x789   : > { %v6180_v38 = vmax.f32 %v4777_v44, %v4907_v22  ;;  %v4844_v26 = vpop.f32.mrf.mxu0  ;;  %v905_v44 = vld [vmem:[%s15424_s1 + $0x10c8] sm:$0xff]  ;;  %5515 = vmatpush.msra.mxu3 %v1192_v34 }
 0x78a   : > { %v4717_v54 = vpop.f32.mrf.mxu1  ;;  %5572 = vmatpush.msra.mxu0 %v905_v44 }
 0x78b   : > { %v13660_v15 = vmax.f32 %v6180_v38, %v13327_v33  ;;  %7787 = vmatmul.msk.f32.gmra.mxu2 %vm1232_vm0, %v13634_v52  ;;  %v4782_v47 = vpop.f32.mrf.mxu3  ;;  %v1229_v33 = vld [vmem:[%s15424_s1 + $0x1ae8] sm:$0xff]  ;;  %v13726_v38 = vld [vmem:[%s8574_s21 + $0xf0] sm:$0xff] }
 0x78c   : > { %5103 = vmatmul.f32.gmra.mxu0 %v13651_v7  ;;  %5644 = vmatpush.msra.mxu2 %v1229_v33  ;;  %v4783_v19 = vadd.f32 %v4782_v47, %v4717_v54 }
 0x78d   : > { %4976 = vmatmul.f32.gmra.mxu1 %v13678_v1 }
 0x78e   : > { %v4909_v45 = vpop.f32.mrf.mxu2 }
 0x78f   : > { %v4910_v29 = vadd.f32 %v4909_v45, %v4844_v26  ;;  %v869_v45 = vld [vmem:[%s15424_s1 + $0xfa8] sm:$0xff] }
 0x790   : > { %7773 = vmatmul.msk.f32.gmra.mxu3 %vm1232_vm0, %v13682_v14  ;;  %5573 = vmatpush.msra.mxu0 %v869_v45 }
 0x791   : > { %v6181_v58 = vmax.f32 %v4780_v42, %v4910_v29  ;;  %v4847_v20 = vpop.f32.mrf.mxu0  ;;  %v868_v42 = vld [vmem:[%s15424_s1 + $0xfa0] sm:$0xff] }
 0x792   : > { %v4720_v49 = vpop.f32.mrf.mxu1  ;;  %5443 = vmatpush.msra.mxu1 %v868_v42 }
 0x793   : > { %v13687_v3 = vmax.f32 %v6181_v58, %v13348_v12  ;;  %7788 = vmatmul.msk.f32.gmra.mxu2 %vm1232_vm0, %v13655_v39  ;;  %v4785_v35 = vpop.f32.mrf.mxu3  ;;  %v13744_v58 = vld [vmem:[%s8574_s21] sm:$0xff] }
 0x794   : > { %5106 = vmatmul.f32.gmra.mxu0 %v13678_v1  ;;  %v4786_v22 = vadd.f32 %v4785_v35, %v4720_v49 }
 0x795   : > { %4979 = vmatmul.f32.gmra.mxu1 %v13699_v25 }
 0x796   : > { %v4912_v12 = vpop.f32.mrf.mxu2 }
 0x797   : > { %v4913_v4 = vadd.f32 %v4912_v12, %v4847_v20  ;;  %v832_v12 = vld [vmem:[%s15424_s1 + $0xe80] sm:$0xff] }
 0x798   : > { %7774 = vmatmul.msk.f32.gmra.mxu3 %vm1232_vm0, %v13703_v18  ;;  %5444 = vmatpush.msra.mxu1 %v832_v12  ;;  %v13816_v12 = vld [vmem:[%s8574_s21 + $0x30] sm:$0xff] }
 0x799   : > { %v6182_v46 = vmax.f32 %v4783_v19, %v4913_v4  ;;  %v4850_v61 = vpop.f32.mrf.mxu0  ;;  %v833_v4 = vld [vmem:[%s15424_s1 + $0xe88] sm:$0xff] }
 0x79a   : > { %v4723_v32 = vpop.f32.mrf.mxu1  ;;  %5574 = vmatpush.msra.mxu0 %v833_v4 }
 0x79b   : > { %v13708_v23 = vmax.f32 %v6182_v46, %v13363_v53  ;;  %7789 = vmatmul.msk.f32.gmra.mxu2 %vm1232_vm0, %v13682_v14  ;;  %v4788_v55 = vpop.f32.mrf.mxu3  ;;  %v1193_v53 = vld [vmem:[%s15424_s1 + $0x19c8] sm:$0xff]  ;;  %v1156_v46 = vld [vmem:[%s15424_s1 + $0x18a0] sm:$0xff] }
 0x79c   : > { %5109 = vmatmul.f32.gmra.mxu0 %v13699_v25  ;;  %5645 = vmatpush.msra.mxu2 %v1193_v53  ;;  %v4789_v29 = vadd.f32 %v4788_v55, %v4723_v32 }
 0x79d   : > { %4982 = vmatmul.f32.gmra.mxu1 %v13726_v38  ;;  %5516 = vmatpush.msra.mxu3 %v1156_v46 }
 0x79e   : > { %v4915_v26 = vpop.f32.mrf.mxu2 }
 0x79f   : > { %v4916_v54 = vadd.f32 %v4915_v26, %v4850_v61  ;;  %v13768_v61 = vld [vmem:[%s8574_s21 + $0x10] sm:$0xff] }
 0x7a0   : > { %7791 = vmatmul.msk.f32.vlgmr.msrb.gmra.mxu3 %vm1232_vm0, %v13382_v50 }
 0x7a1   : > { %v6183_v47 = vmax.f32 %v4786_v22, %v4916_v54  ;;  %v4853_v43 = vpop.f32.mrf.mxu0  ;;  %v796_v54 = vld [vmem:[%s15424_s1 + $0xd60] sm:$0xff] }
 0x7a2   : > { %v4938_v63 = vpop.f32.mrf.mxu1  ;;  %5445 = vmatpush.msra.mxu1 %v796_v54 }
 0x7a3   : > { %v13732_v37 = vmax.f32 %v6183_v47, %v13387_v57  ;;  %7790 = vmatmul.msk.f32.gmra.mxu2 %vm1232_vm0, %v13703_v18  ;;  %v5003_v33 = vpop.f32.mrf.mxu3  ;;  %v797_v47 = vld [vmem:[%s15424_s1 + $0xd68] sm:$0xff] }
 0x7a4   : > { %5112 = vmatmul.f32.gmra.mxu0 %v13726_v38 }
 0x7a5   : > { %5197 = vmatmul.f32.vlgmr.msrb.gmra.mxu1 %v13744_v58  ;;  %5575 = vmatpush.msra.mxu0 %v797_v47  ;;  %v13837_v47 = vld [vmem:[%s8574_s21 + $0x40] sm:$0xff] }
 0x7a6   : > { %v4918_v57 = vpop.f32.mrf.mxu2 }
 0x7a7   : > { %v4919_v20 = vadd.f32 %v4918_v57, %v4853_v43 }
 0x7a8   : > { %7792 = vmatmul.msk.f32.gmra.mxu3 %vm1232_vm0, %v13400_v8 }
 0x7a9   : > { %v6184_v49 = vmax.f32 %v4789_v29, %v4919_v20  ;;  %v5068_v35 = vpop.f32.mrf.mxu0 }
 0x7aa   : > { %v4941_v40 = vpop.f32.mrf.mxu1 }
 0x7ab   : > { %v13750_v59 = vmax.f32 %v6184_v49, %v13405_v41  ;;  %7807 = vmatmul.msk.f32.vlgmr.msrb.gmra.mxu2 %vm1232_vm0, %v13382_v50  ;;  %v5006_v19 = vpop.f32.mrf.mxu3  ;;  %v1157_v50 = vld [vmem:[%s15424_s1 + $0x18a8] sm:$0xff]  ;;  %v5004_v41 = vadd.f32 %v5003_v33, %v4938_v63  ;;  %v13789_v63 = vld [vmem:[%s8574_s21 + $0x20] sm:$0xff]  ;;  %v13793_v33 = vld [vmem:[%s8574_s21 + $0x38] sm:$0xff] }
 0x7ac   : > { %5327 = vmatmul.f32.vlgmr.msrb.gmra.mxu0 %v13744_v58  ;;  %5646 = vmatpush.msra.mxu2 %v1157_v50  ;;  %v5007_v43 = vadd.f32 %v5006_v19, %v4941_v40  ;;  %v760_v49 = vld [vmem:[%s15424_s1 + $0xc40] sm:$0xff]  ;;  %v13820_v50 = vld [vmem:[%s8574_s21 + $0x48] sm:$0xff] }
 0x7ad   : > { %5200 = vmatmul.f32.gmra.mxu1 %v13768_v61  ;;  %v1120_v40 = vld [vmem:[%s15424_s1 + $0x1780] sm:$0xff] }
 0x7ae   : > { %v5133_v32 = vpop.f32.mrf.mxu2  ;;  %5446 = vmatpush.msra.mxu1 %v760_v49  ;;  %5517 = vmatpush.msra.mxu3 %v1120_v40  ;;  %v1084_v40 = vld [vmem:[%s15424_s1 + $0x1660] sm:$0xff] }
 0x7af   : > { %v5134_v55 = vadd.f32 %v5133_v32, %v5068_v35  ;;  %v761_v35 = vld [vmem:[%s15424_s1 + $0xc48] sm:$0xff] }
 0x7b0   : > { %7793 = vmatmul.msk.f32.gmra.mxu3 %vm1232_vm0, %v13772_v9  ;;  %5576 = vmatpush.msra.mxu0 %v761_v35  ;;  %v689_v35 = vld [vmem:[%s15424_s1 + $0xa08] sm:$0xff] }
 0x7b1   : > { %v6185_v44 = vmax.f32 %v5004_v41, %v5134_v55  ;;  %v5071_v34 = vpop.f32.mrf.mxu0  ;;  %5518 = vmatpush.msra.mxu3 %v1084_v40 }
 0x7b2   : > { %v4944_v53 = vpop.f32.mrf.mxu1 }
 0x7b3   : > { %v13777_v22 = vmax.f32 %v6185_v44, %v13426_v30  ;;  %7808 = vmatmul.msk.f32.gmra.mxu2 %vm1232_vm0, %v13400_v8  ;;  %v5009_v26 = vpop.f32.mrf.mxu3 }
 0x7b4   : > { %5330 = vmatmul.f32.gmra.mxu0 %v13768_v61  ;;  %v5010_v19 = vadd.f32 %v5009_v26, %v4944_v53  ;;  %v724_v53 = vld [vmem:[%s15424_s1 + $0xb20] sm:$0xff]  ;;  %v725_v26 = vld [vmem:[%s15424_s1 + $0xb28] sm:$0xff] }
 0x7b5   : > { %5203 = vmatmul.f32.gmra.mxu1 %v13789_v63  ;;  %5577 = vmatpush.msra.mxu0 %v725_v26 }
 0x7b6   : > { %v5136_v30 = vpop.f32.mrf.mxu2  ;;  %5447 = vmatpush.msra.mxu1 %v724_v53 }
 0x7b7   : > { %v5137_v8 = vadd.f32 %v5136_v30, %v5071_v34  ;;  %v13841_v30 = vld [vmem:[%s8574_s21 + $0x58] sm:$0xff]  ;;  %5578 = vmatpush.msra.mxu0 %v689_v35 }
 0x7b8   : > { %7794 = vmatmul.msk.f32.gmra.mxu3 %vm1232_vm0, %v13793_v33 }
 0x7b9   : > { %v6186_v42 = vmax.f32 %v5007_v43, %v5137_v8  ;;  %v5074_v45 = vpop.f32.mrf.mxu0 }
 0x7ba   : > { %v4947_v29 = vpop.f32.mrf.mxu1 }
 0x7bb   : > { %v13798_v57 = vmax.f32 %v6186_v42, %v13441_v62  ;;  %7809 = vmatmul.msk.f32.gmra.mxu2 %vm1232_vm0, %v13772_v9  ;;  %v5012_v20 = vpop.f32.mrf.mxu3  ;;  %v1121_v62 = vld [vmem:[%s15424_s1 + $0x1788] sm:$0xff] }
 0x7bc   : > { %5333 = vmatmul.f32.gmra.mxu0 %v13789_v63  ;;  %5647 = vmatpush.msra.mxu2 %v1121_v62  ;;  %v5013_v54 = vadd.f32 %v5012_v20, %v4947_v29  ;;  %v688_v20 = vld [vmem:[%s15424_s1 + $0xa00] sm:$0xff] }
 0x7bd   : > { %5206 = vmatmul.f32.gmra.mxu1 %v13816_v12 }
 0x7be   : > { %v5139_v4 = vpop.f32.mrf.mxu2  ;;  %5448 = vmatpush.msra.mxu1 %v688_v20 }
 0x7bf   : > { %v5140_v46 = vadd.f32 %v5139_v4, %v5074_v45 }
 0x7c0   : > { %7795 = vmatmul.msk.f32.gmra.mxu3 %vm1232_vm0, %v13820_v50 }
 0x7c1   : > { %v6187_v41 = vmax.f32 %v5010_v19, %v5140_v46  ;;  %v5077_v32 = vpop.f32.mrf.mxu0  ;;  %v13864_v19 = vld [vmem:[%s8574_s21 + $0x50] sm:$0xff] }
 0x7c2   : > { %v4950_v55 = vpop.f32.mrf.mxu1 }
 0x7c3   : > { %v13825_v44 = vmax.f32 %v6187_v41, %v13462_v31  ;;  %7810 = vmatmul.msk.f32.gmra.mxu2 %vm1232_vm0, %v13793_v33  ;;  %v5015_v34 = vpop.f32.mrf.mxu3 }
 0x7c4   : > { %5336 = vmatmul.f32.gmra.mxu0 %v13816_v12  ;;  %v5016_v62 = vadd.f32 %v5015_v34, %v4950_v55  ;;  %v652_v34 = vld [vmem:[%s15424_s1 + $0x8e0] sm:$0xff] }
 0x7c5   : > { %5209 = vmatmul.f32.gmra.mxu1 %v13837_v47 }
 0x7c6   : > { %v5142_v31 = vpop.f32.mrf.mxu2  ;;  %5449 = vmatpush.msra.mxu1 %v652_v34 }
 0x7c7   : > { %v5143_v43 = vadd.f32 %v5142_v31, %v5077_v32 }
 0x7c8   : > { %7796 = vmatmul.msk.f32.gmra.mxu3 %vm1232_vm0, %v13841_v30 }
 0x7c9   : > { %v6188_v8 = vmax.f32 %v5013_v54, %v5143_v43  ;;  %v5080_v42 = vpop.f32.mrf.mxu0  ;;  %v653_v54 = vld [vmem:[%s15424_s1 + $0x8e8] sm:$0xff]  ;;  %v13882_v43 = vld [vmem:[%s8574_s21 + $0x60] sm:$0xff] }
 0x7ca   : > { %v4953_v45 = vpop.f32.mrf.mxu1  ;;  %5579 = vmatpush.msra.mxu0 %v653_v54 }
 0x7cb   : > { %v13846_v49 = vmax.f32 %v6188_v8, %v13477_v27  ;;  %7811 = vmatmul.msk.f32.gmra.mxu2 %vm1232_vm0, %v13820_v50  ;;  %v5018_v29 = vpop.f32.mrf.mxu3  ;;  %v1085_v27 = vld [vmem:[%s15424_s1 + $0x1668] sm:$0xff] }
 0x7cc   : > { %5339 = vmatmul.f32.gmra.mxu0 %v13837_v47  ;;  %5648 = vmatpush.msra.mxu2 %v1085_v27  ;;  %v5019_v31 = vadd.f32 %v5018_v29, %v4953_v45  ;;  %v616_v29 = vld [vmem:[%s15424_s1 + $0x7c0] sm:$0xff]  ;;  %v617_v27 = vld [vmem:[%s15424_s1 + $0x7c8] sm:$0xff] }
 0x7cd   : > { %5212 = vmatmul.f32.gmra.mxu1 %v13864_v19  ;;  %5580 = vmatpush.msra.mxu0 %v617_v27 }
 0x7ce   : > { %v5145_v4 = vpop.f32.mrf.mxu2  ;;  %5450 = vmatpush.msra.mxu1 %v616_v29 }
 0x7cf   : > { %v5146_v46 = vadd.f32 %v5145_v4, %v5080_v42  ;;  %v13906_v4 = vld [vmem:[%s8574_s21 + $0x70] sm:$0xff] }
 0x7d0   : > { %7797 = vmatmul.msk.f32.gmra.mxu3 %vm1232_vm0, %v13496_v13 }
 0x7d1   : > { %v6189_v41 = vmax.f32 %v5016_v62, %v5146_v46  ;;  %v5083_v32 = vpop.f32.mrf.mxu0  ;;  %v1048_v62 = vld [vmem:[%s15424_s1 + $0x1540] sm:$0xff] }
 0x7d2   : > { %v4956_v53 = vpop.f32.mrf.mxu1  ;;  %5519 = vmatpush.msra.mxu3 %v1048_v62 }
 0x7d3   : > { %v13870_v26 = vmax.f32 %v6189_v41, %v13501_v24  ;;  %7812 = vmatmul.msk.f32.gmra.mxu2 %vm1232_vm0, %v13841_v30  ;;  %v5021_v55 = vpop.f32.mrf.mxu3 }
 0x7d4   : > { %5342 = vmatmul.f32.gmra.mxu0 %v13864_v19 }
 0x7d5   : > { %5215 = vmatmul.f32.gmra.mxu1 %v13882_v43 }
 0x7d6   : > { %v5148_v24 = vpop.f32.mrf.mxu2 }
 0x7d7   : > { %v5149_v8 = vadd.f32 %v5148_v24, %v5083_v32  ;;  %v581_v24 = vld [vmem:[%s15424_s1 + $0x6a8] sm:$0xff] }
 0x7d8   : > { %7798 = vmatmul.msk.f32.gmra.mxu3 %vm1232_vm0, %v13514_v51  ;;  %5581 = vmatpush.msra.mxu0 %v581_v24 }
 0x7d9   : > { %v6190_v42 = vmax.f32 %v5019_v31, %v5149_v8  ;;  %v5086_v20 = vpop.f32.mrf.mxu0 }
 0x7da   : > { %v4959_v35 = vpop.f32.mrf.mxu1 }
 0x7db   : > { %v13888_v40 = vmax.f32 %v6190_v42, %v13519_v6  ;;  %7813 = vmatmul.msk.f32.gmra.mxu2 %vm1232_vm0, %v13496_v13  ;;  %v5024_v45 = vpop.f32.mrf.mxu3  ;;  %v1049_v13 = vld [vmem:[%s15424_s1 + $0x1548] sm:$0xff]  ;;  %v5022_v6 = vadd.f32 %v5021_v55, %v4956_v53  ;;  %v580_v55 = vld [vmem:[%s15424_s1 + $0x6a0] sm:$0xff] }
 0x7dc   : > { %5345 = vmatmul.f32.gmra.mxu0 %v13882_v43  ;;  %5649 = vmatpush.msra.mxu2 %v1049_v13  ;;  %v5025_v8 = vadd.f32 %v5024_v45, %v4959_v35  ;;  %v544_v35 = vld [vmem:[%s15424_s1 + $0x580] sm:$0xff]  ;;  %v545_v45 = vld [vmem:[%s15424_s1 + $0x588] sm:$0xff] }
 0x7dd   : > { %5218 = vmatmul.f32.gmra.mxu1 %v13906_v4  ;;  %v1012_v13 = vld [vmem:[%s15424_s1 + $0x1420] sm:$0xff]  ;;  %5582 = vmatpush.msra.mxu0 %v545_v45 }
 0x7de   : > { %v5151_v46 = vpop.f32.mrf.mxu2  ;;  %5451 = vmatpush.msra.mxu1 %v580_v55  ;;  %5520 = vmatpush.msra.mxu3 %v1012_v13  ;;  %v509_v55 = vld [vmem:[%s15424_s1 + $0x468] sm:$0xff] }
 0x7df   : > { %v5152_v41 = vadd.f32 %v5151_v46, %v5086_v20  ;;  %5583 = vmatpush.msra.mxu0 %v509_v55 }
 0x7e0   : > { %7799 = vmatmul.msk.f32.gmra.mxu3 %vm1232_vm0, %v13538_v2  ;;  %5452 = vmatpush.msra.mxu1 %v544_v35 }
 0x7e1   : > { %v6191_v32 = vmax.f32 %v5022_v6, %v5152_v41  ;;  %v5089_v34 = vpop.f32.mrf.mxu0 }
 0x7e2   : > { %v4962_v54 = vpop.f32.mrf.mxu1 }
 0x7e3   : > { %v13912_v31 = vmax.f32 %v6191_v32, %v13543_v0  ;;  %7814 = vmatmul.msk.f32.gmra.mxu2 %vm1232_vm0, %v13514_v51  ;;  %v5027_v53 = vpop.f32.mrf.mxu3 }
 0x7e4   : > { %5348 = vmatmul.f32.gmra.mxu0 %v13906_v4 }
 0x7e5   : > { %5221 = vmatmul.f32.gmra.mxu1 %v13555_v11 }
 0x7e6   : > { %v5154_v0 = vpop.f32.mrf.mxu2 }
 0x7e7   : > { %v5155_v42 = vadd.f32 %v5154_v0, %v5089_v34 }
 0x7e8   : > { %7800 = vmatmul.msk.f32.gmra.mxu3 %vm1232_vm0, %v13559_v60 }
 0x7e9   : > { %v6192_v51 = vmax.f32 %v5025_v8, %v5155_v42  ;;  %v5092_v20 = vpop.f32.mrf.mxu0 }
 0x7ea   : > { %v4965_v29 = vpop.f32.mrf.mxu1 }
 0x7eb   : > { %v13927_v27 = vmax.f32 %v6192_v51, %v13564_v56  ;;  %7815 = vmatmul.msk.f32.gmra.mxu2 %vm1232_vm0, %v13538_v2  ;;  %v5030_v62 = vpop.f32.mrf.mxu3  ;;  %v1013_v2 = vld [vmem:[%s15424_s1 + $0x1428] sm:$0xff]  ;;  %v5028_v56 = vadd.f32 %v5027_v53, %v4962_v54  ;;  %v508_v53 = vld [vmem:[%s15424_s1 + $0x460] sm:$0xff] }
 0x7ec   : > { %5351 = vmatmul.f32.gmra.mxu0 %v13555_v11  ;;  %5650 = vmatpush.msra.mxu2 %v1013_v2  ;;  %v5031_v24 = vadd.f32 %v5030_v62, %v4965_v29  ;;  %v473_v29 = vld [vmem:[%s15424_s1 + $0x348] sm:$0xff]  ;;  %v976_v62 = vld [vmem:[%s15424_s1 + $0x1300] sm:$0xff] }
 0x7ed   : > { %5224 = vmatmul.f32.gmra.mxu1 %v13582_v10  ;;  %5584 = vmatpush.msra.mxu0 %v473_v29 }
 0x7ee   : > { %v5157_v6 = vpop.f32.mrf.mxu2  ;;  %5453 = vmatpush.msra.mxu1 %v508_v53  ;;  %5521 = vmatpush.msra.mxu3 %v976_v62  ;;  %v942_v62 = vld [vmem:[%s15424_s1 + $0x11f0] sm:$0xff] }
 0x7ef   : > { %v5158_v46 = vadd.f32 %v5157_v6, %v5092_v20  ;;  %v472_v20 = vld [vmem:[%s15424_s1 + $0x340] sm:$0xff] }
 0x7f0   : > { %7801 = vmatmul.msk.f32.gmra.mxu3 %vm1232_vm0, %v13586_v5  ;;  %5454 = vmatpush.msra.mxu1 %v472_v20 }
 0x7f1   : > { %v6193_v41 = vmax.f32 %v5028_v56, %v5158_v46  ;;  %v5095_v32 = vpop.f32.mrf.mxu0  ;;  %v436_v46 = vld [vmem:[%s15424_s1 + $0x220] sm:$0xff] }
 0x7f2   : > { %v4968_v34 = vpop.f32.mrf.mxu1  ;;  %5455 = vmatpush.msra.mxu1 %v436_v46  ;;  %v1194_v46 = vld [vmem:[%s15424_s1 + $0x19d0] sm:$0xff] }
 0x7f3   : > { %v13948_v11 = vmax.f32 %v6193_v41, %v13591_v16  ;;  %7816 = vmatmul.msk.f32.gmra.mxu2 %vm1232_vm0, %v13559_v60  ;;  %v5033_v54 = vpop.f32.mrf.mxu3  ;;  %v437_v41 = vld [vmem:[%s15424_s1 + $0x228] sm:$0xff] }
 0x7f4   : > { %5354 = vmatmul.f32.gmra.mxu0 %v13582_v10 }
 0x7f5   : > { %5227 = vmatmul.f32.gmra.mxu1 %v13603_v21  ;;  %5585 = vmatpush.msra.mxu0 %v437_v41 }
 0x7f6   : > { %v5160_v16 = vpop.f32.mrf.mxu2 }
 0x7f7   : > { %v5161_v8 = vadd.f32 %v5160_v16, %v5095_v32  ;;  %v401_v16 = vld [vmem:[%s15424_s1 + $0x108] sm:$0xff] }
 0x7f8   : > { %7802 = vmatmul.msk.f32.gmra.mxu3 %vm1232_vm0, %v13607_v28  ;;  %5586 = vmatpush.msra.mxu0 %v401_v16 }
 0x7f9   : > { %v6194_v60 = vmax.f32 %v5031_v24, %v5161_v8  ;;  %v5098_v0 = vpop.f32.mrf.mxu0  ;;  %v400_v24 = vld [vmem:[%s15424_s1 + $0x100] sm:$0xff]  ;;  %v1230_v8 = vld [vmem:[%s15424_s1 + $0x1af0] sm:$0xff] }
 0x7fa   : > { %v4971_v42 = vpop.f32.mrf.mxu1  ;;  %5456 = vmatpush.msra.mxu1 %v400_v24  ;;  %5774 = vmatpush.msrb.mxu3 %v1230_v8  ;;  %v871_v24 = vld [vmem:[%s15424_s1 + $0xfb8] sm:$0xff] }
 0x7fb   : > { %v13963_v51 = vmax.f32 %v6194_v60, %v13612_v36  ;;  %7817 = vmatmul.msk.f32.gmra.mxu2 %vm1232_vm0, %v13586_v5  ;;  %v5036_v10 = vpop.f32.mrf.mxu3  ;;  %v977_v5 = vld [vmem:[%s15424_s1 + $0x1308] sm:$0xff]  ;;  %v5034_v36 = vadd.f32 %v5033_v54, %v4968_v34 }
 0x7fc   : > { %5357 = vmatmul.f32.gmra.mxu0 %v13603_v21  ;;  %5651 = vmatpush.msra.mxu2 %v977_v5  ;;  %v5037_v32 = vadd.f32 %v5036_v10, %v4971_v42  ;;  %v943_v5 = vld [vmem:[%s15424_s1 + $0x11f8] sm:$0xff] }
 0x7fd   : > { %5230 = vmatmul.f32.gmra.mxu1 %v13630_v48  ;;  %5831 = vmatpush.msrb.mxu0 %v943_v5 }
 0x7fe   : > { %v5163_v35 = vpop.f32.mrf.mxu2  ;;  %5701 = vmatpush.msrb.mxu1 %v942_v62  ;;  %5775 = vmatpush.msrb.mxu3 %v1194_v46 }
 0x7ff   : > { %v5164_v45 = vadd.f32 %v5163_v35, %v5098_v0 }
 0x800   : > { %7803 = vmatmul.msk.f32.gmra.mxu3 %vm1232_vm0, %v13634_v52 }
 0x801   : > { %v6195_v13 = vmax.f32 %v5034_v36, %v5164_v45  ;;  %v5101_v2 = vpop.f32.mrf.mxu0 }
 0x802   : > { %v4974_v56 = vpop.f32.mrf.mxu1 }
 0x803   : > { %v13984_v21 = vmax.f32 %v6195_v13, %v13639_v17  ;;  %7818 = vmatmul.msk.f32.gmra.mxu2 %vm1232_vm0, %v13607_v28  ;;  %v5039_v6 = vpop.f32.mrf.mxu3 }
 0x804   : > { %5360 = vmatmul.f32.gmra.mxu0 %v13630_v48 }
 0x805   : > { %5233 = vmatmul.f32.gmra.mxu1 %v13651_v7 }
 0x806   : > { %v5166_v17 = vpop.f32.mrf.mxu2 }
 0x807   : > { %v5167_v34 = vadd.f32 %v5166_v17, %v5101_v2  ;;  %v14054_v17 = vld [vmem:[%s8574_s21 + $0x8] sm:$0xff] }
 0x808   : > { %7804 = vmatmul.msk.f32.gmra.mxu3 %vm1232_vm0, %v13655_v39 }
 0x809   : > { %v6196_v28 = vmax.f32 %v5037_v32, %v5167_v34  ;;  %v5104_v54 = vpop.f32.mrf.mxu0 }
 0x80a   : > { %v4977_v53 = vpop.f32.mrf.mxu1 }
 0x80b   : > { %v13999_v55 = vmax.f32 %v6196_v28, %v13660_v15  ;;  %7819 = vmatmul.msk.f32.gmra.mxu2 %vm1232_vm0, %v13634_v52  ;;  %v5042_v48 = vpop.f32.mrf.mxu3  ;;  %v1231_v52 = vld [vmem:[%s15424_s1 + $0x1af8] sm:$0xff]  ;;  %v5040_v15 = vadd.f32 %v5039_v6, %v4974_v56  ;;  %v906_v56 = vld [vmem:[%s15424_s1 + $0x10d0] sm:$0xff] }
 0x80c   : > { %5363 = vmatmul.f32.gmra.mxu0 %v13651_v7  ;;  %5904 = vmatpush.msrb.mxu2 %v1231_v52  ;;  %v5043_v36 = vadd.f32 %v5042_v48, %v4977_v53  ;;  %v907_v6 = vld [vmem:[%s15424_s1 + $0x10d8] sm:$0xff]  ;;  %v870_v48 = vld [vmem:[%s15424_s1 + $0xfb0] sm:$0xff] }
 0x80d   : > { %5236 = vmatmul.f32.gmra.mxu1 %v13678_v1  ;;  %5832 = vmatpush.msrb.mxu0 %v907_v6  ;;  %v14072_v52 = vld [vmem:[%s8574_s21 + $0x18] sm:$0xff] }
 0x80e   : > { %v5169_v60 = vpop.f32.mrf.mxu2  ;;  %5702 = vmatpush.msrb.mxu1 %v906_v56 }
 0x80f   : > { %v5170_v0 = vadd.f32 %v5169_v60, %v5104_v54  ;;  %5833 = vmatpush.msrb.mxu0 %v871_v24 }
 0x810   : > { %7805 = vmatmul.msk.f32.gmra.mxu3 %vm1232_vm0, %v13682_v14  ;;  %5703 = vmatpush.msrb.mxu1 %v870_v48 }
 0x811   : > { %v6197_v42 = vmax.f32 %v5040_v15, %v5170_v0  ;;  %v5107_v10 = vpop.f32.mrf.mxu0 }
 0x812   : > { %v4980_v20 = vpop.f32.mrf.mxu1 }
 0x813   : > { %v14020_v7 = vmax.f32 %v6197_v42, %v13687_v3  ;;  %7820 = vmatmul.msk.f32.gmra.mxu2 %vm1232_vm0, %v13655_v39  ;;  %v5045_v29 = vpop.f32.mrf.mxu3  ;;  %v834_v42 = vld [vmem:[%s15424_s1 + $0xe90] sm:$0xff] }
 0x814   : > { %5366 = vmatmul.f32.gmra.mxu0 %v13678_v1  ;;  %5704 = vmatpush.msrb.mxu1 %v834_v42 }
 0x815   : > { %5239 = vmatmul.f32.gmra.mxu1 %v13699_v25 }
 0x816   : > { %v5172_v3 = vpop.f32.mrf.mxu2 }
 0x817   : > { %v5173_v35 = vadd.f32 %v5172_v3, %v5107_v10  ;;  %v835_v10 = vld [vmem:[%s15424_s1 + $0xe98] sm:$0xff] }
 0x818   : > { %7806 = vmatmul.msk.f32.gmra.mxu3 %vm1232_vm0, %v13703_v18  ;;  %5834 = vmatpush.msrb.mxu0 %v835_v10  ;;  %v690_v10 = vld [vmem:[%s15424_s1 + $0xa10] sm:$0xff] }
 0x819   : > { %v6198_v39 = vmax.f32 %v5043_v36, %v5173_v35  ;;  %v5110_v45 = vpop.f32.mrf.mxu0 }
 0x81a   : > { %v4983_v13 = vpop.f32.mrf.mxu1 }
 0x81b   : > { %v14035_v2 = vmax.f32 %v6198_v39, %v13708_v23  ;;  %7821 = vmatmul.msk.f32.gmra.mxu2 %vm1232_vm0, %v13682_v14  ;;  %v5048_v1 = vpop.f32.mrf.mxu3  ;;  %v1195_v14 = vld [vmem:[%s15424_s1 + $0x19d8] sm:$0xff]  ;;  %v5046_v23 = vadd.f32 %v5045_v29, %v4980_v20  ;;  %v1158_v20 = vld [vmem:[%s15424_s1 + $0x18b0] sm:$0xff] }
 0x81c   : > { %5369 = vmatmul.f32.gmra.mxu0 %v13699_v25  ;;  %5905 = vmatpush.msrb.mxu2 %v1195_v14  ;;  %v5049_v16 = vadd.f32 %v5048_v1, %v4983_v13  ;;  %v799_v13 = vld [vmem:[%s15424_s1 + $0xd78] sm:$0xff] }
 0x81d   : > { %5242 = vmatmul.f32.gmra.mxu1 %v13726_v38  ;;  %5776 = vmatpush.msrb.mxu3 %v1158_v20  ;;  %v691_v20 = vld [vmem:[%s15424_s1 + $0xa18] sm:$0xff] }
 0x81e   : > { %v5175_v41 = vpop.f32.mrf.mxu2  ;;  %5835 = vmatpush.msrb.mxu0 %v799_v13  ;;  %v655_v13 = vld [vmem:[%s15424_s1 + $0x8f8] sm:$0xff] }
 0x81f   : > { %v5176_v32 = vadd.f32 %v5175_v41, %v5110_v45  ;;  %v798_v45 = vld [vmem:[%s15424_s1 + $0xd70] sm:$0xff] }
 0x820   : > { %7823 = vmatmul.msk.f32.vlgmr.msra.gmra.mxu3 %vm1232_vm0, %v14054_v17  ;;  %5705 = vmatpush.msrb.mxu1 %v798_v45  ;;  %v762_v41 = vld [vmem:[%s15424_s1 + $0xc50] sm:$0xff] }
 0x821   : > { %v6199_v25 = vmax.f32 %v5046_v23, %v5176_v32  ;;  %v5113_v34 = vpop.f32.mrf.mxu0  ;;  %v763_v32 = vld [vmem:[%s15424_s1 + $0xc58] sm:$0xff]  ;;  %v654_v45 = vld [vmem:[%s15424_s1 + $0x8f0] sm:$0xff] }
 0x822   : > { %v5198_v28 = vpop.f32.mrf.mxu1  ;;  %5706 = vmatpush.msrb.mxu1 %v762_v41  ;;  %5836 = vmatpush.msrb.mxu0 %v763_v32  ;;  %v619_v41 = vld [vmem:[%s15424_s1 + $0x7d8] sm:$0xff]  ;;  %v1050_v32 = vld [vmem:[%s15424_s1 + $0x1550] sm:$0xff] }
 0x823   : > { %v14059_v54 = vmax.f32 %v6199_v25, %v13732_v37  ;;  %7822 = vmatmul.msk.f32.gmra.mxu2 %vm1232_vm0, %v13703_v18  ;;  %v5263_v53 = vpop.f32.mrf.mxu3  ;;  %v1122_v25 = vld [vmem:[%s15424_s1 + $0x1790] sm:$0xff] }
 0x824   : > { %5372 = vmatmul.f32.gmra.mxu0 %v13726_v38  ;;  %v5264_v29 = vadd.f32 %v5263_v53, %v5198_v28  ;;  %5777 = vmatpush.msrb.mxu3 %v1122_v25 }
 0x825   : > { %5457 = vmatmul.f32.vlgmr.msra.gmra.mxu1 %v13744_v58 }
 0x826   : > { %v5178_v37 = vpop.f32.mrf.mxu2 }
 0x827   : > { %v5179_v8 = vadd.f32 %v5178_v37, %v5113_v34  ;;  %v726_v37 = vld [vmem:[%s15424_s1 + $0xb30] sm:$0xff] }
 0x828   : > { %7824 = vmatmul.msk.f32.gmra.mxu3 %vm1232_vm0, %v14072_v52  ;;  %5707 = vmatpush.msrb.mxu1 %v726_v37  ;;  %v583_v37 = vld [vmem:[%s15424_s1 + $0x6b8] sm:$0xff] }
 0x829   : > { %v6200_v18 = vmax.f32 %v5049_v16, %v5179_v8  ;;  %v5328_v15 = vpop.f32.mrf.mxu0  ;;  %v727_v8 = vld [vmem:[%s15424_s1 + $0xb38] sm:$0xff] }
 0x82a   : > { %v5201_v60 = vpop.f32.mrf.mxu1  ;;  %5837 = vmatpush.msrb.mxu0 %v727_v8  ;;  %5708 = vmatpush.msrb.mxu1 %v690_v10  ;;  %v546_v10 = vld [vmem:[%s15424_s1 + $0x590] sm:$0xff] }
 0x82b   : > { %v14077_v0 = vmax.f32 %v6200_v18, %v13750_v59  ;;  %7839 = vmatmul.msk.f32.vlgmr.msra.gmra.mxu2 %vm1232_vm0, %v14054_v17  ;;  %v5266_v38 = vpop.f32.mrf.mxu3  ;;  %v1159_v59 = vld [vmem:[%s15424_s1 + $0x18b8] sm:$0xff] }
 0x82c   : > { %5587 = vmatmul.f32.vlgmr.msra.gmra.mxu0 %v13744_v58  ;;  %5906 = vmatpush.msrb.mxu2 %v1159_v59  ;;  %v5267_v1 = vadd.f32 %v5266_v38, %v5201_v60  ;;  %v1086_v59 = vld [vmem:[%s15424_s1 + $0x1670] sm:$0xff] }
 0x82d   : > { %5460 = vmatmul.f32.gmra.mxu1 %v13768_v61  ;;  %5838 = vmatpush.msrb.mxu0 %v691_v20  ;;  %v547_v20 = vld [vmem:[%s15424_s1 + $0x598] sm:$0xff] }
 0x82e   : > { %v5393_v62 = vpop.f32.mrf.mxu2  ;;  %5778 = vmatpush.msrb.mxu3 %v1086_v59  ;;  %5709 = vmatpush.msrb.mxu1 %v654_v45  ;;  %v1014_v59 = vld [vmem:[%s15424_s1 + $0x1430] sm:$0xff] }
 0x82f   : > { %v5394_v5 = vadd.f32 %v5393_v62, %v5328_v15  ;;  %5839 = vmatpush.msrb.mxu0 %v655_v13 }
 0x830   : > { %7825 = vmatmul.msk.f32.gmra.mxu3 %vm1232_vm0, %v13772_v9 }
 0x831   : > { %v6201_v36 = vmax.f32 %v5264_v29, %v5394_v5  ;;  %v5331_v3 = vpop.f32.mrf.mxu0  ;;  %v14168_v5 = vld [vmem:[%s8574_s21 + $0x68] sm:$0xff]  ;;  %5840 = vmatpush.msrb.mxu0 %v619_v41  ;;  %5779 = vmatpush.msrb.mxu3 %v1050_v32 }
 0x832   : > { %v5204_v35 = vpop.f32.mrf.mxu1 }
 0x833   : > { %v14098_v58 = vmax.f32 %v6201_v36, %v13777_v22  ;;  %7840 = vmatmul.msk.f32.gmra.mxu2 %vm1232_vm0, %v14072_v52  ;;  %v5269_v39 = vpop.f32.mrf.mxu3  ;;  %5841 = vmatpush.msrb.mxu0 %v583_v37 }
 0x834   : > { %5590 = vmatmul.f32.gmra.mxu0 %v13768_v61  ;;  %5780 = vmatpush.msrb.mxu3 %v1014_v59  ;;  %v14327_v59 = vld [vmem:[%s8574_s21 + $0xd8] sm:$0xff] }
 0x835   : > { %5463 = vmatmul.f32.gmra.mxu1 %v13789_v63  ;;  %5842 = vmatpush.msrb.mxu0 %v547_v20 }
 0x836   : > { %v5396_v22 = vpop.f32.mrf.mxu2 }
 0x837   : > { %v5397_v56 = vadd.f32 %v5396_v22, %v5331_v3 }
 0x838   : > { %7826 = vmatmul.msk.f32.gmra.mxu3 %vm1232_vm0, %v13793_v33 }
 0x839   : > { %v6202_v6 = vmax.f32 %v5267_v1, %v5397_v56  ;;  %v5334_v46 = vpop.f32.mrf.mxu0  ;;  %v14186_v56 = vld [vmem:[%s8574_s21 + $0x78] sm:$0xff] }
 0x83a   : > { %v5207_v14 = vpop.f32.mrf.mxu1 }
 0x83b   : > { %v14113_v23 = vmax.f32 %v6202_v6, %v13798_v57  ;;  %7841 = vmatmul.msk.f32.gmra.mxu2 %vm1232_vm0, %v13772_v9  ;;  %v5272_v61 = vpop.f32.mrf.mxu3  ;;  %v1123_v9 = vld [vmem:[%s15424_s1 + $0x1798] sm:$0xff]  ;;  %v5270_v57 = vadd.f32 %v5269_v39, %v5204_v35 }
 0x83c   : > { %5593 = vmatmul.f32.gmra.mxu0 %v13789_v63  ;;  %5907 = vmatpush.msrb.mxu2 %v1123_v9  ;;  %v5273_v18 = vadd.f32 %v5272_v61, %v5207_v14  ;;  %v618_v61 = vld [vmem:[%s15424_s1 + $0x7d0] sm:$0xff] }
 0x83d   : > { %5466 = vmatmul.f32.gmra.mxu1 %v13816_v12 }
 0x83e   : > { %v5399_v34 = vpop.f32.mrf.mxu2  ;;  %5710 = vmatpush.msrb.mxu1 %v618_v61 }
 0x83f   : > { %v5400_v28 = vadd.f32 %v5399_v34, %v5334_v46  ;;  %v14210_v34 = vld [vmem:[%s8574_s21 + $0x88] sm:$0xff] }
 0x840   : > { %7827 = vmatmul.msk.f32.gmra.mxu3 %vm1232_vm0, %v13820_v50 }
 0x841   : > { %v6203_v53 = vmax.f32 %v5270_v57, %v5400_v28  ;;  %v5337_v48 = vpop.f32.mrf.mxu0 }
 0x842   : > { %v5210_v24 = vpop.f32.mrf.mxu1 }
 0x843   : > { %v14134_v63 = vmax.f32 %v6203_v53, %v13825_v44  ;;  %7842 = vmatmul.msk.f32.gmra.mxu2 %vm1232_vm0, %v13793_v33  ;;  %v5275_v16 = vpop.f32.mrf.mxu3 }
 0x844   : > { %5596 = vmatmul.f32.gmra.mxu0 %v13816_v12 }
 0x845   : > { %5469 = vmatmul.f32.gmra.mxu1 %v13837_v47 }
 0x846   : > { %v5402_v44 = vpop.f32.mrf.mxu2 }
 0x847   : > { %v5403_v15 = vadd.f32 %v5402_v44, %v5337_v48 }
 0x848   : > { %7828 = vmatmul.msk.f32.gmra.mxu3 %vm1232_vm0, %v13841_v30 }
 0x849   : > { %v6204_v33 = vmax.f32 %v5273_v18, %v5403_v15  ;;  %v5340_v60 = vpop.f32.mrf.mxu0  ;;  %v14227_v18 = vld [vmem:[%s8574_s21 + $0x80] sm:$0xff]  ;;  %v14231_v15 = vld [vmem:[%s8574_s21 + $0x98] sm:$0xff] }
 0x84a   : > { %v5213_v38 = vpop.f32.mrf.mxu1 }
 0x84b   : > { %v14149_v42 = vmax.f32 %v6204_v33, %v13846_v49  ;;  %7843 = vmatmul.msk.f32.gmra.mxu2 %vm1232_vm0, %v13820_v50  ;;  %v5278_v12 = vpop.f32.mrf.mxu3  ;;  %v1087_v50 = vld [vmem:[%s15424_s1 + $0x1678] sm:$0xff]  ;;  %v5276_v49 = vadd.f32 %v5275_v16, %v5210_v24  ;;  %v582_v16 = vld [vmem:[%s15424_s1 + $0x6b0] sm:$0xff] }
 0x84c   : > { %5599 = vmatmul.f32.gmra.mxu0 %v13837_v47  ;;  %5908 = vmatpush.msrb.mxu2 %v1087_v50  ;;  %v5279_v1 = vadd.f32 %v5278_v12, %v5213_v38 }
 0x84d   : > { %5472 = vmatmul.f32.gmra.mxu1 %v13864_v19 }
 0x84e   : > { %v5405_v29 = vpop.f32.mrf.mxu2  ;;  %5711 = vmatpush.msrb.mxu1 %v582_v16  ;;  %v14306_v16 = vld [vmem:[%s8574_s21 + $0xc8] sm:$0xff] }
 0x84f   : > { %v5406_v62 = vadd.f32 %v5405_v29, %v5340_v60 }
 0x850   : > { %7829 = vmatmul.msk.f32.gmra.mxu3 %vm1232_vm0, %v14168_v5  ;;  %5712 = vmatpush.msrb.mxu1 %v546_v10  ;;  %v14323_v10 = vld [vmem:[%s8574_s21 + $0xc0] sm:$0xff] }
 0x851   : > { %v6205_v47 = vmax.f32 %v5276_v49, %v5406_v62  ;;  %v5343_v36 = vpop.f32.mrf.mxu0  ;;  %v14254_v49 = vld [vmem:[%s8574_s21 + $0x90] sm:$0xff] }
 0x852   : > { %v5216_v3 = vpop.f32.mrf.mxu1 }
 0x853   : > { %v14173_v35 = vmax.f32 %v6205_v47, %v13870_v26  ;;  %7844 = vmatmul.msk.f32.gmra.mxu2 %vm1232_vm0, %v13841_v30  ;;  %v5281_v39 = vpop.f32.mrf.mxu3  ;;  %v14258_v47 = vld [vmem:[%s8574_s21 + $0xa8] sm:$0xff] }
 0x854   : > { %5602 = vmatmul.f32.gmra.mxu0 %v13864_v19  ;;  %v5282_v25 = vadd.f32 %v5281_v39, %v5216_v3 }
 0x855   : > { %5475 = vmatmul.f32.gmra.mxu1 %v13882_v43 }
 0x856   : > { %v5408_v26 = vpop.f32.mrf.mxu2 }
 0x857   : > { %v5409_v22 = vadd.f32 %v5408_v26, %v5343_v36  ;;  %v511_v26 = vld [vmem:[%s15424_s1 + $0x478] sm:$0xff] }
 0x858   : > { %7830 = vmatmul.msk.f32.gmra.mxu3 %vm1232_vm0, %v14186_v56  ;;  %5843 = vmatpush.msrb.mxu0 %v511_v26 }
 0x859   : > { %v6206_v30 = vmax.f32 %v5279_v1, %v5409_v22  ;;  %v5346_v6 = vpop.f32.mrf.mxu0  ;;  %v510_v1 = vld [vmem:[%s15424_s1 + $0x470] sm:$0xff] }
 0x85a   : > { %v5219_v46 = vpop.f32.mrf.mxu1  ;;  %5713 = vmatpush.msrb.mxu1 %v510_v1  ;;  %v14344_v1 = vld [vmem:[%s8574_s21 + $0xd0] sm:$0xff] }
 0x85b   : > { %v14191_v14 = vmax.f32 %v6206_v30, %v13888_v40  ;;  %7845 = vmatmul.msk.f32.gmra.mxu2 %vm1232_vm0, %v14168_v5  ;;  %v5284_v19 = vpop.f32.mrf.mxu3  ;;  %v1051_v40 = vld [vmem:[%s15424_s1 + $0x1558] sm:$0xff]  ;;  %v14275_v30 = vld [vmem:[%s8574_s21 + $0xa0] sm:$0xff] }
 0x85c   : > { %5605 = vmatmul.f32.gmra.mxu0 %v13882_v43  ;;  %5909 = vmatpush.msrb.mxu2 %v1051_v40  ;;  %v5285_v8 = vadd.f32 %v5284_v19, %v5219_v46  ;;  %v14279_v46 = vld [vmem:[%s8574_s21 + $0xb8] sm:$0xff] }
 0x85d   : > { %5478 = vmatmul.f32.gmra.mxu1 %v13906_v4 }
 0x85e   : > { %v5411_v9 = vpop.f32.mrf.mxu2 }
 0x85f   : > { %v5412_v57 = vadd.f32 %v5411_v9, %v5346_v6  ;;  %v475_v9 = vld [vmem:[%s15424_s1 + $0x358] sm:$0xff] }
 0x860   : > { %7831 = vmatmul.msk.f32.gmra.mxu3 %vm1232_vm0, %v14210_v34  ;;  %5844 = vmatpush.msrb.mxu0 %v475_v9 }
 0x861   : > { %v6207_v43 = vmax.f32 %v5282_v25, %v5412_v57  ;;  %v5349_v28 = vpop.f32.mrf.mxu0  ;;  %v474_v25 = vld [vmem:[%s15424_s1 + $0x350] sm:$0xff] }
 0x862   : > { %v5222_v53 = vpop.f32.mrf.mxu1  ;;  %v978_v57 = vld [vmem:[%s15424_s1 + $0x1310] sm:$0xff]  ;;  %5714 = vmatpush.msrb.mxu1 %v474_v25  ;;  %v14359_v25 = vld [vmem:[%s8574_s21 + $0xe0] sm:$0xff] }
 0x863   : > { %v14215_v48 = vmax.f32 %v6207_v43, %v13912_v31  ;;  %7846 = vmatmul.msk.f32.gmra.mxu2 %vm1232_vm0, %v14186_v56  ;;  %v5287_v24 = vpop.f32.mrf.mxu3  ;;  %5781 = vmatpush.msrb.mxu3 %v978_v57 }
 0x864   : > { %5608 = vmatmul.f32.gmra.mxu0 %v13906_v4  ;;  %v5288_v50 = vadd.f32 %v5287_v24, %v5222_v53 }
 0x865   : > { %5481 = vmatmul.f32.gmra.mxu1 %v14227_v18 }
 0x866   : > { %v5414_v31 = vpop.f32.mrf.mxu2 }
 0x867   : > { %v5415_v44 = vadd.f32 %v5414_v31, %v5349_v28  ;;  %v14302_v28 = vld [vmem:[%s8574_s21 + $0xb0] sm:$0xff] }
 0x868   : > { %7832 = vmatmul.msk.f32.gmra.mxu3 %vm1232_vm0, %v14231_v15 }
 0x869   : > { %v6208_v33 = vmax.f32 %v5285_v8, %v5415_v44  ;;  %v5352_v60 = vpop.f32.mrf.mxu0 }
 0x86a   : > { %v5225_v38 = vpop.f32.mrf.mxu1 }
 0x86b   : > { %v14236_v4 = vmax.f32 %v6208_v33, %v13927_v27  ;;  %7847 = vmatmul.msk.f32.gmra.mxu2 %vm1232_vm0, %v14210_v34  ;;  %v5290_v12 = vpop.f32.mrf.mxu3  ;;  %v1015_v27 = vld [vmem:[%s15424_s1 + $0x1438] sm:$0xff] }
 0x86c   : > { %5611 = vmatmul.f32.gmra.mxu0 %v14227_v18  ;;  %5910 = vmatpush.msrb.mxu2 %v1015_v27  ;;  %v5291_v22 = vadd.f32 %v5290_v12, %v5225_v38  ;;  %v439_v38 = vld [vmem:[%s15424_s1 + $0x238] sm:$0xff] }
 0x86d   : > { %5484 = vmatmul.f32.gmra.mxu1 %v14254_v49  ;;  %5845 = vmatpush.msrb.mxu0 %v439_v38 }
 0x86e   : > { %v5417_v29 = vpop.f32.mrf.mxu2 }
 0x86f   : > { %v5418_v62 = vadd.f32 %v5417_v29, %v5352_v60  ;;  %v438_v60 = vld [vmem:[%s15424_s1 + $0x230] sm:$0xff] }
 0x870   : > { %7833 = vmatmul.msk.f32.gmra.mxu3 %vm1232_vm0, %v14258_v47  ;;  %5715 = vmatpush.msrb.mxu1 %v438_v60 }
 0x871   : > { %v6209_v36 = vmax.f32 %v5288_v50, %v5418_v62  ;;  %v5355_v3 = vpop.f32.mrf.mxu0 }
 0x872   : > { %v5228_v39 = vpop.f32.mrf.mxu1 }
 0x873   : > { %v14263_v45 = vmax.f32 %v6209_v36, %v13948_v11  ;;  %7848 = vmatmul.msk.f32.gmra.mxu2 %vm1232_vm0, %v14231_v15  ;;  %v5293_v13 = vpop.f32.mrf.mxu3 }
 0x874   : > { %5614 = vmatmul.f32.gmra.mxu0 %v14254_v49  ;;  %v5294_v43 = vadd.f32 %v5293_v13, %v5228_v39  ;;  %v403_v39 = vld [vmem:[%s15424_s1 + $0x118] sm:$0xff] }
 0x875   : > { %5487 = vmatmul.f32.gmra.mxu1 %v14275_v30  ;;  %5846 = vmatpush.msrb.mxu0 %v403_v39 }
 0x876   : > { %v5420_v11 = vpop.f32.mrf.mxu2 }
 0x877   : > { %v5421_v6 = vadd.f32 %v5420_v11, %v5355_v3  ;;  %v402_v3 = vld [vmem:[%s15424_s1 + $0x110] sm:$0xff] }
 0x878   : > { %7834 = vmatmul.msk.f32.gmra.mxu3 %vm1232_vm0, %v14279_v46  ;;  %5716 = vmatpush.msrb.mxu1 %v402_v3 }
 0x879   : > { %v6210_v19 = vmax.f32 %v5291_v22, %v5421_v6  ;;  %v5358_v61 = vpop.f32.mrf.mxu0  ;;  %v14348_v22 = vld [vmem:[%s8574_s21 + $0xe8] sm:$0xff] }
 0x87a   : > { %v5231_v41 = vpop.f32.mrf.mxu1 }
 0x87b   : > { %v14284_v32 = vmax.f32 %v6210_v19, %v13963_v51  ;;  %7849 = vmatmul.msk.f32.gmra.mxu2 %vm1232_vm0, %v14258_v47  ;;  %v5296_v40 = vpop.f32.mrf.mxu3  ;;  %v979_v51 = vld [vmem:[%s15424_s1 + $0x1318] sm:$0xff] }
 0x87c   : > { %5617 = vmatmul.f32.gmra.mxu0 %v14275_v30  ;;  %5911 = vmatpush.msrb.mxu2 %v979_v51  ;;  %v5297_v12 = vadd.f32 %v5296_v40, %v5231_v41  ;;  %v14363_v51 = vld [vmem:[%s8574_s21 + $0xf8] sm:$0xff] }
 0x87d   : > { %5490 = vmatmul.f32.gmra.mxu1 %v14302_v28 }
 0x87e   : > { %v5423_v53 = vpop.f32.mrf.mxu2 }
 0x87f   : > { %v5424_v24 = vadd.f32 %v5423_v53, %v5358_v61 }
 0x880   : > { %7835 = vmatmul.msk.f32.gmra.mxu3 %vm1232_vm0, %v14306_v16 }
 0x881   : > { %v6211_v37 = vmax.f32 %v5294_v43, %v5424_v24  ;;  %v5361_v8 = vpop.f32.mrf.mxu0 }
 0x882   : > { %v5234_v31 = vpop.f32.mrf.mxu1 }
 0x883   : > { %v14311_v44 = vmax.f32 %v6211_v37, %v13984_v21  ;;  %7850 = vmatmul.msk.f32.gmra.mxu2 %vm1232_vm0, %v14279_v46  ;;  %v5299_v33 = vpop.f32.mrf.mxu3 }
 0x884   : > { %5620 = vmatmul.f32.gmra.mxu0 %v14302_v28  ;;  %v5300_v13 = vadd.f32 %v5299_v33, %v5234_v31  ;;  %v14374_v31 = vld [vmem:[%s8574_s21 + $0xf0] sm:$0xff] }
 0x885   : > { %5493 = vmatmul.f32.gmra.mxu1 %v14323_v10 }
 0x886   : > { %v5426_v21 = vpop.f32.mrf.mxu2 }
 0x887   : > { %v5427_v20 = vadd.f32 %v5426_v21, %v5361_v8 }
 0x888   : > { %7836 = vmatmul.msk.f32.gmra.mxu3 %vm1232_vm0, %v14327_v59 }
 0x889   : > { %v6212_v27 = vmax.f32 %v5297_v12, %v5427_v20  ;;  %v5364_v50 = vpop.f32.mrf.mxu0 }
 0x88a   : > { %v5237_v29 = vpop.f32.mrf.mxu1 }
 0x88b   : > { %v14332_v62 = vmax.f32 %v6212_v27, %v13999_v55  ;;  %7851 = vmatmul.msk.f32.gmra.mxu2 %vm1232_vm0, %v14306_v16  ;;  %v5302_v36 = vpop.f32.mrf.mxu3 }
 0x88c   : > { %5623 = vmatmul.f32.gmra.mxu0 %v14323_v10  ;;  %v5303_v40 = vadd.f32 %v5302_v36, %v5237_v29 }
 0x88d   : > { %5496 = vmatmul.f32.gmra.mxu1 %v14344_v1 }
 0x88e   : > { %v5429_v55 = vpop.f32.mrf.mxu2 }
 0x88f   : > { %v5430_v26 = vadd.f32 %v5429_v55, %v5364_v50  ;;  %v8390_v50 = vld [vmem:[%s8574_s21] sm:$0xff] }
 0x890   : > { %7837 = vmatmul.msk.f32.gmra.mxu3 %vm1232_vm0, %v14348_v22 }
 0x891   : > { %v6213_v11 = vmax.f32 %v5300_v13, %v5430_v26  ;;  %v5367_v6 = vpop.f32.mrf.mxu0 }
 0x892   : > { %v5240_v19 = vpop.f32.mrf.mxu1 }
 0x893   : > { %v14353_v61 = vmax.f32 %v6213_v11, %v14020_v7  ;;  %7852 = vmatmul.msk.f32.gmra.mxu2 %vm1232_vm0, %v14327_v59  ;;  %v5305_v41 = vpop.f32.mrf.mxu3  ;;  %v8391_v11 = vld [vmem:[%s8574_s21 + $0x10] sm:$0xff] }
 0x894   : > { %5626 = vmatmul.f32.gmra.mxu0 %v14344_v1  ;;  %v5306_v8 = vadd.f32 %v5305_v41, %v5240_v19  ;;  %v8392_v41 = vld [vmem:[%s8574_s21 + $0x28] sm:$0xff] }
 0x895   : > { %5499 = vmatmul.f32.gmra.mxu1 %v14359_v25 }
 0x896   : > { %v5432_v9 = vpop.f32.mrf.mxu2 }
 0x897   : > { %v5433_v57 = vadd.f32 %v5432_v9, %v5367_v6 }
 0x898   : > { %7838 = vmatmul.msk.f32.gmra.mxu3 %vm1232_vm0, %v14363_v51 }
 0x899   : > { %v6214_v7 = vmax.f32 %v5303_v40, %v5433_v57  ;;  %v5370_v43 = vpop.f32.mrf.mxu0 }
 0x89a   : > { %v5243_v53 = vpop.f32.mrf.mxu1 }
 0x89b   : > { %v14368_v24 = vmax.f32 %v6214_v7, %v14035_v2  ;;  %7853 = vmatmul.msk.f32.gmra.mxu2 %vm1232_vm0, %v14348_v22  ;;  %v5308_v37 = vpop.f32.mrf.mxu3 }
 0x89c   : > { %5629 = vmatmul.f32.gmra.mxu0 %v14359_v25  ;;  %v5309_v27 = vadd.f32 %v5308_v37, %v5243_v53 }
 0x89d   : > { %5502 = vmatmul.f32.gmra.mxu1 %v14374_v31 }
 0x89e   : > { %v5435_v33 = vpop.f32.mrf.mxu2 }
 0x89f   : > { %v5436_v60 = vadd.f32 %v5435_v33, %v5370_v43  ;;  %v8393_v43 = vld [vmem:[%s8574_s21 + $0x20] sm:$0xff] }
 0x8a0   : > { %7855 = vmatmul.msk.f32.vlgmr.msrb.gmra.mxu3 %vm1232_vm0, %v14054_v17 }
 0x8a1   : > { %v6215_v38 = vmax.f32 %v5306_v8, %v5436_v60  ;;  %v5373_v2 = vpop.f32.mrf.mxu0  ;;  %v8394_v8 = vld [vmem:[%s8574_s21 + $0x38] sm:$0xff] }
 0x8a2   : > { %v5458_v12 = vpop.f32.mrf.mxu1 }
 0x8a3   : > { %v14380_v21 = vmax.f32 %v6215_v38, %v14059_v54  ;;  %7854 = vmatmul.msk.f32.gmra.mxu2 %vm1232_vm0, %v14363_v51  ;;  %v5523_v20 = vpop.f32.mrf.mxu3 }
 0x8a4   : > { %5632 = vmatmul.f32.gmra.mxu0 %v14374_v31  ;;  %v5524_v26 = vadd.f32 %v5523_v20, %v5458_v12  ;;  %v8395_v12 = vld [vmem:[%s8574_s21 + $0x30] sm:$0xff] }
 0x8a5   : > { %5717 = vmatmul.f32.vlgmr.msrb.gmra.mxu1 %v8390_v50 }
 0x8a6   : > { %v5438_v29 = vpop.f32.mrf.mxu2 }
 0x8a7   : > { %v5439_v36 = vadd.f32 %v5438_v29, %v5373_v2 }
 0x8a8   : > { %7856 = vmatmul.msk.f32.gmra.mxu3 %vm1232_vm0, %v14072_v52 }
 0x8a9   : > { %v6216_v3 = vmax.f32 %v5309_v27, %v5439_v36  ;;  %v5588_v39 = vpop.f32.mrf.mxu0 }
 0x8aa   : > { %v5461_v54 = vpop.f32.mrf.mxu1 }
 0x8ab   : > { %v14389_v13 = vmax.f32 %v6216_v3, %v14077_v0  ;;  %7871 = vmatmul.msk.f32.vlgmr.msrb.gmra.mxu2 %vm1232_vm0, %v14054_v17  ;;  %v5526_v55 = vpop.f32.mrf.mxu3 }
 0x8ac   : > { %5847 = vmatmul.f32.vlgmr.msrb.gmra.mxu0 %v8390_v50  ;;  %v5527_v7 = vadd.f32 %v5526_v55, %v5461_v54  ;;  %v8396_v50 = vld [vmem:[%s8574_s21 + $0x48] sm:$0xff]  ;;  %v8397_v55 = vld [vmem:[%s8574_s21 + $0x40] sm:$0xff] }
 0x8ad   : > { %5720 = vmatmul.f32.gmra.mxu1 %v8391_v11 }
 0x8ae   : > { %v5653_v6 = vpop.f32.mrf.mxu2 }
 0x8af   : > { %v5654_v19 = vadd.f32 %v5653_v6, %v5588_v39  ;;  %v8398_v6 = vld [vmem:[%s8574_s21 + $0x58] sm:$0xff] }
 0x8b0   : > { %7857 = vmatmul.msk.f32.gmra.mxu3 %vm1232_vm0, %v8392_v41 }
 0x8b1   : > { %v6217_v40 = vmax.f32 %v5524_v26, %v5654_v19  ;;  %v5591_v9 = vpop.f32.mrf.mxu0 }
 0x8b2   : > { %v5464_v57 = vpop.f32.mrf.mxu1 }
 0x8b3   : > { %v14397_v0 = vmax.f32 %v6217_v40, %v14098_v58  ;;  %7872 = vmatmul.msk.f32.gmra.mxu2 %vm1232_vm0, %v14072_v52  ;;  %v5529_v17 = vpop.f32.mrf.mxu3 }
 0x8b4   : > { %5850 = vmatmul.f32.gmra.mxu0 %v8391_v11  ;;  %v5530_v2 = vadd.f32 %v5529_v17, %v5464_v57  ;;  %v8399_v17 = vld [vmem:[%s8574_s21 + $0x50] sm:$0xff] }
 0x8b5   : > { %5723 = vmatmul.f32.gmra.mxu1 %v8393_v43 }
 0x8b6   : > { %v5656_v53 = vpop.f32.mrf.mxu2 }
 0x8b7   : > { %v5657_v37 = vadd.f32 %v5656_v53, %v5591_v9 }
 0x8b8   : > { %7858 = vmatmul.msk.f32.gmra.mxu3 %vm1232_vm0, %v8394_v8 }
 0x8b9   : > { %v6218_v33 = vmax.f32 %v5527_v7, %v5657_v37  ;;  %v5594_v60 = vpop.f32.mrf.mxu0 }
 0x8ba   : > { %v5467_v38 = vpop.f32.mrf.mxu1 }
 0x8bb   : > { %v14405_v58 = vmax.f32 %v6218_v33, %v14113_v23  ;;  %7873 = vmatmul.msk.f32.gmra.mxu2 %vm1232_vm0, %v8392_v41  ;;  %v5532_v52 = vpop.f32.mrf.mxu3 }
 0x8bc   : > { %5853 = vmatmul.f32.gmra.mxu0 %v8393_v43  ;;  %v5533_v54 = vadd.f32 %v5532_v52, %v5467_v38  ;;  %v8400_v38 = vld [vmem:[%s8574_s21 + $0x60] sm:$0xff] }
 0x8bd   : > { %5726 = vmatmul.f32.gmra.mxu1 %v8395_v12 }
 0x8be   : > { %v5659_v20 = vpop.f32.mrf.mxu2 }
 0x8bf   : > { %v5660_v27 = vadd.f32 %v5659_v20, %v5594_v60 }
 0x8c0   : > { %7859 = vmatmul.msk.f32.gmra.mxu3 %vm1232_vm0, %v8396_v50 }
 0x8c1   : > { %v6219_v29 = vmax.f32 %v5530_v2, %v5660_v27  ;;  %v5597_v36 = vpop.f32.mrf.mxu0 }
 0x8c2   : > { %v5470_v3 = vpop.f32.mrf.mxu1 }
 0x8c3   : > { %v14412_v23 = vmax.f32 %v6219_v29, %v14134_v63  ;;  %7874 = vmatmul.msk.f32.gmra.mxu2 %vm1232_vm0, %v8394_v8  ;;  %v5535_v39 = vpop.f32.mrf.mxu3 }
 0x8c4   : > { %5856 = vmatmul.f32.gmra.mxu0 %v8395_v12  ;;  %v5536_v57 = vadd.f32 %v5535_v39, %v5470_v3 }
 0x8c5   : > { %5729 = vmatmul.f32.gmra.mxu1 %v8397_v55 }
 0x8c6   : > { %v5662_v26 = vpop.f32.mrf.mxu2 }
 0x8c7   : > { %v5663_v11 = vadd.f32 %v5662_v26, %v5597_v36  ;;  %v8401_v36 = vld [vmem:[%s8574_s21 + $0x70] sm:$0xff] }
 0x8c8   : > { %7860 = vmatmul.msk.f32.gmra.mxu3 %vm1232_vm0, %v8398_v6 }
 0x8c9   : > { %v6220_v19 = vmax.f32 %v5533_v54, %v5663_v11  ;;  %v5600_v41 = vpop.f32.mrf.mxu0 }
 0x8ca   : > { %v5473_v40 = vpop.f32.mrf.mxu1 }
 0x8cb   : > { %v14419_v9 = vmax.f32 %v6220_v19, %v14149_v42  ;;  %7875 = vmatmul.msk.f32.gmra.mxu2 %vm1232_vm0, %v8396_v50  ;;  %v5538_v63 = vpop.f32.mrf.mxu3 }
 0x8cc   : > { %5859 = vmatmul.f32.gmra.mxu0 %v8397_v55  ;;  %v5539_v60 = vadd.f32 %v5538_v63, %v5473_v40 }
 0x8cd   : > { %5732 = vmatmul.f32.gmra.mxu1 %v8399_v17 }
 0x8ce   : > { %v5665_v7 = vpop.f32.mrf.mxu2 }
 0x8cf   : > { %v5666_v43 = vadd.f32 %v5665_v7, %v5600_v41  ;;  %v7934_v7 = vld [vmem:[%s15426_s3 + $0x1f8] sm:$0xff] }
 0x8d0   : > { %7861 = vmatmul.msk.f32.gmra.mxu3 %vm1232_vm0, %v14168_v5  ;;  %6685 = vmatpush.msra.mxu2 %v7934_v7 }
 0x8d1   : > { %v6221_v53 = vmax.f32 %v5536_v57, %v5666_v43  ;;  %v5603_v37 = vpop.f32.mrf.mxu0  ;;  %v6572_v57 = vld [vmem:[%s15426_s3 + $0x78] sm:$0xff] }
 0x8d2   : > { %v5476_v8 = vpop.f32.mrf.mxu1  ;;  %6610 = vmatpush.msra.mxu3 %v6572_v57 }
 0x8d3   : > { %v14426_v33 = vmax.f32 %v6221_v53, %v14173_v35  ;;  %7876 = vmatmul.msk.f32.gmra.mxu2 %vm1232_vm0, %v8398_v6  ;;  %v5541_v42 = vpop.f32.mrf.mxu3 }
 0x8d4   : > { %5862 = vmatmul.f32.gmra.mxu0 %v8399_v17  ;;  %v5542_v29 = vadd.f32 %v5541_v42, %v5476_v8  ;;  %v7902_v17 = vld [vmem:[%s15426_s3 + $0xf8] sm:$0xff]  ;;  %v7901_v8 = vld [vmem:[%s15426_s3 + $0xf0] sm:$0xff] }
 0x8d5   : > { %5735 = vmatmul.f32.gmra.mxu1 %v8400_v38 }
 0x8d6   : > { %v5668_v52 = vpop.f32.mrf.mxu2  ;;  %6590 = vmatpush.msra.mxu1 %v7902_v17  ;;  %v7895_v17 = vld [vmem:[%s15426_s3 + $0xc0] sm:$0xff] }
 0x8d7   : > { %v5669_v2 = vadd.f32 %v5668_v52, %v5603_v37  ;;  %v7918_v37 = vld [vmem:[%s15426_s3 + $0x178] sm:$0xff]  ;;  %v6570_v52 = vld [vmem:[%s15426_s3 + $0x68] sm:$0xff] }
 0x8d8   : > { %7862 = vmatmul.msk.f32.gmra.mxu3 %vm1232_vm0, %v14186_v56  ;;  %6647 = vmatpush.msra.mxu0 %v7918_v37  ;;  %v7915_v37 = vld [vmem:[%s15426_s3 + $0x160] sm:$0xff] }
 0x8d9   : > { %v6222_v12 = vmax.f32 %v5539_v60, %v5669_v2  ;;  %v5606_v20 = vpop.f32.mrf.mxu0  ;;  %6591 = vmatpush.msra.mxu1 %v7901_v8  ;;  %v7917_v2 = vld [vmem:[%s15426_s3 + $0x170] sm:$0xff]  ;;  %v6564_v8 = vld [vmem:[%s15426_s3 + $0x38] sm:$0xff] }
 0x8da   : > { %v5479_v27 = vpop.f32.mrf.mxu1  ;;  %6648 = vmatpush.msra.mxu0 %v7917_v2 }
 0x8db   : > { %v14433_v50 = vmax.f32 %v6222_v12, %v14191_v14  ;;  %7877 = vmatmul.msk.f32.gmra.mxu2 %vm1232_vm0, %v14168_v5  ;;  %v5544_v35 = vpop.f32.mrf.mxu3  ;;  %v7900_v12 = vld [vmem:[%s15426_s3 + $0xe8] sm:$0xff] }
 0x8dc   : > { %5865 = vmatmul.f32.gmra.mxu0 %v8400_v38  ;;  %v5545_v11 = vadd.f32 %v5544_v35, %v5479_v27  ;;  %6592 = vmatpush.msra.mxu1 %v7900_v12  ;;  %v6569_v27 = vld [vmem:[%s15426_s3 + $0x60] sm:$0xff] }
 0x8dd   : > { %5738 = vmatmul.f32.gmra.mxu1 %v8401_v36 }
 0x8de   : > { %v5671_v3 = vpop.f32.mrf.mxu2 }
 0x8df   : > { %v5672_v39 = vadd.f32 %v5671_v3, %v5606_v20  ;;  %v7898_v3 = vld [vmem:[%s15426_s3 + $0xd8] sm:$0xff] }
 0x8e0   : > { %7863 = vmatmul.msk.f32.gmra.mxu3 %vm1232_vm0, %v14210_v34 }
 0x8e1   : > { %v6223_v54 = vmax.f32 %v5542_v29, %v5672_v39  ;;  %v5609_v55 = vpop.f32.mrf.mxu0  ;;  %v6568_v29 = vld [vmem:[%s15426_s3 + $0x58] sm:$0xff] }
 0x8e2   : > { %v14440_v26 = vpop.f32.mrf.mxu1 }
 0x8e3   : > { %v14443_v14 = vmax.f32 %v6223_v54, %v14215_v48  ;;  %7878 = vmatmul.msk.f32.gmra.mxu2 %vm1232_vm0, %v14186_v56  ;;  %v14447_v5 = vpop.f32.mrf.mxu3  ;;  %v7916_v54 = vld [vmem:[%s15426_s3 + $0x168] sm:$0xff] }
 0x8e4   : > { %5868 = vmatmul.f32.gmra.mxu0 %v8401_v36 }
 0x8e5   : > { %5741 = vmatmul.f32.gmra.mxu1 %v14227_v18  ;;  %6649 = vmatpush.msra.mxu0 %v7916_v54 }
 0x8e6   : > { %v5674_v6 = vpop.f32.mrf.mxu2 }
 0x8e7   : > { %v5675_v19 = vadd.f32 %v5674_v6, %v5609_v55  ;;  %v7931_v55 = vld [vmem:[%s15426_s3 + $0x1e0] sm:$0xff]  ;;  %6650 = vmatpush.msra.mxu0 %v7915_v37  ;;  %v7889_v37 = vld [vmem:[%s15426_s3 + $0x90] sm:$0xff] }
 0x8e8   : > { %7864 = vmatmul.msk.f32.gmra.mxu3 %vm1232_vm0, %v14231_v15 }
 0x8e9   : > { %v6224_v41 = vmax.f32 %v5545_v11, %v5675_v19  ;;  %v14452_v40 = vpop.f32.mrf.mxu0  ;;  %v6567_v11 = vld [vmem:[%s15426_s3 + $0x50] sm:$0xff]  ;;  %v6566_v19 = vld [vmem:[%s15426_s3 + $0x48] sm:$0xff] }
 0x8ea   : > { %v14454_v63 = vpop.f32.mrf.mxu1 }
 0x8eb   : > { %v14457_v48 = vmax.f32 %v6224_v41, %v14236_v4  ;;  %7879 = vmatmul.msk.f32.gmra.mxu2 %vm1232_vm0, %v14210_v34  ;;  %v14461_v56 = vpop.f32.mrf.mxu3  ;;  %v6565_v41 = vld [vmem:[%s15426_s3 + $0x40] sm:$0xff] }
 0x8ec   : > { %5871 = vmatmul.f32.gmra.mxu0 %v14227_v18  ;;  %v6571_v18 = vld [vmem:[%s15426_s3 + $0x70] sm:$0xff] }
 0x8ed   : > { %5744 = vmatmul.f32.gmra.mxu1 %v14254_v49  ;;  %6611 = vmatpush.msra.mxu3 %v6571_v18 }
 0x8ee   : > { %v14474_v34 = vpop.f32.mrf.mxu2 }
 0x8ef   : > { %6612 = vmatpush.msra.mxu3 %v6570_v52 }
 0x8f0   : > { %7865 = vmatmul.msk.f32.gmra.mxu3 %vm1232_vm0, %v14258_v47 }
 0x8f1   : > { %v14478_v4 = vpop.f32.mrf.mxu0  ;;  %6613 = vmatpush.msra.mxu3 %v6569_v27 }
 0x8f2   : > { %v14480_v43 = vpop.f32.mrf.mxu1 }
 0x8f3   : > { %7880 = vmatmul.msk.f32.gmra.mxu2 %vm1232_vm0, %v14231_v15  ;;  %v14484_v53 = vpop.f32.mrf.mxu3  ;;  %v7933_v15 = vld [vmem:[%s15426_s3 + $0x1f0] sm:$0xff]  ;;  %6614 = vmatpush.msra.mxu3 %v6568_v29 }
 0x8f4   : > { %5874 = vmatmul.f32.gmra.mxu0 %v14254_v49  ;;  %6686 = vmatpush.msra.mxu2 %v7933_v15  ;;  %v7930_v15 = vld [vmem:[%s15426_s3 + $0x1d8] sm:$0xff] }
 0x8f5   : > { %5747 = vmatmul.f32.gmra.mxu1 %v14275_v30  ;;  %6615 = vmatpush.msra.mxu3 %v6567_v11 }
 0x8f6   : > { %v14500_v42 = vpop.f32.mrf.mxu2 }
 0x8f7   : > { %6616 = vmatpush.msra.mxu3 %v6566_v19  ;;  %v7891_v19 = vld [vmem:[%s15426_s3 + $0xa0] sm:$0xff] }
 0x8f8   : > { %7866 = vmatmul.msk.f32.gmra.mxu3 %vm1232_vm0, %v14279_v46 }
 0x8f9   : > { %v14504_v60 = vpop.f32.mrf.mxu0  ;;  %6617 = vmatpush.msra.mxu3 %v6565_v41 }
 0x8fa   : > { %v14506_v38 = vpop.f32.mrf.mxu1 }
 0x8fb   : > { %7881 = vmatmul.msk.f32.gmra.mxu2 %vm1232_vm0, %v14258_v47  ;;  %v14510_v49 = vpop.f32.mrf.mxu3  ;;  %v7932_v47 = vld [vmem:[%s15426_s3 + $0x1e8] sm:$0xff]  ;;  %6618 = vmatpush.msra.mxu3 %v6564_v8 }
 0x8fc   : > { %5877 = vmatmul.f32.gmra.mxu0 %v14275_v30  ;;  %6687 = vmatpush.msra.mxu2 %v7932_v47  ;;  %v7899_v30 = vld [vmem:[%s15426_s3 + $0xe0] sm:$0xff]  ;;  %v6563_v47 = vld [vmem:[%s15426_s3 + $0x30] sm:$0xff] }
 0x8fd   : > { %5750 = vmatmul.f32.gmra.mxu1 %v14302_v28  ;;  %6619 = vmatpush.msra.mxu3 %v6563_v47 }
 0x8fe   : > { %v14526_v20 = vpop.f32.mrf.mxu2  ;;  %6593 = vmatpush.msra.mxu1 %v7899_v30  ;;  %6688 = vmatpush.msra.mxu2 %v7931_v55  ;;  %v6562_v30 = vld [vmem:[%s15426_s3 + $0x28] sm:$0xff]  ;;  %v6561_v55 = vld [vmem:[%s15426_s3 + $0x20] sm:$0xff] }
 0x8ff   : > { %6620 = vmatpush.msra.mxu3 %v6562_v30 }
 0x900   : > { %7867 = vmatmul.msk.f32.gmra.mxu3 %vm1232_vm0, %v14306_v16  ;;  %6594 = vmatpush.msra.mxu1 %v7898_v3  ;;  %v7914_v3 = vld [vmem:[%s15426_s3 + $0x158] sm:$0xff] }
 0x901   : > { %v14536_v35 = vpop.f32.mrf.mxu0  ;;  %6689 = vmatpush.msra.mxu2 %v7930_v15  ;;  %6651 = vmatpush.msra.mxu0 %v7914_v3  ;;  %v7909_v3 = vld [vmem:[%s15426_s3 + $0x130] sm:$0xff] }
 0x902   : > { %v5494_v36 = vpop.f32.mrf.mxu1  ;;  %6621 = vmatpush.msra.mxu3 %v6561_v55  ;;  %v7949_v55 = vld [vmem:[%s15426_s3 + $0x270] sm:$0xff] }
 0x903   : > { %7882 = vmatmul.msk.f32.gmra.mxu2 %vm1232_vm0, %v14279_v46  ;;  %v5559_v39 = vpop.f32.mrf.mxu3  ;;  %v7897_v46 = vld [vmem:[%s15426_s3 + $0xd0] sm:$0xff] }
 0x904   : > { %5880 = vmatmul.f32.gmra.mxu0 %v14302_v28  ;;  %v7896_v28 = vld [vmem:[%s15426_s3 + $0xc8] sm:$0xff]  ;;  %6595 = vmatpush.msra.mxu1 %v7897_v46  ;;  %v5560_v2 = vadd.f32 %v5559_v39, %v5494_v36 }
 0x905   : > { %5753 = vmatmul.f32.gmra.mxu1 %v14323_v10  ;;  %v7892_v39 = vld [vmem:[%s15426_s3 + $0xa8] sm:$0xff] }
 0x906   : > { %v14560_v6 = vpop.f32.mrf.mxu2  ;;  %6596 = vmatpush.msra.mxu1 %v7896_v28  ;;  %v7913_v28 = vld [vmem:[%s15426_s3 + $0x150] sm:$0xff] }
 0x907   : > { %6652 = vmatpush.msra.mxu0 %v7913_v28  ;;  %v7926_v28 = vld [vmem:[%s15426_s3 + $0x1b8] sm:$0xff] }
 0x908   : > { %7868 = vmatmul.msk.f32.gmra.mxu3 %vm1232_vm0, %v14327_v59  ;;  %6597 = vmatpush.msra.mxu1 %v7895_v17  ;;  %v6559_v17 = vld [vmem:[%s15426_s3 + $0x10] sm:$0xff] }
 0x909   : > { %v5624_v57 = vpop.f32.mrf.mxu0 }
 0x90a   : > { %v5497_v7 = vpop.f32.mrf.mxu1 }
 0x90b   : > { %7883 = vmatmul.msk.f32.gmra.mxu2 %vm1232_vm0, %v14306_v16  ;;  %v5562_v18 = vpop.f32.mrf.mxu3  ;;  %v7894_v16 = vld [vmem:[%s15426_s3 + $0xb8] sm:$0xff] }
 0x90c   : > { %5883 = vmatmul.f32.gmra.mxu0 %v14323_v10  ;;  %v5563_v52 = vadd.f32 %v5562_v18, %v5497_v7  ;;  %v7893_v10 = vld [vmem:[%s15426_s3 + $0xb0] sm:$0xff]  ;;  %6598 = vmatpush.msra.mxu1 %v7894_v16  ;;  %v7912_v18 = vld [vmem:[%s15426_s3 + $0x148] sm:$0xff] }
 0x90d   : > { %5756 = vmatmul.f32.gmra.mxu1 %v14344_v1  ;;  %v7929_v7 = vld [vmem:[%s15426_s3 + $0x1d0] sm:$0xff]  ;;  %v6558_v16 = vld [vmem:[%s15426_s3 + $0x8] sm:$0xff]  ;;  %6653 = vmatpush.msra.mxu0 %v7912_v18 }
 0x90e   : > { %v5689_v12 = vpop.f32.mrf.mxu2  ;;  %6599 = vmatpush.msra.mxu1 %v7893_v10  ;;  %6690 = vmatpush.msra.mxu2 %v7929_v7  ;;  %v7888_v10 = vld [vmem:[%s15426_s3 + $0x88] sm:$0xff]  ;;  %v7925_v7 = vld [vmem:[%s15426_s3 + $0x1b0] sm:$0xff] }
 0x90f   : > { %v5690_v27 = vadd.f32 %v5689_v12, %v5624_v57  ;;  %v7890_v57 = vld [vmem:[%s15426_s3 + $0x98] sm:$0xff]  ;;  %v7911_v12 = vld [vmem:[%s15426_s3 + $0x140] sm:$0xff]  ;;  %v7965_v18 = vld [vmem:[%s15426_s3 + $0x2f0] sm:$0xff] }
 0x910   : > { %7869 = vmatmul.msk.f32.gmra.mxu3 %vm1232_vm0, %v14348_v22  ;;  %6600 = vmatpush.msra.mxu1 %v7892_v39 }
 0x911   : > { %v6229_v29 = vmax.f32 %v5560_v2, %v5690_v27  ;;  %v5627_v36 = vpop.f32.mrf.mxu0  ;;  %v6557_v27 = vld [vmem:[%s15426_s3] sm:$0xff]  ;;  %6654 = vmatpush.msra.mxu0 %v7911_v12 }
 0x912   : > { %v5500_v54 = vpop.f32.mrf.mxu1  ;;  %6601 = vmatpush.msra.mxu1 %v7891_v19  ;;  %v7923_v12 = vld [vmem:[%s15426_s3 + $0x1a0] sm:$0xff] }
 0x913   : > { %v14613_v11 = vmax.f32 %v6229_v29, %v14353_v61  ;;  %7884 = vmatmul.msk.f32.gmra.mxu2 %vm1232_vm0, %v14327_v59  ;;  %v5565_v46 = vpop.f32.mrf.mxu3  ;;  %v6560_v61 = vld [vmem:[%s15426_s3 + $0x18] sm:$0xff]  ;;  %v7928_v29 = vld [vmem:[%s15426_s3 + $0x1c8] sm:$0xff] }
 0x914   : > { %5886 = vmatmul.f32.gmra.mxu0 %v14344_v1  ;;  %v5566_v41 = vadd.f32 %v5565_v46, %v5500_v54  ;;  %6622 = vmatpush.msra.mxu3 %v6560_v61  ;;  %v7927_v54 = vld [vmem:[%s15426_s3 + $0x1c0] sm:$0xff] }
 0x915   : > { %5759 = vmatmul.f32.gmra.mxu1 %v14359_v25  ;;  %6691 = vmatpush.msra.mxu2 %v7928_v29  ;;  %v7922_v29 = vld [vmem:[%s15426_s3 + $0x198] sm:$0xff] }
 0x916   : > { %v5692_v59 = vpop.f32.mrf.mxu2  ;;  %6602 = vmatpush.msra.mxu1 %v7890_v57  ;;  %6623 = vmatpush.msra.mxu3 %v6559_v17  ;;  %v7948_v57 = vld [vmem:[%s15426_s3 + $0x268] sm:$0xff] }
 0x917   : > { %v5693_v1 = vadd.f32 %v5692_v59, %v5627_v36  ;;  %v7908_v59 = vld [vmem:[%s15426_s3 + $0x128] sm:$0xff]  ;;  %6692 = vmatpush.msra.mxu2 %v7927_v54  ;;  %v7962_v54 = vld [vmem:[%s15426_s3 + $0x2d8] sm:$0xff] }
 0x918   : > { %7870 = vmatmul.msk.f32.gmra.mxu3 %vm1232_vm0, %v14363_v51  ;;  %6603 = vmatpush.msra.mxu1 %v7889_v37  ;;  %v7924_v37 = vld [vmem:[%s15426_s3 + $0x1a8] sm:$0xff] }
 0x919   : > { %v6230_v8 = vmax.f32 %v5563_v52, %v5693_v1  ;;  %v5630_v15 = vpop.f32.mrf.mxu0  ;;  %6624 = vmatpush.msra.mxu3 %v6558_v16  ;;  %v7966_v1 = vld [vmem:[%s15426_s3 + $0x2f8] sm:$0xff]  ;;  %6693 = vmatpush.msra.mxu2 %v7926_v28 }
 0x91a   : > { %v5503_v2 = vpop.f32.mrf.mxu1  ;;  %6604 = vmatpush.msra.mxu1 %v7888_v10  ;;  %v7945_v10 = vld [vmem:[%s15426_s3 + $0x250] sm:$0xff]  ;;  %v7982_v28 = vld [vmem:[%s15426_s3 + $0x378] sm:$0xff] }
 0x91b   : > { %v14652_v47 = vmax.f32 %v6230_v8, %v14368_v24  ;;  %7885 = vmatmul.msk.f32.gmra.mxu2 %vm1232_vm0, %v14348_v22  ;;  %v5568_v52 = vpop.f32.mrf.mxu3  ;;  %v7910_v24 = vld [vmem:[%s15426_s3 + $0x138] sm:$0xff]  ;;  %v7887_v22 = vld [vmem:[%s15426_s3 + $0x80] sm:$0xff]  ;;  %6625 = vmatpush.msra.mxu3 %v6557_v27 }
 0x91c   : > { %5889 = vmatmul.f32.gmra.mxu0 %v14359_v25  ;;  %v14663_v30 = vadd.f32 %v5568_v52, %v5503_v2  ;;  %v7950_v25 = vld [vmem:[%s15426_s3 + $0x278] sm:$0xff]  ;;  %6605 = vmatpush.msra.mxu1 %v7887_v22  ;;  %v7964_v2 = vld [vmem:[%s15426_s3 + $0x2e8] sm:$0xff]  ;;  %v7905_v52 = vld [vmem:[%s15426_s3 + $0x110] sm:$0xff] }
 0x91d   : > { %5762 = vmatmul.f32.gmra.mxu1 %v14374_v31  ;;  %6655 = vmatpush.msra.mxu0 %v7910_v24  ;;  %v7906_v8 = vld [vmem:[%s15426_s3 + $0x118] sm:$0xff]  ;;  %v7963_v22 = vld [vmem:[%s15426_s3 + $0x2e0] sm:$0xff] }
 0x91e   : > { %v5695_v36 = vpop.f32.mrf.mxu2  ;;  %6723 = vmatpush.msrb.mxu1 %v7950_v25  ;;  %6761 = vmatpush.msrb.mxu3 %v7966_v1  ;;  %v7904_v25 = vld [vmem:[%s15426_s3 + $0x108] sm:$0xff]  ;;  %v7942_v1 = vld [vmem:[%s15426_s3 + $0x238] sm:$0xff] }
 0x91f   : > { %v5696_v39 = vadd.f32 %v5695_v36, %v5630_v15  ;;  %6656 = vmatpush.msra.mxu0 %v7909_v3  ;;  %v7946_v15 = vld [vmem:[%s15426_s3 + $0x258] sm:$0xff]  ;;  %6694 = vmatpush.msra.mxu2 %v7925_v7  ;;  %v7981_v7 = vld [vmem:[%s15426_s3 + $0x370] sm:$0xff] }
 0x920   : > { %6724 = vmatpush.msrb.mxu1 %v7949_v55  ;;  %6762 = vmatpush.msrb.mxu3 %v7965_v18  ;;  %v7921_v55 = vld [vmem:[%s15426_s3 + $0x190] sm:$0xff]  ;;  %v7919_v18 = vld [vmem:[%s15426_s3 + $0x180] sm:$0xff] }
 0x921   : > { %v6231_v46 = vmax.f32 %v5566_v41, %v5696_v39  ;;  %v5633_v19 = vpop.f32.mrf.mxu0  ;;  %6657 = vmatpush.msra.mxu0 %v7908_v59  ;;  %6695 = vmatpush.msra.mxu2 %v7924_v37  ;;  %v7961_v59 = vld [vmem:[%s15426_s3 + $0x2d0] sm:$0xff] }
 0x922   : > { %v5718_v61 = vpop.f32.mrf.mxu1  ;;  %6725 = vmatpush.msrb.mxu1 %v7948_v57  ;;  %6763 = vmatpush.msrb.mxu3 %v7964_v2 }
 0x923   : > { %v14697_v17 = vmax.f32 %v6231_v46, %v14380_v21  ;;  %7886 = vmatmul.msk.f32.gmra.mxu2 %vm1232_vm0, %v14363_v51  ;;  %v5783_v41 = vpop.f32.mrf.mxu3  ;;  %v7907_v21 = vld [vmem:[%s15426_s3 + $0x120] sm:$0xff] }
 0x924   : > { %5892 = vmatmul.f32.gmra.mxu0 %v14374_v31  ;;  %v7947_v51 = vld [vmem:[%s15426_s3 + $0x260] sm:$0xff]  ;;  %6696 = vmatpush.msra.mxu2 %v7923_v12  ;;  %v7940_v12 = vld [vmem:[%s15426_s3 + $0x228] sm:$0xff] }
 0x925   : > { %6658 = vmatpush.msra.mxu0 %v7907_v21  ;;  %6726 = vmatpush.msrb.mxu1 %v7947_v51  ;;  %v7903_v46 = vld [vmem:[%s15426_s3 + $0x100] sm:$0xff]  ;;  %v7960_v21 = vld [vmem:[%s15426_s3 + $0x2c8] sm:$0xff]  ;;  %v7941_v51 = vld [vmem:[%s15426_s3 + $0x230] sm:$0xff] }
 0x926   : > { %v5698_v31 = vpop.f32.mrf.mxu2  ;;  %6764 = vmatpush.msrb.mxu3 %v7963_v22  ;;  %6697 = vmatpush.msra.mxu2 %v7922_v29  ;;  %v7958_v22 = vld [vmem:[%s15426_s3 + $0x2b8] sm:$0xff]  ;;  %v7939_v29 = vld [vmem:[%s15426_s3 + $0x220] sm:$0xff] }
 0x927   : > { %v5699_v16 = vadd.f32 %v5698_v31, %v5633_v19  ;;  %6659 = vmatpush.msra.mxu0 %v7906_v8  ;;  %6727 = vmatpush.msrb.mxu1 %v7946_v15  ;;  %v5784_v19 = vadd.f32 %v5783_v41, %v5718_v61  ;;  %v7920_v61 = vld [vmem:[%s15426_s3 + $0x188] sm:$0xff]  ;;  %v14793_v31 = vld [vmem:[%s15425_s2] ss:$0 sm:$0xff] }
 0x928   : > { %6765 = vmatpush.msrb.mxu3 %v7962_v54  ;;  %6698 = vmatpush.msra.mxu2 %v7921_v55  ;;  %v7980_v15 = vld [vmem:[%s15426_s3 + $0x368] sm:$0xff]  ;;  %v7978_v54 = vld [vmem:[%s15426_s3 + $0x358] sm:$0xff]  ;;  %v7957_v55 = vld [vmem:[%s15426_s3 + $0x2b0] sm:$0xff] }
 0x929   : > { %v6232_v27 = vmax.f32 %v14663_v30, %v5699_v16  ;;  %v5848_v24 = vpop.f32.mrf.mxu0  ;;  %v7944_v30 = vld [vmem:[%s15426_s3 + $0x248] sm:$0xff]  ;;  %6660 = vmatpush.msra.mxu0 %v7905_v52  ;;  %6728 = vmatpush.msrb.mxu1 %v7945_v10  ;;  %v7959_v16 = vld [vmem:[%s15426_s3 + $0x2c0] sm:$0xff]  ;;  %v7998_v52 = vld [vmem:[%s15426_s3 + $0x3f8] sm:$0xff] }
 0x92a   : > { %v5721_v36 = vpop.f32.mrf.mxu1  ;;  %6766 = vmatpush.msrb.mxu3 %v7961_v59  ;;  %6699 = vmatpush.msra.mxu2 %v7920_v61  ;;  %v7937_v59 = vld [vmem:[%s15426_s3 + $0x210] sm:$0xff] }
 0x92b   : > { %v14752_v3 = vmax.f32 %v6232_v27, %v14389_v13  ;;  %v5786_v39 = vpop.f32.mrf.mxu3  ;;  %v7943_v13 = vld [vmem:[%s15426_s3 + $0x240] sm:$0xff]  ;;  %6661 = vmatpush.msra.mxu0 %v7904_v25  ;;  %6729 = vmatpush.msrb.mxu1 %v7944_v30 }
 0x92c   : > { %6767 = vmatpush.msrb.mxu3 %v7960_v21  ;;  %6700 = vmatpush.msra.mxu2 %v7919_v18  ;;  %v5787_v30 = vadd.f32 %v5786_v39, %v5721_v36  ;;  %v7977_v36 = vld [vmem:[%s15426_s3 + $0x350] sm:$0xff]  ;;  %v7956_v39 = vld [vmem:[%s15426_s3 + $0x2a8] sm:$0xff]  ;;  %v7995_v18 = vld [vmem:[%s15426_s3 + $0x3e0] sm:$0xff] }
 0x92d   : > { %6662 = vmatpush.msra.mxu0 %v7903_v46  ;;  %6730 = vmatpush.msrb.mxu1 %v7943_v13  ;;  %v7938_v13 = vld [vmem:[%s15426_s3 + $0x218] sm:$0xff] }
 0x92e   : > { %v5913_v57 = vpop.f32.mrf.mxu2  ;;  %6768 = vmatpush.msrb.mxu3 %v7959_v16  ;;  %6837 = vmatpush.msrb.mxu2 %v7998_v52  ;;  %v7954_v16 = vld [vmem:[%s15426_s3 + $0x298] sm:$0xff] }
 0x92f   : > { %v5914_v41 = vadd.f32 %v5913_v57, %v5848_v24  ;;  %6799 = vmatpush.msrb.mxu0 %v7982_v28  ;;  %6731 = vmatpush.msrb.mxu1 %v7942_v1  ;;  %v7979_v24 = vld [vmem:[%s15426_s3 + $0x360] sm:$0xff]  ;;  %v7996_v57 = vld [vmem:[%s15426_s3 + $0x3e8] sm:$0xff] }
 0x930   : > { %6769 = vmatpush.msrb.mxu3 %v7958_v22  ;;  %v7953_v22 = vld [vmem:[%s15426_s3 + $0x290] sm:$0xff] }
 0x931   : > { %v6233_v37 = vmax.f32 %v5784_v19, %v5914_v41  ;;  %v5851_v8 = vpop.f32.mrf.mxu0  ;;  %6800 = vmatpush.msrb.mxu0 %v7981_v7  ;;  %6732 = vmatpush.msrb.mxu1 %v7941_v51  ;;  %v7976_v41 = vld [vmem:[%s15426_s3 + $0x348] sm:$0xff]  ;;  %v7955_v7 = vld [vmem:[%s15426_s3 + $0x2a0] sm:$0xff] }
 0x932   : > { %v5724_v2 = vpop.f32.mrf.mxu1  ;;  %6770 = vmatpush.msrb.mxu3 %v7957_v55  ;;  %v7936_v51 = vld [vmem:[%s15426_s3 + $0x208] sm:$0xff] }
 0x933   : > { %v6505_v10 = vmax.f32 %v14397_v0, %v6233_v37  ;;  %v5789_v27 = vpop.f32.mrf.mxu3  ;;  %6801 = vmatpush.msrb.mxu0 %v7980_v15  ;;  %v7997_v0 = vld [vmem:[%s15426_s3 + $0x3f0] sm:$0xff]  ;;  %6733 = vmatpush.msrb.mxu1 %v7940_v12  ;;  %v7975_v15 = vld [vmem:[%s15426_s3 + $0x340] sm:$0xff]  ;;  %v7992_v55 = vld [vmem:[%s15426_s3 + $0x3c8] sm:$0xff] }
 0x934   : > { %6838 = vmatpush.msrb.mxu2 %v7997_v0  ;;  %6771 = vmatpush.msrb.mxu3 %v7956_v39  ;;  %v7935_v12 = vld [vmem:[%s15426_s3 + $0x200] sm:$0xff]  ;;  %v7993_v0 = vld [vmem:[%s15426_s3 + $0x3d0] sm:$0xff] }
 0x935   : > { %v6525_v25 = vadd.f32 %v14793_v31, %v6505_v10  ;;  %6802 = vmatpush.msrb.mxu0 %v7979_v24  ;;  %6734 = vmatpush.msrb.mxu1 %v7939_v29  ;;  %v5790_v10 = vadd.f32 %v5789_v27, %v5724_v2  ;;  %v7974_v24 = vld [vmem:[%s15426_s3 + $0x338] sm:$0xff]  ;;  %v7973_v27 = vld [vmem:[%s15426_s3 + $0x330] sm:$0xff]  ;;  %v7951_v39 = vld [vmem:[%s15426_s3 + $0x280] sm:$0xff] }
 0x936   : > { %v5916_v46 = vpop.f32.mrf.mxu2  ;;  %6839 = vmatpush.msrb.mxu2 %v7996_v57  ;;  %6772 = vmatpush.msrb.mxu3 %v7955_v7  ;;  %v8014_v2 = vld [vmem:[%s15426_s3 + $0x478] sm:$0xff] }
 0x937   : > { %v6541_v19 = vmax.f32 %v6525_v25, 0.0  ;;  %v5917_v28 = vadd.f32 %v5916_v46, %v5851_v8  ;;  %6803 = vmatpush.msrb.mxu0 %v7978_v54  ;;  %6735 = vmatpush.msrb.mxu1 %v7938_v13  ;;  %v7952_v54 = vld [vmem:[%s15426_s3 + $0x288] sm:$0xff]  ;;  %v7990_v7 = vld [vmem:[%s15426_s3 + $0x3b8] sm:$0xff] }
 0x938   : > { %6840 = vmatpush.msrb.mxu2 %v7995_v18  ;;  %6773 = vmatpush.msrb.mxu3 %v7954_v16 }
 0x939   : > { %v6234_v1 = vmax.f32 %v5787_v30, %v5917_v28  ;;  %6626 = vmatmul.f32.vlgmr.msra.gmra.mxu3 %v6541_v19  ;;  %v5854_v61 = vpop.f32.mrf.mxu0  ;;  %6804 = vmatpush.msrb.mxu0 %v7977_v36  ;;  %v8013_v19 = vld [vmem:[%s15426_s3 + $0x470] sm:$0xff]  ;;  %v7972_v28 = vld [vmem:[%s15426_s3 + $0x328] sm:$0xff] }
 0x93a   : > { %v5727_v21 = vpop.f32.mrf.mxu1  ;;  %6736 = vmatpush.msrb.mxu1 %v7937_v59  ;;  %6774 = vmatpush.msrb.mxu3 %v7953_v22  ;;  %v7991_v59 = vld [vmem:[%s15426_s3 + $0x3c0] sm:$0xff] }
 0x93b   : > { %v6506_v37 = vmax.f32 %v14405_v58, %v6234_v1  ;;  %v5792_v8 = vpop.f32.mrf.mxu3  ;;  %6805 = vmatpush.msrb.mxu0 %v7976_v41  ;;  %v7994_v58 = vld [vmem:[%s15426_s3 + $0x3d8] sm:$0xff]  ;;  %v7971_v41 = vld [vmem:[%s15426_s3 + $0x320] sm:$0xff] }
 0x93c   : > { %6737 = vmatpush.msrb.mxu1 %v7936_v51  ;;  %6841 = vmatpush.msrb.mxu2 %v7994_v58  ;;  %v5793_v18 = vadd.f32 %v5792_v8, %v5727_v21  ;;  %v8010_v21 = vld [vmem:[%s15426_s3 + $0x458] sm:$0xff]  ;;  %v7969_v8 = vld [vmem:[%s15426_s3 + $0x310] sm:$0xff] }
 0x93d   : > { %v6526_v52 = vadd.f32 %v14793_v31, %v6506_v37  ;;  %6806 = vmatpush.msrb.mxu0 %v7975_v15  ;;  %6775 = vmatpush.msrb.mxu3 %v7952_v54  ;;  %v8011_v37 = vld [vmem:[%s15426_s3 + $0x460] sm:$0xff]  ;;  %v7970_v15 = vld [vmem:[%s15426_s3 + $0x318] sm:$0xff] }
 0x93e   : > { %v5919_v29 = vpop.f32.mrf.mxu2  ;;  %6738 = vmatpush.msrb.mxu1 %v7935_v12  ;;  %6842 = vmatpush.msrb.mxu2 %v7993_v0  ;;  %v7989_v12 = vld [vmem:[%s15426_s3 + $0x3b0] sm:$0xff] }
 0x93f   : > { %v6542_v25 = vmax.f32 %v6526_v52, 0.0  ;;  %v5920_v30 = vadd.f32 %v5919_v29, %v5854_v61  ;;  %6807 = vmatpush.msrb.mxu0 %v7974_v24  ;;  %v8012_v61 = vld [vmem:[%s15426_s3 + $0x468] sm:$0xff]  ;;  %6776 = vmatpush.msrb.mxu3 %v7951_v39  ;;  %v8009_v0 = vld [vmem:[%s15426_s3 + $0x450] sm:$0xff] }
 0x940   : > { %6843 = vmatpush.msrb.mxu2 %v7992_v55  ;;  %v7988_v24 = vld [vmem:[%s15426_s3 + $0x3a8] sm:$0xff] }
 0x941   : > { %v6235_v46 = vmax.f32 %v5790_v10, %v5920_v30  ;;  %6606 = vmatmul.f32.vlgmr.msra.gmra.mxu1 %v6542_v25  ;;  %v5857_v13 = vpop.f32.mrf.mxu0  ;;  %6808 = vmatpush.msrb.mxu0 %v7973_v27  ;;  %v8029_v10 = vld [vmem:[%s15426_s3 + $0x4f0] sm:$0xff]  ;;  %v7968_v25 = vld [vmem:[%s15426_s3 + $0x308] sm:$0xff]  ;;  %v7987_v27 = vld [vmem:[%s15426_s3 + $0x3a0] sm:$0xff] }
 0x942   : > { %v5730_v36 = vpop.f32.mrf.mxu1  ;;  %6875 = vmatpush.msra.mxu1 %v8014_v2  ;;  %6844 = vmatpush.msrb.mxu2 %v7991_v59  ;;  %v8028_v2 = vld [vmem:[%s15426_s3 + $0x4e8] sm:$0xff]  ;;  %v8007_v59 = vld [vmem:[%s15426_s3 + $0x440] sm:$0xff] }
 0x943   : > { %v6507_v57 = vmax.f32 %v14412_v23, %v6235_v46  ;;  %v5795_v1 = vpop.f32.mrf.mxu3  ;;  %6809 = vmatpush.msrb.mxu0 %v7972_v28  ;;  %v8030_v23 = vld [vmem:[%s15426_s3 + $0x4f8] sm:$0xff]  ;;  %v8008_v46 = vld [vmem:[%s15426_s3 + $0x448] sm:$0xff] }
 0x944   : > { %6876 = vmatpush.msra.mxu1 %v8013_v19  ;;  %6845 = vmatpush.msrb.mxu2 %v7990_v7  ;;  %v8027_v19 = vld [vmem:[%s15426_s3 + $0x4e0] sm:$0xff]  ;;  %v5796_v39 = vadd.f32 %v5795_v1, %v5730_v36  ;;  %v8006_v36 = vld [vmem:[%s15426_s3 + $0x438] sm:$0xff]  ;;  %v7985_v1 = vld [vmem:[%s15426_s3 + $0x390] sm:$0xff] }
 0x945   : > { %v6527_v51 = vadd.f32 %v14793_v31, %v6507_v57  ;;  %6810 = vmatpush.msrb.mxu0 %v7971_v41  ;;  %6913 = vmatpush.msra.mxu3 %v8030_v23  ;;  %v8046_v57 = vld [vmem:[%s15426_s3 + $0x578] sm:$0xff] }
 0x946   : > { %v5922_v16 = vpop.f32.mrf.mxu2  ;;  %6877 = vmatpush.msra.mxu1 %v8012_v61  ;;  %6846 = vmatpush.msrb.mxu2 %v7989_v12  ;;  %v8026_v41 = vld [vmem:[%s15426_s3 + $0x4d8] sm:$0xff]  ;;  %v7984_v12 = vld [vmem:[%s15426_s3 + $0x388] sm:$0xff] }
 0x947   : > { %v6543_v58 = vmax.f32 %v6527_v51, 0.0  ;;  %v5923_v52 = vadd.f32 %v5922_v16, %v5857_v13  ;;  %6811 = vmatpush.msrb.mxu0 %v7970_v15  ;;  %6914 = vmatpush.msra.mxu3 %v8029_v10  ;;  %v7967_v13 = vld [vmem:[%s15426_s3 + $0x300] sm:$0xff]  ;;  %v8025_v51 = vld [vmem:[%s15426_s3 + $0x4d0] sm:$0xff] }
 0x948   : > { %6878 = vmatpush.msra.mxu1 %v8011_v37  ;;  %6847 = vmatpush.msrb.mxu2 %v7988_v24  ;;  %v8005_v16 = vld [vmem:[%s15426_s3 + $0x430] sm:$0xff]  ;;  %v8004_v24 = vld [vmem:[%s15426_s3 + $0x428] sm:$0xff] }
 0x949   : > { %v6236_v22 = vmax.f32 %v5793_v18, %v5923_v52  ;;  %6663 = vmatmul.f32.vlgmr.msra.gmra.mxu0 %v6543_v58  ;;  %v5860_v29 = vpop.f32.mrf.mxu0  ;;  %6915 = vmatpush.msra.mxu3 %v8028_v2  ;;  %v8045_v18 = vld [vmem:[%s15426_s3 + $0x570] sm:$0xff]  ;;  %v8024_v52 = vld [vmem:[%s15426_s3 + $0x4c8] sm:$0xff]  ;;  %v8003_v2 = vld [vmem:[%s15426_s3 + $0x420] sm:$0xff] }
 0x94a   : > { %v5733_v30 = vpop.f32.mrf.mxu1  ;;  %6879 = vmatpush.msra.mxu1 %v8010_v21  ;;  %6812 = vmatpush.msrb.mxu0 %v7969_v8  ;;  %v8044_v21 = vld [vmem:[%s15426_s3 + $0x568] sm:$0xff] }
 0x94b   : > { %v6508_v54 = vmax.f32 %v14419_v9, %v6236_v22  ;;  %v5798_v55 = vpop.f32.mrf.mxu3  ;;  %v7986_v9 = vld [vmem:[%s15426_s3 + $0x398] sm:$0xff]  ;;  %6848 = vmatpush.msrb.mxu2 %v7987_v27  ;;  %6916 = vmatpush.msra.mxu3 %v8027_v19  ;;  %v7983_v22 = vld [vmem:[%s15426_s3 + $0x380] sm:$0xff] }
 0x94c   : > { %6880 = vmatpush.msra.mxu1 %v8009_v0  ;;  %6813 = vmatpush.msrb.mxu0 %v7968_v25  ;;  %v5799_v25 = vadd.f32 %v5798_v55, %v5733_v30  ;;  %v8062_v27 = vld [vmem:[%s15426_s3 + $0x5f8] sm:$0xff] }
 0x94d   : > { %v6528_v28 = vadd.f32 %v14793_v31, %v6508_v54  ;;  %6849 = vmatpush.msrb.mxu2 %v7986_v9  ;;  %6917 = vmatpush.msra.mxu3 %v8026_v41  ;;  %v8002_v30 = vld [vmem:[%s15426_s3 + $0x418] sm:$0xff]  ;;  %v8021_v9 = vld [vmem:[%s15426_s3 + $0x4b0] sm:$0xff] }
 0x94e   : > { %v5925_v61 = vpop.f32.mrf.mxu2  ;;  %6881 = vmatpush.msra.mxu1 %v8008_v46  ;;  %6814 = vmatpush.msrb.mxu0 %v7967_v13  ;;  %v8022_v46 = vld [vmem:[%s15426_s3 + $0x4b8] sm:$0xff] }
 0x94f   : > { %v6544_v7 = vmax.f32 %v6528_v28, 0.0  ;;  %v5926_v23 = vadd.f32 %v5925_v61, %v5860_v29  ;;  %6850 = vmatpush.msrb.mxu2 %v7985_v1  ;;  %6918 = vmatpush.msra.mxu3 %v8025_v51  ;;  %v8023_v29 = vld [vmem:[%s15426_s3 + $0x4c0] sm:$0xff]  ;;  %v8042_v55 = vld [vmem:[%s15426_s3 + $0x558] sm:$0xff]  ;;  %v8061_v28 = vld [vmem:[%s15426_s3 + $0x5f0] sm:$0xff] }
 0x950   : > { %6882 = vmatpush.msra.mxu1 %v8007_v59  ;;  %6951 = vmatpush.msra.mxu0 %v8046_v57  ;;  %v8001_v57 = vld [vmem:[%s15426_s3 + $0x410] sm:$0xff]  ;;  %v8000_v51 = vld [vmem:[%s15426_s3 + $0x408] sm:$0xff] }
 0x951   : > { %v6237_v37 = vmax.f32 %v5796_v39, %v5926_v23  ;;  %6701 = vmatmul.f32.vlgmr.msra.gmra.mxu2 %v6544_v7  ;;  %v5863_v15 = vpop.f32.mrf.mxu0  ;;  %6919 = vmatpush.msra.mxu3 %v8024_v52  ;;  %v8041_v61 = vld [vmem:[%s15426_s3 + $0x550] sm:$0xff]  ;;  %v8020_v7 = vld [vmem:[%s15426_s3 + $0x4a8] sm:$0xff]  ;;  %v8039_v52 = vld [vmem:[%s15426_s3 + $0x540] sm:$0xff] }
 0x952   : > { %v5736_v58 = vpop.f32.mrf.mxu1  ;;  %6883 = vmatpush.msra.mxu1 %v8006_v36  ;;  %6952 = vmatpush.msra.mxu0 %v8045_v18  ;;  %v8060_v23 = vld [vmem:[%s15426_s3 + $0x5e8] sm:$0xff] }
 0x953   : > { %v6509_v8 = vmax.f32 %v14426_v33, %v6237_v37  ;;  %v5801_v10 = vpop.f32.mrf.mxu3  ;;  %6851 = vmatpush.msrb.mxu2 %v7984_v12  ;;  %v8043_v33 = vld [vmem:[%s15426_s3 + $0x560] sm:$0xff]  ;;  %6920 = vmatpush.msra.mxu3 %v8023_v29  ;;  %v8040_v18 = vld [vmem:[%s15426_s3 + $0x548] sm:$0xff]  ;;  %v8078_v29 = vld [vmem:[%s15426_s3 + $0x678] sm:$0xff] }
 0x954   : > { %6884 = vmatpush.msra.mxu1 %v8005_v16  ;;  %6953 = vmatpush.msra.mxu0 %v8044_v21  ;;  %v8019_v37 = vld [vmem:[%s15426_s3 + $0x4a0] sm:$0xff]  ;;  %v5802_v16 = vadd.f32 %v5801_v10, %v5736_v58  ;;  %v8018_v58 = vld [vmem:[%s15426_s3 + $0x498] sm:$0xff] }
 0x955   : > { %v6529_v0 = vadd.f32 %v14793_v31, %v6509_v8  ;;  %6852 = vmatpush.msrb.mxu2 %v7983_v22  ;;  %6921 = vmatpush.msra.mxu3 %v8022_v46  ;;  %v7999_v12 = vld [vmem:[%s15426_s3 + $0x400] sm:$0xff]  ;;  %v8058_v8 = vld [vmem:[%s15426_s3 + $0x5d8] sm:$0xff]  ;;  %v8077_v46 = vld [vmem:[%s15426_s3 + $0x670] sm:$0xff] }
 0x956   : > { %v5928_v54 = vpop.f32.mrf.mxu2  ;;  %6885 = vmatpush.msra.mxu1 %v8004_v24  ;;  %6954 = vmatpush.msra.mxu0 %v8043_v33  ;;  %v8038_v10 = vld [vmem:[%s15426_s3 + $0x538] sm:$0xff]  ;;  %v8057_v33 = vld [vmem:[%s15426_s3 + $0x5d0] sm:$0xff] }
 0x957   : > { %v6545_v13 = vmax.f32 %v6529_v0, 0.0  ;;  %v5929_v19 = vadd.f32 %v5928_v54, %v5863_v15  ;;  %6989 = vmatpush.msra.mxu2 %v8062_v27  ;;  %6922 = vmatpush.msra.mxu3 %v8021_v9  ;;  %v8037_v27 = vld [vmem:[%s15426_s3 + $0x530] sm:$0xff]  ;;  %v8036_v9 = vld [vmem:[%s15426_s3 + $0x528] sm:$0xff] }
 0x958   : > { %6886 = vmatpush.msra.mxu1 %v8003_v2  ;;  %6955 = vmatpush.msra.mxu0 %v8042_v55  ;;  %v8017_v2 = vld [vmem:[%s15426_s3 + $0x490] sm:$0xff]  ;;  %v8016_v55 = vld [vmem:[%s15426_s3 + $0x488] sm:$0xff] }
 0x959   : > { %v6238_v39 = vmax.f32 %v5799_v25, %v5929_v19  ;;  %6739 = vmatmul.f32.vlgmr.msrb.gmra.mxu1 %v6545_v13  ;;  %v5866_v59 = vpop.f32.mrf.mxu0  ;;  %6990 = vmatpush.msra.mxu2 %v8061_v28  ;;  %v8056_v13 = vld [vmem:[%s15426_s3 + $0x5c8] sm:$0xff] }
 0x95a   : > { %v5739_v41 = vpop.f32.mrf.mxu1  ;;  %6887 = vmatpush.msra.mxu1 %v8002_v30  ;;  %6956 = vmatpush.msra.mxu0 %v8041_v61  ;;  %v8076_v28 = vld [vmem:[%s15426_s3 + $0x668] sm:$0xff]  ;;  %v8035_v61 = vld [vmem:[%s15426_s3 + $0x520] sm:$0xff] }
 0x95b   : > { %v6510_v36 = vmax.f32 %v14433_v50, %v6238_v39  ;;  %v5804_v1 = vpop.f32.mrf.mxu3  ;;  %v8059_v50 = vld [vmem:[%s15426_s3 + $0x5e0] sm:$0xff]  ;;  %6923 = vmatpush.msra.mxu3 %v8020_v7  ;;  %6991 = vmatpush.msra.mxu2 %v8060_v23 }
 0x95c   : > { %6888 = vmatpush.msra.mxu1 %v8001_v57  ;;  %6957 = vmatpush.msra.mxu0 %v8040_v18  ;;  %v8015_v57 = vld [vmem:[%s15426_s3 + $0x480] sm:$0xff]  ;;  %v8074_v18 = vld [vmem:[%s15426_s3 + $0x658] sm:$0xff] }
 0x95d   : > { %v6530_v15 = vadd.f32 %v14793_v31, %v6510_v36  ;;  %6924 = vmatpush.msra.mxu3 %v8019_v37  ;;  %6992 = vmatpush.msra.mxu2 %v8059_v50  ;;  %v8075_v23 = vld [vmem:[%s15426_s3 + $0x660] sm:$0xff]  ;;  %v8094_v37 = vld [vmem:[%s15426_s3 + $0x6f8] sm:$0xff]  ;;  %v5548_v50 = vadd.f32 %v14447_v5, %v14440_v26  ;;  %v8073_v26 = vld [vmem:[%s15426_s3 + $0x650] sm:$0xff] }
 0x95e   : > { %v5931_v21 = vpop.f32.mrf.mxu2  ;;  %6889 = vmatpush.msra.mxu1 %v8000_v51  ;;  %6958 = vmatpush.msra.mxu0 %v8039_v52  ;;  %v8033_v52 = vld [vmem:[%s15426_s3 + $0x510] sm:$0xff] }
 0x95f   : > { %v6546_v24 = vmax.f32 %v6530_v15, 0.0  ;;  %v5932_v22 = vadd.f32 %v5931_v21, %v5866_v59  ;;  %6993 = vmatpush.msra.mxu2 %v8058_v8  ;;  %6925 = vmatpush.msra.mxu3 %v8018_v58  ;;  %v5805_v59 = vadd.f32 %v5804_v1, %v5739_v41  ;;  %v8034_v41 = vld [vmem:[%s15426_s3 + $0x518] sm:$0xff]  ;;  %v5678_v15 = vadd.f32 %v14474_v34, %v14452_v40  ;;  %v8053_v21 = vld [vmem:[%s15426_s3 + $0x5b0] sm:$0xff]  ;;  %v8072_v58 = vld [vmem:[%s15426_s3 + $0x648] sm:$0xff] }
 0x960   : > { %6890 = vmatpush.msra.mxu1 %v7999_v12  ;;  %6959 = vmatpush.msra.mxu0 %v8038_v10  ;;  %v8054_v1 = vld [vmem:[%s15426_s3 + $0x5b8] sm:$0xff]  ;;  %v8093_v5 = vld [vmem:[%s15426_s3 + $0x6f0] sm:$0xff] }
 0x961   : > { %v6239_v0 = vmax.f32 %v5802_v16, %v5932_v22  ;;  %6777 = vmatmul.f32.vlgmr.msrb.gmra.mxu3 %v6546_v24  ;;  %v5869_v25 = vpop.f32.mrf.mxu0  ;;  %6994 = vmatpush.msra.mxu2 %v8057_v33  ;;  %v8032_v24 = vld [vmem:[%s15426_s3 + $0x508] sm:$0xff]  ;;  %v6225_v10 = vmax.f32 %v5548_v50, %v5678_v15  ;;  %v8047_v50 = vld [vmem:[%s15426_s3 + $0x580] sm:$0xff] }
 0x962   : > { %v5742_v54 = vpop.f32.mrf.mxu1  ;;  %7027 = vmatpush.msrb.mxu1 %v8078_v29  ;;  %6926 = vmatpush.msra.mxu3 %v8017_v2  ;;  %v8052_v22 = vld [vmem:[%s15426_s3 + $0x5a8] sm:$0xff] }
 0x963   : > { %v6511_v19 = vmax.f32 %v14443_v14, %v6239_v0  ;;  %v5807_v30 = vpop.f32.mrf.mxu3  ;;  %6960 = vmatpush.msra.mxu0 %v8037_v27  ;;  %v8055_v14 = vld [vmem:[%s15426_s3 + $0x5c0] sm:$0xff]  ;;  %6995 = vmatpush.msra.mxu2 %v8056_v13 }
 0x964   : > { %7028 = vmatpush.msrb.mxu1 %v8077_v46  ;;  %6927 = vmatpush.msra.mxu3 %v8016_v55  ;;  %v5808_v33 = vadd.f32 %v5807_v30, %v5742_v54  ;;  %v8031_v0 = vld [vmem:[%s15426_s3 + $0x500] sm:$0xff]  ;;  %v5551_v30 = vadd.f32 %v14461_v56, %v14454_v63  ;;  %v8070_v55 = vld [vmem:[%s15426_s3 + $0x638] sm:$0xff]  ;;  %v8049_v56 = vld [vmem:[%s15426_s3 + $0x590] sm:$0xff] }
 0x965   : > { %v6531_v39 = vadd.f32 %v14793_v31, %v6511_v19  ;;  %6961 = vmatpush.msra.mxu0 %v8036_v9  ;;  %6996 = vmatpush.msra.mxu2 %v8055_v14  ;;  %v8071_v27 = vld [vmem:[%s15426_s3 + $0x640] sm:$0xff]  ;;  %v8050_v19 = vld [vmem:[%s15426_s3 + $0x598] sm:$0xff]  ;;  %v5681_v14 = vadd.f32 %v14500_v42, %v14478_v4  ;;  %v8109_v4 = vld [vmem:[%s15426_s3 + $0x770] sm:$0xff] }
 0x966   : > { %v5934_v7 = vpop.f32.mrf.mxu2  ;;  %7029 = vmatpush.msrb.mxu1 %v8076_v28  ;;  %6928 = vmatpush.msra.mxu3 %v8015_v57  ;;  %v8091_v54 = vld [vmem:[%s15426_s3 + $0x6e0] sm:$0xff]  ;;  %v8110_v9 = vld [vmem:[%s15426_s3 + $0x778] sm:$0xff]  ;;  %v6497_v28 = vmax.f32 %v6225_v10, %v14263_v45  ;;  %v8069_v45 = vld [vmem:[%s15426_s3 + $0x630] sm:$0xff] }
 0x967   : > { %v6547_v36 = vmax.f32 %v6531_v39, 0.0  ;;  %v5935_v51 = vadd.f32 %v5934_v7, %v5869_v25  ;;  %6962 = vmatpush.msra.mxu0 %v8035_v61  ;;  %6997 = vmatpush.msra.mxu2 %v8054_v1  ;;  %v8051_v25 = vld [vmem:[%s15426_s3 + $0x5a0] sm:$0xff]  ;;  %v8090_v63 = vld [vmem:[%s15426_s3 + $0x6d8] sm:$0xff]  ;;  %v8089_v7 = vld [vmem:[%s15426_s3 + $0x6d0] sm:$0xff] }
 0x968   : > { %7030 = vmatpush.msrb.mxu1 %v8075_v23  ;;  %7065 = vmatpush.msrb.mxu3 %v8094_v37  ;;  %v8048_v23 = vld [vmem:[%s15426_s3 + $0x588] sm:$0xff] }
 0x969   : > { %v6240_v16 = vmax.f32 %v5805_v59, %v5935_v51  ;;  %6815 = vmatmul.f32.vlgmr.msrb.gmra.mxu0 %v6547_v36  ;;  %v5872_v12 = vpop.f32.mrf.mxu0  ;;  %6998 = vmatpush.msra.mxu2 %v8053_v21  ;;  %v8068_v36 = vld [vmem:[%s15426_s3 + $0x628] sm:$0xff]  ;;  %v8067_v21 = vld [vmem:[%s15426_s3 + $0x620] sm:$0xff] }
 0x96a   : > { %v5745_v8 = vpop.f32.mrf.mxu1  ;;  %6963 = vmatpush.msra.mxu0 %v8034_v41  ;;  %7031 = vmatpush.msrb.mxu1 %v8074_v18  ;;  %v8108_v51 = vld [vmem:[%s15426_s3 + $0x768] sm:$0xff]  ;;  %v6226_v41 = vmax.f32 %v5551_v30, %v5681_v14  ;;  %v8103_v30 = vld [vmem:[%s15426_s3 + $0x740] sm:$0xff] }
 0x96b   : > { %v6512_v40 = vmax.f32 %v14457_v48, %v6240_v16  ;;  %v5810_v34 = vpop.f32.mrf.mxu3  ;;  %v8092_v48 = vld [vmem:[%s15426_s3 + $0x6e8] sm:$0xff]  ;;  %7066 = vmatpush.msrb.mxu3 %v8093_v5  ;;  %6999 = vmatpush.msra.mxu2 %v8052_v22  ;;  %v8107_v16 = vld [vmem:[%s15426_s3 + $0x760] sm:$0xff]  ;;  %v8106_v5 = vld [vmem:[%s15426_s3 + $0x758] sm:$0xff] }
 0x96c   : > { %6964 = vmatpush.msra.mxu0 %v8033_v52  ;;  %7032 = vmatpush.msrb.mxu1 %v8073_v26  ;;  %v5811_v18 = vadd.f32 %v5810_v34, %v5745_v8  ;;  %v8088_v37 = vld [vmem:[%s15426_s3 + $0x6c8] sm:$0xff]  ;;  %v8087_v8 = vld [vmem:[%s15426_s3 + $0x6c0] sm:$0xff]  ;;  %v5554_v26 = vadd.f32 %v14484_v53, %v14480_v43  ;;  %v6498_v34 = vmax.f32 %v6226_v41, %v14284_v32  ;;  %v8066_v43 = vld [vmem:[%s15426_s3 + $0x618] sm:$0xff] }
 0x96d   : > { %v6532_v29 = vadd.f32 %v14793_v31, %v6512_v40  ;;  %7067 = vmatpush.msrb.mxu3 %v8092_v48  ;;  %7000 = vmatpush.msra.mxu2 %v8051_v25  ;;  %v8126_v40 = vld [vmem:[%s15426_s3 + $0x7f8] sm:$0xff]  ;;  %v8105_v32 = vld [vmem:[%s15426_s3 + $0x750] sm:$0xff]  ;;  %v8124_v25 = vld [vmem:[%s15426_s3 + $0x7e8] sm:$0xff] }
 0x96e   : > { %v5937_v2 = vpop.f32.mrf.mxu2  ;;  %6965 = vmatpush.msra.mxu0 %v8032_v24  ;;  %7033 = vmatpush.msrb.mxu1 %v8072_v58  ;;  %v5684_v24 = vadd.f32 %v14526_v20, %v14504_v60  ;;  %v8086_v53 = vld [vmem:[%s15426_s3 + $0x6b8] sm:$0xff]  ;;  %v8125_v60 = vld [vmem:[%s15426_s3 + $0x7f0] sm:$0xff]  ;;  %v8083_v14 = vld [vmem:[%s15426_s3 + $0x6a0] sm:$0xff] }
 0x96f   : > { %v6548_v46 = vmax.f32 %v6532_v29, 0.0  ;;  %v5938_v13 = vadd.f32 %v5937_v2, %v5872_v12  ;;  %7068 = vmatpush.msrb.mxu3 %v8091_v54  ;;  %7001 = vmatpush.msra.mxu2 %v8050_v19  ;;  %v8065_v29 = vld [vmem:[%s15426_s3 + $0x610] sm:$0xff]  ;;  %v8084_v54 = vld [vmem:[%s15426_s3 + $0x6a8] sm:$0xff] }
 0x970   : > { %6966 = vmatpush.msra.mxu0 %v8031_v0  ;;  %7034 = vmatpush.msrb.mxu1 %v8071_v27  ;;  %v8104_v0 = vld [vmem:[%s15426_s3 + $0x748] sm:$0xff]  ;;  %v6227_v2 = vmax.f32 %v5554_v26, %v5684_v24  ;;  %v8117_v24 = vld [vmem:[%s15426_s3 + $0x7b0] sm:$0xff] }
 0x971   : > { %v6241_v39 = vmax.f32 %v5808_v33, %v5938_v13  ;;  %6853 = vmatmul.f32.vlgmr.msrb.gmra.mxu2 %v6548_v46  ;;  %v5875_v59 = vpop.f32.mrf.mxu0  ;;  %7069 = vmatpush.msrb.mxu3 %v8090_v63  ;;  %v8085_v33 = vld [vmem:[%s15426_s3 + $0x6b0] sm:$0xff]  ;;  %v8064_v13 = vld [vmem:[%s15426_s3 + $0x608] sm:$0xff]  ;;  %v8102_v63 = vld [vmem:[%s15426_s3 + $0x738] sm:$0xff] }
 0x972   : > { %v5748_v57 = vpop.f32.mrf.mxu1  ;;  %7035 = vmatpush.msrb.mxu1 %v8070_v55  ;;  %7103 = vmatpush.msrb.mxu0 %v8110_v9 }
 0x973   : > { %v6513_v42 = vmax.f32 %v6497_v28, %v6241_v39  ;;  %v5813_v61 = vpop.f32.mrf.mxu3  ;;  %7002 = vmatpush.msra.mxu2 %v8049_v56  ;;  %7070 = vmatpush.msrb.mxu3 %v8089_v7  ;;  %v8063_v28 = vld [vmem:[%s15426_s3 + $0x600] sm:$0xff]  ;;  %v5557_v39 = vadd.f32 %v14510_v49, %v14506_v38  ;;  %v6499_v56 = vmax.f32 %v6227_v2, %v14311_v44  ;;  %v8082_v38 = vld [vmem:[%s15426_s3 + $0x698] sm:$0xff]  ;;  %v8101_v44 = vld [vmem:[%s15426_s3 + $0x730] sm:$0xff] }
 0x974   : > { %7036 = vmatpush.msrb.mxu1 %v8069_v45  ;;  %7104 = vmatpush.msrb.mxu0 %v8109_v4  ;;  %v5814_v46 = vadd.f32 %v5813_v61, %v5748_v57  ;;  %v5687_v57 = vadd.f32 %v14560_v6, %v14536_v35  ;;  %v8122_v49 = vld [vmem:[%s15426_s3 + $0x7d8] sm:$0xff]  ;;  %v8081_v6 = vld [vmem:[%s15426_s3 + $0x690] sm:$0xff] }
 0x975   : > { %v6533_v1 = vadd.f32 %v14793_v31, %v6513_v42  ;;  %7003 = vmatpush.msra.mxu2 %v8048_v23  ;;  %7071 = vmatpush.msrb.mxu3 %v8088_v37  ;;  %v8121_v7 = vld [vmem:[%s15426_s3 + $0x7d0] sm:$0xff]  ;;  %v8100_v23 = vld [vmem:[%s15426_s3 + $0x728] sm:$0xff] }
 0x976   : > { %v5940_v15 = vpop.f32.mrf.mxu2  ;;  %7037 = vmatpush.msrb.mxu1 %v8068_v36  ;;  %7105 = vmatpush.msrb.mxu0 %v8108_v51  ;;  %v6228_v36 = vmax.f32 %v5557_v39, %v5687_v57  ;;  %v8120_v37 = vld [vmem:[%s15426_s3 + $0x7c8] sm:$0xff] }
 0x977   : > { %v6549_v12 = vmax.f32 %v6533_v1, 0.0  ;;  %v5941_v52 = vadd.f32 %v5940_v15, %v5875_v59  ;;  %7004 = vmatpush.msra.mxu2 %v8047_v50  ;;  %7072 = vmatpush.msrb.mxu3 %v8087_v8  ;;  %v8123_v59 = vld [vmem:[%s15426_s3 + $0x7e0] sm:$0xff]  ;;  %v8080_v1 = vld [vmem:[%s15426_s3 + $0x688] sm:$0xff] }
 0x978   : > { %7106 = vmatpush.msrb.mxu0 %v8107_v16  ;;  %7038 = vmatpush.msrb.mxu1 %v8067_v21  ;;  %v8079_v16 = vld [vmem:[%s15426_s3 + $0x680] sm:$0xff]  ;;  %v6500_v21 = vmax.f32 %v6228_v36, %v14332_v62  ;;  %v8097_v62 = vld [vmem:[%s15426_s3 + $0x710] sm:$0xff] }
 0x979   : > { %v6242_v22 = vmax.f32 %v5811_v18, %v5941_v52  ;;  %6891 = vmatmul.f32.vlgmr.msra.gmra.mxu1 %v6549_v12  ;;  %v5878_v58 = vpop.f32.mrf.mxu0  ;;  %7141 = vmatpush.msrb.mxu2 %v8126_v40  ;;  %v8099_v12 = vld [vmem:[%s15426_s3 + $0x720] sm:$0xff]  ;;  %v8118_v40 = vld [vmem:[%s15426_s3 + $0x7b8] sm:$0xff] }
 0x97a   : > { %v5751_v48 = vpop.f32.mrf.mxu1  ;;  %7107 = vmatpush.msrb.mxu0 %v8106_v5  ;;  %7039 = vmatpush.msrb.mxu1 %v8066_v43  ;;  %v8119_v52 = vld [vmem:[%s15426_s3 + $0x7c0] sm:$0xff]  ;;  %v8098_v5 = vld [vmem:[%s15426_s3 + $0x718] sm:$0xff] }
 0x97b   : > { %v6514_v20 = vmax.f32 %v6498_v34, %v6242_v22  ;;  %v5816_v10 = vpop.f32.mrf.mxu3  ;;  %7073 = vmatpush.msrb.mxu3 %v8086_v53  ;;  %7142 = vmatpush.msrb.mxu2 %v8125_v60  ;;  %v8096_v53 = vld [vmem:[%s15426_s3 + $0x708] sm:$0xff] }
 0x97c   : > { %7108 = vmatpush.msrb.mxu0 %v8105_v32  ;;  %7040 = vmatpush.msrb.mxu1 %v8065_v29  ;;  %v5817_v41 = vadd.f32 %v5816_v10, %v5751_v48  ;;  %v8116_v10 = vld [vmem:[%s15426_s3 + $0x7a8] sm:$0xff]  ;;  %v8095_v29 = vld [vmem:[%s15426_s3 + $0x700] sm:$0xff] }
 0x97d   : > { %v6534_v27 = vadd.f32 %v14793_v31, %v6514_v20  ;;  %7074 = vmatpush.msrb.mxu3 %v8085_v33  ;;  %7143 = vmatpush.msrb.mxu2 %v8124_v25  ;;  %v8115_v25 = vld [vmem:[%s15426_s3 + $0x7a0] sm:$0xff] }
 0x97e   : > { %v5943_v19 = vpop.f32.mrf.mxu2  ;;  %7109 = vmatpush.msrb.mxu0 %v8104_v0  ;;  %7041 = vmatpush.msrb.mxu1 %v8064_v13 }
 0x97f   : > { %v6550_v55 = vmax.f32 %v6534_v27, 0.0  ;;  %v5944_v9 = vadd.f32 %v5943_v19, %v5878_v58  ;;  %7075 = vmatpush.msrb.mxu3 %v8084_v54  ;;  %7144 = vmatpush.msrb.mxu2 %v8123_v59  ;;  %v8114_v27 = vld [vmem:[%s15426_s3 + $0x798] sm:$0xff]  ;;  %v8113_v54 = vld [vmem:[%s15426_s3 + $0x790] sm:$0xff] }
 0x980   : > { %7110 = vmatpush.msrb.mxu0 %v8103_v30  ;;  %7042 = vmatpush.msrb.mxu1 %v8063_v28 }
 0x981   : > { %v6243_v45 = vmax.f32 %v5814_v46, %v5944_v9  ;;  %6929 = vmatmul.f32.vlgmr.msra.gmra.mxu3 %v6550_v55  ;;  %v5881_v4 = vpop.f32.mrf.mxu0  ;;  %7145 = vmatpush.msrb.mxu2 %v8122_v49 }
 0x982   : > { %7076 = vmatpush.msrb.mxu3 %v8083_v14  ;;  %v5754_v35 = vpop.f32.mrf.mxu1  ;;  %7111 = vmatpush.msrb.mxu0 %v8102_v63  ;;  %v8402_v63 = vld [vmem:[%s15425_s2] ss:$0 sm:$0xff] }
 0x983   : > { %v6515_v42 = vmax.f32 %v6499_v56, %v6243_v45  ;;  %v5819_v61 = vpop.f32.mrf.mxu3  ;;  %7146 = vmatpush.msrb.mxu2 %v8121_v7 }
 0x984   : > { %7077 = vmatpush.msrb.mxu3 %v8082_v38  ;;  %7112 = vmatpush.msrb.mxu0 %v8101_v44  ;;  %v5820_v58 = vadd.f32 %v5819_v61, %v5754_v35 }
 0x985   : > { %v6535_v51 = vadd.f32 %v14793_v31, %v6515_v42  ;;  %7147 = vmatpush.msrb.mxu2 %v8120_v37  ;;  %v7174_v37 = vld [vmem:[%s15428_s5 + $0x30] sm:$0x3] }
 0x986   : > { %v5946_v18 = vpop.f32.mrf.mxu2  ;;  %7078 = vmatpush.msrb.mxu3 %v8081_v6  ;;  %7113 = vmatpush.msrb.mxu0 %v8100_v23 }
 0x987   : > { %v6551_v50 = vmax.f32 %v6535_v51, 0.0  ;;  %v5947_v15 = vadd.f32 %v5946_v18, %v5881_v4  ;;  %7148 = vmatpush.msrb.mxu2 %v8119_v52  ;;  %8127 = vmatpush.msk.msra.mxu1 %vm7183_vm1, %v7174_v37 }
 0x988   : > { %7079 = vmatpush.msrb.mxu3 %v8080_v1  ;;  %7114 = vmatpush.msrb.mxu0 %v8099_v12 }
 0x989   : > { %v6244_v8 = vmax.f32 %v5817_v41, %v5947_v15  ;;  %6967 = vmatmul.f32.vlgmr.msra.gmra.mxu0 %v6551_v50  ;;  %v5884_v26 = vpop.f32.mrf.mxu0  ;;  %7149 = vmatpush.msrb.mxu2 %v8118_v40  ;;  %v7172_v50 = vld [vmem:[%s15428_s5 + $0x20] sm:$0xff] }
 0x98a   : > { %7080 = vmatpush.msrb.mxu3 %v8079_v16  ;;  %7115 = vmatpush.msrb.mxu0 %v8098_v5  ;;  %v5757_v43 = vpop.f32.mrf.mxu1  ;;  %v7171_v5 = vld [vmem:[%s15428_s5 + $0x18] sm:$0xff] }
 0x98b   : > { %v6516_v34 = vmax.f32 %v6500_v21, %v6244_v8  ;;  %v5822_v32 = vpop.f32.mrf.mxu3  ;;  %7150 = vmatpush.msrb.mxu2 %v8117_v24 }
 0x98c   : > { %7116 = vmatpush.msrb.mxu0 %v8097_v62  ;;  %v5823_v13 = vadd.f32 %v5822_v32, %v5757_v43  ;;  %v7170_v62 = vld [vmem:[%s15428_s5 + $0x10] sm:$0xff]  ;;  %v7168_v43 = vld [vmem:[%s15428_s5] sm:$0xff] }
 0x98d   : > { %v6536_v22 = vadd.f32 %v14793_v31, %v6516_v34  ;;  %7151 = vmatpush.msrb.mxu2 %v8116_v10  ;;  %v7216_v32 = vld [vmem:[%s15430_s7 + $0x30] sm:$0x3]  ;;  %v7214_v10 = vld [vmem:[%s15430_s7 + $0x20] sm:$0xff] }
 0x98e   : > { %v5949_v48 = vpop.f32.mrf.mxu2  ;;  %7117 = vmatpush.msrb.mxu0 %v8096_v53  ;;  %8129 = vmatpush.msk.msra.mxu3 %vm7183_vm1, %v7216_v32 }
 0x98f   : > { %v6552_v60 = vmax.f32 %v6536_v22, 0.0  ;;  %v5950_v20 = vadd.f32 %v5949_v48, %v5884_v26  ;;  %7152 = vmatpush.msrb.mxu2 %v8115_v25  ;;  %v7169_v22 = vld [vmem:[%s15428_s5 + $0x8] sm:$0xff] }
 0x990   : > { %7118 = vmatpush.msrb.mxu0 %v8095_v29 }
 0x991   : > { %v6245_v33 = vmax.f32 %v5820_v58, %v5950_v20  ;;  %7005 = vmatmul.f32.vlgmr.msra.gmra.mxu2 %v6552_v60  ;;  %v5887_v0 = vpop.f32.mrf.mxu0  ;;  %v7215_v60 = vld [vmem:[%s15430_s7 + $0x28] sm:$0xff] }
 0x992   : > { %7153 = vmatpush.msrb.mxu2 %v8114_v27  ;;  %v5760_v9 = vpop.f32.mrf.mxu1  ;;  %7237 = vmatpush.msra.mxu3 %v7215_v60 }
 0x993   : > { %v6517_v2 = vmax.f32 %v14613_v11, %v6245_v33  ;;  %v8112_v11 = vld [vmem:[%s15426_s3 + $0x788] sm:$0xff]  ;;  %v5825_v28 = vpop.f32.mrf.mxu3  ;;  %v7213_v33 = vld [vmem:[%s15430_s7 + $0x18] sm:$0xff] }
 0x994   : > { %7154 = vmatpush.msrb.mxu2 %v8113_v54  ;;  %v5826_v57 = vadd.f32 %v5825_v28, %v5760_v9  ;;  %7238 = vmatpush.msra.mxu3 %v7214_v10 }
 0x995   : > { %v6537_v46 = vadd.f32 %v14793_v31, %v6517_v2  ;;  %v8111_v31 = vld [vmem:[%s15426_s3 + $0x780] sm:$0xff] }
 0x996   : > { %v5952_v19 = vpop.f32.mrf.mxu2  ;;  %7155 = vmatpush.msrb.mxu2 %v8112_v11  ;;  %7239 = vmatpush.msra.mxu3 %v7213_v33 }
 0x997   : > { %v6553_v30 = vmax.f32 %v6537_v46, 0.0  ;;  %v5953_v55 = vadd.f32 %v5952_v19, %v5887_v0 }
 0x998   : > { %7156 = vmatpush.msrb.mxu2 %v8111_v31 }
 0x999   : > { %v6246_v14 = vmax.f32 %v5823_v13, %v5953_v55  ;;  %7043 = vmatmul.f32.vlgmr.msrb.gmra.mxu1 %v6553_v30  ;;  %v5890_v39 = vpop.f32.mrf.mxu0 }
 0x99a   : > { %v5763_v44 = vpop.f32.mrf.mxu1 }
 0x99b   : > { %v6518_v59 = vmax.f32 %v14652_v47, %v6246_v14  ;;  %v5828_v42 = vpop.f32.mrf.mxu3  ;;  %v8143_v14 = vld [vmem:[%s15427_s4] ss:$0 sm:$0xff] }
 0x99c   : > { %v5829_v7 = vadd.f32 %v5828_v42, %v5763_v44 }
 0x99d   : > { %v6538_v56 = vadd.f32 %v8402_v63, %v6518_v59 }
 0x99e   : > { %v5955_v45 = vpop.f32.mrf.mxu2 }
 0x99f   : > { %v6554_v4 = vmax.f32 %v6538_v56, 0.0  ;;  %v5956_v38 = vadd.f32 %v5955_v45, %v5890_v39  ;;  %v7212_v56 = vld [vmem:[%s15430_s7 + $0x10] sm:$0xff]  ;;  %v7210_v45 = vld [vmem:[%s15430_s7] sm:$0xff] }
 0x9a0   : > { %7240 = vmatpush.msra.mxu3 %v7212_v56 }
 0x9a1   : > { %v6247_v49 = vmax.f32 %v5826_v57, %v5956_v38  ;;  %7081 = vmatmul.f32.vlgmr.msrb.gmra.mxu3 %v6554_v4  ;;  %v5893_v6 = vpop.f32.mrf.mxu0  ;;  %v7211_v57 = vld [vmem:[%s15430_s7 + $0x8] sm:$0xff]  ;;  %v8144_v4 = vld [vmem:[%s15429_s6] ss:$0 sm:$0xff] }
 0x9a2   : > { %7241 = vmatpush.msra.mxu3 %v7211_v57 }
 0x9a3   : > { %v6519_v35 = vmax.f32 %v14697_v17, %v6247_v49  ;;  %v7173_v17 = vld [vmem:[%s15428_s5 + $0x28] sm:$0xff] }
 0x9a4   : > { %7197 = vmatpush.msra.mxu1 %v7173_v17  ;;  %7242 = vmatpush.msra.mxu3 %v7210_v45 }
 0x9a5   : > { %v6539_v61 = vadd.f32 %v8402_v63, %v6519_v35  ;;  %v8145_v35 = vld [vmem:[%s15431_s8] ss:$0 sm:$0xff] }
 0x9a6   : > { %v5958_v47 = vpop.f32.mrf.mxu2  ;;  %7198 = vmatpush.msra.mxu1 %v7172_v50 }
 0x9a7   : > { %v6555_v23 = vmax.f32 %v6539_v61, 0.0  ;;  %v5959_v36 = vadd.f32 %v5958_v47, %v5893_v6 }
 0x9a8   : > { %7199 = vmatpush.msra.mxu1 %v7171_v5 }
 0x9a9   : > { %v6248_v51 = vmax.f32 %v5829_v7, %v5959_v36  ;;  %7119 = vmatmul.f32.vlgmr.msrb.gmra.mxu0 %v6555_v23 }
 0x9aa   : > { %7200 = vmatpush.msra.mxu1 %v7170_v62 }
 0x9ab   : > { %v6520_v41 = vmax.f32 %v14752_v3, %v6248_v51 }
 0x9ac   : > { %7201 = vmatpush.msra.mxu1 %v7169_v22 }
 0x9ad   : > { %v6540_v1 = vadd.f32 %v8402_v63, %v6520_v41 }
 0x9ae   : > { %7202 = vmatpush.msra.mxu1 %v7168_v43 }
 0x9af   : > { %v6556_v18 = vmax.f32 %v6540_v1, 0.0 }
 0x9b1   : > { %7157 = vmatmul.f32.vlgmr.msrb.gmra.mxu2 %v6556_v18 }
 0x9bc   : > { %v6627_v3 = vpop.f32.mrf.mxu3 }
 0x9be   : > { %v6607_v15 = vpop.f32.mrf.mxu1 }
 0x9bf   : > { %v6628_v12 = vadd.f32 %v6627_v3, %v6607_v15 }
 0x9c6   : > { %v6664_v16 = vpop.f32.mrf.mxu0 }
 0x9c7   : > { %v6667_v21 = vadd.f32 %v6664_v16, %v6628_v12 }
 0x9d4   : > { %v6702_v52 = vpop.f32.mrf.mxu2 }
 0x9d5   : > { %v6705_v8 = vadd.f32 %v6702_v52, %v6667_v21 }
 0x9d6   : > { %v6740_v26 = vpop.f32.mrf.mxu1 }
 0x9d7   : > { %v6743_v34 = vadd.f32 %v6740_v26, %v6705_v8 }
 0x9e4   : > { %v6778_v40 = vpop.f32.mrf.mxu3 }
 0x9e5   : > { %v6781_v24 = vadd.f32 %v6778_v40, %v6743_v34 }
 0x9e6   : > { %v6816_v58 = vpop.f32.mrf.mxu0 }
 0x9e7   : > { %v6819_v48 = vadd.f32 %v6816_v58, %v6781_v24 }
 0x9f4   : > { %v6854_v53 = vpop.f32.mrf.mxu2 }
 0x9f5   : > { %v6857_v20 = vadd.f32 %v6854_v53, %v6819_v48 }
 0x9f6   : > { %v6892_v29 = vpop.f32.mrf.mxu1 }
 0x9f7   : > { %v6895_v25 = vadd.f32 %v6892_v29, %v6857_v20 }
 0xa04   : > { %v6930_v0 = vpop.f32.mrf.mxu3 }
 0xa05   : > { %v6933_v2 = vadd.f32 %v6930_v0, %v6895_v25 }
 0xa06   : > { %v6968_v27 = vpop.f32.mrf.mxu0 }
 0xa07   : > { %v6971_v13 = vadd.f32 %v6968_v27, %v6933_v2 }
 0xa14   : > { %v7006_v46 = vpop.f32.mrf.mxu2 }
 0xa15   : > { %v7009_v54 = vadd.f32 %v7006_v46, %v6971_v13 }
 0xa16   : > { %v7044_v19 = vpop.f32.mrf.mxu1 }
 0xa17   : > { %v7047_v55 = vadd.f32 %v7044_v19, %v7009_v54 }
 0xa24   : > { %v7082_v30 = vpop.f32.mrf.mxu3 }
 0xa25   : > { %v7085_v11 = vadd.f32 %v7082_v30, %v7047_v55 }
 0xa26   : > { %v7120_v9 = vpop.f32.mrf.mxu0 }
 0xa27   : > { %v7123_v28 = vadd.f32 %v7120_v9, %v7085_v11 }
 0xa34   : > { %v7158_v31 = vpop.f32.mrf.mxu2 }
 0xa35   : > { %v7161_v39 = vadd.f32 %v7158_v31, %v7123_v28 }
 0xa37   : > { %v7166_v59 = vadd.f32 %v8143_v14, %v7161_v39 }
 0xa39   : > { %v7167_v63 = vmax.f32 %v7166_v59, 0.0 }
 0xa3b   : > { %8128 = vmatmul.msk.f32.vlgmr.msra.gmra.mxu1 %vm7179_vm2, %v7167_v63 }
 0xab8   : > { %v7204_v38 = vpop.f32.mrf.mxu1 }
 0xab9   : > { %v7205_v49 = vadd.f32 %v8144_v4, %v7204_v38 }
 0xabb   : > { %vm7207_vm3 = vcmp.gt.f32.partialorder %v7205_v49, 0.0  ;;  %v7208_v44 = vmul.f32 0.01, %v7205_v49 }
 0xabd   : > { %v7209_v42 = vsel %vm7207_vm3, %v7205_v49, %v7208_v44 }
 0xabe   : > { %8130 = vmatmul.msk.f32.vlgmr.msra.gmra.mxu3 %vm7179_vm2, %v7209_v42 }
 0xb41   : > { %v7244_v6 = vpop.f32.mrf.mxu3 }
 0xb42   : > { %v7245_v61 = vadd.f32 %v8145_v35, %v7244_v6 }
 0xb44   : > { %7248 = vst.msk [vmem:[%s335_s15] sm:$0xff] %vm7247_vm4, %v7245_v61 }
 0xb45 PF: > { %s19_s30 = sadd.s32 1, %s8409_s30  }
 0xb46   : > { %p16_p5 = scmp.ge.s32.totalorder %s19_s30, 4  }
 0xb48   :  { %18 = sbr.rel (!%p16_p5) target bundleno = 1 (0x1), region = 101 }

</bundles_post_ra>
